<compile_context>
chip_gen: v6e
topology: v6e:2x2x1
jax: 0.10.0
libtpu: 0.0.40
codegen_flags: <defaults>
</compile_context>

<pallas_src>
import numpy as np
import jax
import jax.numpy as jnp
from jax import lax
from jax.experimental import pallas as pl
from jax.experimental.pallas import tpu as pltpu


# ---------------------------------------------------------------------------
# Fused whole-network kernel (per grid step: one batch tile of `tb` images)
# ---------------------------------------------------------------------------

def _make_net_kernel(tb):
    def kernel(x_ref, c1_ref, cb1_ref, c2_ref, cb2_ref,
               w1_ref, fb1_ref, w4_ref, fb4_ref, w2_ref, fb2_ref,
               out_ref, h1_acc):
        f32, bf16 = jnp.float32, jnp.bfloat16

        # 0/1 row-selection matrices for the 2x2 max-pool along H
        # (built from iota, never touch HBM).
        def row_select(out_rows, in_rows, parity):
            r2 = lax.broadcasted_iota(jnp.int32, (out_rows, in_rows), 0)
            r = lax.broadcasted_iota(jnp.int32, (out_rows, in_rows), 1)
            return (r == 2 * r2 + parity).astype(bf16)

        s1e, s1o = row_select(14, 28, 0), row_select(14, 28, 1)
        s2e, s2o = row_select(5, 10, 0), row_select(5, 10, 1)

        def conv_relu_pool(src, n_conv_rows, c_ref, cb_ref, se, so):
            """src: (H, W*Cin) bf16.  Banded matmuls per kernel row for the two
            pool-column corners, max over corners, bias+relu, then row-pool via
            0/1 selection matmuls.  Returns (H2, W2*Cout) bf16."""
            acc0 = acc1 = None
            for i in range(c_ref.shape[0]):                 # kernel rows (5)
                lhs = src[i:i + n_conv_rows, :]             # (n_conv_rows, W*Cin)
                d0 = jnp.dot(lhs, c_ref[i, 0], preferred_element_type=f32)
                d1 = jnp.dot(lhs, c_ref[i, 1], preferred_element_type=f32)
                acc0 = d0 if acc0 is None else acc0 + d0
                acc1 = d1 if acc1 is None else acc1 + d1
            y = jnp.maximum(jnp.maximum(acc0, acc1) + cb_ref[...], 0.0)
            yb = y.astype(bf16)
            pooled = jnp.maximum(jnp.dot(se, yb, preferred_element_type=f32),
                                 jnp.dot(so, yb, preferred_element_type=f32))
            return pooled.astype(bf16)

        # --- per-image conv stages + fc1 partial (static unroll over tile) ---
        for b in range(tb):
            xb = x_ref[b]                                              # (32, 96)
            p1 = conv_relu_pool(xb, 28, c1_ref, cb1_ref, s1e, s1o)     # (14, 84)
            p2 = conv_relu_pool(p1, 10, c2_ref, cb2_ref, s2e, s2o)     # (5, 80)
            row = None                                                 # fc1 pre-bias
            for r2 in range(5):
                d = jnp.dot(p2[r2:r2 + 1, :], w1_ref[r2],
                            preferred_element_type=f32)                # (1, 1024)
                row = d if row is None else row + d
            h1_acc[b:b + 1, :] = row

        # --- batched FC epilogue on the whole tile (weights VMEM-resident) ---
        h = jnp.maximum(h1_acc[...] + fb1_ref[...], 0.0)               # (tb, 1024)
        h = jnp.maximum(jnp.dot(h.astype(bf16), w4_ref[...],
                                preferred_element_type=f32) + fb4_ref[...], 0.0)
        h = jnp.maximum(jnp.dot(h.astype(bf16), w2_ref[...],
                                preferred_element_type=f32) + fb2_ref[...], 0.0)
        out_ref[...] = h.astype(out_ref.dtype)

    return kernel


# ---------------------------------------------------------------------------
# Forward pass wrapper (one pallas_call, grid over batch tiles)
# ---------------------------------------------------------------------------

def net_forward(prep, x):
    """x: (B, 3, 32, 32) float32 (torch NCHW)."""
    B = x.shape[0]
    assert x.shape[1:] == (3, 32, 32)

    # NCHW -> (B, H, W*Cin) bf16 (tiny XLA relayout of the raw input).
    xk = jnp.transpose(x, (0, 2, 3, 1)).reshape(B, 32, 96).astype(jnp.bfloat16)

    # Batch tile of 8 images per grid step (pad batch if needed).
    if B % 8 == 0:
        tb, bp = 8, B
    elif B < 8:
        tb, bp = B, B
    else:
        tb, bp = 8, ((B + 7) // 8) * 8
    if bp != B:
        xk = jnp.pad(xk, ((0, bp - B), (0, 0), (0, 0)))
    grid = (bp // tb,)

    flops_per_image = 2 * (10 * 28 * 96 * 84 + 2 * 14 * 28 * 84
                           + 10 * 10 * 84 * 80 + 2 * 5 * 10 * 80
                           + 400 * 1024 + 1024 * 512 + 512 * 256)
    w_bytes = sum(int(np.prod(v.shape)) * v.dtype.itemsize for v in prep.values())
    cost = pl.CostEstimate(
        flops=int(bp * flops_per_image),
        transcendentals=0,
        bytes_accessed=int(bp * (32 * 96 * 2 + 256 * 4) + w_bytes))

    const = lambda *_: None  # noqa: E731  (placeholder; real maps below)

    out = pl.pallas_call(
        _make_net_kernel(tb),
        out_shape=jax.ShapeDtypeStruct((bp, 256), jnp.float32),
        grid=grid,
        in_specs=[
            pl.BlockSpec((tb, 32, 96), lambda n: (n, 0, 0)),        # images
            pl.BlockSpec((5, 2, 96, 84), lambda n: (0, 0, 0, 0)),   # conv1 banded
            pl.BlockSpec((1, 84), lambda n: (0, 0)),                # conv1 bias
            pl.BlockSpec((5, 2, 84, 80), lambda n: (0, 0, 0, 0)),   # conv2 banded
            pl.BlockSpec((1, 80), lambda n: (0, 0)),                # conv2 bias
            pl.BlockSpec((5, 80, 1024), lambda n: (0, 0, 0)),       # fc1 blocks
            pl.BlockSpec((1, 1024), lambda n: (0, 0)),              # fc1 bias
            pl.BlockSpec((1024, 512), lambda n: (0, 0)),            # fc4 w
            pl.BlockSpec((1, 512), lambda n: (0, 0)),               # fc4 bias
            pl.BlockSpec((512, 256), lambda n: (0, 0)),             # fc2 w
            pl.BlockSpec((1, 256), lambda n: (0, 0)),               # fc2 bias
        ],
        out_specs=pl.BlockSpec((tb, 256), lambda n: (n, 0)),
        scratch_shapes=[pltpu.VMEM((tb, 1024), jnp.float32)],
        compiler_params=pltpu.CompilerParams(
            dimension_semantics=("parallel",),
            vmem_limit_bytes=32 * 1024 * 1024),
        cost_estimate=cost,
    )(xk, prep["conv1_w"], prep["conv1_b"], prep["conv2_w"], prep["conv2_b"],
      prep["fc1_w"], prep["fc1_b"], prep["fc4_w"], prep["fc4_b"],
      prep["fc2_w"], prep["fc2_b"])
    return out[:B]


# ---------------------------------------------------------------------------
# Parameters (deterministic, synthetic; torch layouts) + one-time re-layout
# ---------------------------------------------------------------------------

def init_params():
    key = jax.random.PRNGKey(42)
    ks = jax.random.split(key, 12)

    def u(k, shape, fan_in):
        bound = 1.0 / jnp.sqrt(fan_in)
        return jax.random.uniform(k, shape, jnp.float32, -bound, bound)

    p = {}
    p["conv1_w"] = u(ks[0], (6, 3, 5, 5), 3 * 5 * 5)
    p["conv1_b"] = u(ks[1], (6,), 3 * 5 * 5)
    p["conv2_w"] = u(ks[2], (16, 6, 5, 5), 6 * 5 * 5)
    p["conv2_b"] = u(ks[3], (16,), 6 * 5 * 5)
    p["fc1_w"] = u(ks[4], (1024, 400), 400)   # torch Linear layout: (out, in)
    p["fc1_b"] = u(ks[5], (1024,), 400)
    p["fc4_w"] = u(ks[6], (512, 1024), 1024)
    p["fc4_b"] = u(ks[7], (512,), 1024)
    p["fc2_w"] = u(ks[8], (256, 512), 512)
    p["fc2_b"] = u(ks[9], (256,), 512)
    # fc3 exists in __init__ but is unused in forward(); kept for parity.
    p["fc3_w"] = u(ks[10], (10, 256), 256)
    p["fc3_b"] = u(ks[11], (10,), 256)
    return p


def prepare_params(p):
    """One-time weight re-layout (outside jit).

    Conv weights -> per-(kernel-row, pool-column-corner) banded matrices over the
    (W*Cin) -> (W2*Cout) lane layouts used in-kernel; fc1 -> 5 row blocks with
    torch's NCHW flatten permutation folded in; fc4/fc2 pre-transposed.
    Matmul operands bf16, biases f32 (tiled to the conv lane layouts)."""
    np_p = {k: np.asarray(v) for k, v in p.items()}

    def banded(w, in_w, pool_w):
        cout, cin, kh, kw = w.shape
        bm = np.zeros((kh, 2, in_w * cin, pool_w * cout), np.float32)
        for i in range(kh):
            for q in range(2):
                for c2 in range(pool_w):
                    for j in range(kw):
                        col = 2 * c2 + q + j
                        bm[i, q, col * cin:(col + 1) * cin,
                           c2 * cout:(c2 + 1) * cout] = w[:, :, i, j].T
        return bm

    q = {}
    q["conv1_w"] = jnp.asarray(banded(np_p["conv1_w"], 32, 14), jnp.bfloat16)
    q["conv1_b"] = jnp.asarray(np.tile(np_p["conv1_b"], 14)[None, :], jnp.float32)
    q["conv2_w"] = jnp.asarray(banded(np_p["conv2_w"], 14, 5), jnp.bfloat16)
    q["conv2_b"] = jnp.asarray(np.tile(np_p["conv2_b"], 5)[None, :], jnp.float32)

    # fc1: torch flatten index = co*25 + r2*5 + c2 ; kernel feature layout is
    # (r2, c2*16 + co)  ->  W1blk[r2, c2*16+co, o] = fc1_w[o, co*25 + r2*5 + c2].
    w1 = np_p["fc1_w"].reshape(1024, 16, 5, 5)                 # [o, co, r2, c2]
    w1 = np.transpose(w1, (2, 3, 1, 0)).reshape(5, 80, 1024)   # [r2, c2*16+co, o]
    q["fc1_w"] = jnp.asarray(w1, jnp.bfloat16)
    q["fc1_b"] = jnp.asarray(np_p["fc1_b"][None, :], jnp.float32)
    q["fc4_w"] = jnp.asarray(np_p["fc4_w"].T, jnp.bfloat16)
    q["fc4_b"] = jnp.asarray(np_p["fc4_b"][None, :], jnp.float32)
    q["fc2_w"] = jnp.asarray(np_p["fc2_w"].T, jnp.bfloat16)
    q["fc2_b"] = jnp.asarray(np_p["fc2_b"][None, :], jnp.float32)
    return q


# ---------------------------------------------------------------------------
# Pure-JAX/XLA reference (mimics the kernel's bf16 quantization points)
# ---------------------------------------------------------------------------

def reference_forward(p, x):
    f32, bf16 = jnp.float32, jnp.bfloat16
    B = x.shape[0]
    q = lambda a: a.astype(bf16).astype(f32)  # noqa: E731

    def conv_relu_pool(h, w, b):
        wq = q(jnp.transpose(w, (2, 3, 1, 0)))                 # HWIO
        y = lax.conv_general_dilated(h, wq, (1, 1), "VALID",
                                     dimension_numbers=("NHWC", "HWIO", "NHWC"))
        y = jnp.maximum(y + b, 0.0)
        Bo, H, W, C = y.shape
        y = y.reshape(Bo, H // 2, 2, W // 2, 2, C).max(axis=(2, 4))
        return q(y)

    h = q(jnp.transpose(x, (0, 2, 3, 1)))                      # NHWC
    h = conv_relu_pool(h, p["conv1_w"], p["conv1_b"])          # (B,14,14,6)
    h = conv_relu_pool(h, p["conv2_w"], p["conv2_b"])          # (B,5,5,16)
    h = jnp.transpose(h, (0, 3, 1, 2)).reshape(B, 400)         # torch NCHW flatten

    def fc(h, w, b):
        return jnp.maximum(q(h) @ q(w.T) + b, 0.0)

    h = fc(h, p["fc1_w"], p["fc1_b"])
    h = fc(h, p["fc4_w"], p["fc4_b"])
    h = fc(h, p["fc2_w"], p["fc2_b"])
    return h


# ---------------------------------------------------------------------------

if __name__ == "__main__":
    params = init_params()
    prep = prepare_params(params)   # one-time re-layout, outside jit

    # Input implied by the module: 3 channels, 32x32 (so flatten gives 16*5*5).
    x = jax.random.normal(jax.random.PRNGKey(0), (2, 3, 32, 32), jnp.float32)

    fwd = jax.jit(net_forward)
    out = fwd(prep, x)
    jax.block_until_ready(out)

    assert out.shape == (2, 256), out.shape
    assert out.dtype == jnp.float32
    assert bool(jnp.all(out >= 0.0))  # final op is a relu

    ref = reference_forward(params, x)
    rel_err = float(jnp.max(jnp.abs(out - ref)) / (jnp.max(jnp.abs(ref)) + 1e-6))
    assert rel_err < 2e-2, f"mismatch vs reference: rel err {rel_err}"

    print("KERNEL_OK")
</pallas_src>

<mosaic_0001>
module attributes {stable_mosaic.version = 11 : i64} {
  func.func @kernel(%arg0: i32, %arg1: memref<2x32x96xbf16, #tpu.memory_space<vmem>>, %arg2: memref<5x2x96x84xbf16, #tpu.memory_space<vmem>>, %arg3: memref<1x84xf32, #tpu.memory_space<vmem>>, %arg4: memref<5x2x84x80xbf16, #tpu.memory_space<vmem>>, %arg5: memref<1x80xf32, #tpu.memory_space<vmem>>, %arg6: memref<5x80x1024xbf16, #tpu.memory_space<vmem>>, %arg7: memref<1x1024xf32, #tpu.memory_space<vmem>>, %arg8: memref<1024x512xbf16, #tpu.memory_space<vmem>>, %arg9: memref<1x512xf32, #tpu.memory_space<vmem>>, %arg10: memref<512x256xbf16, #tpu.memory_space<vmem>>, %arg11: memref<1x256xf32, #tpu.memory_space<vmem>>, %arg12: memref<2x256xf32, #tpu.memory_space<vmem>>, %arg13: memref<2x1024xf32, #tpu.memory_space<vmem>>) attributes {dimension_semantics = [#tpu.dimension_semantics<parallel>], iteration_bounds = array<i64: 1>, scalar_prefetch = 0 : i64, scratch_operands = 1 : i64, tpu.core_type = #tpu.core_type<tc>, window_params = [{transform_indices = @transform_0, window_bounds = array<i64: 2, 32, 96>}, {pipeline_mode = #tpu.pipeline_mode<synchronous>, transform_indices = @transform_1, window_bounds = array<i64: 5, 2, 96, 84>}, {pipeline_mode = #tpu.pipeline_mode<synchronous>, transform_indices = @transform_2, window_bounds = array<i64: 1, 84>}, {pipeline_mode = #tpu.pipeline_mode<synchronous>, transform_indices = @transform_3, window_bounds = array<i64: 5, 2, 84, 80>}, {pipeline_mode = #tpu.pipeline_mode<synchronous>, transform_indices = @transform_4, window_bounds = array<i64: 1, 80>}, {pipeline_mode = #tpu.pipeline_mode<synchronous>, transform_indices = @transform_5, window_bounds = array<i64: 5, 80, 1024>}, {pipeline_mode = #tpu.pipeline_mode<synchronous>, transform_indices = @transform_6, window_bounds = array<i64: 1, 1024>}, {pipeline_mode = #tpu.pipeline_mode<synchronous>, transform_indices = @transform_7, window_bounds = array<i64: 1024, 512>}, {pipeline_mode = #tpu.pipeline_mode<synchronous>, transform_indices = @transform_8, window_bounds = array<i64: 1, 512>}, {pipeline_mode = #tpu.pipeline_mode<synchronous>, transform_indices = @transform_9, window_bounds = array<i64: 512, 256>}, {pipeline_mode = #tpu.pipeline_mode<synchronous>, transform_indices = @transform_10, window_bounds = array<i64: 1, 256>}, {transform_indices = @transform_11, window_bounds = array<i64: 2, 256>}]} {
    %0 = tpu.iota {dimensions = array<i32: 0>} : vector<14x28xi32>
    %1 = tpu.iota {dimensions = array<i32: 1>} : vector<14x28xi32>
    %c2_i32 = arith.constant 2 : i32
    %2 = vector.broadcast %c2_i32 : i32 to vector<14x28xi32>
    %3 = arith.muli %2, %0 : vector<14x28xi32>
    %c0_i32 = arith.constant 0 : i32
    %4 = vector.broadcast %c0_i32 : i32 to vector<14x28xi32>
    %5 = arith.addi %3, %4 : vector<14x28xi32>
    %6 = arith.cmpi eq, %1, %5 : vector<14x28xi32>
    %7 = arith.extui %6 : vector<14x28xi1> to vector<14x28xi32>
    %8 = arith.sitofp %7 : vector<14x28xi32> to vector<14x28xf32>
    %9 = arith.truncf %8 : vector<14x28xf32> to vector<14x28xbf16>
    %10 = tpu.iota {dimensions = array<i32: 0>} : vector<14x28xi32>
    %11 = tpu.iota {dimensions = array<i32: 1>} : vector<14x28xi32>
    %c2_i32_0 = arith.constant 2 : i32
    %12 = vector.broadcast %c2_i32_0 : i32 to vector<14x28xi32>
    %13 = arith.muli %12, %10 : vector<14x28xi32>
    %c1_i32 = arith.constant 1 : i32
    %14 = vector.broadcast %c1_i32 : i32 to vector<14x28xi32>
    %15 = arith.addi %13, %14 : vector<14x28xi32>
    %16 = arith.cmpi eq, %11, %15 : vector<14x28xi32>
    %17 = arith.extui %16 : vector<14x28xi1> to vector<14x28xi32>
    %18 = arith.sitofp %17 : vector<14x28xi32> to vector<14x28xf32>
    %19 = arith.truncf %18 : vector<14x28xf32> to vector<14x28xbf16>
    %20 = tpu.iota {dimensions = array<i32: 0>} : vector<5x10xi32>
    %21 = tpu.iota {dimensions = array<i32: 1>} : vector<5x10xi32>
    %c2_i32_1 = arith.constant 2 : i32
    %22 = vector.broadcast %c2_i32_1 : i32 to vector<5x10xi32>
    %23 = arith.muli %22, %20 : vector<5x10xi32>
    %c0_i32_2 = arith.constant 0 : i32
    %24 = vector.broadcast %c0_i32_2 : i32 to vector<5x10xi32>
    %25 = arith.addi %23, %24 : vector<5x10xi32>
    %26 = arith.cmpi eq, %21, %25 : vector<5x10xi32>
    %27 = arith.extui %26 : vector<5x10xi1> to vector<5x10xi32>
    %28 = arith.sitofp %27 : vector<5x10xi32> to vector<5x10xf32>
    %29 = arith.truncf %28 : vector<5x10xf32> to vector<5x10xbf16>
    %30 = tpu.iota {dimensions = array<i32: 0>} : vector<5x10xi32>
    %31 = tpu.iota {dimensions = array<i32: 1>} : vector<5x10xi32>
    %c2_i32_3 = arith.constant 2 : i32
    %32 = vector.broadcast %c2_i32_3 : i32 to vector<5x10xi32>
    %33 = arith.muli %32, %30 : vector<5x10xi32>
    %c1_i32_4 = arith.constant 1 : i32
    %34 = vector.broadcast %c1_i32_4 : i32 to vector<5x10xi32>
    %35 = arith.addi %33, %34 : vector<5x10xi32>
    %36 = arith.cmpi eq, %31, %35 : vector<5x10xi32>
    %37 = arith.extui %36 : vector<5x10xi1> to vector<5x10xi32>
    %38 = arith.sitofp %37 : vector<5x10xi32> to vector<5x10xf32>
    %39 = arith.truncf %38 : vector<5x10xf32> to vector<5x10xbf16>
    %c0 = arith.constant 0 : index
    %c0_5 = arith.constant 0 : index
    %c0_6 = arith.constant 0 : index
    %40 = vector.load %arg1[%c0, %c0_5, %c0_6] : memref<2x32x96xbf16, #tpu.memory_space<vmem>>, vector<1x32x96xbf16>
    %41 = vector.shape_cast %40 : vector<1x32x96xbf16> to vector<32x96xbf16>
    %42 = vector.extract_strided_slice %41 {offsets = [0, 0], sizes = [28, 96], strides = [1, 1]} : vector<32x96xbf16> to vector<28x96xbf16>
    %c0_7 = arith.constant 0 : index
    %c0_8 = arith.constant 0 : index
    %c0_9 = arith.constant 0 : index
    %c0_10 = arith.constant 0 : index
    %43 = vector.load %arg2[%c0_7, %c0_8, %c0_9, %c0_10] : memref<5x2x96x84xbf16, #tpu.memory_space<vmem>>, vector<1x1x96x84xbf16>
    %44 = vector.shape_cast %43 : vector<1x1x96x84xbf16> to vector<96x84xbf16>
    %cst = arith.constant dense<0.000000e+00> : vector<28x84xf32>
    %45 = tpu.matmul %42, %44, %cst {dimension_numbers = #tpu.dot_dimension_numbers<[1], [0], [0], [1], [0, 0, 1, 1], [], []>} : vector<28x96xbf16>, vector<96x84xbf16>, vector<28x84xf32> -> vector<28x84xf32>
    %c0_11 = arith.constant 0 : index
    %c1 = arith.constant 1 : index
    %c0_12 = arith.constant 0 : index
    %c0_13 = arith.constant 0 : index
    %46 = vector.load %arg2[%c0_11, %c1, %c0_12, %c0_13] : memref<5x2x96x84xbf16, #tpu.memory_space<vmem>>, vector<1x1x96x84xbf16>
    %47 = vector.shape_cast %46 : vector<1x1x96x84xbf16> to vector<96x84xbf16>
    %cst_14 = arith.constant dense<0.000000e+00> : vector<28x84xf32>
    %48 = tpu.matmul %42, %47, %cst_14 {dimension_numbers = #tpu.dot_dimension_numbers<[1], [0], [0], [1], [0, 0, 1, 1], [], []>} : vector<28x96xbf16>, vector<96x84xbf16>, vector<28x84xf32> -> vector<28x84xf32>
    %49 = vector.extract_strided_slice %41 {offsets = [1, 0], sizes = [28, 96], strides = [1, 1]} : vector<32x96xbf16> to vector<28x96xbf16>
    %c1_15 = arith.constant 1 : index
    %c0_16 = arith.constant 0 : index
    %c0_17 = arith.constant 0 : index
    %c0_18 = arith.constant 0 : index
    %50 = vector.load %arg2[%c1_15, %c0_16, %c0_17, %c0_18] : memref<5x2x96x84xbf16, #tpu.memory_space<vmem>>, vector<1x1x96x84xbf16>
    %51 = vector.shape_cast %50 : vector<1x1x96x84xbf16> to vector<96x84xbf16>
    %cst_19 = arith.constant dense<0.000000e+00> : vector<28x84xf32>
    %52 = tpu.matmul %49, %51, %cst_19 {dimension_numbers = #tpu.dot_dimension_numbers<[1], [0], [0], [1], [0, 0, 1, 1], [], []>} : vector<28x96xbf16>, vector<96x84xbf16>, vector<28x84xf32> -> vector<28x84xf32>
    %c1_20 = arith.constant 1 : index
    %c1_21 = arith.constant 1 : index
    %c0_22 = arith.constant 0 : index
    %c0_23 = arith.constant 0 : index
    %53 = vector.load %arg2[%c1_20, %c1_21, %c0_22, %c0_23] : memref<5x2x96x84xbf16, #tpu.memory_space<vmem>>, vector<1x1x96x84xbf16>
    %54 = vector.shape_cast %53 : vector<1x1x96x84xbf16> to vector<96x84xbf16>
    %cst_24 = arith.constant dense<0.000000e+00> : vector<28x84xf32>
    %55 = tpu.matmul %49, %54, %cst_24 {dimension_numbers = #tpu.dot_dimension_numbers<[1], [0], [0], [1], [0, 0, 1, 1], [], []>} : vector<28x96xbf16>, vector<96x84xbf16>, vector<28x84xf32> -> vector<28x84xf32>
    %56 = arith.addf %45, %52 : vector<28x84xf32>
    %57 = arith.addf %48, %55 : vector<28x84xf32>
    %58 = vector.extract_strided_slice %41 {offsets = [2, 0], sizes = [28, 96], strides = [1, 1]} : vector<32x96xbf16> to vector<28x96xbf16>
    %c2 = arith.constant 2 : index
    %c0_25 = arith.constant 0 : index
    %c0_26 = arith.constant 0 : index
    %c0_27 = arith.constant 0 : index
    %59 = vector.load %arg2[%c2, %c0_25, %c0_26, %c0_27] : memref<5x2x96x84xbf16, #tpu.memory_space<vmem>>, vector<1x1x96x84xbf16>
    %60 = vector.shape_cast %59 : vector<1x1x96x84xbf16> to vector<96x84xbf16>
    %cst_28 = arith.constant dense<0.000000e+00> : vector<28x84xf32>
    %61 = tpu.matmul %58, %60, %cst_28 {dimension_numbers = #tpu.dot_dimension_numbers<[1], [0], [0], [1], [0, 0, 1, 1], [], []>} : vector<28x96xbf16>, vector<96x84xbf16>, vector<28x84xf32> -> vector<28x84xf32>
    %c2_29 = arith.constant 2 : index
    %c1_30 = arith.constant 1 : index
    %c0_31 = arith.constant 0 : index
    %c0_32 = arith.constant 0 : index
    %62 = vector.load %arg2[%c2_29, %c1_30, %c0_31, %c0_32] : memref<5x2x96x84xbf16, #tpu.memory_space<vmem>>, vector<1x1x96x84xbf16>
    %63 = vector.shape_cast %62 : vector<1x1x96x84xbf16> to vector<96x84xbf16>
    %cst_33 = arith.constant dense<0.000000e+00> : vector<28x84xf32>
    %64 = tpu.matmul %58, %63, %cst_33 {dimension_numbers = #tpu.dot_dimension_numbers<[1], [0], [0], [1], [0, 0, 1, 1], [], []>} : vector<28x96xbf16>, vector<96x84xbf16>, vector<28x84xf32> -> vector<28x84xf32>
    %65 = arith.addf %56, %61 : vector<28x84xf32>
    %66 = arith.addf %57, %64 : vector<28x84xf32>
    %67 = vector.extract_strided_slice %41 {offsets = [3, 0], sizes = [28, 96], strides = [1, 1]} : vector<32x96xbf16> to vector<28x96xbf16>
    %c3 = arith.constant 3 : index
    %c0_34 = arith.constant 0 : index
    %c0_35 = arith.constant 0 : index
    %c0_36 = arith.constant 0 : index
    %68 = vector.load %arg2[%c3, %c0_34, %c0_35, %c0_36] : memref<5x2x96x84xbf16, #tpu.memory_space<vmem>>, vector<1x1x96x84xbf16>
    %69 = vector.shape_cast %68 : vector<1x1x96x84xbf16> to vector<96x84xbf16>
    %cst_37 = arith.constant dense<0.000000e+00> : vector<28x84xf32>
    %70 = tpu.matmul %67, %69, %cst_37 {dimension_numbers = #tpu.dot_dimension_numbers<[1], [0], [0], [1], [0, 0, 1, 1], [], []>} : vector<28x96xbf16>, vector<96x84xbf16>, vector<28x84xf32> -> vector<28x84xf32>
    %c3_38 = arith.constant 3 : index
    %c1_39 = arith.constant 1 : index
    %c0_40 = arith.constant 0 : index
    %c0_41 = arith.constant 0 : index
    %71 = vector.load %arg2[%c3_38, %c1_39, %c0_40, %c0_41] : memref<5x2x96x84xbf16, #tpu.memory_space<vmem>>, vector<1x1x96x84xbf16>
    %72 = vector.shape_cast %71 : vector<1x1x96x84xbf16> to vector<96x84xbf16>
    %cst_42 = arith.constant dense<0.000000e+00> : vector<28x84xf32>
    %73 = tpu.matmul %67, %72, %cst_42 {dimension_numbers = #tpu.dot_dimension_numbers<[1], [0], [0], [1], [0, 0, 1, 1], [], []>} : vector<28x96xbf16>, vector<96x84xbf16>, vector<28x84xf32> -> vector<28x84xf32>
    %74 = arith.addf %65, %70 : vector<28x84xf32>
    %75 = arith.addf %66, %73 : vector<28x84xf32>
    %76 = vector.extract_strided_slice %41 {offsets = [4, 0], sizes = [28, 96], strides = [1, 1]} : vector<32x96xbf16> to vector<28x96xbf16>
    %c4 = arith.constant 4 : index
    %c0_43 = arith.constant 0 : index
    %c0_44 = arith.constant 0 : index
    %c0_45 = arith.constant 0 : index
    %77 = vector.load %arg2[%c4, %c0_43, %c0_44, %c0_45] : memref<5x2x96x84xbf16, #tpu.memory_space<vmem>>, vector<1x1x96x84xbf16>
    %78 = vector.shape_cast %77 : vector<1x1x96x84xbf16> to vector<96x84xbf16>
    %cst_46 = arith.constant dense<0.000000e+00> : vector<28x84xf32>
    %79 = tpu.matmul %76, %78, %cst_46 {dimension_numbers = #tpu.dot_dimension_numbers<[1], [0], [0], [1], [0, 0, 1, 1], [], []>} : vector<28x96xbf16>, vector<96x84xbf16>, vector<28x84xf32> -> vector<28x84xf32>
    %c4_47 = arith.constant 4 : index
    %c1_48 = arith.constant 1 : index
    %c0_49 = arith.constant 0 : index
    %c0_50 = arith.constant 0 : index
    %80 = vector.load %arg2[%c4_47, %c1_48, %c0_49, %c0_50] : memref<5x2x96x84xbf16, #tpu.memory_space<vmem>>, vector<1x1x96x84xbf16>
    %81 = vector.shape_cast %80 : vector<1x1x96x84xbf16> to vector<96x84xbf16>
    %cst_51 = arith.constant dense<0.000000e+00> : vector<28x84xf32>
    %82 = tpu.matmul %76, %81, %cst_51 {dimension_numbers = #tpu.dot_dimension_numbers<[1], [0], [0], [1], [0, 0, 1, 1], [], []>} : vector<28x96xbf16>, vector<96x84xbf16>, vector<28x84xf32> -> vector<28x84xf32>
    %83 = arith.addf %74, %79 : vector<28x84xf32>
    %84 = arith.addf %75, %82 : vector<28x84xf32>
    %85 = arith.maximumf %83, %84 : vector<28x84xf32>
    %c0_52 = arith.constant 0 : index
    %c0_53 = arith.constant 0 : index
    %86 = vector.load %arg3[%c0_52, %c0_53] : memref<1x84xf32, #tpu.memory_space<vmem>>, vector<1x84xf32>
    %87 = vector.broadcast %86 : vector<1x84xf32> to vector<28x84xf32>
    %88 = arith.addf %85, %87 : vector<28x84xf32>
    %cst_54 = arith.constant 0.000000e+00 : f32
    %89 = vector.broadcast %cst_54 : f32 to vector<28x84xf32>
    %90 = arith.maximumf %88, %89 : vector<28x84xf32>
    %91 = arith.truncf %90 : vector<28x84xf32> to vector<28x84xbf16>
    %cst_55 = arith.constant dense<0.000000e+00> : vector<14x84xf32>
    %92 = tpu.matmul %9, %91, %cst_55 {dimension_numbers = #tpu.dot_dimension_numbers<[1], [0], [0], [1], [0, 0, 1, 1], [], []>} : vector<14x28xbf16>, vector<28x84xbf16>, vector<14x84xf32> -> vector<14x84xf32>
    %cst_56 = arith.constant dense<0.000000e+00> : vector<14x84xf32>
    %93 = tpu.matmul %19, %91, %cst_56 {dimension_numbers = #tpu.dot_dimension_numbers<[1], [0], [0], [1], [0, 0, 1, 1], [], []>} : vector<14x28xbf16>, vector<28x84xbf16>, vector<14x84xf32> -> vector<14x84xf32>
    %94 = arith.maximumf %92, %93 : vector<14x84xf32>
    %95 = arith.truncf %94 : vector<14x84xf32> to vector<14x84xbf16>
    %96 = vector.extract_strided_slice %95 {offsets = [0, 0], sizes = [10, 84], strides = [1, 1]} : vector<14x84xbf16> to vector<10x84xbf16>
    %c0_57 = arith.constant 0 : index
    %c0_58 = arith.constant 0 : index
    %c0_59 = arith.constant 0 : index
    %c0_60 = arith.constant 0 : index
    %97 = vector.load %arg4[%c0_57, %c0_58, %c0_59, %c0_60] : memref<5x2x84x80xbf16, #tpu.memory_space<vmem>>, vector<1x1x84x80xbf16>
    %98 = vector.shape_cast %97 : vector<1x1x84x80xbf16> to vector<84x80xbf16>
    %cst_61 = arith.constant dense<0.000000e+00> : vector<10x80xf32>
    %99 = tpu.matmul %96, %98, %cst_61 {dimension_numbers = #tpu.dot_dimension_numbers<[1], [0], [0], [1], [0, 0, 1, 1], [], []>} : vector<10x84xbf16>, vector<84x80xbf16>, vector<10x80xf32> -> vector<10x80xf32>
    %c0_62 = arith.constant 0 : index
    %c1_63 = arith.constant 1 : index
    %c0_64 = arith.constant 0 : index
    %c0_65 = arith.constant 0 : index
    %100 = vector.load %arg4[%c0_62, %c1_63, %c0_64, %c0_65] : memref<5x2x84x80xbf16, #tpu.memory_space<vmem>>, vector<1x1x84x80xbf16>
    %101 = vector.shape_cast %100 : vector<1x1x84x80xbf16> to vector<84x80xbf16>
    %cst_66 = arith.constant dense<0.000000e+00> : vector<10x80xf32>
    %102 = tpu.matmul %96, %101, %cst_66 {dimension_numbers = #tpu.dot_dimension_numbers<[1], [0], [0], [1], [0, 0, 1, 1], [], []>} : vector<10x84xbf16>, vector<84x80xbf16>, vector<10x80xf32> -> vector<10x80xf32>
    %103 = vector.extract_strided_slice %95 {offsets = [1, 0], sizes = [10, 84], strides = [1, 1]} : vector<14x84xbf16> to vector<10x84xbf16>
    %c1_67 = arith.constant 1 : index
    %c0_68 = arith.constant 0 : index
    %c0_69 = arith.constant 0 : index
    %c0_70 = arith.constant 0 : index
    %104 = vector.load %arg4[%c1_67, %c0_68, %c0_69, %c0_70] : memref<5x2x84x80xbf16, #tpu.memory_space<vmem>>, vector<1x1x84x80xbf16>
    %105 = vector.shape_cast %104 : vector<1x1x84x80xbf16> to vector<84x80xbf16>
    %cst_71 = arith.constant dense<0.000000e+00> : vector<10x80xf32>
    %106 = tpu.matmul %103, %105, %cst_71 {dimension_numbers = #tpu.dot_dimension_numbers<[1], [0], [0], [1], [0, 0, 1, 1], [], []>} : vector<10x84xbf16>, vector<84x80xbf16>, vector<10x80xf32> -> vector<10x80xf32>
    %c1_72 = arith.constant 1 : index
    %c1_73 = arith.constant 1 : index
    %c0_74 = arith.constant 0 : index
    %c0_75 = arith.constant 0 : index
    %107 = vector.load %arg4[%c1_72, %c1_73, %c0_74, %c0_75] : memref<5x2x84x80xbf16, #tpu.memory_space<vmem>>, vector<1x1x84x80xbf16>
    %108 = vector.shape_cast %107 : vector<1x1x84x80xbf16> to vector<84x80xbf16>
    %cst_76 = arith.constant dense<0.000000e+00> : vector<10x80xf32>
    %109 = tpu.matmul %103, %108, %cst_76 {dimension_numbers = #tpu.dot_dimension_numbers<[1], [0], [0], [1], [0, 0, 1, 1], [], []>} : vector<10x84xbf16>, vector<84x80xbf16>, vector<10x80xf32> -> vector<10x80xf32>
    %110 = arith.addf %99, %106 : vector<10x80xf32>
    %111 = arith.addf %102, %109 : vector<10x80xf32>
    %112 = vector.extract_strided_slice %95 {offsets = [2, 0], sizes = [10, 84], strides = [1, 1]} : vector<14x84xbf16> to vector<10x84xbf16>
    %c2_77 = arith.constant 2 : index
    %c0_78 = arith.constant 0 : index
    %c0_79 = arith.constant 0 : index
    %c0_80 = arith.constant 0 : index
    %113 = vector.load %arg4[%c2_77, %c0_78, %c0_79, %c0_80] : memref<5x2x84x80xbf16, #tpu.memory_space<vmem>>, vector<1x1x84x80xbf16>
    %114 = vector.shape_cast %113 : vector<1x1x84x80xbf16> to vector<84x80xbf16>
    %cst_81 = arith.constant dense<0.000000e+00> : vector<10x80xf32>
    %115 = tpu.matmul %112, %114, %cst_81 {dimension_numbers = #tpu.dot_dimension_numbers<[1], [0], [0], [1], [0, 0, 1, 1], [], []>} : vector<10x84xbf16>, vector<84x80xbf16>, vector<10x80xf32> -> vector<10x80xf32>
    %c2_82 = arith.constant 2 : index
    %c1_83 = arith.constant 1 : index
    %c0_84 = arith.constant 0 : index
    %c0_85 = arith.constant 0 : index
    %116 = vector.load %arg4[%c2_82, %c1_83, %c0_84, %c0_85] : memref<5x2x84x80xbf16, #tpu.memory_space<vmem>>, vector<1x1x84x80xbf16>
    %117 = vector.shape_cast %116 : vector<1x1x84x80xbf16> to vector<84x80xbf16>
    %cst_86 = arith.constant dense<0.000000e+00> : vector<10x80xf32>
    %118 = tpu.matmul %112, %117, %cst_86 {dimension_numbers = #tpu.dot_dimension_numbers<[1], [0], [0], [1], [0, 0, 1, 1], [], []>} : vector<10x84xbf16>, vector<84x80xbf16>, vector<10x80xf32> -> vector<10x80xf32>
    %119 = arith.addf %110, %115 : vector<10x80xf32>
    %120 = arith.addf %111, %118 : vector<10x80xf32>
    %121 = vector.extract_strided_slice %95 {offsets = [3, 0], sizes = [10, 84], strides = [1, 1]} : vector<14x84xbf16> to vector<10x84xbf16>
    %c3_87 = arith.constant 3 : index
    %c0_88 = arith.constant 0 : index
    %c0_89 = arith.constant 0 : index
    %c0_90 = arith.constant 0 : index
    %122 = vector.load %arg4[%c3_87, %c0_88, %c0_89, %c0_90] : memref<5x2x84x80xbf16, #tpu.memory_space<vmem>>, vector<1x1x84x80xbf16>
    %123 = vector.shape_cast %122 : vector<1x1x84x80xbf16> to vector<84x80xbf16>
    %cst_91 = arith.constant dense<0.000000e+00> : vector<10x80xf32>
    %124 = tpu.matmul %121, %123, %cst_91 {dimension_numbers = #tpu.dot_dimension_numbers<[1], [0], [0], [1], [0, 0, 1, 1], [], []>} : vector<10x84xbf16>, vector<84x80xbf16>, vector<10x80xf32> -> vector<10x80xf32>
    %c3_92 = arith.constant 3 : index
    %c1_93 = arith.constant 1 : index
    %c0_94 = arith.constant 0 : index
    %c0_95 = arith.constant 0 : index
    %125 = vector.load %arg4[%c3_92, %c1_93, %c0_94, %c0_95] : memref<5x2x84x80xbf16, #tpu.memory_space<vmem>>, vector<1x1x84x80xbf16>
    %126 = vector.shape_cast %125 : vector<1x1x84x80xbf16> to vector<84x80xbf16>
    %cst_96 = arith.constant dense<0.000000e+00> : vector<10x80xf32>
    %127 = tpu.matmul %121, %126, %cst_96 {dimension_numbers = #tpu.dot_dimension_numbers<[1], [0], [0], [1], [0, 0, 1, 1], [], []>} : vector<10x84xbf16>, vector<84x80xbf16>, vector<10x80xf32> -> vector<10x80xf32>
    %128 = arith.addf %119, %124 : vector<10x80xf32>
    %129 = arith.addf %120, %127 : vector<10x80xf32>
    %130 = vector.extract_strided_slice %95 {offsets = [4, 0], sizes = [10, 84], strides = [1, 1]} : vector<14x84xbf16> to vector<10x84xbf16>
    %c4_97 = arith.constant 4 : index
    %c0_98 = arith.constant 0 : index
    %c0_99 = arith.constant 0 : index
    %c0_100 = arith.constant 0 : index
    %131 = vector.load %arg4[%c4_97, %c0_98, %c0_99, %c0_100] : memref<5x2x84x80xbf16, #tpu.memory_space<vmem>>, vector<1x1x84x80xbf16>
    %132 = vector.shape_cast %131 : vector<1x1x84x80xbf16> to vector<84x80xbf16>
    %cst_101 = arith.constant dense<0.000000e+00> : vector<10x80xf32>
    %133 = tpu.matmul %130, %132, %cst_101 {dimension_numbers = #tpu.dot_dimension_numbers<[1], [0], [0], [1], [0, 0, 1, 1], [], []>} : vector<10x84xbf16>, vector<84x80xbf16>, vector<10x80xf32> -> vector<10x80xf32>
    %c4_102 = arith.constant 4 : index
    %c1_103 = arith.constant 1 : index
    %c0_104 = arith.constant 0 : index
    %c0_105 = arith.constant 0 : index
    %134 = vector.load %arg4[%c4_102, %c1_103, %c0_104, %c0_105] : memref<5x2x84x80xbf16, #tpu.memory_space<vmem>>, vector<1x1x84x80xbf16>
    %135 = vector.shape_cast %134 : vector<1x1x84x80xbf16> to vector<84x80xbf16>
    %cst_106 = arith.constant dense<0.000000e+00> : vector<10x80xf32>
    %136 = tpu.matmul %130, %135, %cst_106 {dimension_numbers = #tpu.dot_dimension_numbers<[1], [0], [0], [1], [0, 0, 1, 1], [], []>} : vector<10x84xbf16>, vector<84x80xbf16>, vector<10x80xf32> -> vector<10x80xf32>
    %137 = arith.addf %128, %133 : vector<10x80xf32>
    %138 = arith.addf %129, %136 : vector<10x80xf32>
    %139 = arith.maximumf %137, %138 : vector<10x80xf32>
    %c0_107 = arith.constant 0 : index
    %c0_108 = arith.constant 0 : index
    %140 = vector.load %arg5[%c0_107, %c0_108] : memref<1x80xf32, #tpu.memory_space<vmem>>, vector<1x80xf32>
    %141 = vector.broadcast %140 : vector<1x80xf32> to vector<10x80xf32>
    %142 = arith.addf %139, %141 : vector<10x80xf32>
    %cst_109 = arith.constant 0.000000e+00 : f32
    %143 = vector.broadcast %cst_109 : f32 to vector<10x80xf32>
    %144 = arith.maximumf %142, %143 : vector<10x80xf32>
    %145 = arith.truncf %144 : vector<10x80xf32> to vector<10x80xbf16>
    %cst_110 = arith.constant dense<0.000000e+00> : vector<5x80xf32>
    %146 = tpu.matmul %29, %145, %cst_110 {dimension_numbers = #tpu.dot_dimension_numbers<[1], [0], [0], [1], [0, 0, 1, 1], [], []>} : vector<5x10xbf16>, vector<10x80xbf16>, vector<5x80xf32> -> vector<5x80xf32>
    %cst_111 = arith.constant dense<0.000000e+00> : vector<5x80xf32>
    %147 = tpu.matmul %39, %145, %cst_111 {dimension_numbers = #tpu.dot_dimension_numbers<[1], [0], [0], [1], [0, 0, 1, 1], [], []>} : vector<5x10xbf16>, vector<10x80xbf16>, vector<5x80xf32> -> vector<5x80xf32>
    %148 = arith.maximumf %146, %147 : vector<5x80xf32>
    %149 = arith.truncf %148 : vector<5x80xf32> to vector<5x80xbf16>
    %150 = vector.extract_strided_slice %149 {offsets = [0, 0], sizes = [1, 80], strides = [1, 1]} : vector<5x80xbf16> to vector<1x80xbf16>
    %c0_112 = arith.constant 0 : index
    %c0_113 = arith.constant 0 : index
    %c0_114 = arith.constant 0 : index
    %151 = vector.load %arg6[%c0_112, %c0_113, %c0_114] : memref<5x80x1024xbf16, #tpu.memory_space<vmem>>, vector<1x80x1024xbf16>
    %152 = vector.shape_cast %151 : vector<1x80x1024xbf16> to vector<80x1024xbf16>
    %cst_115 = arith.constant dense<0.000000e+00> : vector<1x1024xf32>
    %153 = tpu.matmul %150, %152, %cst_115 {dimension_numbers = #tpu.dot_dimension_numbers<[1], [0], [0], [1], [0, 0, 1, 1], [], []>} : vector<1x80xbf16>, vector<80x1024xbf16>, vector<1x1024xf32> -> vector<1x1024xf32>
    %154 = vector.extract_strided_slice %149 {offsets = [1, 0], sizes = [1, 80], strides = [1, 1]} : vector<5x80xbf16> to vector<1x80xbf16>
    %c1_116 = arith.constant 1 : index
    %c0_117 = arith.constant 0 : index
    %c0_118 = arith.constant 0 : index
    %155 = vector.load %arg6[%c1_116, %c0_117, %c0_118] : memref<5x80x1024xbf16, #tpu.memory_space<vmem>>, vector<1x80x1024xbf16>
    %156 = vector.shape_cast %155 : vector<1x80x1024xbf16> to vector<80x1024xbf16>
    %cst_119 = arith.constant dense<0.000000e+00> : vector<1x1024xf32>
    %157 = tpu.matmul %154, %156, %cst_119 {dimension_numbers = #tpu.dot_dimension_numbers<[1], [0], [0], [1], [0, 0, 1, 1], [], []>} : vector<1x80xbf16>, vector<80x1024xbf16>, vector<1x1024xf32> -> vector<1x1024xf32>
    %158 = arith.addf %153, %157 : vector<1x1024xf32>
    %159 = vector.extract_strided_slice %149 {offsets = [2, 0], sizes = [1, 80], strides = [1, 1]} : vector<5x80xbf16> to vector<1x80xbf16>
    %c2_120 = arith.constant 2 : index
    %c0_121 = arith.constant 0 : index
    %c0_122 = arith.constant 0 : index
    %160 = vector.load %arg6[%c2_120, %c0_121, %c0_122] : memref<5x80x1024xbf16, #tpu.memory_space<vmem>>, vector<1x80x1024xbf16>
    %161 = vector.shape_cast %160 : vector<1x80x1024xbf16> to vector<80x1024xbf16>
    %cst_123 = arith.constant dense<0.000000e+00> : vector<1x1024xf32>
    %162 = tpu.matmul %159, %161, %cst_123 {dimension_numbers = #tpu.dot_dimension_numbers<[1], [0], [0], [1], [0, 0, 1, 1], [], []>} : vector<1x80xbf16>, vector<80x1024xbf16>, vector<1x1024xf32> -> vector<1x1024xf32>
    %163 = arith.addf %158, %162 : vector<1x1024xf32>
    %164 = vector.extract_strided_slice %149 {offsets = [3, 0], sizes = [1, 80], strides = [1, 1]} : vector<5x80xbf16> to vector<1x80xbf16>
    %c3_124 = arith.constant 3 : index
    %c0_125 = arith.constant 0 : index
    %c0_126 = arith.constant 0 : index
    %165 = vector.load %arg6[%c3_124, %c0_125, %c0_126] : memref<5x80x1024xbf16, #tpu.memory_space<vmem>>, vector<1x80x1024xbf16>
    %166 = vector.shape_cast %165 : vector<1x80x1024xbf16> to vector<80x1024xbf16>
    %cst_127 = arith.constant dense<0.000000e+00> : vector<1x1024xf32>
    %167 = tpu.matmul %164, %166, %cst_127 {dimension_numbers = #tpu.dot_dimension_numbers<[1], [0], [0], [1], [0, 0, 1, 1], [], []>} : vector<1x80xbf16>, vector<80x1024xbf16>, vector<1x1024xf32> -> vector<1x1024xf32>
    %168 = arith.addf %163, %167 : vector<1x1024xf32>
    %169 = vector.extract_strided_slice %149 {offsets = [4, 0], sizes = [1, 80], strides = [1, 1]} : vector<5x80xbf16> to vector<1x80xbf16>
    %c4_128 = arith.constant 4 : index
    %c0_129 = arith.constant 0 : index
    %c0_130 = arith.constant 0 : index
    %170 = vector.load %arg6[%c4_128, %c0_129, %c0_130] : memref<5x80x1024xbf16, #tpu.memory_space<vmem>>, vector<1x80x1024xbf16>
    %171 = vector.shape_cast %170 : vector<1x80x1024xbf16> to vector<80x1024xbf16>
    %cst_131 = arith.constant dense<0.000000e+00> : vector<1x1024xf32>
    %172 = tpu.matmul %169, %171, %cst_131 {dimension_numbers = #tpu.dot_dimension_numbers<[1], [0], [0], [1], [0, 0, 1, 1], [], []>} : vector<1x80xbf16>, vector<80x1024xbf16>, vector<1x1024xf32> -> vector<1x1024xf32>
    %173 = arith.addf %168, %172 : vector<1x1024xf32>
    %c0_132 = arith.constant 0 : index
    %c0_133 = arith.constant 0 : index
    %174 = vector.load %arg13[%c0_132, %c0_133] : memref<2x1024xf32, #tpu.memory_space<vmem>>, vector<1x1024xf32>
    tpu.vector_store %arg13[%c0_132, %c0_133], %173 {strides = array<i32>} : memref<2x1024xf32, #tpu.memory_space<vmem>>, vector<1x1024xf32>,
    %c1_134 = arith.constant 1 : index
    %c0_135 = arith.constant 0 : index
    %c0_136 = arith.constant 0 : index
    %175 = vector.load %arg1[%c1_134, %c0_135, %c0_136] : memref<2x32x96xbf16, #tpu.memory_space<vmem>>, vector<1x32x96xbf16>
    %176 = vector.shape_cast %175 : vector<1x32x96xbf16> to vector<32x96xbf16>
    %177 = vector.extract_strided_slice %176 {offsets = [0, 0], sizes = [28, 96], strides = [1, 1]} : vector<32x96xbf16> to vector<28x96xbf16>
    %c0_137 = arith.constant 0 : index
    %c0_138 = arith.constant 0 : index
    %c0_139 = arith.constant 0 : index
    %c0_140 = arith.constant 0 : index
    %178 = vector.load %arg2[%c0_137, %c0_138, %c0_139, %c0_140] : memref<5x2x96x84xbf16, #tpu.memory_space<vmem>>, vector<1x1x96x84xbf16>
    %179 = vector.shape_cast %178 : vector<1x1x96x84xbf16> to vector<96x84xbf16>
    %cst_141 = arith.constant dense<0.000000e+00> : vector<28x84xf32>
    %180 = tpu.matmul %177, %179, %cst_141 {dimension_numbers = #tpu.dot_dimension_numbers<[1], [0], [0], [1], [0, 0, 1, 1], [], []>} : vector<28x96xbf16>, vector<96x84xbf16>, vector<28x84xf32> -> vector<28x84xf32>
    %c0_142 = arith.constant 0 : index
    %c1_143 = arith.constant 1 : index
    %c0_144 = arith.constant 0 : index
    %c0_145 = arith.constant 0 : index
    %181 = vector.load %arg2[%c0_142, %c1_143, %c0_144, %c0_145] : memref<5x2x96x84xbf16, #tpu.memory_space<vmem>>, vector<1x1x96x84xbf16>
    %182 = vector.shape_cast %181 : vector<1x1x96x84xbf16> to vector<96x84xbf16>
    %cst_146 = arith.constant dense<0.000000e+00> : vector<28x84xf32>
    %183 = tpu.matmul %177, %182, %cst_146 {dimension_numbers = #tpu.dot_dimension_numbers<[1], [0], [0], [1], [0, 0, 1, 1], [], []>} : vector<28x96xbf16>, vector<96x84xbf16>, vector<28x84xf32> -> vector<28x84xf32>
    %184 = vector.extract_strided_slice %176 {offsets = [1, 0], sizes = [28, 96], strides = [1, 1]} : vector<32x96xbf16> to vector<28x96xbf16>
    %c1_147 = arith.constant 1 : index
    %c0_148 = arith.constant 0 : index
    %c0_149 = arith.constant 0 : index
    %c0_150 = arith.constant 0 : index
    %185 = vector.load %arg2[%c1_147, %c0_148, %c0_149, %c0_150] : memref<5x2x96x84xbf16, #tpu.memory_space<vmem>>, vector<1x1x96x84xbf16>
    %186 = vector.shape_cast %185 : vector<1x1x96x84xbf16> to vector<96x84xbf16>
    %cst_151 = arith.constant dense<0.000000e+00> : vector<28x84xf32>
    %187 = tpu.matmul %184, %186, %cst_151 {dimension_numbers = #tpu.dot_dimension_numbers<[1], [0], [0], [1], [0, 0, 1, 1], [], []>} : vector<28x96xbf16>, vector<96x84xbf16>, vector<28x84xf32> -> vector<28x84xf32>
    %c1_152 = arith.constant 1 : index
    %c1_153 = arith.constant 1 : index
    %c0_154 = arith.constant 0 : index
    %c0_155 = arith.constant 0 : index
    %188 = vector.load %arg2[%c1_152, %c1_153, %c0_154, %c0_155] : memref<5x2x96x84xbf16, #tpu.memory_space<vmem>>, vector<1x1x96x84xbf16>
    %189 = vector.shape_cast %188 : vector<1x1x96x84xbf16> to vector<96x84xbf16>
    %cst_156 = arith.constant dense<0.000000e+00> : vector<28x84xf32>
    %190 = tpu.matmul %184, %189, %cst_156 {dimension_numbers = #tpu.dot_dimension_numbers<[1], [0], [0], [1], [0, 0, 1, 1], [], []>} : vector<28x96xbf16>, vector<96x84xbf16>, vector<28x84xf32> -> vector<28x84xf32>
    %191 = arith.addf %180, %187 : vector<28x84xf32>
    %192 = arith.addf %183, %190 : vector<28x84xf32>
    %193 = vector.extract_strided_slice %176 {offsets = [2, 0], sizes = [28, 96], strides = [1, 1]} : vector<32x96xbf16> to vector<28x96xbf16>
    %c2_157 = arith.constant 2 : index
    %c0_158 = arith.constant 0 : index
    %c0_159 = arith.constant 0 : index
    %c0_160 = arith.constant 0 : index
    %194 = vector.load %arg2[%c2_157, %c0_158, %c0_159, %c0_160] : memref<5x2x96x84xbf16, #tpu.memory_space<vmem>>, vector<1x1x96x84xbf16>
    %195 = vector.shape_cast %194 : vector<1x1x96x84xbf16> to vector<96x84xbf16>
    %cst_161 = arith.constant dense<0.000000e+00> : vector<28x84xf32>
    %196 = tpu.matmul %193, %195, %cst_161 {dimension_numbers = #tpu.dot_dimension_numbers<[1], [0], [0], [1], [0, 0, 1, 1], [], []>} : vector<28x96xbf16>, vector<96x84xbf16>, vector<28x84xf32> -> vector<28x84xf32>
    %c2_162 = arith.constant 2 : index
    %c1_163 = arith.constant 1 : index
    %c0_164 = arith.constant 0 : index
    %c0_165 = arith.constant 0 : index
    %197 = vector.load %arg2[%c2_162, %c1_163, %c0_164, %c0_165] : memref<5x2x96x84xbf16, #tpu.memory_space<vmem>>, vector<1x1x96x84xbf16>
    %198 = vector.shape_cast %197 : vector<1x1x96x84xbf16> to vector<96x84xbf16>
    %cst_166 = arith.constant dense<0.000000e+00> : vector<28x84xf32>
    %199 = tpu.matmul %193, %198, %cst_166 {dimension_numbers = #tpu.dot_dimension_numbers<[1], [0], [0], [1], [0, 0, 1, 1], [], []>} : vector<28x96xbf16>, vector<96x84xbf16>, vector<28x84xf32> -> vector<28x84xf32>
    %200 = arith.addf %191, %196 : vector<28x84xf32>
    %201 = arith.addf %192, %199 : vector<28x84xf32>
    %202 = vector.extract_strided_slice %176 {offsets = [3, 0], sizes = [28, 96], strides = [1, 1]} : vector<32x96xbf16> to vector<28x96xbf16>
    %c3_167 = arith.constant 3 : index
    %c0_168 = arith.constant 0 : index
    %c0_169 = arith.constant 0 : index
    %c0_170 = arith.constant 0 : index
    %203 = vector.load %arg2[%c3_167, %c0_168, %c0_169, %c0_170] : memref<5x2x96x84xbf16, #tpu.memory_space<vmem>>, vector<1x1x96x84xbf16>
    %204 = vector.shape_cast %203 : vector<1x1x96x84xbf16> to vector<96x84xbf16>
    %cst_171 = arith.constant dense<0.000000e+00> : vector<28x84xf32>
    %205 = tpu.matmul %202, %204, %cst_171 {dimension_numbers = #tpu.dot_dimension_numbers<[1], [0], [0], [1], [0, 0, 1, 1], [], []>} : vector<28x96xbf16>, vector<96x84xbf16>, vector<28x84xf32> -> vector<28x84xf32>
    %c3_172 = arith.constant 3 : index
    %c1_173 = arith.constant 1 : index
    %c0_174 = arith.constant 0 : index
    %c0_175 = arith.constant 0 : index
    %206 = vector.load %arg2[%c3_172, %c1_173, %c0_174, %c0_175] : memref<5x2x96x84xbf16, #tpu.memory_space<vmem>>, vector<1x1x96x84xbf16>
    %207 = vector.shape_cast %206 : vector<1x1x96x84xbf16> to vector<96x84xbf16>
    %cst_176 = arith.constant dense<0.000000e+00> : vector<28x84xf32>
    %208 = tpu.matmul %202, %207, %cst_176 {dimension_numbers = #tpu.dot_dimension_numbers<[1], [0], [0], [1], [0, 0, 1, 1], [], []>} : vector<28x96xbf16>, vector<96x84xbf16>, vector<28x84xf32> -> vector<28x84xf32>
    %209 = arith.addf %200, %205 : vector<28x84xf32>
    %210 = arith.addf %201, %208 : vector<28x84xf32>
    %211 = vector.extract_strided_slice %176 {offsets = [4, 0], sizes = [28, 96], strides = [1, 1]} : vector<32x96xbf16> to vector<28x96xbf16>
    %c4_177 = arith.constant 4 : index
    %c0_178 = arith.constant 0 : index
    %c0_179 = arith.constant 0 : index
    %c0_180 = arith.constant 0 : index
    %212 = vector.load %arg2[%c4_177, %c0_178, %c0_179, %c0_180] : memref<5x2x96x84xbf16, #tpu.memory_space<vmem>>, vector<1x1x96x84xbf16>
    %213 = vector.shape_cast %212 : vector<1x1x96x84xbf16> to vector<96x84xbf16>
    %cst_181 = arith.constant dense<0.000000e+00> : vector<28x84xf32>
    %214 = tpu.matmul %211, %213, %cst_181 {dimension_numbers = #tpu.dot_dimension_numbers<[1], [0], [0], [1], [0, 0, 1, 1], [], []>} : vector<28x96xbf16>, vector<96x84xbf16>, vector<28x84xf32> -> vector<28x84xf32>
    %c4_182 = arith.constant 4 : index
    %c1_183 = arith.constant 1 : index
    %c0_184 = arith.constant 0 : index
    %c0_185 = arith.constant 0 : index
    %215 = vector.load %arg2[%c4_182, %c1_183, %c0_184, %c0_185] : memref<5x2x96x84xbf16, #tpu.memory_space<vmem>>, vector<1x1x96x84xbf16>
    %216 = vector.shape_cast %215 : vector<1x1x96x84xbf16> to vector<96x84xbf16>
    %cst_186 = arith.constant dense<0.000000e+00> : vector<28x84xf32>
    %217 = tpu.matmul %211, %216, %cst_186 {dimension_numbers = #tpu.dot_dimension_numbers<[1], [0], [0], [1], [0, 0, 1, 1], [], []>} : vector<28x96xbf16>, vector<96x84xbf16>, vector<28x84xf32> -> vector<28x84xf32>
    %218 = arith.addf %209, %214 : vector<28x84xf32>
    %219 = arith.addf %210, %217 : vector<28x84xf32>
    %220 = arith.maximumf %218, %219 : vector<28x84xf32>
    %c0_187 = arith.constant 0 : index
    %c0_188 = arith.constant 0 : index
    %221 = vector.load %arg3[%c0_187, %c0_188] : memref<1x84xf32, #tpu.memory_space<vmem>>, vector<1x84xf32>
    %222 = vector.broadcast %221 : vector<1x84xf32> to vector<28x84xf32>
    %223 = arith.addf %220, %222 : vector<28x84xf32>
    %cst_189 = arith.constant 0.000000e+00 : f32
    %224 = vector.broadcast %cst_189 : f32 to vector<28x84xf32>
    %225 = arith.maximumf %223, %224 : vector<28x84xf32>
    %226 = arith.truncf %225 : vector<28x84xf32> to vector<28x84xbf16>
    %cst_190 = arith.constant dense<0.000000e+00> : vector<14x84xf32>
    %227 = tpu.matmul %9, %226, %cst_190 {dimension_numbers = #tpu.dot_dimension_numbers<[1], [0], [0], [1], [0, 0, 1, 1], [], []>} : vector<14x28xbf16>, vector<28x84xbf16>, vector<14x84xf32> -> vector<14x84xf32>
    %cst_191 = arith.constant dense<0.000000e+00> : vector<14x84xf32>
    %228 = tpu.matmul %19, %226, %cst_191 {dimension_numbers = #tpu.dot_dimension_numbers<[1], [0], [0], [1], [0, 0, 1, 1], [], []>} : vector<14x28xbf16>, vector<28x84xbf16>, vector<14x84xf32> -> vector<14x84xf32>
    %229 = arith.maximumf %227, %228 : vector<14x84xf32>
    %230 = arith.truncf %229 : vector<14x84xf32> to vector<14x84xbf16>
    %231 = vector.extract_strided_slice %230 {offsets = [0, 0], sizes = [10, 84], strides = [1, 1]} : vector<14x84xbf16> to vector<10x84xbf16>
    %c0_192 = arith.constant 0 : index
    %c0_193 = arith.constant 0 : index
    %c0_194 = arith.constant 0 : index
    %c0_195 = arith.constant 0 : index
    %232 = vector.load %arg4[%c0_192, %c0_193, %c0_194, %c0_195] : memref<5x2x84x80xbf16, #tpu.memory_space<vmem>>, vector<1x1x84x80xbf16>
    %233 = vector.shape_cast %232 : vector<1x1x84x80xbf16> to vector<84x80xbf16>
    %cst_196 = arith.constant dense<0.000000e+00> : vector<10x80xf32>
    %234 = tpu.matmul %231, %233, %cst_196 {dimension_numbers = #tpu.dot_dimension_numbers<[1], [0], [0], [1], [0, 0, 1, 1], [], []>} : vector<10x84xbf16>, vector<84x80xbf16>, vector<10x80xf32> -> vector<10x80xf32>
    %c0_197 = arith.constant 0 : index
    %c1_198 = arith.constant 1 : index
    %c0_199 = arith.constant 0 : index
    %c0_200 = arith.constant 0 : index
    %235 = vector.load %arg4[%c0_197, %c1_198, %c0_199, %c0_200] : memref<5x2x84x80xbf16, #tpu.memory_space<vmem>>, vector<1x1x84x80xbf16>
    %236 = vector.shape_cast %235 : vector<1x1x84x80xbf16> to vector<84x80xbf16>
    %cst_201 = arith.constant dense<0.000000e+00> : vector<10x80xf32>
    %237 = tpu.matmul %231, %236, %cst_201 {dimension_numbers = #tpu.dot_dimension_numbers<[1], [0], [0], [1], [0, 0, 1, 1], [], []>} : vector<10x84xbf16>, vector<84x80xbf16>, vector<10x80xf32> -> vector<10x80xf32>
    %238 = vector.extract_strided_slice %230 {offsets = [1, 0], sizes = [10, 84], strides = [1, 1]} : vector<14x84xbf16> to vector<10x84xbf16>
    %c1_202 = arith.constant 1 : index
    %c0_203 = arith.constant 0 : index
    %c0_204 = arith.constant 0 : index
    %c0_205 = arith.constant 0 : index
    %239 = vector.load %arg4[%c1_202, %c0_203, %c0_204, %c0_205] : memref<5x2x84x80xbf16, #tpu.memory_space<vmem>>, vector<1x1x84x80xbf16>
    %240 = vector.shape_cast %239 : vector<1x1x84x80xbf16> to vector<84x80xbf16>
    %cst_206 = arith.constant dense<0.000000e+00> : vector<10x80xf32>
    %241 = tpu.matmul %238, %240, %cst_206 {dimension_numbers = #tpu.dot_dimension_numbers<[1], [0], [0], [1], [0, 0, 1, 1], [], []>} : vector<10x84xbf16>, vector<84x80xbf16>, vector<10x80xf32> -> vector<10x80xf32>
    %c1_207 = arith.constant 1 : index
    %c1_208 = arith.constant 1 : index
    %c0_209 = arith.constant 0 : index
    %c0_210 = arith.constant 0 : index
    %242 = vector.load %arg4[%c1_207, %c1_208, %c0_209, %c0_210] : memref<5x2x84x80xbf16, #tpu.memory_space<vmem>>, vector<1x1x84x80xbf16>
    %243 = vector.shape_cast %242 : vector<1x1x84x80xbf16> to vector<84x80xbf16>
    %cst_211 = arith.constant dense<0.000000e+00> : vector<10x80xf32>
    %244 = tpu.matmul %238, %243, %cst_211 {dimension_numbers = #tpu.dot_dimension_numbers<[1], [0], [0], [1], [0, 0, 1, 1], [], []>} : vector<10x84xbf16>, vector<84x80xbf16>, vector<10x80xf32> -> vector<10x80xf32>
    %245 = arith.addf %234, %241 : vector<10x80xf32>
    %246 = arith.addf %237, %244 : vector<10x80xf32>
    %247 = vector.extract_strided_slice %230 {offsets = [2, 0], sizes = [10, 84], strides = [1, 1]} : vector<14x84xbf16> to vector<10x84xbf16>
    %c2_212 = arith.constant 2 : index
    %c0_213 = arith.constant 0 : index
    %c0_214 = arith.constant 0 : index
    %c0_215 = arith.constant 0 : index
    %248 = vector.load %arg4[%c2_212, %c0_213, %c0_214, %c0_215] : memref<5x2x84x80xbf16, #tpu.memory_space<vmem>>, vector<1x1x84x80xbf16>
    %249 = vector.shape_cast %248 : vector<1x1x84x80xbf16> to vector<84x80xbf16>
    %cst_216 = arith.constant dense<0.000000e+00> : vector<10x80xf32>
    %250 = tpu.matmul %247, %249, %cst_216 {dimension_numbers = #tpu.dot_dimension_numbers<[1], [0], [0], [1], [0, 0, 1, 1], [], []>} : vector<10x84xbf16>, vector<84x80xbf16>, vector<10x80xf32> -> vector<10x80xf32>
    %c2_217 = arith.constant 2 : index
    %c1_218 = arith.constant 1 : index
    %c0_219 = arith.constant 0 : index
    %c0_220 = arith.constant 0 : index
    %251 = vector.load %arg4[%c2_217, %c1_218, %c0_219, %c0_220] : memref<5x2x84x80xbf16, #tpu.memory_space<vmem>>, vector<1x1x84x80xbf16>
    %252 = vector.shape_cast %251 : vector<1x1x84x80xbf16> to vector<84x80xbf16>
    %cst_221 = arith.constant dense<0.000000e+00> : vector<10x80xf32>
    %253 = tpu.matmul %247, %252, %cst_221 {dimension_numbers = #tpu.dot_dimension_numbers<[1], [0], [0], [1], [0, 0, 1, 1], [], []>} : vector<10x84xbf16>, vector<84x80xbf16>, vector<10x80xf32> -> vector<10x80xf32>
    %254 = arith.addf %245, %250 : vector<10x80xf32>
    %255 = arith.addf %246, %253 : vector<10x80xf32>
    %256 = vector.extract_strided_slice %230 {offsets = [3, 0], sizes = [10, 84], strides = [1, 1]} : vector<14x84xbf16> to vector<10x84xbf16>
    %c3_222 = arith.constant 3 : index
    %c0_223 = arith.constant 0 : index
    %c0_224 = arith.constant 0 : index
    %c0_225 = arith.constant 0 : index
    %257 = vector.load %arg4[%c3_222, %c0_223, %c0_224, %c0_225] : memref<5x2x84x80xbf16, #tpu.memory_space<vmem>>, vector<1x1x84x80xbf16>
    %258 = vector.shape_cast %257 : vector<1x1x84x80xbf16> to vector<84x80xbf16>
    %cst_226 = arith.constant dense<0.000000e+00> : vector<10x80xf32>
    %259 = tpu.matmul %256, %258, %cst_226 {dimension_numbers = #tpu.dot_dimension_numbers<[1], [0], [0], [1], [0, 0, 1, 1], [], []>} : vector<10x84xbf16>, vector<84x80xbf16>, vector<10x80xf32> -> vector<10x80xf32>
    %c3_227 = arith.constant 3 : index
    %c1_228 = arith.constant 1 : index
    %c0_229 = arith.constant 0 : index
    %c0_230 = arith.constant 0 : index
    %260 = vector.load %arg4[%c3_227, %c1_228, %c0_229, %c0_230] : memref<5x2x84x80xbf16, #tpu.memory_space<vmem>>, vector<1x1x84x80xbf16>
    %261 = vector.shape_cast %260 : vector<1x1x84x80xbf16> to vector<84x80xbf16>
    %cst_231 = arith.constant dense<0.000000e+00> : vector<10x80xf32>
    %262 = tpu.matmul %256, %261, %cst_231 {dimension_numbers = #tpu.dot_dimension_numbers<[1], [0], [0], [1], [0, 0, 1, 1], [], []>} : vector<10x84xbf16>, vector<84x80xbf16>, vector<10x80xf32> -> vector<10x80xf32>
    %263 = arith.addf %254, %259 : vector<10x80xf32>
    %264 = arith.addf %255, %262 : vector<10x80xf32>
    %265 = vector.extract_strided_slice %230 {offsets = [4, 0], sizes = [10, 84], strides = [1, 1]} : vector<14x84xbf16> to vector<10x84xbf16>
    %c4_232 = arith.constant 4 : index
    %c0_233 = arith.constant 0 : index
    %c0_234 = arith.constant 0 : index
    %c0_235 = arith.constant 0 : index
    %266 = vector.load %arg4[%c4_232, %c0_233, %c0_234, %c0_235] : memref<5x2x84x80xbf16, #tpu.memory_space<vmem>>, vector<1x1x84x80xbf16>
    %267 = vector.shape_cast %266 : vector<1x1x84x80xbf16> to vector<84x80xbf16>
    %cst_236 = arith.constant dense<0.000000e+00> : vector<10x80xf32>
    %268 = tpu.matmul %265, %267, %cst_236 {dimension_numbers = #tpu.dot_dimension_numbers<[1], [0], [0], [1], [0, 0, 1, 1], [], []>} : vector<10x84xbf16>, vector<84x80xbf16>, vector<10x80xf32> -> vector<10x80xf32>
    %c4_237 = arith.constant 4 : index
    %c1_238 = arith.constant 1 : index
    %c0_239 = arith.constant 0 : index
    %c0_240 = arith.constant 0 : index
    %269 = vector.load %arg4[%c4_237, %c1_238, %c0_239, %c0_240] : memref<5x2x84x80xbf16, #tpu.memory_space<vmem>>, vector<1x1x84x80xbf16>
    %270 = vector.shape_cast %269 : vector<1x1x84x80xbf16> to vector<84x80xbf16>
    %cst_241 = arith.constant dense<0.000000e+00> : vector<10x80xf32>
    %271 = tpu.matmul %265, %270, %cst_241 {dimension_numbers = #tpu.dot_dimension_numbers<[1], [0], [0], [1], [0, 0, 1, 1], [], []>} : vector<10x84xbf16>, vector<84x80xbf16>, vector<10x80xf32> -> vector<10x80xf32>
    %272 = arith.addf %263, %268 : vector<10x80xf32>
    %273 = arith.addf %264, %271 : vector<10x80xf32>
    %274 = arith.maximumf %272, %273 : vector<10x80xf32>
    %c0_242 = arith.constant 0 : index
    %c0_243 = arith.constant 0 : index
    %275 = vector.load %arg5[%c0_242, %c0_243] : memref<1x80xf32, #tpu.memory_space<vmem>>, vector<1x80xf32>
    %276 = vector.broadcast %275 : vector<1x80xf32> to vector<10x80xf32>
    %277 = arith.addf %274, %276 : vector<10x80xf32>
    %cst_244 = arith.constant 0.000000e+00 : f32
    %278 = vector.broadcast %cst_244 : f32 to vector<10x80xf32>
    %279 = arith.maximumf %277, %278 : vector<10x80xf32>
    %280 = arith.truncf %279 : vector<10x80xf32> to vector<10x80xbf16>
    %cst_245 = arith.constant dense<0.000000e+00> : vector<5x80xf32>
    %281 = tpu.matmul %29, %280, %cst_245 {dimension_numbers = #tpu.dot_dimension_numbers<[1], [0], [0], [1], [0, 0, 1, 1], [], []>} : vector<5x10xbf16>, vector<10x80xbf16>, vector<5x80xf32> -> vector<5x80xf32>
    %cst_246 = arith.constant dense<0.000000e+00> : vector<5x80xf32>
    %282 = tpu.matmul %39, %280, %cst_246 {dimension_numbers = #tpu.dot_dimension_numbers<[1], [0], [0], [1], [0, 0, 1, 1], [], []>} : vector<5x10xbf16>, vector<10x80xbf16>, vector<5x80xf32> -> vector<5x80xf32>
    %283 = arith.maximumf %281, %282 : vector<5x80xf32>
    %284 = arith.truncf %283 : vector<5x80xf32> to vector<5x80xbf16>
    %285 = vector.extract_strided_slice %284 {offsets = [0, 0], sizes = [1, 80], strides = [1, 1]} : vector<5x80xbf16> to vector<1x80xbf16>
    %c0_247 = arith.constant 0 : index
    %c0_248 = arith.constant 0 : index
    %c0_249 = arith.constant 0 : index
    %286 = vector.load %arg6[%c0_247, %c0_248, %c0_249] : memref<5x80x1024xbf16, #tpu.memory_space<vmem>>, vector<1x80x1024xbf16>
    %287 = vector.shape_cast %286 : vector<1x80x1024xbf16> to vector<80x1024xbf16>
    %cst_250 = arith.constant dense<0.000000e+00> : vector<1x1024xf32>
    %288 = tpu.matmul %285, %287, %cst_250 {dimension_numbers = #tpu.dot_dimension_numbers<[1], [0], [0], [1], [0, 0, 1, 1], [], []>} : vector<1x80xbf16>, vector<80x1024xbf16>, vector<1x1024xf32> -> vector<1x1024xf32>
    %289 = vector.extract_strided_slice %284 {offsets = [1, 0], sizes = [1, 80], strides = [1, 1]} : vector<5x80xbf16> to vector<1x80xbf16>
    %c1_251 = arith.constant 1 : index
    %c0_252 = arith.constant 0 : index
    %c0_253 = arith.constant 0 : index
    %290 = vector.load %arg6[%c1_251, %c0_252, %c0_253] : memref<5x80x1024xbf16, #tpu.memory_space<vmem>>, vector<1x80x1024xbf16>
    %291 = vector.shape_cast %290 : vector<1x80x1024xbf16> to vector<80x1024xbf16>
    %cst_254 = arith.constant dense<0.000000e+00> : vector<1x1024xf32>
    %292 = tpu.matmul %289, %291, %cst_254 {dimension_numbers = #tpu.dot_dimension_numbers<[1], [0], [0], [1], [0, 0, 1, 1], [], []>} : vector<1x80xbf16>, vector<80x1024xbf16>, vector<1x1024xf32> -> vector<1x1024xf32>
    %293 = arith.addf %288, %292 : vector<1x1024xf32>
    %294 = vector.extract_strided_slice %284 {offsets = [2, 0], sizes = [1, 80], strides = [1, 1]} : vector<5x80xbf16> to vector<1x80xbf16>
    %c2_255 = arith.constant 2 : index
    %c0_256 = arith.constant 0 : index
    %c0_257 = arith.constant 0 : index
    %295 = vector.load %arg6[%c2_255, %c0_256, %c0_257] : memref<5x80x1024xbf16, #tpu.memory_space<vmem>>, vector<1x80x1024xbf16>
    %296 = vector.shape_cast %295 : vector<1x80x1024xbf16> to vector<80x1024xbf16>
    %cst_258 = arith.constant dense<0.000000e+00> : vector<1x1024xf32>
    %297 = tpu.matmul %294, %296, %cst_258 {dimension_numbers = #tpu.dot_dimension_numbers<[1], [0], [0], [1], [0, 0, 1, 1], [], []>} : vector<1x80xbf16>, vector<80x1024xbf16>, vector<1x1024xf32> -> vector<1x1024xf32>
    %298 = arith.addf %293, %297 : vector<1x1024xf32>
    %299 = vector.extract_strided_slice %284 {offsets = [3, 0], sizes = [1, 80], strides = [1, 1]} : vector<5x80xbf16> to vector<1x80xbf16>
    %c3_259 = arith.constant 3 : index
    %c0_260 = arith.constant 0 : index
    %c0_261 = arith.constant 0 : index
    %300 = vector.load %arg6[%c3_259, %c0_260, %c0_261] : memref<5x80x1024xbf16, #tpu.memory_space<vmem>>, vector<1x80x1024xbf16>
    %301 = vector.shape_cast %300 : vector<1x80x1024xbf16> to vector<80x1024xbf16>
    %cst_262 = arith.constant dense<0.000000e+00> : vector<1x1024xf32>
    %302 = tpu.matmul %299, %301, %cst_262 {dimension_numbers = #tpu.dot_dimension_numbers<[1], [0], [0], [1], [0, 0, 1, 1], [], []>} : vector<1x80xbf16>, vector<80x1024xbf16>, vector<1x1024xf32> -> vector<1x1024xf32>
    %303 = arith.addf %298, %302 : vector<1x1024xf32>
    %304 = vector.extract_strided_slice %284 {offsets = [4, 0], sizes = [1, 80], strides = [1, 1]} : vector<5x80xbf16> to vector<1x80xbf16>
    %c4_263 = arith.constant 4 : index
    %c0_264 = arith.constant 0 : index
    %c0_265 = arith.constant 0 : index
    %305 = vector.load %arg6[%c4_263, %c0_264, %c0_265] : memref<5x80x1024xbf16, #tpu.memory_space<vmem>>, vector<1x80x1024xbf16>
    %306 = vector.shape_cast %305 : vector<1x80x1024xbf16> to vector<80x1024xbf16>
    %cst_266 = arith.constant dense<0.000000e+00> : vector<1x1024xf32>
    %307 = tpu.matmul %304, %306, %cst_266 {dimension_numbers = #tpu.dot_dimension_numbers<[1], [0], [0], [1], [0, 0, 1, 1], [], []>} : vector<1x80xbf16>, vector<80x1024xbf16>, vector<1x1024xf32> -> vector<1x1024xf32>
    %308 = arith.addf %303, %307 : vector<1x1024xf32>
    %c1_267 = arith.constant 1 : index
    %c0_268 = arith.constant 0 : index
    %309 = vector.load %arg13[%c1_267, %c0_268] : memref<2x1024xf32, #tpu.memory_space<vmem>>, vector<1x1024xf32>
    tpu.vector_store %arg13[%c1_267, %c0_268], %308 {strides = array<i32>} : memref<2x1024xf32, #tpu.memory_space<vmem>>, vector<1x1024xf32>,
    %c0_269 = arith.constant 0 : index
    %c0_270 = arith.constant 0 : index
    %310 = vector.load %arg13[%c0_269, %c0_270] : memref<2x1024xf32, #tpu.memory_space<vmem>>, vector<2x1024xf32>
    %c0_271 = arith.constant 0 : index
    %c0_272 = arith.constant 0 : index
    %311 = vector.load %arg7[%c0_271, %c0_272] : memref<1x1024xf32, #tpu.memory_space<vmem>>, vector<1x1024xf32>
    %312 = vector.broadcast %311 : vector<1x1024xf32> to vector<2x1024xf32>
    %313 = arith.addf %310, %312 : vector<2x1024xf32>
    %cst_273 = arith.constant 0.000000e+00 : f32
    %314 = vector.broadcast %cst_273 : f32 to vector<2x1024xf32>
    %315 = arith.maximumf %313, %314 : vector<2x1024xf32>
    %316 = arith.truncf %315 : vector<2x1024xf32> to vector<2x1024xbf16>
    %c0_274 = arith.constant 0 : index
    %c0_275 = arith.constant 0 : index
    %317 = vector.load %arg8[%c0_274, %c0_275] : memref<1024x512xbf16, #tpu.memory_space<vmem>>, vector<1024x512xbf16>
    %cst_276 = arith.constant dense<0.000000e+00> : vector<2x512xf32>
    %318 = tpu.matmul %316, %317, %cst_276 {dimension_numbers = #tpu.dot_dimension_numbers<[1], [0], [0], [1], [0, 0, 1, 1], [], []>} : vector<2x1024xbf16>, vector<1024x512xbf16>, vector<2x512xf32> -> vector<2x512xf32>
    %c0_277 = arith.constant 0 : index
    %c0_278 = arith.constant 0 : index
    %319 = vector.load %arg9[%c0_277, %c0_278] : memref<1x512xf32, #tpu.memory_space<vmem>>, vector<1x512xf32>
    %320 = vector.broadcast %319 : vector<1x512xf32> to vector<2x512xf32>
    %321 = arith.addf %318, %320 : vector<2x512xf32>
    %cst_279 = arith.constant 0.000000e+00 : f32
    %322 = vector.broadcast %cst_279 : f32 to vector<2x512xf32>
    %323 = arith.maximumf %321, %322 : vector<2x512xf32>
    %324 = arith.truncf %323 : vector<2x512xf32> to vector<2x512xbf16>
    %c0_280 = arith.constant 0 : index
    %c0_281 = arith.constant 0 : index
    %325 = vector.load %arg10[%c0_280, %c0_281] : memref<512x256xbf16, #tpu.memory_space<vmem>>, vector<512x256xbf16>
    %cst_282 = arith.constant dense<0.000000e+00> : vector<2x256xf32>
    %326 = tpu.matmul %324, %325, %cst_282 {dimension_numbers = #tpu.dot_dimension_numbers<[1], [0], [0], [1], [0, 0, 1, 1], [], []>} : vector<2x512xbf16>, vector<512x256xbf16>, vector<2x256xf32> -> vector<2x256xf32>
    %c0_283 = arith.constant 0 : index
    %c0_284 = arith.constant 0 : index
    %327 = vector.load %arg11[%c0_283, %c0_284] : memref<1x256xf32, #tpu.memory_space<vmem>>, vector<1x256xf32>
    %328 = vector.broadcast %327 : vector<1x256xf32> to vector<2x256xf32>
    %329 = arith.addf %326, %328 : vector<2x256xf32>
    %cst_285 = arith.constant 0.000000e+00 : f32
    %330 = vector.broadcast %cst_285 : f32 to vector<2x256xf32>
    %331 = arith.maximumf %329, %330 : vector<2x256xf32>
    %c0_286 = arith.constant 0 : index
    %c0_287 = arith.constant 0 : index
    %332 = vector.load %arg12[%c0_286, %c0_287] : memref<2x256xf32, #tpu.memory_space<vmem>>, vector<2x256xf32>
    tpu.vector_store %arg12[%c0_286, %c0_287], %331 {strides = array<i32>} : memref<2x256xf32, #tpu.memory_space<vmem>>, vector<2x256xf32>,
    return
  }
  func.func @transform_0(%arg0: i32) -> (i32, i32, i32) {
    %c0_i32 = arith.constant 0 : i32
    %c0_i32_0 = arith.constant 0 : i32
    %c0_i32_1 = arith.constant 0 : i32
    return %arg0, %c0_i32, %c0_i32_0 : i32, i32, i32
  }
  func.func @transform_1(%arg0: i32) -> (i32, i32, i32, i32) {
    %c0_i32 = arith.constant 0 : i32
    %c0_i32_0 = arith.constant 0 : i32
    %c0_i32_1 = arith.constant 0 : i32
    %c0_i32_2 = arith.constant 0 : i32
    %c0_i32_3 = arith.constant 0 : i32
    return %c0_i32, %c0_i32_0, %c0_i32_1, %c0_i32_2 : i32, i32, i32, i32
  }
  func.func @transform_2(%arg0: i32) -> (i32, i32) {
    %c0_i32 = arith.constant 0 : i32
    %c0_i32_0 = arith.constant 0 : i32
    %c0_i32_1 = arith.constant 0 : i32
    return %c0_i32, %c0_i32_0 : i32, i32
  }
  func.func @transform_3(%arg0: i32) -> (i32, i32, i32, i32) {
    %c0_i32 = arith.constant 0 : i32
    %c0_i32_0 = arith.constant 0 : i32
    %c0_i32_1 = arith.constant 0 : i32
    %c0_i32_2 = arith.constant 0 : i32
    %c0_i32_3 = arith.constant 0 : i32
    return %c0_i32, %c0_i32_0, %c0_i32_1, %c0_i32_2 : i32, i32, i32, i32
  }
  func.func @transform_4(%arg0: i32) -> (i32, i32) {
    %c0_i32 = arith.constant 0 : i32
    %c0_i32_0 = arith.constant 0 : i32
    %c0_i32_1 = arith.constant 0 : i32
    return %c0_i32, %c0_i32_0 : i32, i32
  }
  func.func @transform_5(%arg0: i32) -> (i32, i32, i32) {
    %c0_i32 = arith.constant 0 : i32
    %c0_i32_0 = arith.constant 0 : i32
    %c0_i32_1 = arith.constant 0 : i32
    %c0_i32_2 = arith.constant 0 : i32
    return %c0_i32, %c0_i32_0, %c0_i32_1 : i32, i32, i32
  }
  func.func @transform_6(%arg0: i32) -> (i32, i32) {
    %c0_i32 = arith.constant 0 : i32
    %c0_i32_0 = arith.constant 0 : i32
    %c0_i32_1 = arith.constant 0 : i32
    return %c0_i32, %c0_i32_0 : i32, i32
  }
  func.func @transform_7(%arg0: i32) -> (i32, i32) {
    %c0_i32 = arith.constant 0 : i32
    %c0_i32_0 = arith.constant 0 : i32
    %c0_i32_1 = arith.constant 0 : i32
    return %c0_i32, %c0_i32_0 : i32, i32
  }
  func.func @transform_8(%arg0: i32) -> (i32, i32) {
    %c0_i32 = arith.constant 0 : i32
    %c0_i32_0 = arith.constant 0 : i32
    %c0_i32_1 = arith.constant 0 : i32
    return %c0_i32, %c0_i32_0 : i32, i32
  }
  func.func @transform_9(%arg0: i32) -> (i32, i32) {
    %c0_i32 = arith.constant 0 : i32
    %c0_i32_0 = arith.constant 0 : i32
    %c0_i32_1 = arith.constant 0 : i32
    return %c0_i32, %c0_i32_0 : i32, i32
  }
  func.func @transform_10(%arg0: i32) -> (i32, i32) {
    %c0_i32 = arith.constant 0 : i32
    %c0_i32_0 = arith.constant 0 : i32
    %c0_i32_1 = arith.constant 0 : i32
    return %c0_i32, %c0_i32_0 : i32, i32
  }
  func.func @transform_11(%arg0: i32) -> (i32, i32) {
    %c0_i32 = arith.constant 0 : i32
    %c0_i32_0 = arith.constant 0 : i32
    return %arg0, %c0_i32 : i32, i32
  }
}

</mosaic_0001>

<bundles_post_ra>
// kernel: net_forward.1
= control target key start
LH: loop header
LB: loop body
LE: loop exit
PB: predicated region body
PF: predicated region fallthrough
CT: control target
= control target key end

     0   :  { %16 = vsyncpa [#allocation4], 0  ;;  %s17002_s0 = inlined_call_operand.vmem [shape: bf16[2,32,96], index: 0, kind: input, shape index: {}]   ;;  %s17003_s1 = inlined_call_operand.vmem [shape: bf16[5,2,96,84], index: 1, kind: input, shape index: {}]   ;;  %s17004_s2 = inlined_call_operand.vmem [shape: f32[1,84], index: 2, kind: input, shape index: {}]   ;;  %s17005_s3 = inlined_call_operand.vmem [shape: bf16[5,2,84,80], index: 3, kind: input, shape index: {}]   ;;  %s17006_s4 = inlined_call_operand.vmem [shape: f32[1,80], index: 4, kind: input, shape index: {}]   ;;  %s17007_s5 = inlined_call_operand.hbm [shape: bf16[5,80,1024], index: 5, kind: input, shape index: {}]   ;;  %s17008_s6 = inlined_call_operand.vmem [shape: f32[1,1024], index: 6, kind: input, shape index: {}]   ;;  %s17009_s7 = inlined_call_operand.vmem [shape: bf16[1024,512], index: 7, kind: input, shape index: {}]   ;;  %s17010_s8 = inlined_call_operand.vmem [shape: f32[1,512], index: 8, kind: input, shape index: {}]   ;;  %s17011_s9 = inlined_call_operand.hbm [shape: bf16[512,256], index: 9, kind: input, shape index: {}]   ;;  %s17012_s10 = inlined_call_operand.vmem [shape: f32[1,256], index: 10, kind: input, shape index: {}]   ;;  %s17013_s11 = inlined_call_operand.hbm [shape: f32[2,256], index: 11, kind: output, shape index: {}]  }
   0x1   :  { %17 = vsyncpa [#allocation7], 0 }
   0x2   :  { %18 = vsyncpa [#allocation5], 0  ;;  %s14618_s17 = smov [#allocation3]  }
   0x3   :  { %s34_s18 = sshll.u32 %s14618_s17, 4  ;;  %s35_s18 = int_to_ptr.vmem [resolvable:$true] %s34_s18 }
   0x4   :  { %s14560_s19 = scalar_lea.vmem %s35_s18, 25600  ;;  %p14565_p1 = scmp.lt.s32.totalorder %s35_s18, %s35_s18 }
   0x5   :  { %p14561_p0 = scmp.ne.s32.totalorder %s35_s18, %s14560_s19  ;;  %p14566_p2 = scmp.lt.s32.totalorder %s14560_s19, %s14560_s19 }
   0x7   :  { %p14567_p3 = por %p14566_p2, %p14565_p1 }
   0x9   :  { %p14568_p4 = pnand %p14567_p3, %p14561_p0 }
   0xb   :  { %14571 = shalt.err (!%p14568_p4)
}
   0xc   :  { %s14619_s20 = smov 512   ;;  %s14620_s21 = smov 32  }
   0xd   :  { %40 = dma.hbm_to_vmem [thread:$0]  %s17007_s5, 25600, %s35_s18, [#allocation4], %s14619_s20, %s14619_s20, %s14620_s21  }
   0xe   :  { %s14621_s24 = smov [#allocation6]  }
   0xf   :  { %s52_s25 = sshll.u32 %s14621_s24, 4  ;;  %s53_s25 = int_to_ptr.vmem [resolvable:$true] %s52_s25 }
  0x10   :  { %s14580_s26 = scalar_lea.vmem %s53_s25, 8192  ;;  %p14585_p6 = scmp.lt.s32.totalorder %s53_s25, %s53_s25 }
  0x11   :  { %p14581_p5 = scmp.ne.s32.totalorder %s53_s25, %s14580_s26  ;;  %p14586_p7 = scmp.lt.s32.totalorder %s14580_s26, %s14580_s26 }
  0x13   :  { %p14587_p8 = por %p14586_p7, %p14585_p6 }
  0x15   :  { %p14588_p9 = pnand %p14587_p8, %p14581_p5 }
  0x17   :  { %14591 = shalt.err (!%p14588_p9)
}
  0x18   :  { %s14622_s27 = smov 128   ;;  %s14623_s28 = smov 8  }
  0x19   :  { %58 = dma.hbm_to_vmem [thread:$0]  %s17011_s9, 8192, %s53_s25, [#allocation7], %s14622_s27, %s14622_s27, %s14623_s28  }
  0x1a   :  { %14612 = dma.done.wait [#allocation4], 25600  }
  0x1b   :  { %14613 = vsyncadd [#allocation4], 4294941696 }
  0x1c   :  { %14614 = dma.done.wait [#allocation7], 8192  }
  0x1d   :  { %14615 = vsyncadd [#allocation7], 4294959104  ;;  %v13828_v0 = vld [vmem:[%s17003_s1 + $0x88] sm:$0xff]   ;;  %v13829_v1 = vld [vmem:[%s17003_s1 + $0xb8] sm:$0xff]   ;;  %vm145_vm0 = vsmask.f32 7424 }
  0x1e   :  { %13120 = vmatprep.subr.bf16.mxu0 %v13828_v0  ;;  %v13830_v2 = vld [vmem:[%s17003_s1 + $0x80] sm:$0xff]   ;;  %13136 = vmatprep.subr.bf16.mxu1 %v13829_v1  ;;  %v13831_v3 = vld [vmem:[%s17003_s1 + $0xb0] sm:$0xff]   ;;  %v13832_v4 = vld [vmem:[%s17003_s1 + $0x78] sm:$0xff]   ;;  %vm197_vm1 = vcmask 785408   ;;  %vm970_vm2 = vcmask 1045504   ;;  %vm538_vm3 = vcmask 1046528  }
  0x1f   :  { %13121 = vmatpush3.bf16.msra.mxu0 %v13828_v0  ;;  %13137 = vmatpush3.bf16.msra.mxu1 %v13829_v1  ;;  %v13833_v5 = vld [vmem:[%s17003_s1 + $0xa8] sm:$0xff]   ;;  %v13834_v6 = vld [vmem:[%s17003_s1 + $0x70] sm:$0xff]   ;;  %v13835_v7 = vld [vmem:[%s17003_s1 + $0xa0] sm:$0xff]   ;;  %vm752_vm4 = vsmask.f32 6400  ;;  %vm14625_vm5 = vmmov 0  }
  0x20   :  { %13122 = vmatprep.subr.bf16.mxu0 %v13830_v2  ;;  %13138 = vmatprep.subr.bf16.mxu1 %v13831_v3  ;;  %v13836_v8 = vld [vmem:[%s17003_s1 + $0x68] sm:$0xff]   ;;  %v13837_v9 = vld [vmem:[%s17003_s1 + $0x98] sm:$0xff]   ;;  %v14729_v10 = vld [vmem:[%s17002_s0] sm:$0xff]   ;;  %vm1367_vm10 = vcmask 1041408   ;;  %vm1192_vm11 = vcmask 228352   ;;  %vm1363_vm12 = vcmask 687104  }
  0x21   :  { %v14734_v11 = vld [vmem:[%s17002_s0 + $0x8] sm:$0xff]   ;;  %v147_v12 = vshrl.u32 %v14729_v10, 16  ;;  %v149_v13 = vshll.u32 %v14729_v10, 16  ;;  %v13838_v15 = vld [vmem:[%s17003_s1 + $0x60] sm:$0xff]   ;;  %v13839_v16 = vld [vmem:[%s17003_s1 + $0x90] sm:$0xff]   ;;  %v971_v24 = vrot.slane %v14729_v10, 2 }
  0x22   :  { %v154_v14 = vshll.u32 %v14734_v11, 16  ;;  %v158_v19 = vshrl.u32 %v14734_v11, 16  ;;  %v13842_v21 = vld [vmem:[%s17003_s1 + $0x28] sm:$0xff]   ;;  %v13843_v23 = vld [vmem:[%s17003_s1 + $0x58] sm:$0xff]   ;;  %v14765_v26 = vrot.slane %v14734_v11, 2  ;;  %v13844_v27 = vld [vmem:[%s17003_s1 + $0x20] sm:$0xff]  }
  0x23   :  { %13123 = vmatpush3.bf16.msra.mxu0 %v13830_v2  ;;  %13139 = vmatpush3.bf16.msra.mxu1 %v13831_v3  ;;  %v151_v17 = vrot.slane %v149_v13, 1  ;;  %v13845_v29 = vld [vmem:[%s17003_s1 + $0x50] sm:$0xff]   ;;  %v13846_v30 = vld [vmem:[%s17003_s1 + $0x18] sm:$0xff]   ;;  %v13847_v31 = vld [vmem:[%s17003_s1 + $0x48] sm:$0xff]   ;;  %v539_v40 = vrot.slane %v14729_v10, 1  ;;  %v540_v41 = vrot.slane %v14734_v11, 1 }
  0x24   :  { %13124 = vmatprep.subr.bf16.mxu0 %v13832_v4  ;;  %13140 = vmatprep.subr.bf16.mxu1 %v13833_v5  ;;  %v156_v18 = vrot.slane %v154_v14, 1  ;;  %v14772_v28 = vsel %vm970_vm2, %v971_v24, %v14765_v26  ;;  %v13848_v32 = vld [vmem:[%s17003_s1 + $0x10] sm:$0xff]   ;;  %v13849_v33 = vld [vmem:[%s17003_s1 + $0x40] sm:$0xff]   ;;  %v13850_v34 = vld [vmem:[%s17003_s1 + $0x8] sm:$0xff]   ;;  %v753_v49 = vrot.slane %v147_v12, 1  ;;  %v757_v51 = vrot.slane %v154_v14, 2 }
  0x25   :  { %v152_v20 = vor.u32 %v151_v17, %v147_v12  ;;  %v13851_v35 = vld [vmem:[%s17003_s1 + $0x38] sm:$0xff]   ;;  %v13852_v36 = vld [vmem:[%s17003_s1] sm:$0xff]   ;;  %v13853_v37 = vld [vmem:[%s17003_s1 + $0x30] sm:$0xff]   ;;  %v541_v44 = vsel %vm538_vm3, %v539_v40, %v540_v41  ;;  %v754_v54 = vrot.slane %v149_v13, 2  ;;  %v756_v56 = vrot.slane %v158_v19, 1  ;;  %s14629_s26 = smov [#allocation8]  }
  0x26   :  { %v160_v25 = vor.u32 %v158_v19, %v156_v18  ;;  %v13854_v38 = vld [vmem:[%s17003_s1 + $0xe8] sm:$0xff]   ;;  %v13855_v39 = vld [vmem:[%s17003_s1 + $0x118] sm:$0xff]   ;;  %v13856_v42 = vld [vmem:[%s17003_s1 + $0xe0] sm:$0xff]   ;;  %vm2236_vm13 = vcmask 1044480   ;;  %vm2232_vm14 = vcmask 80896   ;;  %vm2609_vm15 = vcmask 654336  }
  0x27   :  { %13125 = vmatpush3.bf16.msra.mxu0 %v13832_v4  ;;  %13141 = vmatpush3.bf16.msra.mxu1 %v13833_v5  ;;  %v157_v22 = vsel %vm145_vm0, %v152_v20, %v156_v18  ;;  %v13857_v43 = vld [vmem:[%s17003_s1 + $0x110] sm:$0xff]   ;;  %v13858_v45 = vld [vmem:[%s17003_s1 + $0xd8] sm:$0xff]   ;;  %v13859_v46 = vld [vmem:[%s17003_s1 + $0x108] sm:$0xff]   ;;  %v755_v60 = vor.u32 %v754_v54, %v753_v49  ;;  %v758_v61 = vor.u32 %v757_v51, %v756_v56  ;;  %v14624_v20 = vmov 0.0   ;;  %s11291_s27 = sshll.u32 %s14629_s26, 4  ;;  %s11292_s27 = int_to_ptr.vmem [resolvable:$true] %s11291_s27 }
  0x28   :  { %13126 = vmatprep.subr.bf16.mxu0 %v13834_v6  ;;  %13142 = vmatprep.subr.bf16.mxu1 %v13835_v7  ;;  %v13860_v47 = vld [vmem:[%s17003_s1 + $0xd0] sm:$0xff]   ;;  %v13861_v48 = vld [vmem:[%s17003_s1 + $0x100] sm:$0xff]   ;;  %v13862_v50 = vld [vmem:[%s17003_s1 + $0xc8] sm:$0xff]   ;;  %p14597_p11 = scmp.lt.s32.totalorder %s11292_s27, %s11292_s27 }
  0x29   :  { %13132 = vmatprep.mubr.msk.bf16.mxu0 %vm197_vm1, %v157_v22  ;;  %13148 = vmatprep.mubr.msk.bf16.mxu1 %vm197_vm1, %v157_v22  ;;  %v13863_v52 = vld [vmem:[%s17003_s1 + $0xf8] sm:$0xff]   ;;  %v13864_v53 = vld [vmem:[%s17003_s1 + $0xc0] sm:$0xff]   ;;  %v13865_v55 = vld [vmem:[%s17003_s1 + $0xf0] sm:$0xff]   ;;  %v759_v0 = vsel %vm752_vm4, %v755_v60, %v758_v61 }
  0x2a   :  { %v13866_v57 = vld [vmem:[%s17003_s1 + $0x148] sm:$0xff]   ;;  %v13867_v58 = vld [vmem:[%s17003_s1 + $0x178] sm:$0xff]   ;;  %v13868_v59 = vld [vmem:[%s17003_s1 + $0x140] sm:$0xff]  }
  0x2b   :  { %13127 = vmatpush3.bf16.msra.mxu0 %v13834_v6  ;;  %13143 = vmatpush3.bf16.msra.mxu1 %v13835_v7  ;;  %v13869_v62 = vld [vmem:[%s17003_s1 + $0x170] sm:$0xff]   ;;  %v13870_v63 = vld [vmem:[%s17003_s1 + $0x138] sm:$0xff]   ;;  %v13871_v1 = vld [vmem:[%s17003_s1 + $0x168] sm:$0xff]  }
  0x2c   :  { %13128 = vmatprep.subr.bf16.mxu0 %v13836_v8  ;;  %13144 = vmatprep.subr.bf16.mxu1 %v13837_v9  ;;  %v13872_v2 = vld [vmem:[%s17003_s1 + $0x130] sm:$0xff]   ;;  %v13873_v3 = vld [vmem:[%s17003_s1 + $0x160] sm:$0xff]   ;;  %v13874_v4 = vld [vmem:[%s17003_s1 + $0x128] sm:$0xff]  }
  0x2d   :  { %v13875_v5 = vld [vmem:[%s17003_s1 + $0x158] sm:$0xff]   ;;  %v13876_v6 = vld [vmem:[%s17003_s1 + $0x120] sm:$0xff]   ;;  %v13877_v7 = vld [vmem:[%s17003_s1 + $0x150] sm:$0xff]  }
  0x2e   :  { %v13882_v12 = vld [vmem:[%s17003_s1 + $0x198] sm:$0xff]   ;;  %v13883_v13 = vld [vmem:[%s17003_s1 + $0x1c8] sm:$0xff]   ;;  %v13884_v14 = vld [vmem:[%s17003_s1 + $0x190] sm:$0xff]  }
  0x2f   :  { %13129 = vmatpush3.bf16.msra.mxu0 %v13836_v8  ;;  %13145 = vmatpush3.bf16.msra.mxu1 %v13837_v9  ;;  %v13878_v8 = vld [vmem:[%s17003_s1 + $0x1a8] sm:$0xff]   ;;  %v13879_v9 = vld [vmem:[%s17003_s1 + $0x1d8] sm:$0xff]   ;;  %v13888_v18 = vld [vmem:[%s17003_s1 + $0x180] sm:$0xff]  }
  0x30   :  { %13130 = vmatprep.subr.bf16.mxu0 %v13838_v15  ;;  %13146 = vmatprep.subr.bf16.mxu1 %v13839_v16  ;;  %v13887_v17 = vld [vmem:[%s17003_s1 + $0x1b8] sm:$0xff]   ;;  %v13889_v19 = vld [vmem:[%s17003_s1 + $0x1b0] sm:$0xff]  }
  0x33   :  { %13131 = vmatpush3.bf16.msra.mxu0 %v13838_v15  ;;  %13147 = vmatpush3.bf16.msra.mxu1 %v13839_v16  ;;  %v13885_v15 = vld [vmem:[%s17003_s1 + $0x1c0] sm:$0xff]   ;;  %v13886_v16 = vld [vmem:[%s17003_s1 + $0x188] sm:$0xff]  }
  0x34   :  { %13152 = vmatprep.subr.bf16.mxu0 %v13842_v21  ;;  %13168 = vmatprep.subr.bf16.mxu1 %v13843_v23 }
  0x36   :  { %13133 = vmatmul.mubr.msk.bf16.vlgmr.msra.gmra.mxu0 %vm197_vm1, %v160_v25  ;;  %13149 = vmatmul.mubr.msk.bf16.vlgmr.msra.gmra.mxu1 %vm197_vm1, %v160_v25 }
  0x37   :  { %13153 = vmatpush3.bf16.msra.mxu0 %v13842_v21  ;;  %13169 = vmatpush3.bf16.msra.mxu1 %v13843_v23 }
  0x38   :  { %13154 = vmatprep.subr.bf16.mxu0 %v13844_v27  ;;  %13170 = vmatprep.subr.bf16.mxu1 %v13845_v29 }
  0x39   :  { %13164 = vmatprep.mubr.msk.bf16.mxu0 %vm197_vm1, %v14729_v10  ;;  %13180 = vmatprep.mubr.msk.bf16.mxu1 %vm197_vm1, %v14729_v10  ;;  %v13880_v10 = vld [vmem:[%s17003_s1 + $0x1a0] sm:$0xff]  }
  0x3b   :  { %13155 = vmatpush3.bf16.msra.mxu0 %v13844_v27  ;;  %13171 = vmatpush3.bf16.msra.mxu1 %v13845_v29 }
  0x3c   :  { %13156 = vmatprep.subr.bf16.mxu0 %v13846_v30  ;;  %13172 = vmatprep.subr.bf16.mxu1 %v13847_v31 }
  0x3f   :  { %13157 = vmatpush3.bf16.msra.mxu0 %v13846_v30  ;;  %13173 = vmatpush3.bf16.msra.mxu1 %v13847_v31 }
  0x40   :  { %13158 = vmatprep.subr.bf16.mxu0 %v13848_v32  ;;  %13174 = vmatprep.subr.bf16.mxu1 %v13849_v33 }
  0x43   :  { %13159 = vmatpush3.bf16.msra.mxu0 %v13848_v32  ;;  %13175 = vmatpush3.bf16.msra.mxu1 %v13849_v33 }
  0x44   :  { %13160 = vmatprep.subr.bf16.mxu0 %v13850_v34  ;;  %13176 = vmatprep.subr.bf16.mxu1 %v13851_v35 }
  0x47   :  { %13161 = vmatpush3.bf16.msra.mxu0 %v13850_v34  ;;  %13177 = vmatpush3.bf16.msra.mxu1 %v13851_v35 }
  0x48   :  { %13162 = vmatprep.subr.bf16.mxu0 %v13852_v36  ;;  %13178 = vmatprep.subr.bf16.mxu1 %v13853_v37 }
  0x4b   :  { %13163 = vmatpush3.bf16.msra.mxu0 %v13852_v36  ;;  %13179 = vmatpush3.bf16.msra.mxu1 %v13853_v37 }
  0x4c   :  { %13184 = vmatprep.subr.bf16.mxu0 %v13854_v38  ;;  %13200 = vmatprep.subr.bf16.mxu1 %v13855_v39 }
  0x4e   :  { %13165 = vmatmul.mubr.msk.bf16.vlgmr.msra.gmra.mxu0 %vm197_vm1, %v14734_v11  ;;  %13181 = vmatmul.mubr.msk.bf16.vlgmr.msra.gmra.mxu1 %vm197_vm1, %v14734_v11  ;;  %v13881_v11 = vld [vmem:[%s17003_s1 + $0x1d0] sm:$0xff]  }
  0x4f   :  { %13185 = vmatpush3.bf16.msra.mxu0 %v13854_v38  ;;  %13201 = vmatpush3.bf16.msra.mxu1 %v13855_v39 }
  0x50   :  { %13186 = vmatprep.subr.bf16.mxu0 %v13856_v42  ;;  %13202 = vmatprep.subr.bf16.mxu1 %v13857_v43 }
  0x51   :  { %13196 = vmatprep.mubr.msk.bf16.mxu0 %vm197_vm1, %v541_v44  ;;  %13212 = vmatprep.mubr.msk.bf16.mxu1 %vm197_vm1, %v541_v44 }
  0x53   :  { %13187 = vmatpush3.bf16.msra.mxu0 %v13856_v42  ;;  %13203 = vmatpush3.bf16.msra.mxu1 %v13857_v43 }
  0x54   :  { %13188 = vmatprep.subr.bf16.mxu0 %v13858_v45  ;;  %13204 = vmatprep.subr.bf16.mxu1 %v13859_v46 }
  0x57   :  { %13189 = vmatpush3.bf16.msra.mxu0 %v13858_v45  ;;  %13205 = vmatpush3.bf16.msra.mxu1 %v13859_v46 }
  0x58   :  { %13190 = vmatprep.subr.bf16.mxu0 %v13860_v47  ;;  %13206 = vmatprep.subr.bf16.mxu1 %v13861_v48 }
  0x5b   :  { %13191 = vmatpush3.bf16.msra.mxu0 %v13860_v47  ;;  %13207 = vmatpush3.bf16.msra.mxu1 %v13861_v48 }
  0x5c   :  { %13192 = vmatprep.subr.bf16.mxu0 %v13862_v50  ;;  %13208 = vmatprep.subr.bf16.mxu1 %v13863_v52 }
  0x5f   :  { %13193 = vmatpush3.bf16.msra.mxu0 %v13862_v50  ;;  %13209 = vmatpush3.bf16.msra.mxu1 %v13863_v52  ;;  %v68_v50 = vlaneseq }
  0x60   :  { %13194 = vmatprep.subr.bf16.mxu0 %v13864_v53  ;;  %13210 = vmatprep.subr.bf16.mxu1 %v13865_v55 }
  0x63   :  { %13195 = vmatpush3.bf16.msra.mxu0 %v13864_v53  ;;  %13211 = vmatpush3.bf16.msra.mxu1 %v13865_v55 }
  0x64   :  { %13216 = vmatprep.subr.bf16.mxu0 %v13866_v57  ;;  %13232 = vmatprep.subr.bf16.mxu1 %v13867_v58 }
  0x66   :  { %13197 = vmatmul.mubr.msk.bf16.vlgmr.msra.gmra.mxu0 %vm197_vm1, %v540_v41  ;;  %13213 = vmatmul.mubr.msk.bf16.vlgmr.msra.gmra.mxu1 %vm197_vm1, %v540_v41 }
  0x67   :  { %13217 = vmatpush3.bf16.msra.mxu0 %v13866_v57  ;;  %13233 = vmatpush3.bf16.msra.mxu1 %v13867_v58  ;;  %v14953_v57 = vshrl.u32 %v68_v50, 7 }
  0x68   :  { %13218 = vmatprep.subr.bf16.mxu0 %v13868_v59  ;;  %13234 = vmatprep.subr.bf16.mxu1 %v13869_v62 }
  0x69   :  { %13228 = vmatprep.mubr.msk.bf16.mxu0 %vm197_vm1, %v759_v0  ;;  %13244 = vmatprep.mubr.msk.bf16.mxu1 %vm197_vm1, %v759_v0 }
  0x6b   :  { %13219 = vmatpush3.bf16.msra.mxu0 %v13868_v59  ;;  %13235 = vmatpush3.bf16.msra.mxu1 %v13869_v62 }
  0x6c   :  { %13220 = vmatprep.subr.bf16.mxu0 %v13870_v63  ;;  %13236 = vmatprep.subr.bf16.mxu1 %v13871_v1 }
  0x6f   :  { %13221 = vmatpush3.bf16.msra.mxu0 %v13870_v63  ;;  %13237 = vmatpush3.bf16.msra.mxu1 %v13871_v1 }
  0x70   :  { %13222 = vmatprep.subr.bf16.mxu0 %v13872_v2  ;;  %13238 = vmatprep.subr.bf16.mxu1 %v13873_v3 }
  0x73   :  { %13223 = vmatpush3.bf16.msra.mxu0 %v13872_v2  ;;  %13239 = vmatpush3.bf16.msra.mxu1 %v13873_v3 }
  0x74   :  { %13224 = vmatprep.subr.bf16.mxu0 %v13874_v4  ;;  %13240 = vmatprep.subr.bf16.mxu1 %v13875_v5 }
  0x77   :  { %13225 = vmatpush3.bf16.msra.mxu0 %v13874_v4  ;;  %13241 = vmatpush3.bf16.msra.mxu1 %v13875_v5 }
  0x78   :  { %13226 = vmatprep.subr.bf16.mxu0 %v13876_v6  ;;  %13242 = vmatprep.subr.bf16.mxu1 %v13877_v7 }
  0x7b   :  { %13227 = vmatpush3.bf16.msra.mxu0 %v13876_v6  ;;  %13243 = vmatpush3.bf16.msra.mxu1 %v13877_v7 }
  0x7c   :  { %13248 = vmatprep.subr.bf16.mxu0 %v13878_v8  ;;  %13264 = vmatprep.subr.bf16.mxu1 %v13879_v9 }
  0x7e   :  { %13229 = vmatmul.mubr.msk.bf16.vlgmr.msra.gmra.mxu0 %vm197_vm1, %v758_v61  ;;  %13245 = vmatmul.mubr.msk.bf16.vlgmr.msra.gmra.mxu1 %vm197_vm1, %v758_v61 }
  0x7f   :  { %13249 = vmatpush3.bf16.msra.mxu0 %v13878_v8  ;;  %13265 = vmatpush3.bf16.msra.mxu1 %v13879_v9 }
  0x80   :  { %13250 = vmatprep.subr.bf16.mxu0 %v13880_v10  ;;  %13266 = vmatprep.subr.bf16.mxu1 %v13881_v11 }
  0x81   :  { %13260 = vmatprep.mubr.msk.bf16.mxu0 %vm197_vm1, %v14772_v28  ;;  %13276 = vmatprep.mubr.msk.bf16.mxu1 %vm197_vm1, %v14772_v28 }
  0x83   :  { %13251 = vmatpush3.bf16.msra.mxu0 %v13880_v10  ;;  %13267 = vmatpush3.bf16.msra.mxu1 %v13881_v11 }
  0x84   :  { %13252 = vmatprep.subr.bf16.mxu0 %v13882_v12  ;;  %13268 = vmatprep.subr.bf16.mxu1 %v13883_v13 }
  0x87   :  { %13253 = vmatpush3.bf16.msra.mxu0 %v13882_v12  ;;  %13269 = vmatpush3.bf16.msra.mxu1 %v13883_v13  ;;  %v70_v12 = vadd.s32 8, %v14953_v57 }
  0x88   :  { %13254 = vmatprep.subr.bf16.mxu0 %v13884_v14  ;;  %13270 = vmatprep.subr.bf16.mxu1 %v13885_v15 }
  0x8b   :  { %13255 = vmatpush3.bf16.msra.mxu0 %v13884_v14  ;;  %13271 = vmatpush3.bf16.msra.mxu1 %v13885_v15 }
  0x8c   :  { %13256 = vmatprep.subr.bf16.mxu0 %v13886_v16  ;;  %13272 = vmatprep.subr.bf16.mxu1 %v13887_v17 }
  0x8f   :  { %13257 = vmatpush3.bf16.msra.mxu0 %v13886_v16  ;;  %13273 = vmatpush3.bf16.msra.mxu1 %v13887_v17 }
  0x90   :  { %13258 = vmatprep.subr.bf16.mxu0 %v13888_v18  ;;  %13274 = vmatprep.subr.bf16.mxu1 %v13889_v19 }
  0x93   :  { %13259 = vmatpush3.bf16.msra.mxu0 %v13888_v18  ;;  %13275 = vmatpush3.bf16.msra.mxu1 %v13889_v19 }
  0x94   :  { %13280 = vmatprep.subr.bf16.mxu0 %v14624_v20  ;;  %13288 = vmatprep.subr.bf16.mxu1 %v14624_v20 }
  0x96   :  { %13261 = vmatmul.mubr.msk.bf16.vlgmr.msra.gmra.mxu0 %vm197_vm1, %v14765_v26  ;;  %13277 = vmatmul.mubr.msk.bf16.vlgmr.msra.gmra.mxu1 %vm197_vm1, %v14765_v26 }
  0x97   :  { %13284 = vmatprep.mubr.msk.bf16.mxu0 %vm14625_vm5, %v14624_v20  ;;  %13292 = vmatprep.mubr.msk.bf16.mxu1 %vm14625_vm5, %v14624_v20 }
  0xf6   :  { %v13134_v21 = vpop.f32.mrf.mxu0  ;;  %v13150_v22 = vpop.f32.mrf.mxu1 }
  0xf8   :  { %v238_v23 = vpop.f32.mrf.mxu0  ;;  %v336_v24 = vpop.f32.mrf.mxu1 }
  0xfa   :  { %v13135_v25 = vpop.f32.mrf.mxu0  ;;  %v13151_v27 = vpop.f32.mrf.mxu1 }
  0xfc   :  { %v241_v28 = vpop.f32.mrf.mxu0  ;;  %v339_v26 = vpop.f32.mrf.mxu1 }
 0x10e   :  { %v13166_v29 = vpop.f32.mrf.mxu0  ;;  %v13182_v30 = vpop.f32.mrf.mxu1 }
 0x10f   :  { %v434_v51 = vadd.f32 %v13166_v29, %v13134_v21  ;;  %v519_v53 = vadd.f32 %v13182_v30, %v13150_v22 }
 0x110   :  { %v425_v31 = vpop.f32.mrf.mxu0  ;;  %v510_v32 = vpop.f32.mrf.mxu1 }
 0x111   :  { %v426_v58 = vadd.f32 %v425_v31, %v238_v23  ;;  %v511_v59 = vadd.f32 %v510_v32, %v336_v24  ;;  %v11495_v24 = vld [vmem:[%s17004_s2] ss:$0 sm:$0xff]  ;;  %v73_v32 = vmul.u32 2, %v14953_v57 }
 0x112   :  { %v13167_v33 = vpop.f32.mrf.mxu0  ;;  %v13183_v34 = vpop.f32.mrf.mxu1 }
 0x113   :  { %v437_v60 = vadd.f32 %v13167_v33, %v13135_v25  ;;  %v522_v63 = vadd.f32 %v13183_v34, %v13151_v27  ;;  %v74_v33 = vmul.u32 2, %v70_v12 }
 0x114   :  { %v428_v35 = vpop.f32.mrf.mxu0  ;;  %v513_v36 = vpop.f32.mrf.mxu1 }
 0x115   :  { %v429_v0 = vadd.f32 %v428_v35, %v241_v28  ;;  %v514_v8 = vadd.f32 %v513_v36, %v339_v26 }
 0x126   :  { %v13198_v37 = vpop.f32.mrf.mxu0  ;;  %v13214_v38 = vpop.f32.mrf.mxu1 }
 0x127   :  { %v733_v54 = vadd.f32 %v13198_v37, %v434_v51  ;;  %v737_v55 = vadd.f32 %v13214_v38, %v519_v53 }
 0x128   :  { %v618_v39 = vpop.f32.mrf.mxu0  ;;  %v716_v40 = vpop.f32.mrf.mxu1 }
 0x129   :  { %v731_v3 = vadd.f32 %v618_v39, %v426_v58  ;;  %v735_v4 = vadd.f32 %v716_v40, %v511_v59  ;;  %v72_v40 = vand.u32 127, %v68_v50  ;;  %v13890_v58 = vld [vmem:[%s17005_s3 + $0x80] ss:$0 sps:$4 sm:$0x33]  }
 0x12a   :  { %v13199_v41 = vpop.f32.mrf.mxu0  ;;  %v13215_v42 = vpop.f32.mrf.mxu1  ;;  %v13891_v59 = vld [vmem:[%s17005_s3 + $0xac] ss:$0 sps:$4 sm:$0x33]  }
 0x12b   :  { %v734_v5 = vadd.f32 %v13199_v41, %v437_v60  ;;  %v738_v9 = vadd.f32 %v13215_v42, %v522_v63  ;;  %vm75_vm6 = vcmp.eq.s32.totalorder %v72_v40, %v73_v32  ;;  %vm76_vm7 = vcmp.eq.s32.totalorder %v72_v40, %v74_v33 }
 0x12c   :  { %v621_v43 = vpop.f32.mrf.mxu0  ;;  %v719_v44 = vpop.f32.mrf.mxu1  ;;  %v14962_v53 = vsel %vm75_vm6, 1.0, %v14624_v20  ;;  %v1369_v63 = vsel %vm1367_vm10, %v13890_v58, 0  ;;  %v13923_v58 = vld [vmem:[%s17005_s3 + $0xe4] sm:$0xff]  }
 0x12d   :  { %v732_v13 = vadd.f32 %v621_v43, %v429_v0  ;;  %v736_v18 = vadd.f32 %v719_v44, %v514_v8  ;;  %v82_v43 = vadd.s32 1, %v73_v32  ;;  %v83_v44 = vadd.s32 1, %v74_v33  ;;  %v13899_v8 = vld [vmem:[%s17005_s3 + $0x8c] sm:$0xff]  }
 0x12e   :  { %v1458_v0 = vsel %vm1367_vm10, %v13891_v59, 0  ;;  %v13924_v59 = vld [vmem:[%s17005_s3 + $0xb0] sm:$0xff]  }
 0x12f   :  { %vm84_vm8 = vcmp.eq.s32.totalorder %v72_v40, %v82_v43  ;;  %vm85_vm9 = vcmp.eq.s32.totalorder %v72_v40, %v83_v44  ;;  %v13910_v40 = vld [vmem:[%s17005_s3 + $0x8] sm:$0xff]   ;;  %v13914_v44 = vld [vmem:[%s17005_s3 + $0xd8] ss:$0 sps:$4 sm:$0x33]  }
 0x130   :  { %v13913_v43 = vld [vmem:[%s17005_s3 + $0x2c] sm:$0xff]  }
 0x13e   :  { %v13230_v45 = vpop.f32.mrf.mxu0  ;;  %v13246_v46 = vpop.f32.mrf.mxu1 }
 0x13f   :  { %v951_v61 = vadd.f32 %v13230_v45, %v733_v54  ;;  %v955_v1 = vadd.f32 %v13246_v46, %v737_v55  ;;  %v11302_v54 = vsel %vm76_vm7, 1.0, %v14624_v20  ;;  %v14966_v55 = vsel %vm84_vm8, 1.0, %v14624_v20 }
 0x140   :  { %v836_v47 = vpop.f32.mrf.mxu0  ;;  %v934_v48 = vpop.f32.mrf.mxu1 }
 0x141   :  { %v949_v14 = vadd.f32 %v836_v47, %v731_v3  ;;  %v953_v15 = vadd.f32 %v934_v48, %v735_v4  ;;  %v13894_v3 = vld [vmem:[%s17005_s3 + $0x70] sm:$0xff]   ;;  %v13895_v4 = vld [vmem:[%s17005_s3 + $0x9c] sm:$0xff]  }
 0x142   :  { %v13231_v49 = vpop.f32.mrf.mxu0  ;;  %v13247_v52 = vpop.f32.mrf.mxu1 }
 0x143   :  { %v952_v16 = vadd.f32 %v13231_v49, %v734_v5  ;;  %v956_v19 = vadd.f32 %v13247_v52, %v738_v9  ;;  %v13896_v5 = vld [vmem:[%s17005_s3 + $0x68] sm:$0xff]   ;;  %v13900_v9 = vld [vmem:[%s17005_s3 + $0x58] sm:$0xff]  }
 0x144   :  { %v839_v56 = vpop.f32.mrf.mxu0  ;;  %v937_v62 = vpop.f32.mrf.mxu1 }
 0x145   :  { %v950_v23 = vadd.f32 %v839_v56, %v732_v13  ;;  %v954_v29 = vadd.f32 %v937_v62, %v736_v18  ;;  %v11304_v56 = vsel %vm85_vm9, 1.0, %v14624_v20 }
 0x146   :  { %v14981_v62 = vpack.c.bf16 %v11304_v56, %v14966_v55  ;;  %v13922_v56 = vld [vmem:[%s17005_s3 + $0xb8] sm:$0xff]  }
 0x156   :  { %v13262_v2 = vpop.f32.mrf.mxu0  ;;  %v13278_v7 = vpop.f32.mrf.mxu1 }
 0x157   :  { %v1165_v6 = vadd.f32 %v13262_v2, %v951_v61  ;;  %v1169_v10 = vadd.f32 %v13278_v7, %v955_v1  ;;  %v14978_v61 = vpack.c.bf16 %v11302_v54, %v14962_v53  ;;  %v13892_v1 = vld [vmem:[%s17005_s3 + $0x78] sm:$0xff]   ;;  %v13893_v2 = vld [vmem:[%s17005_s3 + $0xa4] sm:$0xff]   ;;  %v13921_v54 = vld [vmem:[%s17005_s3 + $0xec] sm:$0xff]  }
 0x158   :  { %v1050_v11 = vpop.f32.mrf.mxu0  ;;  %v1148_v17 = vpop.f32.mrf.mxu1  ;;  %v13898_v7 = vld [vmem:[%s17005_s3 + $0x60] sm:$0xff]  }
 0x159   :  { %v1173_v21 = vmax.f32 %v1165_v6, %v1169_v10  ;;  %v1163_v25 = vadd.f32 %v1050_v11, %v949_v14  ;;  %v1167_v27 = vadd.f32 %v1148_v17, %v953_v15  ;;  %v13897_v6 = vld [vmem:[%s17005_s3 + $0x94] sm:$0xff]   ;;  %v13901_v10 = vld [vmem:[%s17005_s3 + $0x84] sm:$0xff]  }
 0x15a   :  { %v13263_v22 = vpop.f32.mrf.mxu0  ;;  %v13279_v26 = vpop.f32.mrf.mxu1 }
 0x15b   :  { %v1166_v28 = vadd.f32 %v13263_v22, %v952_v16  ;;  %v1170_v30 = vadd.f32 %v13279_v26, %v956_v19  ;;  %v1184_v36 = vadd.f32 %v11495_v24, %v1173_v21  ;;  %v1171_v39 = vmax.f32 %v1163_v25, %v1167_v27  ;;  %v13903_v27 = vld [vmem:[%s17005_s3 + $0x54] ss:$0 sps:$4 sm:$0x33]  }
 0x15c   :  { %v1053_v31 = vpop.f32.mrf.mxu0  ;;  %v1151_v35 = vpop.f32.mrf.mxu1  ;;  %v1614_v32 = vsel %vm1367_vm10, %v13903_v27, 0  ;;  %v13946_v27 = vld [vmem:[%s17005_s3 + $0x168] sm:$0xff]  }
 0x15d   :  { %v1164_v34 = vadd.f32 %v1053_v31, %v950_v23  ;;  %v1174_v37 = vmax.f32 %v1166_v28, %v1170_v30  ;;  %v1168_v38 = vadd.f32 %v1151_v35, %v954_v29  ;;  %v1188_v45 = vmax.f32 %v1184_v36, 0.0  ;;  %v13902_v23 = vld [vmem:[%s17005_s3 + $0x28] ss:$0 sps:$4 sm:$0x33]   ;;  %v13905_v35 = vld [vmem:[%s17005_s3 + $0x4c] sm:$0xff]   ;;  %v13906_v36 = vld [vmem:[%s17005_s3 + $0x18] sm:$0xff]  }
 0x15e   :  { %v1182_v48 = vadd.f32 %v11495_v24, %v1171_v39  ;;  %v1537_v31 = vsel %vm1367_vm10, %v13902_v23, 0  ;;  %v13909_v39 = vld [vmem:[%s17005_s3 + $0x3c] sm:$0xff]   ;;  %v13943_v23 = vld [vmem:[%s17005_s3 + $0x1a4] sm:$0xff]  }
 0x15f   :  { %v1185_v41 = vadd.f32 %v11495_v24, %v1174_v37  ;;  %v1172_v42 = vmax.f32 %v1164_v34, %v1168_v38  ;;  %v13904_v34 = vld [vmem:[%s17005_s3 + $0x20] sm:$0xff]   ;;  %v13908_v38 = vld [vmem:[%s17005_s3 + $0x10] sm:$0xff]  }
 0x160   :  { %v1186_v50 = vmax.f32 %v1182_v48, 0.0  ;;  %v13907_v37 = vld [vmem:[%s17005_s3 + $0x44] sm:$0xff]   ;;  %v13916_v48 = vld [vmem:[%s17005_s3 + $0xd0] sm:$0xff]  }
 0x161   :  { %v1189_v46 = vmax.f32 %v1185_v41, 0.0  ;;  %v1183_v47 = vadd.f32 %v11495_v24, %v1172_v42  ;;  %v13911_v41 = vld [vmem:[%s17005_s3 + $0x34] sm:$0xff]   ;;  %v13912_v42 = vld [vmem:[%s17005_s3] sm:$0xff]  }
 0x163   :  { %v1191_v49 = vpack.c.bf16 %v1189_v46, %v1188_v45  ;;  %v1187_v51 = vmax.f32 %v1183_v47, 0.0  ;;  %v13915_v45 = vld [vmem:[%s17005_s3 + $0x104] ss:$0 sps:$4 sm:$0x33]   ;;  %v1708_v46 = vsel %vm1367_vm10, %v13914_v44, 0 }
 0x164   :  { %v1797_v47 = vsel %vm1367_vm10, %v13915_v45, 0 }
 0x165   :  { %v1198_v52 = vsel %vm970_vm2, %v1191_v49, 0  ;;  %v1190_v60 = vpack.c.bf16 %v1187_v51, %v1186_v50  ;;  %v13917_v49 = vld [vmem:[%s17005_s3 + $0xfc] sm:$0xff]   ;;  %v13918_v51 = vld [vmem:[%s17005_s3 + $0xc8] sm:$0xff]  }
 0x166   :  { %13281 = vmatpush3.bf16.msra.mxu0 %v1198_v52  ;;  %13289 = vmatpush3.bf16.msra.mxu1 %v1198_v52  ;;  %v13919_v52 = vld [vmem:[%s17005_s3 + $0xf4] sm:$0xff]   ;;  %v13920_v50 = vld [vmem:[%s17005_s3 + $0xc0] sm:$0xff]  }
 0x167   :  { %13282 = vmatprep.subr.bf16.mxu0 %v14624_v20  ;;  %13290 = vmatprep.subr.bf16.mxu1 %v14624_v20 }
 0x16a   :  { %13283 = vmatpush3.bf16.msra.mxu0 %v1190_v60  ;;  %13291 = vmatpush3.bf16.msra.mxu1 %v1190_v60  ;;  %v13925_v60 = vld [vmem:[%s17005_s3 + $0xdc] sm:$0xff]  }
 0x16b   :  { %13296 = vmatprep.subr.bf16.mxu0 %v14624_v20  ;;  %13312 = vmatprep.subr.bf16.mxu1 %v14624_v20 }
 0x16d   :  { %13285 = vmatmul.mubr.msk.bf16.vlgmr.msra.gmra.mxu0 %vm1192_vm11, %v14978_v61  ;;  %13293 = vmatmul.mubr.msk.bf16.vlgmr.msra.gmra.mxu1 %vm1192_vm11, %v14981_v62 }
 0x16e   :  { %13297 = vmatpush3.bf16.msra.mxu0 %v1369_v63  ;;  %13313 = vmatpush3.bf16.msra.mxu1 %v1458_v0  ;;  %v13926_v63 = vld [vmem:[%s17005_s3 + $0x130] ss:$0 sps:$4 sm:$0x33]   ;;  %v13927_v0 = vld [vmem:[%s17005_s3 + $0x15c] ss:$0 sps:$4 sm:$0x33]  }
 0x16f   :  { %13298 = vmatprep.subr.bf16.mxu0 %v14624_v20  ;;  %13314 = vmatprep.subr.bf16.mxu1 %v14624_v20 }
 0x170   :  { %13308 = vmatprep.mubr.msk.bf16.mxu0 %vm14625_vm5, %v14624_v20  ;;  %13324 = vmatprep.mubr.msk.bf16.mxu1 %vm14625_vm5, %v14624_v20 }
 0x172   :  { %13299 = vmatpush3.bf16.msra.mxu0 %v13892_v1  ;;  %13315 = vmatpush3.bf16.msra.mxu1 %v13893_v2  ;;  %v1896_v2 = vsel %vm1367_vm10, %v13926_v63, 0 }
 0x173   :  { %13300 = vmatprep.subr.bf16.mxu0 %v14624_v20  ;;  %13316 = vmatprep.subr.bf16.mxu1 %v14624_v20 }
 0x176   :  { %13301 = vmatpush3.bf16.msra.mxu0 %v13894_v3  ;;  %13317 = vmatpush3.bf16.msra.mxu1 %v13895_v4  ;;  %v1985_v3 = vsel %vm1367_vm10, %v13927_v0, 0  ;;  %v13928_v4 = vld [vmem:[%s17005_s3 + $0x128] sm:$0xff]  }
 0x177   :  { %13302 = vmatprep.subr.bf16.mxu0 %v14624_v20  ;;  %13318 = vmatprep.subr.bf16.mxu1 %v14624_v20 }
 0x17a   :  { %13303 = vmatpush3.bf16.msra.mxu0 %v13896_v5  ;;  %13319 = vmatpush3.bf16.msra.mxu1 %v13897_v6  ;;  %v13929_v5 = vld [vmem:[%s17005_s3 + $0x154] sm:$0xff]   ;;  %v13930_v6 = vld [vmem:[%s17005_s3 + $0x120] sm:$0xff]  }
 0x17b   :  { %13304 = vmatprep.subr.bf16.mxu0 %v14624_v20  ;;  %13320 = vmatprep.subr.bf16.mxu1 %v14624_v20 }
 0x17e   :  { %13305 = vmatpush3.bf16.msra.mxu0 %v13898_v7  ;;  %13321 = vmatpush3.bf16.msra.mxu1 %v13899_v8  ;;  %v13931_v7 = vld [vmem:[%s17005_s3 + $0x14c] sm:$0xff]   ;;  %v13932_v8 = vld [vmem:[%s17005_s3 + $0x118] sm:$0xff]  }
 0x17f   :  { %13306 = vmatprep.subr.bf16.mxu0 %v14624_v20  ;;  %13322 = vmatprep.subr.bf16.mxu1 %v14624_v20 }
 0x182   :  { %13307 = vmatpush3.bf16.msra.mxu0 %v13900_v9  ;;  %13323 = vmatpush3.bf16.msra.mxu1 %v13901_v10  ;;  %v13933_v9 = vld [vmem:[%s17005_s3 + $0x144] sm:$0xff]   ;;  %v13934_v10 = vld [vmem:[%s17005_s3 + $0x110] sm:$0xff]  }
 0x183   :  { %13328 = vmatprep.subr.bf16.mxu0 %v14624_v20  ;;  %13344 = vmatprep.subr.bf16.mxu1 %v14624_v20 }
 0x22d   :  { %v1234_v11 = vpop.f32.mrf.mxu0  ;;  %v1278_v12 = vpop.f32.mrf.mxu1 }
 0x22e   :  { %v1285_v17 = vmax.f32 %v1234_v11, %v1278_v12  ;;  %v13935_v11 = vld [vmem:[%s17005_s3 + $0x13c] sm:$0xff]   ;;  %v13936_v12 = vld [vmem:[%s17005_s3 + $0x108] sm:$0xff]  }
 0x22f   :  { %v13286_v13 = vpop.f32.mrf.mxu0  ;;  %v13294_v14 = vpop.f32.mrf.mxu1 }
 0x230   :  { %v13937_v13 = vld [vmem:[%s17005_s3 + $0x134] sm:$0xff]   ;;  %v13938_v14 = vld [vmem:[%s17005_s3 + $0x188] ss:$0 sps:$4 sm:$0x33]  }
 0x231   :  { %v1237_v15 = vpop.f32.mrf.mxu0  ;;  %v1281_v16 = vpop.f32.mrf.mxu1 }
 0x232   :  { %v1286_v18 = vmax.f32 %v1237_v15, %v1281_v16  ;;  %v13939_v15 = vld [vmem:[%s17005_s3 + $0x1b4] ss:$0 sps:$4 sm:$0x33]   ;;  %v2082_v16 = vsel %vm1367_vm10, %v13938_v14, 0 }
 0x233   :  { %v13287_v19 = vpop.f32.mrf.mxu0  ;;  %v13295_v21 = vpop.f32.mrf.mxu1 }
 0x234   :  { %v15037_v22 = vpack.c.bf16 %v1286_v18, %v1285_v17  ;;  %v2171_v17 = vsel %vm1367_vm10, %v13939_v15, 0  ;;  %v13940_v18 = vld [vmem:[%s17005_s3 + $0x180] sm:$0xff]   ;;  %v13941_v19 = vld [vmem:[%s17005_s3 + $0x1ac] sm:$0xff]   ;;  %v13942_v21 = vld [vmem:[%s17005_s3 + $0x178] sm:$0xff]  }
 0x236   :  { %v1324_v24 = vshrl.u32 %v15037_v22, 16  ;;  %v1326_v25 = vshll.u32 %v15037_v22, 16  ;;  %v1670_v1 = vrot.slane %v15037_v22, 1 }
 0x238   :  { %v1328_v28 = vrot.slane %v1326_v25, 1  ;;  %v1856_v26 = vrot.slane %v1324_v24, 1  ;;  %v1857_v29 = vrot.slane %v1326_v25, 2  ;;  %v13945_v25 = vld [vmem:[%s17005_s3 + $0x19c] sm:$0xff]  }
 0x23a   :  { %v1329_v30 = vor.u32 %v1328_v28, %v1324_v24  ;;  %v15049_v33 = vor.u32 %v1857_v29, %v1856_v26  ;;  %v13944_v24 = vld [vmem:[%s17005_s3 + $0x170] sm:$0xff]   ;;  %v13948_v26 = vld [vmem:[%s17005_s3 + $0x160] sm:$0xff]  }
 0x23b   :  { %v13947_v28 = vld [vmem:[%s17005_s3 + $0x194] sm:$0xff]   ;;  %v13949_v29 = vld [vmem:[%s17005_s3 + $0x18c] sm:$0xff]  }
 0x23c   :  { %13309 = vmatmul.mubr.msk.bf16.vlgmr.msra.gmra.mxu0 %vm1363_vm12, %v1329_v30  ;;  %13325 = vmatmul.mubr.msk.bf16.vlgmr.msra.gmra.mxu1 %vm1363_vm12, %v1329_v30  ;;  %v2044_v30 = vrot.slane %v15037_v22, 2 }
 0x23d   :  { %13329 = vmatpush3.bf16.msra.mxu0 %v1537_v31  ;;  %13345 = vmatpush3.bf16.msra.mxu1 %v1614_v32 }
 0x23e   :  { %13330 = vmatprep.subr.bf16.mxu0 %v14624_v20  ;;  %13346 = vmatprep.subr.bf16.mxu1 %v14624_v20 }
 0x23f   :  { %13340 = vmatprep.mubr.msk.bf16.mxu0 %vm14625_vm5, %v14624_v20  ;;  %13356 = vmatprep.mubr.msk.bf16.mxu1 %vm14625_vm5, %v14624_v20 }
 0x241   :  { %13331 = vmatpush3.bf16.msra.mxu0 %v13904_v34  ;;  %13347 = vmatpush3.bf16.msra.mxu1 %v13905_v35 }
 0x242   :  { %13332 = vmatprep.subr.bf16.mxu0 %v14624_v20  ;;  %13348 = vmatprep.subr.bf16.mxu1 %v14624_v20 }
 0x245   :  { %13333 = vmatpush3.bf16.msra.mxu0 %v13906_v36  ;;  %13349 = vmatpush3.bf16.msra.mxu1 %v13907_v37 }
 0x246   :  { %13334 = vmatprep.subr.bf16.mxu0 %v14624_v20  ;;  %13350 = vmatprep.subr.bf16.mxu1 %v14624_v20 }
 0x249   :  { %13335 = vmatpush3.bf16.msra.mxu0 %v13908_v38  ;;  %13351 = vmatpush3.bf16.msra.mxu1 %v13909_v39 }
 0x24a   :  { %13336 = vmatprep.subr.bf16.mxu0 %v14624_v20  ;;  %13352 = vmatprep.subr.bf16.mxu1 %v14624_v20 }
 0x24d   :  { %13337 = vmatpush3.bf16.msra.mxu0 %v13910_v40  ;;  %13353 = vmatpush3.bf16.msra.mxu1 %v13911_v41 }
 0x24e   :  { %13338 = vmatprep.subr.bf16.mxu0 %v14624_v20  ;;  %13354 = vmatprep.subr.bf16.mxu1 %v14624_v20 }
 0x251   :  { %13339 = vmatpush3.bf16.msra.mxu0 %v13912_v42  ;;  %13355 = vmatpush3.bf16.msra.mxu1 %v13913_v43 }
 0x252   :  { %13360 = vmatprep.subr.bf16.mxu0 %v14624_v20  ;;  %13376 = vmatprep.subr.bf16.mxu1 %v14624_v20 }
 0x254   :  { %13341 = vmatmul.mubr.msk.bf16.vlgmr.msra.gmra.mxu0 %vm1363_vm12, %v15037_v22  ;;  %13357 = vmatmul.mubr.msk.bf16.vlgmr.msra.gmra.mxu1 %vm1363_vm12, %v15037_v22 }
 0x255   :  { %13361 = vmatpush3.bf16.msra.mxu0 %v1708_v46  ;;  %13377 = vmatpush3.bf16.msra.mxu1 %v1797_v47 }
 0x256   :  { %13362 = vmatprep.subr.bf16.mxu0 %v14624_v20  ;;  %13378 = vmatprep.subr.bf16.mxu1 %v14624_v20 }
 0x257   :  { %13372 = vmatprep.mubr.msk.bf16.mxu0 %vm14625_vm5, %v14624_v20  ;;  %13388 = vmatprep.mubr.msk.bf16.mxu1 %vm14625_vm5, %v14624_v20 }
 0x259   :  { %13363 = vmatpush3.bf16.msra.mxu0 %v13916_v48  ;;  %13379 = vmatpush3.bf16.msra.mxu1 %v13917_v49 }
 0x25a   :  { %13364 = vmatprep.subr.bf16.mxu0 %v14624_v20  ;;  %13380 = vmatprep.subr.bf16.mxu1 %v14624_v20 }
 0x25d   :  { %13365 = vmatpush3.bf16.msra.mxu0 %v13918_v51  ;;  %13381 = vmatpush3.bf16.msra.mxu1 %v13919_v52 }
 0x25e   :  { %13366 = vmatprep.subr.bf16.mxu0 %v14624_v20  ;;  %13382 = vmatprep.subr.bf16.mxu1 %v14624_v20 }
 0x261   :  { %13367 = vmatpush3.bf16.msra.mxu0 %v13920_v50  ;;  %13383 = vmatpush3.bf16.msra.mxu1 %v13921_v54 }
 0x262   :  { %13368 = vmatprep.subr.bf16.mxu0 %v14624_v20  ;;  %13384 = vmatprep.subr.bf16.mxu1 %v14624_v20 }
 0x265   :  { %13369 = vmatpush3.bf16.msra.mxu0 %v13922_v56  ;;  %13385 = vmatpush3.bf16.msra.mxu1 %v13923_v58 }
 0x266   :  { %13370 = vmatprep.subr.bf16.mxu0 %v14624_v20  ;;  %13386 = vmatprep.subr.bf16.mxu1 %v14624_v20 }
 0x269   :  { %13371 = vmatpush3.bf16.msra.mxu0 %v13924_v59  ;;  %13387 = vmatpush3.bf16.msra.mxu1 %v13925_v60 }
 0x26a   :  { %13392 = vmatprep.subr.bf16.mxu0 %v14624_v20  ;;  %13408 = vmatprep.subr.bf16.mxu1 %v14624_v20 }
 0x26c   :  { %13373 = vmatmul.mubr.msk.bf16.vlgmr.msra.gmra.mxu0 %vm1363_vm12, %v1670_v1  ;;  %13389 = vmatmul.mubr.msk.bf16.vlgmr.msra.gmra.mxu1 %vm1363_vm12, %v1670_v1 }
 0x26d   :  { %13393 = vmatpush3.bf16.msra.mxu0 %v1896_v2  ;;  %13409 = vmatpush3.bf16.msra.mxu1 %v1985_v3 }
 0x26e   :  { %13394 = vmatprep.subr.bf16.mxu0 %v14624_v20  ;;  %13410 = vmatprep.subr.bf16.mxu1 %v14624_v20 }
 0x26f   :  { %13404 = vmatprep.mubr.msk.bf16.mxu0 %vm14625_vm5, %v14624_v20  ;;  %13420 = vmatprep.mubr.msk.bf16.mxu1 %vm14625_vm5, %v14624_v20 }
 0x271   :  { %13395 = vmatpush3.bf16.msra.mxu0 %v13928_v4  ;;  %13411 = vmatpush3.bf16.msra.mxu1 %v13929_v5 }
 0x272   :  { %13396 = vmatprep.subr.bf16.mxu0 %v14624_v20  ;;  %13412 = vmatprep.subr.bf16.mxu1 %v14624_v20 }
 0x275   :  { %13397 = vmatpush3.bf16.msra.mxu0 %v13930_v6  ;;  %13413 = vmatpush3.bf16.msra.mxu1 %v13931_v7 }
 0x276   :  { %13398 = vmatprep.subr.bf16.mxu0 %v14624_v20  ;;  %13414 = vmatprep.subr.bf16.mxu1 %v14624_v20 }
 0x279   :  { %13399 = vmatpush3.bf16.msra.mxu0 %v13932_v8  ;;  %13415 = vmatpush3.bf16.msra.mxu1 %v13933_v9 }
 0x27a   :  { %13400 = vmatprep.subr.bf16.mxu0 %v14624_v20  ;;  %13416 = vmatprep.subr.bf16.mxu1 %v14624_v20 }
 0x27d   :  { %13401 = vmatpush3.bf16.msra.mxu0 %v13934_v10  ;;  %13417 = vmatpush3.bf16.msra.mxu1 %v13935_v11 }
 0x27e   :  { %13402 = vmatprep.subr.bf16.mxu0 %v14624_v20  ;;  %13418 = vmatprep.subr.bf16.mxu1 %v14624_v20 }
 0x281   :  { %13403 = vmatpush3.bf16.msra.mxu0 %v13936_v12  ;;  %13419 = vmatpush3.bf16.msra.mxu1 %v13937_v13 }
 0x282   :  { %13424 = vmatprep.subr.bf16.mxu0 %v14624_v20  ;;  %13440 = vmatprep.subr.bf16.mxu1 %v14624_v20 }
 0x284   :  { %13405 = vmatmul.mubr.msk.bf16.vlgmr.msra.gmra.mxu0 %vm1363_vm12, %v15049_v33  ;;  %13421 = vmatmul.mubr.msk.bf16.vlgmr.msra.gmra.mxu1 %vm1363_vm12, %v15049_v33 }
 0x285   :  { %13425 = vmatpush3.bf16.msra.mxu0 %v2082_v16  ;;  %13441 = vmatpush3.bf16.msra.mxu1 %v2171_v17 }
 0x286   :  { %13426 = vmatprep.subr.bf16.mxu0 %v14624_v20  ;;  %13442 = vmatprep.subr.bf16.mxu1 %v14624_v20 }
 0x287   :  { %13436 = vmatprep.mubr.msk.bf16.mxu0 %vm14625_vm5, %v14624_v20  ;;  %13452 = vmatprep.mubr.msk.bf16.mxu1 %vm14625_vm5, %v14624_v20 }
 0x289   :  { %13427 = vmatpush3.bf16.msra.mxu0 %v13940_v18  ;;  %13443 = vmatpush3.bf16.msra.mxu1 %v13941_v19 }
 0x28a   :  { %13428 = vmatprep.subr.bf16.mxu0 %v14624_v20  ;;  %13444 = vmatprep.subr.bf16.mxu1 %v14624_v20 }
 0x28d   :  { %13429 = vmatpush3.bf16.msra.mxu0 %v13942_v21  ;;  %13445 = vmatpush3.bf16.msra.mxu1 %v13943_v23 }
 0x28e   :  { %13430 = vmatprep.subr.bf16.mxu0 %v14624_v20  ;;  %13446 = vmatprep.subr.bf16.mxu1 %v14624_v20 }
 0x291   :  { %13431 = vmatpush3.bf16.msra.mxu0 %v13944_v24  ;;  %13447 = vmatpush3.bf16.msra.mxu1 %v13945_v25  ;;  %v11667_v24 = vld [vmem:[%s17006_s4] ss:$0 sm:$0xff] }
 0x292   :  { %13432 = vmatprep.subr.bf16.mxu0 %v14624_v20  ;;  %13448 = vmatprep.subr.bf16.mxu1 %v14624_v20 }
 0x295   :  { %13433 = vmatpush3.bf16.msra.mxu0 %v13946_v27  ;;  %13449 = vmatpush3.bf16.msra.mxu1 %v13947_v28 }
 0x296   :  { %13434 = vmatprep.subr.bf16.mxu0 %v14624_v20  ;;  %13450 = vmatprep.subr.bf16.mxu1 %v14624_v20 }
 0x299   :  { %13435 = vmatpush3.bf16.msra.mxu0 %v13948_v26  ;;  %13451 = vmatpush3.bf16.msra.mxu1 %v13949_v29 }
 0x29a   :  { %13456 = vmatprep.subr.bf16.mxu0 %v14624_v20  ;;  %13462 = vmatprep.subr.bf16.mxu1 %v14624_v20 }
 0x29c   :  { %13437 = vmatmul.mubr.msk.bf16.vlgmr.msra.gmra.mxu0 %vm1363_vm12, %v2044_v30  ;;  %13453 = vmatmul.mubr.msk.bf16.vlgmr.msra.gmra.mxu1 %vm1363_vm12, %v2044_v30 }
 0x29d   :  { %13458 = vmatprep.mubr.msk.bf16.mxu0 %vm14625_vm5, %v14624_v20  ;;  %13464 = vmatprep.mubr.msk.bf16.mxu1 %vm14625_vm5, %v14624_v20 }
 0x2fc   :  { %v1405_v31 = vpop.f32.mrf.mxu0  ;;  %v1494_v32 = vpop.f32.mrf.mxu1 }
 0x2fe   :  { %v13310_v33 = vpop.f32.mrf.mxu0  ;;  %v13326_v34 = vpop.f32.mrf.mxu1 }
 0x2ff   :  { %v2398_v34 = vld [vmem:[#allocation3 + $0x240] sm:$0xff] }
 0x300   :  { %v1408_v35 = vpop.f32.mrf.mxu0  ;;  %v1497_v22 = vpop.f32.mrf.mxu1 }
 0x302   :  { %v13311_v36 = vpop.f32.mrf.mxu0  ;;  %v13327_v37 = vpop.f32.mrf.mxu1 }
 0x303   :  { %v2403_v36 = vld [vmem:[#allocation3 + $0x268] sm:$0xff] }
 0x314   :  { %v1573_v38 = vpop.f32.mrf.mxu0  ;;  %v1650_v39 = vpop.f32.mrf.mxu1 }
 0x315   :  { %v1574_v40 = vadd.f32 %v1573_v38, %v1405_v31  ;;  %v1651_v41 = vadd.f32 %v1650_v39, %v1494_v32 }
 0x316   :  { %v13342_v42 = vpop.f32.mrf.mxu0  ;;  %v13358_v43 = vpop.f32.mrf.mxu1 }
 0x317   :  { %v2390_v42 = vld [vmem:[#allocation3 + $0x200] sm:$0xff] }
 0x318   :  { %v1576_v44 = vpop.f32.mrf.mxu0  ;;  %v1653_v45 = vpop.f32.mrf.mxu1  ;;  %v2394_v43 = vld [vmem:[#allocation3 + $0x220] sm:$0xff] }
 0x319   :  { %v1577_v46 = vadd.f32 %v1576_v44, %v1408_v35  ;;  %v1654_v47 = vadd.f32 %v1653_v45, %v1497_v22  ;;  %v2402_v35 = vld [vmem:[#allocation3 + $0x260] sm:$0xff]  ;;  %v2399_v22 = vld [vmem:[#allocation3 + $0x248] sm:$0xff] }
 0x31a   :  { %v13343_v48 = vpop.f32.mrf.mxu0  ;;  %v13359_v49 = vpop.f32.mrf.mxu1  ;;  %v2391_v44 = vld [vmem:[#allocation3 + $0x208] sm:$0xff] }
 0x31b   :  { %v2395_v45 = vld [vmem:[#allocation3 + $0x228] sm:$0xff]  ;;  %v15289_v48 = vpack.c.bf16 %v14966_v55, %v14966_v55  ;;  %v11702_v49 = vcombine.low %v2398_v34, %v2402_v35 }
 0x31c   :  { %v11696_v55 = vcombine.low %v2391_v44, %v2395_v45 }
 0x32c   :  { %v1744_v51 = vpop.f32.mrf.mxu0  ;;  %v1833_v52 = vpop.f32.mrf.mxu1 }
 0x32d   :  { %v1840_v7 = vadd.f32 %v1744_v51, %v1574_v40  ;;  %v1842_v8 = vadd.f32 %v1833_v52, %v1651_v41  ;;  %v11703_v40 = vcombine.high %v2398_v34, %v2402_v35  ;;  %v11705_v41 = vcombine.high %v2399_v22, %v2403_v36  ;;  %v2396_v35 = vld [vmem:[#allocation3 + $0x230] sm:$0xff] }
 0x32e   :  { %v13374_v50 = vpop.f32.mrf.mxu0  ;;  %v13390_v54 = vpop.f32.mrf.mxu1  ;;  %v11704_v51 = vcombine.low %v2399_v22, %v2403_v36  ;;  %v11695_v52 = vcombine.high %v2390_v42, %v2394_v43  ;;  %v2393_v22 = vld [vmem:[#allocation3 + $0x218] sm:$0xff] }
 0x32f   :  { %v11697_v50 = vcombine.high %v2391_v44, %v2395_v45  ;;  %v2382_v54 = vld [vmem:[#allocation3 + $0x1c0] sm:$0xff]  ;;  %v2397_v36 = vld [vmem:[#allocation3 + $0x238] sm:$0xff] }
 0x330   :  { %v1747_v56 = vpop.f32.mrf.mxu0  ;;  %v1836_v58 = vpop.f32.mrf.mxu1 }
 0x331   :  { %v1841_v13 = vadd.f32 %v1747_v56, %v1577_v46  ;;  %v1843_v14 = vadd.f32 %v1836_v58, %v1654_v47  ;;  %v15285_v47 = vpack.c.bf16 %v14962_v53, %v14962_v53  ;;  %v2386_v56 = vld [vmem:[#allocation3 + $0x1e0] sm:$0xff]  ;;  %v2383_v58 = vld [vmem:[#allocation3 + $0x1c8] sm:$0xff]  ;;  %v11694_v53 = vcombine.low %v2390_v42, %v2394_v43  ;;  %v2384_v43 = vld [vmem:[#allocation3 + $0x1d0] sm:$0xff] }
 0x332   :  { %v13375_v59 = vpop.f32.mrf.mxu0  ;;  %v13391_v60 = vpop.f32.mrf.mxu1  ;;  %v11701_v42 = vcombine.high %v2393_v22, %v2397_v36 }
 0x333   :  { %v2387_v59 = vld [vmem:[#allocation3 + $0x1e8] sm:$0xff]  ;;  %v11687_v60 = vcombine.high %v2382_v54, %v2386_v56 }
 0x344   :  { %v1932_v63 = vpop.f32.mrf.mxu0  ;;  %v2021_v0 = vpop.f32.mrf.mxu1 }
 0x345   :  { %v2028_v9 = vadd.f32 %v1932_v63, %v1840_v7  ;;  %v2030_v10 = vadd.f32 %v2021_v0, %v1842_v8  ;;  %v11689_v63 = vcombine.high %v2383_v58, %v2387_v59  ;;  %v2374_v0 = vld [vmem:[#allocation3 + $0x180] sm:$0xff] }
 0x346   :  { %v13406_v1 = vpop.f32.mrf.mxu0  ;;  %v13422_v2 = vpop.f32.mrf.mxu1 }
 0x347   :  { %v2378_v1 = vld [vmem:[#allocation3 + $0x1a0] sm:$0xff]  ;;  %v2375_v2 = vld [vmem:[#allocation3 + $0x188] sm:$0xff] }
 0x348   :  { %v1935_v3 = vpop.f32.mrf.mxu0  ;;  %v2024_v4 = vpop.f32.mrf.mxu1  ;;  %v11678_v8 = vcombine.low %v2374_v0, %v2378_v1 }
 0x349   :  { %v2029_v19 = vadd.f32 %v1935_v3, %v1841_v13  ;;  %v2031_v21 = vadd.f32 %v2024_v4, %v1843_v14  ;;  %v2379_v3 = vld [vmem:[#allocation3 + $0x1a8] sm:$0xff]  ;;  %v11686_v4 = vcombine.low %v2382_v54, %v2386_v56 }
 0x34a   :  { %v13407_v5 = vpop.f32.mrf.mxu0  ;;  %v13423_v6 = vpop.f32.mrf.mxu1  ;;  %v11681_v7 = vcombine.high %v2375_v2, %v2379_v3  ;;  %v2371_v14 = vld [vmem:[#allocation3 + $0x168] sm:$0xff] }
 0x34b   :  { %v11688_v5 = vcombine.low %v2383_v58, %v2387_v59  ;;  %v11679_v6 = vcombine.high %v2374_v0, %v2378_v1  ;;  %v2376_v58 = vld [vmem:[#allocation3 + $0x190] sm:$0xff] }
 0x34c   :  { %v2380_v59 = vld [vmem:[#allocation3 + $0x1b0] sm:$0xff] }
 0x34d   :  { %v11683_v0 = vcombine.high %v2376_v58, %v2380_v59 }
 0x35c   :  { %v2118_v11 = vpop.f32.mrf.mxu0  ;;  %v2207_v12 = vpop.f32.mrf.mxu1 }
 0x35d   :  { %v2214_v15 = vadd.f32 %v2118_v11, %v2028_v9  ;;  %v2216_v16 = vadd.f32 %v2207_v12, %v2030_v10  ;;  %v11680_v9 = vcombine.low %v2375_v2, %v2379_v3  ;;  %v2366_v10 = vld [vmem:[#allocation3 + $0x140] sm:$0xff]  ;;  %v2367_v12 = vld [vmem:[#allocation3 + $0x148] sm:$0xff]  ;;  %v2368_v2 = vld [vmem:[#allocation3 + $0x150] sm:$0xff] }
 0x35e   :  { %v13438_v17 = vpop.f32.mrf.mxu0  ;;  %v13454_v18 = vpop.f32.mrf.mxu1  ;;  %v2370_v11 = vld [vmem:[#allocation3 + $0x160] sm:$0xff]  ;;  %v2372_v3 = vld [vmem:[#allocation3 + $0x170] sm:$0xff] }
 0x35f   :  { %v2218_v23 = vmax.f32 %v2214_v15, %v2216_v16  ;;  %v11671_v13 = vcombine.high %v2366_v10, %v2370_v11  ;;  %v11670_v15 = vcombine.low %v2366_v10, %v2370_v11  ;;  %v11672_v16 = vcombine.low %v2367_v12, %v2371_v14  ;;  %v2400_v18 = vld [vmem:[#allocation3 + $0x250] sm:$0xff]  ;;  %v2357_v10 = vld [vmem:[#allocation3 + $0x100] sm:$0xff] }
 0x360   :  { %v2121_v25 = vpop.f32.mrf.mxu0  ;;  %v2210_v27 = vpop.f32.mrf.mxu1  ;;  %v11673_v17 = vcombine.high %v2367_v12, %v2371_v14  ;;  %v2361_v11 = vld [vmem:[#allocation3 + $0x120] sm:$0xff]  ;;  %v2358_v12 = vld [vmem:[#allocation3 + $0x108] sm:$0xff]  ;;  %v11674_v14 = vcombine.low %v2368_v2, %v2372_v3 }
 0x361   :  { %v2215_v28 = vadd.f32 %v2121_v25, %v2029_v19  ;;  %v2217_v26 = vadd.f32 %v2210_v27, %v2031_v21  ;;  %v2227_v31 = vadd.f32 %v11667_v24, %v2218_v23  ;;  %v2404_v19 = vld [vmem:[#allocation3 + $0x270] sm:$0xff]  ;;  %v2401_v21 = vld [vmem:[#allocation3 + $0x258] sm:$0xff] }
 0x362   :  { %v13439_v29 = vpop.f32.mrf.mxu0  ;;  %v13455_v30 = vpop.f32.mrf.mxu1  ;;  %v11707_v23 = vcombine.high %v2400_v18, %v2404_v19  ;;  %v11706_v25 = vcombine.low %v2400_v18, %v2404_v19  ;;  %v2349_v18 = vld [vmem:[#allocation3 + $0xc0] sm:$0xff] }
 0x363   :  { %v2219_v32 = vmax.f32 %v2215_v28, %v2217_v26  ;;  %v2229_v37 = vmax.f32 %v2227_v31, 0.0  ;;  %v14626_v26 = vmov 0   ;;  %v2353_v19 = vld [vmem:[#allocation3 + $0xe0] sm:$0xff] }
 0x365   :  { %v2228_v33 = vadd.f32 %v11667_v24, %v2219_v32  ;;  %v2405_v24 = vld [vmem:[#allocation3 + $0x278] sm:$0xff]  ;;  %v2392_v32 = vld [vmem:[#allocation3 + $0x210] sm:$0xff] }
 0x366   :  { %v11708_v27 = vcombine.low %v2401_v21, %v2405_v24  ;;  %v11709_v28 = vcombine.high %v2401_v21, %v2405_v24  ;;  %v2350_v21 = vld [vmem:[#allocation3 + $0xc8] sm:$0xff]  ;;  %v11746_v24 = vcombine.low %v2357_v10, %v2361_v11 }
 0x367   :  { %v2230_v38 = vmax.f32 %v2228_v33, 0.0 }
 0x369   :  { %v2231_v39 = vpack.c.bf16 %v2230_v38, %v2229_v37 }
 0x36b   :  { %v2238_v46 = vsel %vm2236_vm13, %v2231_v39, 0 }
 0x36c   :  { %13457 = vmatpush3.bf16.msra.mxu0 %v2238_v46  ;;  %13463 = vmatpush3.bf16.msra.mxu1 %v2238_v46  ;;  %v2388_v46 = vld [vmem:[#allocation3 + $0x1f0] sm:$0xff] }
 0x36d   :  { %2619 = vmatprep.subr.bf16.mxu0 %v11703_v40  ;;  %2660 = vmatprep.subr.bf16.mxu1 %v11705_v41  ;;  %v11699_v41 = vcombine.high %v2392_v32, %v2396_v35  ;;  %v11691_v54 = vcombine.high %v2384_v43, %v2388_v46 }
 0x36f   :  { %13459 = vmatmul.mubr.msk.bf16.vlgmr.msra.gmra.mxu0 %vm2232_vm14, %v15285_v47  ;;  %13465 = vmatmul.mubr.msk.bf16.vlgmr.msra.gmra.mxu1 %vm2232_vm14, %v15289_v48 }
 0x370   :  { %2620 = vmatpush1.bf16.msra.mxu0 %v11702_v49  ;;  %2661 = vmatpush1.bf16.msra.mxu1 %v11704_v51  ;;  %v2385_v49 = vld [vmem:[#allocation3 + $0x1d8] sm:$0xff] }
 0x371   :  { %2621 = vmatprep.subr.bf16.mxu0 %v11695_v52  ;;  %2662 = vmatprep.subr.bf16.mxu1 %v11697_v50  ;;  %v2389_v51 = vld [vmem:[#allocation3 + $0x1f8] sm:$0xff]  ;;  %v11698_v52 = vcombine.low %v2392_v32, %v2396_v35  ;;  %v11700_v50 = vcombine.low %v2393_v22, %v2397_v36  ;;  %v2346_v32 = vld [vmem:[#allocation3 + $0xa8] sm:$0xff]  ;;  %v2333_v36 = vld [vmem:[#allocation3 + $0x40] sm:$0xff] }
 0x372   :  { %2645 = vmatprep.mubr.bf16.mxu0 %v14626_v26  ;;  %2686 = vmatprep.mubr.bf16.mxu1 %v14626_v26  ;;  %v11693_v56 = vcombine.high %v2385_v49, %v2389_v51 }
 0x374   :  { %2622 = vmatpush1.bf16.msra.mxu0 %v11694_v53  ;;  %2663 = vmatpush1.bf16.msra.mxu1 %v11696_v55  ;;  %v2377_v53 = vld [vmem:[#allocation3 + $0x198] sm:$0xff] }
 0x375   :  { %2623 = vmatprep.subr.bf16.mxu0 %v11687_v60  ;;  %2664 = vmatprep.subr.bf16.mxu1 %v11689_v63  ;;  %v2381_v55 = vld [vmem:[#allocation3 + $0x1b8] sm:$0xff]  ;;  %v11690_v60 = vcombine.low %v2384_v43, %v2388_v46  ;;  %v11692_v63 = vcombine.low %v2385_v49, %v2389_v51  ;;  %v2325_v46 = vld [vmem:[#allocation3] sm:$0xff]  ;;  %v2326_v51 = vld [vmem:[#allocation3 + $0x8] sm:$0xff] }
 0x376   :  { %v11685_v1 = vcombine.high %v2377_v53, %v2381_v55  ;;  %v2329_v49 = vld [vmem:[#allocation3 + $0x20] sm:$0xff] }
 0x378   :  { %2624 = vmatpush1.bf16.msra.mxu0 %v11686_v4  ;;  %2665 = vmatpush1.bf16.msra.mxu1 %v11688_v5  ;;  %v2369_v4 = vld [vmem:[#allocation3 + $0x158] sm:$0xff] }
 0x379   :  { %2625 = vmatprep.subr.bf16.mxu0 %v11679_v6  ;;  %2666 = vmatprep.subr.bf16.mxu1 %v11681_v7  ;;  %v2373_v5 = vld [vmem:[#allocation3 + $0x178] sm:$0xff]  ;;  %v11682_v6 = vcombine.low %v2376_v58, %v2380_v59  ;;  %v11684_v7 = vcombine.low %v2377_v53, %v2381_v55  ;;  %v2359_v59 = vld [vmem:[#allocation3 + $0x110] sm:$0xff] }
 0x37a   :  { %v2363_v53 = vld [vmem:[#allocation3 + $0x130] sm:$0xff]  ;;  %v2360_v55 = vld [vmem:[#allocation3 + $0x118] sm:$0xff] }
 0x37c   :  { %2626 = vmatpush1.bf16.msra.mxu0 %v11678_v8  ;;  %2667 = vmatpush1.bf16.msra.mxu1 %v11680_v9  ;;  %v11675_v8 = vcombine.high %v2368_v2, %v2372_v3  ;;  %v11677_v9 = vcombine.high %v2369_v4, %v2373_v5  ;;  %v2351_v3 = vld [vmem:[#allocation3 + $0xd0] sm:$0xff] }
 0x37d   :  { %2627 = vmatprep.subr.bf16.mxu0 %v11671_v13  ;;  %2668 = vmatprep.subr.bf16.mxu1 %v11673_v17  ;;  %v2362_v13 = vld [vmem:[#allocation3 + $0x128] sm:$0xff] }
 0x37e   :  { %v11749_v17 = vcombine.high %v2358_v12, %v2362_v13 }
 0x380   :  { %2628 = vmatpush1.bf16.msra.mxu0 %v11670_v15  ;;  %2669 = vmatpush1.bf16.msra.mxu1 %v11672_v16  ;;  %v11676_v15 = vcombine.low %v2369_v4, %v2373_v5  ;;  %v11747_v16 = vcombine.high %v2357_v10, %v2361_v11  ;;  %v2355_v4 = vld [vmem:[#allocation3 + $0xf0] sm:$0xff]  ;;  %v2352_v5 = vld [vmem:[#allocation3 + $0xd8] sm:$0xff] }
 0x381   :  { %2701 = vmatprep.subr.bf16.mxu0 %v11707_v23  ;;  %2742 = vmatprep.subr.bf16.mxu1 %v11709_v28  ;;  %v2354_v23 = vld [vmem:[#allocation3 + $0xe8] sm:$0xff]  ;;  %v2343_v11 = vld [vmem:[#allocation3 + $0x90] sm:$0xff] }
 0x382   :  { %v11741_v28 = vcombine.high %v2350_v21, %v2354_v23 }
 0x42f   :  { %v2274_v29 = vpop.f32.mrf.mxu0  ;;  %v2317_v30 = vpop.f32.mrf.mxu1 }
 0x430   :  { %v2323_v31 = vmax.f32 %v2274_v29, %v2317_v30  ;;  %v2341_v29 = vld [vmem:[#allocation3 + $0x80] sm:$0xff] }
 0x431   :  { %v13460_v33 = vpop.f32.mrf.mxu0  ;;  %v13466_v34 = vpop.f32.mrf.mxu1  ;;  %v2345_v30 = vld [vmem:[#allocation3 + $0xa0] sm:$0xff] }
 0x432   :  { %v15297_v37 = vpack.c.bf16 %v2323_v31, %v2323_v31  ;;  %v2342_v31 = vld [vmem:[#allocation3 + $0x88] sm:$0xff]  ;;  %v11738_v33 = vcombine.low %v2349_v18, %v2353_v19  ;;  %v11740_v34 = vcombine.low %v2350_v21, %v2354_v23  ;;  %v11731_v35 = vcombine.high %v2341_v29, %v2345_v30  ;;  %v2339_v21 = vld [vmem:[#allocation3 + $0x70] sm:$0xff]  ;;  %v2336_v23 = vld [vmem:[#allocation3 + $0x58] sm:$0xff] }
 0x433   :  { %v2277_v38 = vpop.f32.mrf.mxu0  ;;  %v2320_v39 = vpop.f32.mrf.mxu1  ;;  %v11733_v22 = vcombine.high %v2342_v31, %v2346_v32  ;;  %v11732_v43 = vcombine.low %v2342_v31, %v2346_v32  ;;  %v2331_v31 = vld [vmem:[#allocation3 + $0x30] sm:$0xff]  ;;  %v2328_v32 = vld [vmem:[#allocation3 + $0x18] sm:$0xff] }
 0x434   :  { %v15300_v40 = vshrl.u32 %v15297_v37, 16  ;;  %v2337_v38 = vld [vmem:[#allocation3 + $0x60] sm:$0xff]  ;;  %v2334_v39 = vld [vmem:[#allocation3 + $0x48] sm:$0xff] }
 0x435   :  { %v13461_v44 = vpop.f32.mrf.mxu0  ;;  %v13467_v45 = vpop.f32.mrf.mxu1 }
 0x436   :  { %11710 = vmatmul.mubr.msk.bf16.vlgmr.msra.gmra.mxu0 %vm2609_vm15, %v15300_v40  ;;  %11711 = vmatmul.mubr.msk.bf16.vlgmr.msra.gmra.mxu1 %vm2609_vm15, %v15300_v40  ;;  %v11723_v44 = vcombine.high %v2333_v36, %v2337_v38 }
 0x437   :  { %2702 = vmatpush1.bf16.msra.mxu0 %v11706_v25  ;;  %2743 = vmatpush1.bf16.msra.mxu1 %v11708_v27  ;;  %v11748_v25 = vcombine.low %v2358_v12, %v2362_v13  ;;  %v11739_v27 = vcombine.high %v2349_v18, %v2353_v19  ;;  %v2347_v12 = vld [vmem:[#allocation3 + $0xb0] sm:$0xff]  ;;  %v2344_v13 = vld [vmem:[#allocation3 + $0x98] sm:$0xff] }
 0x438   :  { %2703 = vmatprep.subr.bf16.mxu0 %v11699_v41  ;;  %2744 = vmatprep.subr.bf16.mxu1 %v11701_v42  ;;  %v2338_v41 = vld [vmem:[#allocation3 + $0x68] sm:$0xff]  ;;  %v11730_v42 = vcombine.low %v2341_v29, %v2345_v30  ;;  %v2335_v19 = vld [vmem:[#allocation3 + $0x50] sm:$0xff] }
 0x439   :  { %2727 = vmatprep.mubr.bf16.mxu0 %v14626_v26  ;;  %2768 = vmatprep.mubr.bf16.mxu1 %v14626_v26  ;;  %v11725_v45 = vcombine.high %v2334_v39, %v2338_v41  ;;  %v2327_v30 = vld [vmem:[#allocation3 + $0x10] sm:$0xff] }
 0x43b   :  { %2704 = vmatpush1.bf16.msra.mxu0 %v11698_v52  ;;  %2745 = vmatpush1.bf16.msra.mxu1 %v11700_v50  ;;  %v2330_v52 = vld [vmem:[#allocation3 + $0x28] sm:$0xff]  ;;  %v11722_v50 = vcombine.low %v2333_v36, %v2337_v38  ;;  %v3176_v38 = vld [vmem:[#allocation3 + $0x380] sm:$0xff] }
 0x43c   :  { %2705 = vmatprep.subr.bf16.mxu0 %v11691_v54  ;;  %2746 = vmatprep.subr.bf16.mxu1 %v11693_v56  ;;  %v11724_v54 = vcombine.low %v2334_v39, %v2338_v41  ;;  %v11715_v56 = vcombine.high %v2325_v46, %v2329_v49  ;;  %v11717_v58 = vcombine.high %v2326_v51, %v2330_v52  ;;  %v3180_v39 = vld [vmem:[#allocation3 + $0x3a0] sm:$0xff]  ;;  %v3177_v41 = vld [vmem:[#allocation3 + $0x388] sm:$0xff] }
 0x43f   :  { %2706 = vmatpush1.bf16.msra.mxu0 %v11690_v60  ;;  %2747 = vmatpush1.bf16.msra.mxu1 %v11692_v63  ;;  %v2364_v60 = vld [vmem:[#allocation3 + $0x138] sm:$0xff]  ;;  %v11714_v63 = vcombine.low %v2325_v46, %v2329_v49  ;;  %v3168_v49 = vld [vmem:[#allocation3 + $0x340] sm:$0xff] }
 0x440   :  { %2707 = vmatprep.subr.bf16.mxu0 %v11683_v0  ;;  %2748 = vmatprep.subr.bf16.mxu1 %v11685_v1  ;;  %v11716_v0 = vcombine.low %v2326_v51, %v2330_v52  ;;  %v11751_v1 = vcombine.high %v2359_v59, %v2363_v53  ;;  %v11753_v2 = vcombine.high %v2360_v55, %v2364_v60  ;;  %v3172_v51 = vld [vmem:[#allocation3 + $0x360] sm:$0xff]  ;;  %v3169_v52 = vld [vmem:[#allocation3 + $0x348] sm:$0xff] }
 0x443   :  { %2708 = vmatpush1.bf16.msra.mxu0 %v11682_v6  ;;  %2749 = vmatpush1.bf16.msra.mxu1 %v11684_v7  ;;  %v2356_v6 = vld [vmem:[#allocation3 + $0xf8] sm:$0xff]  ;;  %v11750_v7 = vcombine.low %v2359_v59, %v2363_v53  ;;  %v3160_v53 = vld [vmem:[#allocation3 + $0x300] sm:$0xff] }
 0x444   :  { %2709 = vmatprep.subr.bf16.mxu0 %v11675_v8  ;;  %2750 = vmatprep.subr.bf16.mxu1 %v11677_v9  ;;  %v11752_v8 = vcombine.low %v2360_v55, %v2364_v60  ;;  %v11743_v9 = vcombine.high %v2351_v3, %v2355_v4  ;;  %v11745_v10 = vcombine.high %v2352_v5, %v2356_v6  ;;  %v3164_v55 = vld [vmem:[#allocation3 + $0x320] sm:$0xff]  ;;  %v3161_v60 = vld [vmem:[#allocation3 + $0x308] sm:$0xff] }
 0x447   :  { %2710 = vmatpush1.bf16.msra.mxu0 %v11674_v14  ;;  %2751 = vmatpush1.bf16.msra.mxu1 %v11676_v15  ;;  %v2348_v14 = vld [vmem:[#allocation3 + $0xb8] sm:$0xff]  ;;  %v11742_v15 = vcombine.low %v2351_v3, %v2355_v4  ;;  %v3152_v4 = vld [vmem:[#allocation3 + $0x2c0] sm:$0xff] }
 0x448   :  { %2985 = vmatprep.subr.bf16.mxu0 %v11747_v16  ;;  %3026 = vmatprep.subr.bf16.mxu1 %v11749_v17  ;;  %v11744_v16 = vcombine.low %v2352_v5, %v2356_v6  ;;  %v11735_v17 = vcombine.high %v2343_v11, %v2347_v12  ;;  %v11737_v18 = vcombine.high %v2344_v13, %v2348_v14  ;;  %v3156_v5 = vld [vmem:[#allocation3 + $0x2e0] sm:$0xff]  ;;  %v3153_v6 = vld [vmem:[#allocation3 + $0x2c8] sm:$0xff] }
 0x44a   :  { %11712 = vmatmul.mubr.msk.bf16.vlgmr.msra.gmra.mxu0 %vm2609_vm15, %v15300_v40  ;;  %11713 = vmatmul.mubr.msk.bf16.vlgmr.msra.gmra.mxu1 %vm2609_vm15, %v15300_v40 }
 0x44b   :  { %2986 = vmatpush1.bf16.msra.mxu0 %v11746_v24  ;;  %3027 = vmatpush1.bf16.msra.mxu1 %v11748_v25  ;;  %v2340_v24 = vld [vmem:[#allocation3 + $0x78] sm:$0xff]  ;;  %v11734_v25 = vcombine.low %v2343_v11, %v2347_v12  ;;  %v3144_v12 = vld [vmem:[#allocation3 + $0x280] sm:$0xff] }
 0x44c   :  { %2987 = vmatprep.subr.bf16.mxu0 %v11739_v27  ;;  %3028 = vmatprep.subr.bf16.mxu1 %v11741_v28  ;;  %v11736_v27 = vcombine.low %v2344_v13, %v2348_v14  ;;  %v11727_v28 = vcombine.high %v2335_v19, %v2339_v21  ;;  %v11729_v29 = vcombine.high %v2336_v23, %v2340_v24  ;;  %v3148_v13 = vld [vmem:[#allocation3 + $0x2a0] sm:$0xff]  ;;  %v3145_v14 = vld [vmem:[#allocation3 + $0x288] sm:$0xff] }
 0x44d   :  { %3011 = vmatprep.mubr.bf16.mxu0 %v14626_v26  ;;  %3052 = vmatprep.mubr.bf16.mxu1 %v14626_v26 }
 0x44f   :  { %2988 = vmatpush1.bf16.msra.mxu0 %v11738_v33  ;;  %3029 = vmatpush1.bf16.msra.mxu1 %v11740_v34  ;;  %v2332_v33 = vld [vmem:[#allocation3 + $0x38] sm:$0xff]  ;;  %v11726_v34 = vcombine.low %v2335_v19, %v2339_v21  ;;  %v3178_v21 = vld [vmem:[#allocation3 + $0x390] sm:$0xff] }
 0x450   :  { %2989 = vmatprep.subr.bf16.mxu0 %v11731_v35  ;;  %3030 = vmatprep.subr.bf16.mxu1 %v11733_v22  ;;  %v11728_v35 = vcombine.low %v2336_v23, %v2340_v24  ;;  %v11719_v22 = vcombine.high %v2327_v30, %v2331_v31  ;;  %v11721_v36 = vcombine.high %v2328_v32, %v2332_v33  ;;  %v3182_v23 = vld [vmem:[#allocation3 + $0x3b0] sm:$0xff]  ;;  %v3179_v24 = vld [vmem:[#allocation3 + $0x398] sm:$0xff] }
 0x453   :  { %2990 = vmatpush1.bf16.msra.mxu0 %v11730_v42  ;;  %3031 = vmatpush1.bf16.msra.mxu1 %v11732_v43  ;;  %v3181_v42 = vld [vmem:[#allocation3 + $0x3a8] sm:$0xff]  ;;  %v11718_v43 = vcombine.low %v2327_v30, %v2331_v31  ;;  %v3170_v31 = vld [vmem:[#allocation3 + $0x350] sm:$0xff] }
 0x454   :  { %2991 = vmatprep.subr.bf16.mxu0 %v11723_v44  ;;  %3032 = vmatprep.subr.bf16.mxu1 %v11725_v45  ;;  %v11720_v44 = vcombine.low %v2328_v32, %v2332_v33  ;;  %v11791_v45 = vcombine.high %v3176_v38, %v3180_v39  ;;  %v11793_v46 = vcombine.high %v3177_v41, %v3181_v42  ;;  %v3174_v32 = vld [vmem:[#allocation3 + $0x370] sm:$0xff]  ;;  %v3171_v33 = vld [vmem:[#allocation3 + $0x358] sm:$0xff] }
 0x457   :  { %2992 = vmatpush1.bf16.msra.mxu0 %v11722_v50  ;;  %3033 = vmatpush1.bf16.msra.mxu1 %v11724_v54  ;;  %v3173_v50 = vld [vmem:[#allocation3 + $0x368] sm:$0xff]  ;;  %v11790_v54 = vcombine.low %v3176_v38, %v3180_v39  ;;  %v11787_v38 = vcombine.high %v3170_v31, %v3174_v32 }
 0x458   :  { %2993 = vmatprep.subr.bf16.mxu0 %v11715_v56  ;;  %3034 = vmatprep.subr.bf16.mxu1 %v11717_v58  ;;  %v11792_v56 = vcombine.low %v3177_v41, %v3181_v42  ;;  %v11783_v58 = vcombine.high %v3168_v49, %v3172_v51  ;;  %v11785_v59 = vcombine.high %v3169_v52, %v3173_v50  ;;  %v3162_v41 = vld [vmem:[#allocation3 + $0x310] sm:$0xff] }
 0x459   :  { %v3166_v42 = vld [vmem:[#allocation3 + $0x330] sm:$0xff] }
 0x45b   :  { %2994 = vmatpush1.bf16.msra.mxu0 %v11714_v63  ;;  %3035 = vmatpush1.bf16.msra.mxu1 %v11716_v0  ;;  %v3165_v63 = vld [vmem:[#allocation3 + $0x328] sm:$0xff]  ;;  %v11782_v0 = vcombine.low %v3168_v49, %v3172_v51  ;;  %v11779_v49 = vcombine.high %v3162_v41, %v3166_v42 }
 0x45c   :  { %3067 = vmatprep.subr.bf16.mxu0 %v11751_v1  ;;  %3108 = vmatprep.subr.bf16.mxu1 %v11753_v2  ;;  %v11784_v1 = vcombine.low %v3169_v52, %v3173_v50  ;;  %v11775_v2 = vcombine.high %v3160_v53, %v3164_v55  ;;  %v11777_v3 = vcombine.high %v3161_v60, %v3165_v63  ;;  %v3154_v52 = vld [vmem:[#allocation3 + $0x2d0] sm:$0xff] }
 0x45d   :  { %v3158_v50 = vld [vmem:[#allocation3 + $0x2f0] sm:$0xff] }
 0x45e   :  { %11754 = vmatmul.mubr.msk.bf16.vlgmr.msra.gmra.mxu0 %vm2609_vm15, %v15297_v37  ;;  %11755 = vmatmul.mubr.msk.bf16.vlgmr.msra.gmra.mxu1 %vm2609_vm15, %v15297_v37 }
 0x45f   :  { %3068 = vmatpush1.bf16.msra.mxu0 %v11750_v7  ;;  %3109 = vmatpush1.bf16.msra.mxu1 %v11752_v8  ;;  %v3157_v7 = vld [vmem:[#allocation3 + $0x2e8] sm:$0xff]  ;;  %v11774_v8 = vcombine.low %v3160_v53, %v3164_v55  ;;  %v11771_v53 = vcombine.high %v3154_v52, %v3158_v50 }
 0x460   :  { %3069 = vmatprep.subr.bf16.mxu0 %v11743_v9  ;;  %3110 = vmatprep.subr.bf16.mxu1 %v11745_v10  ;;  %v11776_v9 = vcombine.low %v3161_v60, %v3165_v63  ;;  %v11767_v10 = vcombine.high %v3152_v4, %v3156_v5  ;;  %v11769_v11 = vcombine.high %v3153_v6, %v3157_v7  ;;  %v3146_v60 = vld [vmem:[#allocation3 + $0x290] sm:$0xff] }
 0x461   :  { %3093 = vmatprep.mubr.bf16.mxu0 %v14626_v26  ;;  %3134 = vmatprep.mubr.bf16.mxu1 %v14626_v26  ;;  %v3150_v63 = vld [vmem:[#allocation3 + $0x2b0] sm:$0xff] }
 0x463   :  { %3070 = vmatpush1.bf16.msra.mxu0 %v11742_v15  ;;  %3111 = vmatpush1.bf16.msra.mxu1 %v11744_v16  ;;  %v3149_v15 = vld [vmem:[#allocation3 + $0x2a8] sm:$0xff]  ;;  %v11766_v16 = vcombine.low %v3152_v4, %v3156_v5  ;;  %v11763_v4 = vcombine.high %v3146_v60, %v3150_v63 }
 0x464   :  { %3071 = vmatprep.subr.bf16.mxu0 %v11735_v17  ;;  %3112 = vmatprep.subr.bf16.mxu1 %v11737_v18  ;;  %v11768_v17 = vcombine.low %v3153_v6, %v3157_v7  ;;  %v11759_v18 = vcombine.high %v3144_v12, %v3148_v13  ;;  %v11761_v19 = vcombine.high %v3145_v14, %v3149_v15  ;;  %v3594_v6 = vld [vmem:[#allocation3 + $0x4c0] sm:$0xff] }
 0x465   :  { %v3598_v7 = vld [vmem:[#allocation3 + $0x4e0] sm:$0xff] }
 0x467   :  { %3072 = vmatpush1.bf16.msra.mxu0 %v11734_v25  ;;  %3113 = vmatpush1.bf16.msra.mxu1 %v11736_v27  ;;  %v3183_v25 = vld [vmem:[#allocation3 + $0x3b8] sm:$0xff]  ;;  %v11758_v27 = vcombine.low %v3144_v12, %v3148_v13  ;;  %v11835_v12 = vcombine.high %v3594_v6, %v3598_v7 }
 0x468   :  { %3073 = vmatprep.subr.bf16.mxu0 %v11727_v28  ;;  %3114 = vmatprep.subr.bf16.mxu1 %v11729_v29  ;;  %v11760_v28 = vcombine.low %v3145_v14, %v3149_v15  ;;  %v11795_v29 = vcombine.high %v3178_v21, %v3182_v23  ;;  %v11797_v30 = vcombine.high %v3179_v24, %v3183_v25  ;;  %v3586_v14 = vld [vmem:[#allocation3 + $0x480] sm:$0xff] }
 0x469   :  { %v3590_v15 = vld [vmem:[#allocation3 + $0x4a0] sm:$0xff] }
 0x46b   :  { %3074 = vmatpush1.bf16.msra.mxu0 %v11726_v34  ;;  %3115 = vmatpush1.bf16.msra.mxu1 %v11728_v35  ;;  %v3175_v34 = vld [vmem:[#allocation3 + $0x378] sm:$0xff]  ;;  %v11794_v35 = vcombine.low %v3178_v21, %v3182_v23  ;;  %v11827_v21 = vcombine.high %v3586_v14, %v3590_v15 }
 0x46c   :  { %3075 = vmatprep.subr.bf16.mxu0 %v11719_v22  ;;  %3116 = vmatprep.subr.bf16.mxu1 %v11721_v36  ;;  %v11796_v22 = vcombine.low %v3179_v24, %v3183_v25  ;;  %v15327_v36 = vrot.slane %v15297_v37, 1  ;;  %v11789_v39 = vcombine.high %v3171_v33, %v3175_v34  ;;  %v3578_v24 = vld [vmem:[#allocation3 + $0x440] sm:$0xff] }
 0x46d   :  { %v3582_v25 = vld [vmem:[#allocation3 + $0x460] sm:$0xff] }
 0x46f   :  { %3076 = vmatpush1.bf16.msra.mxu0 %v11718_v43  ;;  %3117 = vmatpush1.bf16.msra.mxu1 %v11720_v44  ;;  %v3163_v43 = vld [vmem:[#allocation3 + $0x318] sm:$0xff] }
 0x470   :  { %3395 = vmatprep.subr.bf16.mxu0 %v11791_v45  ;;  %3436 = vmatprep.subr.bf16.mxu1 %v11793_v46  ;;  %v3167_v44 = vld [vmem:[#allocation3 + $0x338] sm:$0xff]  ;;  %v11786_v45 = vcombine.low %v3170_v31, %v3174_v32  ;;  %v11788_v46 = vcombine.low %v3171_v33, %v3175_v34  ;;  %v11819_v31 = vcombine.high %v3578_v24, %v3582_v25  ;;  %v3570_v33 = vld [vmem:[#allocation3 + $0x400] sm:$0xff] }
 0x471   :  { %v11781_v51 = vcombine.high %v3163_v43, %v3167_v44  ;;  %v3574_v34 = vld [vmem:[#allocation3 + $0x420] sm:$0xff] }
 0x472   :  { %11756 = vmatmul.mubr.msk.bf16.vlgmr.msra.gmra.mxu0 %vm2609_vm15, %v15297_v37  ;;  %11757 = vmatmul.mubr.msk.bf16.vlgmr.msra.gmra.mxu1 %vm2609_vm15, %v15297_v37 }
 0x473   :  { %3396 = vmatpush1.bf16.msra.mxu0 %v11790_v54  ;;  %3437 = vmatpush1.bf16.msra.mxu1 %v11792_v56  ;;  %v3155_v54 = vld [vmem:[#allocation3 + $0x2d8] sm:$0xff] }
 0x474   :  { %3397 = vmatprep.subr.bf16.mxu0 %v11783_v58  ;;  %3438 = vmatprep.subr.bf16.mxu1 %v11785_v59  ;;  %v3159_v56 = vld [vmem:[#allocation3 + $0x2f8] sm:$0xff]  ;;  %v11778_v58 = vcombine.low %v3162_v41, %v3166_v42  ;;  %v11780_v59 = vcombine.low %v3163_v43, %v3167_v44  ;;  %v3562_v42 = vld [vmem:[#allocation3 + $0x3c0] sm:$0xff]  ;;  %v3563_v44 = vld [vmem:[#allocation3 + $0x3c8] sm:$0xff] }
 0x475   :  { %3421 = vmatprep.mubr.bf16.mxu0 %v14626_v26  ;;  %3462 = vmatprep.mubr.bf16.mxu1 %v14626_v26  ;;  %v11773_v55 = vcombine.high %v3155_v54, %v3159_v56  ;;  %v3566_v43 = vld [vmem:[#allocation3 + $0x3e0] sm:$0xff] }
 0x477   :  { %3398 = vmatpush1.bf16.msra.mxu0 %v11782_v0  ;;  %3439 = vmatpush1.bf16.msra.mxu1 %v11784_v1  ;;  %v3147_v0 = vld [vmem:[#allocation3 + $0x298] sm:$0xff] }
 0x478   :  { %3399 = vmatprep.subr.bf16.mxu0 %v11775_v2  ;;  %3440 = vmatprep.subr.bf16.mxu1 %v11777_v3  ;;  %v3151_v1 = vld [vmem:[#allocation3 + $0x2b8] sm:$0xff]  ;;  %v11770_v2 = vcombine.low %v3154_v52, %v3158_v50  ;;  %v11772_v3 = vcombine.low %v3155_v54, %v3159_v56  ;;  %v3596_v50 = vld [vmem:[#allocation3 + $0x4d0] sm:$0xff] }
 0x479   :  { %v11765_v5 = vcombine.high %v3147_v0, %v3151_v1  ;;  %v3600_v54 = vld [vmem:[#allocation3 + $0x4f0] sm:$0xff]  ;;  %v3597_v56 = vld [vmem:[#allocation3 + $0x4d8] sm:$0xff] }
 0x47b   :  { %3400 = vmatpush1.bf16.msra.mxu0 %v11774_v8  ;;  %3441 = vmatpush1.bf16.msra.mxu1 %v11776_v9  ;;  %v3595_v8 = vld [vmem:[#allocation3 + $0x4c8] sm:$0xff] }
 0x47c   :  { %3401 = vmatprep.subr.bf16.mxu0 %v11767_v10  ;;  %3442 = vmatprep.subr.bf16.mxu1 %v11769_v11  ;;  %v3599_v9 = vld [vmem:[#allocation3 + $0x4e8] sm:$0xff]  ;;  %v11762_v10 = vcombine.low %v3146_v60, %v3150_v63  ;;  %v11764_v11 = vcombine.low %v3147_v0, %v3151_v1  ;;  %v3588_v63 = vld [vmem:[#allocation3 + $0x490] sm:$0xff]  ;;  %v3589_v1 = vld [vmem:[#allocation3 + $0x498] sm:$0xff] }
 0x47d   :  { %v11837_v13 = vcombine.high %v3595_v8, %v3599_v9  ;;  %v3592_v0 = vld [vmem:[#allocation3 + $0x4b0] sm:$0xff] }
 0x47f   :  { %3402 = vmatpush1.bf16.msra.mxu0 %v11766_v16  ;;  %3443 = vmatpush1.bf16.msra.mxu1 %v11768_v17  ;;  %v3587_v16 = vld [vmem:[#allocation3 + $0x488] sm:$0xff] }
 0x480   :  { %3403 = vmatprep.subr.bf16.mxu0 %v11759_v18  ;;  %3444 = vmatprep.subr.bf16.mxu1 %v11761_v19  ;;  %v3591_v17 = vld [vmem:[#allocation3 + $0x4a8] sm:$0xff]  ;;  %v11834_v18 = vcombine.low %v3594_v6, %v3598_v7  ;;  %v11836_v19 = vcombine.low %v3595_v8, %v3599_v9  ;;  %v11831_v6 = vcombine.high %v3588_v63, %v3592_v0  ;;  %v3580_v8 = vld [vmem:[#allocation3 + $0x450] sm:$0xff] }
 0x481   :  { %v11829_v23 = vcombine.high %v3587_v16, %v3591_v17  ;;  %v3584_v9 = vld [vmem:[#allocation3 + $0x470] sm:$0xff] }
 0x483   :  { %3404 = vmatpush1.bf16.msra.mxu0 %v11758_v27  ;;  %3445 = vmatpush1.bf16.msra.mxu1 %v11760_v28  ;;  %v3579_v27 = vld [vmem:[#allocation3 + $0x448] sm:$0xff] }
 0x484   :  { %3477 = vmatprep.subr.bf16.mxu0 %v11795_v29  ;;  %3518 = vmatprep.subr.bf16.mxu1 %v11797_v30  ;;  %v3583_v28 = vld [vmem:[#allocation3 + $0x468] sm:$0xff]  ;;  %v11826_v29 = vcombine.low %v3586_v14, %v3590_v15  ;;  %v11828_v30 = vcombine.low %v3587_v16, %v3591_v17  ;;  %v3572_v15 = vld [vmem:[#allocation3 + $0x410] sm:$0xff]  ;;  %v3573_v17 = vld [vmem:[#allocation3 + $0x418] sm:$0xff] }
 0x485   :  { %v11821_v32 = vcombine.high %v3579_v27, %v3583_v28  ;;  %v3576_v16 = vld [vmem:[#allocation3 + $0x430] sm:$0xff] }
 0x486   :  { %11798 = vmatmul.mubr.msk.bf16.vlgmr.msra.gmra.mxu0 %vm2609_vm15, %v15327_v36  ;;  %11799 = vmatmul.mubr.msk.bf16.vlgmr.msra.gmra.mxu1 %vm2609_vm15, %v15327_v36 }
 0x487   :  { %3478 = vmatpush1.bf16.msra.mxu0 %v11794_v35  ;;  %3519 = vmatpush1.bf16.msra.mxu1 %v11796_v22  ;;  %v3571_v35 = vld [vmem:[#allocation3 + $0x408] sm:$0xff] }
 0x488   :  { %3479 = vmatprep.subr.bf16.mxu0 %v11787_v38  ;;  %3520 = vmatprep.subr.bf16.mxu1 %v11789_v39  ;;  %v3575_v22 = vld [vmem:[#allocation3 + $0x428] sm:$0xff]  ;;  %v11818_v38 = vcombine.low %v3578_v24, %v3582_v25  ;;  %v11811_v39 = vcombine.high %v3570_v33, %v3574_v34  ;;  %v3564_v25 = vld [vmem:[#allocation3 + $0x3d0] sm:$0xff] }
 0x489   :  { %3503 = vmatprep.mubr.bf16.mxu0 %v14626_v26  ;;  %3544 = vmatprep.mubr.bf16.mxu1 %v14626_v26  ;;  %v11813_v41 = vcombine.high %v3571_v35, %v3575_v22 }
 0x48b   :  { %3480 = vmatpush1.bf16.msra.mxu0 %v11786_v45  ;;  %3521 = vmatpush1.bf16.msra.mxu1 %v11788_v46  ;;  %v3567_v45 = vld [vmem:[#allocation3 + $0x3e8] sm:$0xff]  ;;  %v11810_v46 = vcombine.low %v3570_v33, %v3574_v34  ;;  %v4011_v34 = vld [vmem:[#allocation3 + $0x600] sm:$0xff] }
 0x48c   :  { %3481 = vmatprep.subr.bf16.mxu0 %v11779_v49  ;;  %3522 = vmatprep.subr.bf16.mxu1 %v11781_v51  ;;  %v11812_v49 = vcombine.low %v3571_v35, %v3575_v22  ;;  %v11803_v51 = vcombine.high %v3562_v42, %v3566_v43  ;;  %v11805_v52 = vcombine.high %v3563_v44, %v3567_v45  ;;  %v4015_v35 = vld [vmem:[#allocation3 + $0x620] sm:$0xff]  ;;  %v4012_v22 = vld [vmem:[#allocation3 + $0x608] sm:$0xff] }
 0x48f   :  { %3482 = vmatpush1.bf16.msra.mxu0 %v11778_v58  ;;  %3523 = vmatpush1.bf16.msra.mxu1 %v11780_v59  ;;  %v3601_v58 = vld [vmem:[#allocation3 + $0x4f8] sm:$0xff]  ;;  %v11802_v59 = vcombine.low %v3562_v42, %v3566_v43  ;;  %v4003_v43 = vld [vmem:[#allocation3 + $0x5c0] sm:$0xff] }
 0x490   :  { %3483 = vmatprep.subr.bf16.mxu0 %v11771_v53  ;;  %3524 = vmatprep.subr.bf16.mxu1 %v11773_v55  ;;  %v11804_v53 = vcombine.low %v3563_v44, %v3567_v45  ;;  %v11839_v55 = vcombine.high %v3596_v50, %v3600_v54  ;;  %v11841_v60 = vcombine.high %v3597_v56, %v3601_v58  ;;  %v4007_v44 = vld [vmem:[#allocation3 + $0x5e0] sm:$0xff]  ;;  %v4004_v45 = vld [vmem:[#allocation3 + $0x5c8] sm:$0xff] }
 0x493   :  { %3484 = vmatpush1.bf16.msra.mxu0 %v11770_v2  ;;  %3525 = vmatpush1.bf16.msra.mxu1 %v11772_v3  ;;  %v3593_v2 = vld [vmem:[#allocation3 + $0x4b8] sm:$0xff]  ;;  %v11838_v3 = vcombine.low %v3596_v50, %v3600_v54  ;;  %v3995_v54 = vld [vmem:[#allocation3 + $0x580] sm:$0xff] }
 0x494   :  { %3485 = vmatprep.subr.bf16.mxu0 %v11763_v4  ;;  %3526 = vmatprep.subr.bf16.mxu1 %v11765_v5  ;;  %v11840_v4 = vcombine.low %v3597_v56, %v3601_v58  ;;  %v15342_v5 = vrot.slane %v15300_v40, 1  ;;  %v11833_v7 = vcombine.high %v3589_v1, %v3593_v2  ;;  %v11823_v40 = vcombine.high %v3580_v8, %v3584_v9  ;;  %v3999_v56 = vld [vmem:[#allocation3 + $0x5a0] sm:$0xff]  ;;  %v3996_v58 = vld [vmem:[#allocation3 + $0x588] sm:$0xff] }
 0x497   :  { %3486 = vmatpush1.bf16.msra.mxu0 %v11762_v10  ;;  %3527 = vmatpush1.bf16.msra.mxu1 %v11764_v11  ;;  %v3581_v10 = vld [vmem:[#allocation3 + $0x458] sm:$0xff] }
 0x498   :  { %3812 = vmatprep.subr.bf16.mxu0 %v11835_v12  ;;  %3853 = vmatprep.subr.bf16.mxu1 %v11837_v13  ;;  %v3585_v11 = vld [vmem:[#allocation3 + $0x478] sm:$0xff]  ;;  %v11830_v12 = vcombine.low %v3588_v63, %v3592_v0  ;;  %v11832_v13 = vcombine.low %v3589_v1, %v3593_v2  ;;  %v3987_v0 = vld [vmem:[#allocation3 + $0x540] sm:$0xff]  ;;  %v3988_v2 = vld [vmem:[#allocation3 + $0x548] sm:$0xff] }
 0x499   :  { %v11825_v14 = vcombine.high %v3581_v10, %v3585_v11  ;;  %v3991_v1 = vld [vmem:[#allocation3 + $0x560] sm:$0xff] }
 0x49a   :  { %11800 = vmatmul.mubr.msk.bf16.vlgmr.msra.gmra.mxu0 %vm2609_vm15, %v15327_v36  ;;  %11801 = vmatmul.mubr.msk.bf16.vlgmr.msra.gmra.mxu1 %vm2609_vm15, %v15327_v36  ;;  %v11820_v36 = vcombine.low %v3579_v27, %v3583_v28  ;;  %v3568_v27 = vld [vmem:[#allocation3 + $0x3f0] sm:$0xff]  ;;  %v3565_v28 = vld [vmem:[#allocation3 + $0x3d8] sm:$0xff] }
 0x49b   :  { %3813 = vmatpush1.bf16.msra.mxu0 %v11834_v18  ;;  %3854 = vmatpush1.bf16.msra.mxu1 %v11836_v19  ;;  %v3577_v18 = vld [vmem:[#allocation3 + $0x438] sm:$0xff]  ;;  %v11822_v19 = vcombine.low %v3580_v8, %v3584_v9  ;;  %v3979_v8 = vld [vmem:[#allocation3 + $0x500] sm:$0xff] }
 0x49c   :  { %3814 = vmatprep.subr.bf16.mxu0 %v11827_v21  ;;  %3855 = vmatprep.subr.bf16.mxu1 %v11829_v23  ;;  %v11824_v21 = vcombine.low %v3581_v10, %v3585_v11  ;;  %v11815_v23 = vcombine.high %v3572_v15, %v3576_v16  ;;  %v11817_v24 = vcombine.high %v3573_v17, %v3577_v18  ;;  %v3983_v9 = vld [vmem:[#allocation3 + $0x520] sm:$0xff]  ;;  %v3980_v10 = vld [vmem:[#allocation3 + $0x508] sm:$0xff] }
 0x49d   :  { %3838 = vmatprep.mubr.bf16.mxu0 %v14626_v26  ;;  %3879 = vmatprep.mubr.bf16.mxu1 %v14626_v26  ;;  %v3984_v11 = vld [vmem:[#allocation3 + $0x528] sm:$0xff] }
 0x49f   :  { %3815 = vmatpush1.bf16.msra.mxu0 %v11826_v29  ;;  %3856 = vmatpush1.bf16.msra.mxu1 %v11828_v30  ;;  %v3569_v29 = vld [vmem:[#allocation3 + $0x3f8] sm:$0xff]  ;;  %v11814_v30 = vcombine.low %v3572_v15, %v3576_v16  ;;  %v4013_v15 = vld [vmem:[#allocation3 + $0x610] sm:$0xff] }
 0x4a0   :  { %3816 = vmatprep.subr.bf16.mxu0 %v11819_v31  ;;  %3857 = vmatprep.subr.bf16.mxu1 %v11821_v32  ;;  %v11816_v31 = vcombine.low %v3573_v17, %v3577_v18  ;;  %v11807_v32 = vcombine.high %v3564_v25, %v3568_v27  ;;  %v11809_v33 = vcombine.high %v3565_v28, %v3569_v29  ;;  %v4017_v16 = vld [vmem:[#allocation3 + $0x630] sm:$0xff]  ;;  %v4014_v17 = vld [vmem:[#allocation3 + $0x618] sm:$0xff] }
 0x4a1   :  { %v4018_v18 = vld [vmem:[#allocation3 + $0x638] sm:$0xff] }
 0x4a3   :  { %3817 = vmatpush1.bf16.msra.mxu0 %v11818_v38  ;;  %3858 = vmatpush1.bf16.msra.mxu1 %v11820_v36  ;;  %v4016_v38 = vld [vmem:[#allocation3 + $0x628] sm:$0xff]  ;;  %v11806_v36 = vcombine.low %v3564_v25, %v3568_v27  ;;  %v4005_v25 = vld [vmem:[#allocation3 + $0x5d0] sm:$0xff] }
 0x4a4   :  { %3818 = vmatprep.subr.bf16.mxu0 %v11811_v39  ;;  %3859 = vmatprep.subr.bf16.mxu1 %v11813_v41  ;;  %v11808_v39 = vcombine.low %v3565_v28, %v3569_v29  ;;  %v11879_v41 = vcombine.high %v4011_v34, %v4015_v35  ;;  %v11881_v42 = vcombine.high %v4012_v22, %v4016_v38  ;;  %v4009_v27 = vld [vmem:[#allocation3 + $0x5f0] sm:$0xff]  ;;  %v4006_v28 = vld [vmem:[#allocation3 + $0x5d8] sm:$0xff] }
 0x4a5   :  { %v4010_v29 = vld [vmem:[#allocation3 + $0x5f8] sm:$0xff] }
 0x4a7   :  { %3819 = vmatpush1.bf16.msra.mxu0 %v11810_v46  ;;  %3860 = vmatpush1.bf16.msra.mxu1 %v11812_v49  ;;  %v4008_v46 = vld [vmem:[#allocation3 + $0x5e8] sm:$0xff]  ;;  %v11878_v49 = vcombine.low %v4011_v34, %v4015_v35  ;;  %v11877_v34 = vcombine.high %v4006_v28, %v4010_v29  ;;  %v3997_v35 = vld [vmem:[#allocation3 + $0x590] sm:$0xff] }
 0x4a8   :  { %3820 = vmatprep.subr.bf16.mxu0 %v11803_v51  ;;  %3861 = vmatprep.subr.bf16.mxu1 %v11805_v52  ;;  %v11880_v51 = vcombine.low %v4012_v22, %v4016_v38  ;;  %v11871_v52 = vcombine.high %v4003_v43, %v4007_v44  ;;  %v11873_v50 = vcombine.high %v4004_v45, %v4008_v46  ;;  %v4001_v22 = vld [vmem:[#allocation3 + $0x5b0] sm:$0xff]  ;;  %v3998_v38 = vld [vmem:[#allocation3 + $0x598] sm:$0xff] }
 0x4ab   :  { %3821 = vmatpush1.bf16.msra.mxu0 %v11802_v59  ;;  %3862 = vmatpush1.bf16.msra.mxu1 %v11804_v53  ;;  %v4000_v59 = vld [vmem:[#allocation3 + $0x5a8] sm:$0xff]  ;;  %v11870_v53 = vcombine.low %v4003_v43, %v4007_v44  ;;  %v3989_v43 = vld [vmem:[#allocation3 + $0x550] sm:$0xff] }
 0x4ac   :  { %3894 = vmatprep.subr.bf16.mxu0 %v11839_v55  ;;  %3935 = vmatprep.subr.bf16.mxu1 %v11841_v60  ;;  %v11872_v55 = vcombine.low %v4004_v45, %v4008_v46  ;;  %v11863_v60 = vcombine.high %v3995_v54, %v3999_v56  ;;  %v11865_v63 = vcombine.high %v3996_v58, %v4000_v59  ;;  %v3993_v44 = vld [vmem:[#allocation3 + $0x570] sm:$0xff]  ;;  %v3990_v45 = vld [vmem:[#allocation3 + $0x558] sm:$0xff] }
 0x4ad   :  { %v3994_v46 = vld [vmem:[#allocation3 + $0x578] sm:$0xff] }
 0x4ae   :  { %11842 = vmatmul.mubr.msk.bf16.vlgmr.msra.gmra.mxu0 %vm2609_vm15, %v15342_v5  ;;  %11843 = vmatmul.mubr.msk.bf16.vlgmr.msra.gmra.mxu1 %vm2609_vm15, %v15342_v5 }
 0x4af   :  { %3895 = vmatpush1.bf16.msra.mxu0 %v11838_v3  ;;  %3936 = vmatpush1.bf16.msra.mxu1 %v11840_v4  ;;  %v3992_v3 = vld [vmem:[#allocation3 + $0x568] sm:$0xff]  ;;  %v11862_v4 = vcombine.low %v3995_v54, %v3999_v56  ;;  %v11861_v54 = vcombine.high %v3990_v45, %v3994_v46  ;;  %v3981_v56 = vld [vmem:[#allocation3 + $0x510] sm:$0xff] }
 0x4b0   :  { %3896 = vmatprep.subr.bf16.mxu0 %v11831_v6  ;;  %3937 = vmatprep.subr.bf16.mxu1 %v11833_v7  ;;  %v11855_v6 = vcombine.high %v3987_v0, %v3991_v1  ;;  %v11857_v7 = vcombine.high %v3988_v2, %v3992_v3 }
 0x4b1   :  { %3920 = vmatprep.mubr.bf16.mxu0 %v14626_v26  ;;  %3961 = vmatprep.mubr.bf16.mxu1 %v14626_v26 }
 0x4b3   :  { %3897 = vmatpush1.bf16.msra.mxu0 %v11830_v12  ;;  %3938 = vmatpush1.bf16.msra.mxu1 %v11832_v13  ;;  %v11854_v12 = vcombine.low %v3987_v0, %v3991_v1  ;;  %v11856_v13 = vcombine.low %v3988_v2, %v3992_v3  ;;  %v11860_v0 = vcombine.low %v3990_v45, %v3994_v46 }
 0x4b4   :  { %3898 = vmatprep.subr.bf16.mxu0 %v11823_v40  ;;  %3939 = vmatprep.subr.bf16.mxu1 %v11825_v14  ;;  %v11847_v40 = vcombine.high %v3979_v8, %v3983_v9  ;;  %v11849_v14 = vcombine.high %v3980_v10, %v3984_v11 }
 0x4b7   :  { %3899 = vmatpush1.bf16.msra.mxu0 %v11822_v19  ;;  %3940 = vmatpush1.bf16.msra.mxu1 %v11824_v21  ;;  %v11846_v19 = vcombine.low %v3979_v8, %v3983_v9  ;;  %v11848_v21 = vcombine.low %v3980_v10, %v3984_v11  ;;  %v13950_v8 = vld [vmem:[%s17003_s1 + $0x88] sm:$0xff]   ;;  %v13951_v9 = vld [vmem:[%s17003_s1 + $0xb8] sm:$0xff]  }
 0x4b8   :  { %3900 = vmatprep.subr.bf16.mxu0 %v11815_v23  ;;  %3941 = vmatprep.subr.bf16.mxu1 %v11817_v24  ;;  %v11883_v23 = vcombine.high %v4013_v15, %v4017_v16  ;;  %v11885_v24 = vcombine.high %v4014_v17, %v4018_v18 }
 0x4bb   :  { %3901 = vmatpush1.bf16.msra.mxu0 %v11814_v30  ;;  %3942 = vmatpush1.bf16.msra.mxu1 %v11816_v31  ;;  %v11882_v30 = vcombine.low %v4013_v15, %v4017_v16  ;;  %v11884_v31 = vcombine.low %v4014_v17, %v4018_v18  ;;  %v13955_v15 = vld [vmem:[%s17003_s1 + $0xa8] sm:$0xff]   ;;  %v13956_v16 = vld [vmem:[%s17003_s1 + $0x70] sm:$0xff]   ;;  %v13957_v17 = vld [vmem:[%s17003_s1 + $0xa0] sm:$0xff]  }
 0x4bc   :  { %3902 = vmatprep.subr.bf16.mxu0 %v11807_v32  ;;  %3943 = vmatprep.subr.bf16.mxu1 %v11809_v33  ;;  %v15357_v32 = vrot.slane %v15297_v37, 2  ;;  %v11875_v33 = vcombine.high %v4005_v25, %v4009_v27  ;;  %v11867_v37 = vcombine.high %v3997_v35, %v4001_v22  ;;  %v13958_v18 = vld [vmem:[%s17003_s1 + $0x68] sm:$0xff]  }
 0x4bf   :  { %3903 = vmatpush1.bf16.msra.mxu0 %v11806_v36  ;;  %3944 = vmatpush1.bf16.msra.mxu1 %v11808_v39  ;;  %v4002_v36 = vld [vmem:[#allocation3 + $0x5b8] sm:$0xff]  ;;  %v11874_v39 = vcombine.low %v4005_v25, %v4009_v27  ;;  %v13960_v27 = vld [vmem:[%s17003_s1 + $0x60] sm:$0xff]  }
 0x4c0   :  { %4229 = vmatprep.subr.bf16.mxu0 %v11879_v41  ;;  %4270 = vmatprep.subr.bf16.mxu1 %v11881_v42  ;;  %v11876_v41 = vcombine.low %v4006_v28, %v4010_v29  ;;  %v11869_v42 = vcombine.high %v3998_v38, %v4002_v36  ;;  %v13961_v28 = vld [vmem:[%s17003_s1 + $0x90] sm:$0xff]  }
 0x4c2   :  { %11844 = vmatmul.mubr.msk.bf16.vlgmr.msra.gmra.mxu0 %vm2609_vm15, %v15342_v5  ;;  %11845 = vmatmul.mubr.msk.bf16.vlgmr.msra.gmra.mxu1 %vm2609_vm15, %v15342_v5  ;;  %v11864_v5 = vcombine.low %v3996_v58, %v4000_v59  ;;  %v3985_v58 = vld [vmem:[#allocation3 + $0x530] sm:$0xff]  ;;  %v3982_v59 = vld [vmem:[#allocation3 + $0x518] sm:$0xff] }
 0x4c3   :  { %4230 = vmatpush1.bf16.msra.mxu0 %v11878_v49  ;;  %4271 = vmatpush1.bf16.msra.mxu1 %v11880_v51  ;;  %v15368_v49 = vld [vmem:[%s17002_s0 + $0x10] sm:$0xff]   ;;  %v11866_v51 = vcombine.low %v3997_v35, %v4001_v22  ;;  %v11851_v1 = vcombine.high %v3981_v56, %v3985_v58  ;;  %v13965_v35 = vld [vmem:[%s17003_s1 + $0x58] sm:$0xff]  }
 0x4c4   :  { %4231 = vmatprep.subr.bf16.mxu0 %v11871_v52  ;;  %4272 = vmatprep.subr.bf16.mxu1 %v11873_v50  ;;  %v11868_v52 = vcombine.low %v3998_v38, %v4002_v36  ;;  %v11859_v50 = vcombine.high %v3989_v43, %v3993_v44  ;;  %v4506_v3 = vshrl.u32 %v15368_v49, 16  ;;  %v13966_v38 = vld [vmem:[%s17003_s1 + $0x20] sm:$0xff]   ;;  %v13967_v36 = vld [vmem:[%s17003_s1 + $0x50] sm:$0xff]  }
 0x4c5   :  { %4255 = vmatprep.mubr.bf16.mxu0 %v14626_v26  ;;  %4296 = vmatprep.mubr.bf16.mxu1 %v14626_v26 }
 0x4c7   :  { %4232 = vmatpush1.bf16.msra.mxu0 %v11870_v53  ;;  %4273 = vmatpush1.bf16.msra.mxu1 %v11872_v55  ;;  %v3986_v53 = vld [vmem:[#allocation3 + $0x538] sm:$0xff]  ;;  %v15373_v55 = vld [vmem:[%s17002_s0 + $0x18] sm:$0xff]  }
 0x4c8   :  { %4233 = vmatprep.subr.bf16.mxu0 %v11863_v60  ;;  %4274 = vmatprep.subr.bf16.mxu1 %v11865_v63  ;;  %v4508_v60 = vshll.u32 %v15368_v49, 16  ;;  %v11858_v63 = vcombine.low %v3989_v43, %v3993_v44  ;;  %v11853_v2 = vcombine.high %v3982_v59, %v3986_v53 }
 0x4cb   :  { %4234 = vmatpush1.bf16.msra.mxu0 %v11862_v4  ;;  %4275 = vmatpush1.bf16.msra.mxu1 %v11864_v5  ;;  %v4510_v4 = vrot.slane %v4508_v60, 1  ;;  %v4513_v5 = vshll.u32 %v15373_v55, 16 }
 0x4cc   :  { %4235 = vmatprep.subr.bf16.mxu0 %v11855_v6  ;;  %4276 = vmatprep.subr.bf16.mxu1 %v11857_v7  ;;  %v11850_v6 = vcombine.low %v3981_v56, %v3985_v58  ;;  %v11852_v7 = vcombine.low %v3982_v59, %v3986_v53  ;;  %v13974_v59 = vld [vmem:[%s17003_s1] sm:$0xff]   ;;  %v13975_v53 = vld [vmem:[%s17003_s1 + $0x30] sm:$0xff]  }
 0x4cd   :  { %v4511_v10 = vor.u32 %v4510_v4, %v4506_v3  ;;  %v4515_v11 = vrot.slane %v4513_v5, 1  ;;  %v13978_v4 = vld [vmem:[%s17003_s1 + $0xe0] sm:$0xff]  }
 0x4cf   :  { %4236 = vmatpush1.bf16.msra.mxu0 %v11854_v12  ;;  %4277 = vmatpush1.bf16.msra.mxu1 %v11856_v13  ;;  %v13952_v12 = vld [vmem:[%s17003_s1 + $0x80] sm:$0xff]   ;;  %v13953_v13 = vld [vmem:[%s17003_s1 + $0xb0] sm:$0xff]  }
 0x4d0   :  { %4237 = vmatprep.subr.bf16.mxu0 %v11847_v40  ;;  %4278 = vmatprep.subr.bf16.mxu1 %v11849_v14  ;;  %v4516_v40 = vsel %vm145_vm0, %v4511_v10, %v4515_v11  ;;  %v13954_v14 = vld [vmem:[%s17003_s1 + $0x78] sm:$0xff]  }
 0x4d3   :  { %4238 = vmatpush1.bf16.msra.mxu0 %v11846_v19  ;;  %4279 = vmatpush1.bf16.msra.mxu1 %v11848_v21  ;;  %v13959_v19 = vld [vmem:[%s17003_s1 + $0x98] sm:$0xff]  }
 0x4d4   :  { %4311 = vmatprep.subr.bf16.mxu0 %v11883_v23  ;;  %4352 = vmatprep.subr.bf16.mxu1 %v11885_v24 }
 0x4d6   :  { %11886 = vmatmul.mubr.msk.bf16.vlgmr.msra.gmra.mxu0 %vm2609_vm15, %v15357_v32  ;;  %11887 = vmatmul.mubr.msk.bf16.vlgmr.msra.gmra.mxu1 %vm2609_vm15, %v15357_v32 }
 0x4d7   :  { %4312 = vmatpush1.bf16.msra.mxu0 %v11882_v30  ;;  %4353 = vmatpush1.bf16.msra.mxu1 %v11884_v31  ;;  %v4517_v31 = vshrl.u32 %v15373_v55, 16 }
 0x4d8   :  { %4313 = vmatprep.subr.bf16.mxu0 %v11875_v33  ;;  %4354 = vmatprep.subr.bf16.mxu1 %v11877_v34  ;;  %v13964_v34 = vld [vmem:[%s17003_s1 + $0x28] sm:$0xff]  }
 0x4d9   :  { %4337 = vmatprep.mubr.bf16.mxu0 %v14626_v26  ;;  %4378 = vmatprep.mubr.bf16.mxu1 %v14626_v26  ;;  %v4519_v22 = vor.u32 %v4517_v31, %v4515_v11 }
 0x4db   :  { %4314 = vmatpush1.bf16.msra.mxu0 %v11874_v39  ;;  %4355 = vmatpush1.bf16.msra.mxu1 %v11876_v41  ;;  %v13968_v39 = vld [vmem:[%s17003_s1 + $0x18] sm:$0xff]   ;;  %v13969_v41 = vld [vmem:[%s17003_s1 + $0x48] sm:$0xff]  }
 0x4dc   :  { %4315 = vmatprep.subr.bf16.mxu0 %v11867_v37  ;;  %4356 = vmatprep.subr.bf16.mxu1 %v11869_v42  ;;  %v13970_v37 = vld [vmem:[%s17003_s1 + $0x10] sm:$0xff]   ;;  %v13971_v42 = vld [vmem:[%s17003_s1 + $0x40] sm:$0xff]  }
 0x4df   :  { %4316 = vmatpush1.bf16.msra.mxu0 %v11866_v51  ;;  %4357 = vmatpush1.bf16.msra.mxu1 %v11868_v52  ;;  %v13972_v51 = vld [vmem:[%s17003_s1 + $0x8] sm:$0xff]   ;;  %v13973_v52 = vld [vmem:[%s17003_s1 + $0x38] sm:$0xff]  }
 0x4e0   :  { %4317 = vmatprep.subr.bf16.mxu0 %v11859_v50  ;;  %4358 = vmatprep.subr.bf16.mxu1 %v11861_v54 }
 0x4e3   :  { %4318 = vmatpush1.bf16.msra.mxu0 %v11858_v63  ;;  %4359 = vmatpush1.bf16.msra.mxu1 %v11860_v0  ;;  %v13976_v63 = vld [vmem:[%s17003_s1 + $0xe8] sm:$0xff]   ;;  %v13977_v0 = vld [vmem:[%s17003_s1 + $0x118] sm:$0xff]  }
 0x4e4   :  { %4319 = vmatprep.subr.bf16.mxu0 %v11851_v1  ;;  %4360 = vmatprep.subr.bf16.mxu1 %v11853_v2  ;;  %v4894_v1 = vrot.slane %v15368_v49, 1  ;;  %v15496_v2 = vrot.slane %v15373_v55, 1 }
 0x4e7   :  { %4320 = vmatpush1.bf16.msra.mxu0 %v11850_v6  ;;  %4361 = vmatpush1.bf16.msra.mxu1 %v11852_v7  ;;  %v13979_v6 = vld [vmem:[%s17003_s1 + $0x110] sm:$0xff]   ;;  %v4896_v7 = vsel %vm538_vm3, %v4894_v1, %v15496_v2 }
 0x4e8   :  { %13468 = vmatprep.subr.bf16.mxu0 %v13950_v8  ;;  %13484 = vmatprep.subr.bf16.mxu1 %v13951_v9  ;;  %v13999_v1 = vld [vmem:[%s17003_s1 + $0x150] sm:$0xff]  }
 0x4ea   :  { %11888 = vmatmul.mubr.msk.bf16.vlgmr.msra.gmra.mxu0 %vm2609_vm15, %v15357_v32  ;;  %11889 = vmatmul.mubr.msk.bf16.vlgmr.msra.gmra.mxu1 %vm2609_vm15, %v15357_v32 }
 0x4eb   :  { %13469 = vmatpush3.bf16.msra.mxu0 %v13950_v8  ;;  %13485 = vmatpush3.bf16.msra.mxu1 %v13951_v9  ;;  %v13980_v8 = vld [vmem:[%s17003_s1 + $0xd8] sm:$0xff]   ;;  %v13981_v9 = vld [vmem:[%s17003_s1 + $0x108] sm:$0xff]  }
 0x4ec   :  { %13470 = vmatprep.subr.bf16.mxu0 %v13952_v12  ;;  %13486 = vmatprep.subr.bf16.mxu1 %v13953_v13 }
 0x4ed   :  { %13480 = vmatprep.mubr.msk.bf16.mxu0 %vm197_vm1, %v4516_v40  ;;  %13496 = vmatprep.mubr.msk.bf16.mxu1 %vm197_vm1, %v4516_v40 }
 0x4ef   :  { %13471 = vmatpush3.bf16.msra.mxu0 %v13952_v12  ;;  %13487 = vmatpush3.bf16.msra.mxu1 %v13953_v13 }
 0x4f0   :  { %13472 = vmatprep.subr.bf16.mxu0 %v13954_v14  ;;  %13488 = vmatprep.subr.bf16.mxu1 %v13955_v15 }
 0x4f3   :  { %13473 = vmatpush3.bf16.msra.mxu0 %v13954_v14  ;;  %13489 = vmatpush3.bf16.msra.mxu1 %v13955_v15  ;;  %v13982_v15 = vld [vmem:[%s17003_s1 + $0xd0] sm:$0xff]  }
 0x4f4   :  { %13474 = vmatprep.subr.bf16.mxu0 %v13956_v16  ;;  %13490 = vmatprep.subr.bf16.mxu1 %v13957_v17 }
 0x4f6   :  { %v15421_v21 = vpop.f32.mrf.mxu0  ;;  %v15423_v23 = vpop.f32.mrf.mxu1 }
 0x4f7   :  { %13475 = vmatpush3.bf16.msra.mxu0 %v13956_v16  ;;  %13491 = vmatpush3.bf16.msra.mxu1 %v13957_v17  ;;  %v13983_v16 = vld [vmem:[%s17003_s1 + $0x100] sm:$0xff]  }
 0x4f8   :  { %v15425_v24 = vpop.f32.mrf.mxu0  ;;  %v15427_v25 = vpop.f32.mrf.mxu1  ;;  %13476 = vmatprep.subr.bf16.mxu0 %v13958_v18  ;;  %13492 = vmatprep.subr.bf16.mxu1 %v13959_v19 }
 0x4fa   :  { %v2651_v29 = vpop.f32.mrf.mxu0  ;;  %v2692_v30 = vpop.f32.mrf.mxu1 }
 0x4fb   :  { %13477 = vmatpush3.bf16.msra.mxu0 %v13958_v18  ;;  %13493 = vmatpush3.bf16.msra.mxu1 %v13959_v19  ;;  %v13987_v29 = vld [vmem:[%s17003_s1 + $0xf0] sm:$0xff]   ;;  %v5105_v30 = vrot.slane %v4506_v3, 1  ;;  %v13989_v3 = vld [vmem:[%s17003_s1 + $0x178] sm:$0xff]  }
 0x4fc   :  { %v2652_v32 = vpop.f32.mrf.mxu0  ;;  %v2693_v33 = vpop.f32.mrf.mxu1  ;;  %13478 = vmatprep.subr.bf16.mxu0 %v13960_v27  ;;  %13494 = vmatprep.subr.bf16.mxu1 %v13961_v28 }
 0x4fd   :  { %v5106_v32 = vrot.slane %v4508_v60, 2  ;;  %v5108_v33 = vrot.slane %v4517_v31, 1  ;;  %v13991_v31 = vld [vmem:[%s17003_s1 + $0x170] sm:$0xff]  }
 0x4ff   :  { %13479 = vmatpush3.bf16.msra.mxu0 %v13960_v27  ;;  %13495 = vmatpush3.bf16.msra.mxu1 %v13961_v28  ;;  %v13984_v28 = vld [vmem:[%s17003_s1 + $0xc8] sm:$0xff]  }
 0x500   :  { %13500 = vmatprep.subr.bf16.mxu0 %v13964_v34  ;;  %13516 = vmatprep.subr.bf16.mxu1 %v13965_v35 }
 0x502   :  { %13481 = vmatmul.mubr.msk.bf16.vlgmr.msra.gmra.mxu0 %vm197_vm1, %v4519_v22  ;;  %13497 = vmatmul.mubr.msk.bf16.vlgmr.msra.gmra.mxu1 %vm197_vm1, %v4519_v22  ;;  %v5107_v22 = vor.u32 %v5106_v32, %v5105_v30  ;;  %v14011_v30 = vld [vmem:[%s17003_s1 + $0x1b0] sm:$0xff]  }
 0x503   :  { %13501 = vmatpush3.bf16.msra.mxu0 %v13964_v34  ;;  %13517 = vmatpush3.bf16.msra.mxu1 %v13965_v35  ;;  %v5109_v34 = vrot.slane %v4513_v5, 2  ;;  %v13988_v35 = vld [vmem:[%s17003_s1 + $0x148] sm:$0xff]   ;;  %v13990_v5 = vld [vmem:[%s17003_s1 + $0x140] sm:$0xff]  }
 0x504   :  { %13502 = vmatprep.subr.bf16.mxu0 %v13966_v38  ;;  %13518 = vmatprep.subr.bf16.mxu1 %v13967_v36 }
 0x505   :  { %13512 = vmatprep.mubr.msk.bf16.mxu0 %vm197_vm1, %v15368_v49  ;;  %13528 = vmatprep.mubr.msk.bf16.mxu1 %vm197_vm1, %v15368_v49  ;;  %v15562_v60 = vor.u32 %v5109_v34, %v5108_v33 }
 0x507   :  { %13503 = vmatpush3.bf16.msra.mxu0 %v13966_v38  ;;  %13519 = vmatpush3.bf16.msra.mxu1 %v13967_v36 }
 0x508   :  { %13504 = vmatprep.subr.bf16.mxu0 %v13968_v39  ;;  %13520 = vmatprep.subr.bf16.mxu1 %v13969_v41 }
 0x50a   :  { %v15468_v43 = vpop.f32.mrf.mxu0  ;;  %v15470_v44 = vpop.f32.mrf.mxu1 }
 0x50b   :  { %13505 = vmatpush3.bf16.msra.mxu0 %v13968_v39  ;;  %13521 = vmatpush3.bf16.msra.mxu1 %v13969_v41  ;;  %v5111_v39 = vsel %vm752_vm4, %v5107_v22, %v15562_v60 }
 0x50c   :  { %v15472_v45 = vpop.f32.mrf.mxu0  ;;  %v15474_v46 = vpop.f32.mrf.mxu1  ;;  %13506 = vmatprep.subr.bf16.mxu0 %v13970_v37  ;;  %13522 = vmatprep.subr.bf16.mxu1 %v13971_v42 }
 0x50e   :  { %v2733_v50 = vpop.f32.mrf.mxu0  ;;  %v2774_v54 = vpop.f32.mrf.mxu1 }
 0x50f   :  { %13507 = vmatpush3.bf16.msra.mxu0 %v13970_v37  ;;  %13523 = vmatpush3.bf16.msra.mxu1 %v13971_v42  ;;  %v13993_v50 = vld [vmem:[%s17003_s1 + $0x168] sm:$0xff]  }
 0x510   :  { %v2734_v56 = vpop.f32.mrf.mxu0  ;;  %v2775_v58 = vpop.f32.mrf.mxu1  ;;  %13508 = vmatprep.subr.bf16.mxu0 %v13972_v51  ;;  %13524 = vmatprep.subr.bf16.mxu1 %v13973_v52 }
 0x513   :  { %13509 = vmatpush3.bf16.msra.mxu0 %v13972_v51  ;;  %13525 = vmatpush3.bf16.msra.mxu1 %v13973_v52  ;;  %v13992_v52 = vld [vmem:[%s17003_s1 + $0x138] sm:$0xff]  }
 0x514   :  { %13510 = vmatprep.subr.bf16.mxu0 %v13974_v59  ;;  %13526 = vmatprep.subr.bf16.mxu1 %v13975_v53 }
 0x517   :  { %13511 = vmatpush3.bf16.msra.mxu0 %v13974_v59  ;;  %13527 = vmatpush3.bf16.msra.mxu1 %v13975_v53  ;;  %v13996_v53 = vld [vmem:[%s17003_s1 + $0x128] sm:$0xff]  }
 0x518   :  { %13532 = vmatprep.subr.bf16.mxu0 %v13976_v63  ;;  %13548 = vmatprep.subr.bf16.mxu1 %v13977_v0 }
 0x51a   :  { %13513 = vmatmul.mubr.msk.bf16.vlgmr.msra.gmra.mxu0 %vm197_vm1, %v15373_v55  ;;  %13529 = vmatmul.mubr.msk.bf16.vlgmr.msra.gmra.mxu1 %vm197_vm1, %v15373_v55 }
 0x51b   :  { %13533 = vmatpush3.bf16.msra.mxu0 %v13976_v63  ;;  %13549 = vmatpush3.bf16.msra.mxu1 %v13977_v0  ;;  %v13997_v63 = vld [vmem:[%s17003_s1 + $0x158] sm:$0xff]   ;;  %v13998_v0 = vld [vmem:[%s17003_s1 + $0x120] sm:$0xff]  }
 0x51c   :  { %13534 = vmatprep.subr.bf16.mxu0 %v13978_v4  ;;  %13550 = vmatprep.subr.bf16.mxu1 %v13979_v6 }
 0x51d   :  { %13544 = vmatprep.mubr.msk.bf16.mxu0 %vm197_vm1, %v4896_v7  ;;  %13560 = vmatprep.mubr.msk.bf16.mxu1 %vm197_vm1, %v4896_v7 }
 0x51e   :  { %v3013_v10 = vpop.f32.mrf.mxu0  ;;  %v3054_v11 = vpop.f32.mrf.mxu1 }
 0x51f   :  { %v15519_v12 = vadd.f32 %v3013_v10, %v15421_v21  ;;  %v15522_v13 = vadd.f32 %v3054_v11, %v15423_v23  ;;  %13535 = vmatpush3.bf16.msra.mxu0 %v13978_v4  ;;  %13551 = vmatpush3.bf16.msra.mxu1 %v13979_v6  ;;  %v14001_v4 = vld [vmem:[%s17003_s1 + $0x1d8] sm:$0xff]  }
 0x520   :  { %v3015_v40 = vpop.f32.mrf.mxu0  ;;  %v3056_v14 = vpop.f32.mrf.mxu1  ;;  %13536 = vmatprep.subr.bf16.mxu0 %v13980_v8  ;;  %13552 = vmatprep.subr.bf16.mxu1 %v13981_v9 }
 0x521   :  { %v15531_v17 = vadd.f32 %v3015_v40, %v15425_v24  ;;  %v15534_v18 = vadd.f32 %v3056_v14, %v15427_v25  ;;  %v13985_v24 = vld [vmem:[%s17003_s1 + $0xf8] sm:$0xff]   ;;  %v13986_v25 = vld [vmem:[%s17003_s1 + $0xc0] sm:$0xff]  }
 0x522   :  { %v3017_v19 = vpop.f32.mrf.mxu0  ;;  %v3058_v21 = vpop.f32.mrf.mxu1 }
 0x523   :  { %13537 = vmatpush3.bf16.msra.mxu0 %v13980_v8  ;;  %13553 = vmatpush3.bf16.msra.mxu1 %v13981_v9  ;;  %v5320_v8 = vrot.slane %v15368_v49, 2  ;;  %v15622_v9 = vrot.slane %v15373_v55, 2  ;;  %v14003_v49 = vld [vmem:[%s17003_s1 + $0x1d0] sm:$0xff]  }
 0x524   :  { %v3018_v23 = vpop.f32.mrf.mxu0  ;;  %v3059_v27 = vpop.f32.mrf.mxu1  ;;  %13538 = vmatprep.subr.bf16.mxu0 %v13982_v15  ;;  %13554 = vmatprep.subr.bf16.mxu1 %v13983_v16 }
 0x525   :  { %v5322_v19 = vsel %vm970_vm2, %v5320_v8, %v15622_v9  ;;  %v14006_v27 = vld [vmem:[%s17003_s1 + $0x190] sm:$0xff]  }
 0x527   :  { %13539 = vmatpush3.bf16.msra.mxu0 %v13982_v15  ;;  %13555 = vmatpush3.bf16.msra.mxu1 %v13983_v16  ;;  %v14002_v15 = vld [vmem:[%s17003_s1 + $0x1a0] sm:$0xff]  }
 0x528   :  { %13540 = vmatprep.subr.bf16.mxu0 %v13984_v28  ;;  %13556 = vmatprep.subr.bf16.mxu1 %v13985_v24 }
 0x52b   :  { %13541 = vmatpush3.bf16.msra.mxu0 %v13984_v28  ;;  %13557 = vmatpush3.bf16.msra.mxu1 %v13985_v24  ;;  %v14007_v28 = vld [vmem:[%s17003_s1 + $0x1c0] sm:$0xff]   ;;  %v14008_v24 = vld [vmem:[%s17003_s1 + $0x188] sm:$0xff]  }
 0x52c   :  { %13542 = vmatprep.subr.bf16.mxu0 %v13986_v25  ;;  %13558 = vmatprep.subr.bf16.mxu1 %v13987_v29 }
 0x52f   :  { %13543 = vmatpush3.bf16.msra.mxu0 %v13986_v25  ;;  %13559 = vmatpush3.bf16.msra.mxu1 %v13987_v29  ;;  %v14009_v25 = vld [vmem:[%s17003_s1 + $0x1b8] sm:$0xff]   ;;  %v14010_v29 = vld [vmem:[%s17003_s1 + $0x180] sm:$0xff]  }
 0x530   :  { %13564 = vmatprep.subr.bf16.mxu0 %v13988_v35  ;;  %13580 = vmatprep.subr.bf16.mxu1 %v13989_v3 }
 0x532   :  { %v3095_v38 = vpop.f32.mrf.mxu0  ;;  %v3136_v36 = vpop.f32.mrf.mxu1  ;;  %13545 = vmatmul.mubr.msk.bf16.vlgmr.msra.gmra.mxu0 %vm197_vm1, %v15496_v2  ;;  %13561 = vmatmul.mubr.msk.bf16.vlgmr.msra.gmra.mxu1 %vm197_vm1, %v15496_v2  ;;  %v14000_v2 = vld [vmem:[%s17003_s1 + $0x1a8] sm:$0xff]  }
 0x533   :  { %v15577_v41 = vadd.f32 %v3095_v38, %v15468_v43  ;;  %v15580_v37 = vadd.f32 %v3136_v36, %v15470_v44  ;;  %13565 = vmatpush3.bf16.msra.mxu0 %v13988_v35  ;;  %13581 = vmatpush3.bf16.msra.mxu1 %v13989_v3 }
 0x534   :  { %v3097_v42 = vpop.f32.mrf.mxu0  ;;  %v3138_v51 = vpop.f32.mrf.mxu1  ;;  %13566 = vmatprep.subr.bf16.mxu0 %v13990_v5  ;;  %13582 = vmatprep.subr.bf16.mxu1 %v13991_v31 }
 0x535   :  { %v15589_v43 = vadd.f32 %v3097_v42, %v15472_v45  ;;  %v15592_v44 = vadd.f32 %v3138_v51, %v15474_v46  ;;  %13576 = vmatprep.mubr.msk.bf16.mxu0 %vm197_vm1, %v5111_v39  ;;  %13592 = vmatprep.mubr.msk.bf16.mxu1 %vm197_vm1, %v5111_v39  ;;  %v13994_v45 = vld [vmem:[%s17003_s1 + $0x130] sm:$0xff]   ;;  %v13995_v46 = vld [vmem:[%s17003_s1 + $0x160] sm:$0xff]  }
 0x536   :  { %v3099_v54 = vpop.f32.mrf.mxu0  ;;  %v3140_v56 = vpop.f32.mrf.mxu1 }
 0x537   :  { %13567 = vmatpush3.bf16.msra.mxu0 %v13990_v5  ;;  %13583 = vmatpush3.bf16.msra.mxu1 %v13991_v31 }
 0x538   :  { %v3100_v58 = vpop.f32.mrf.mxu0  ;;  %v3141_v59 = vpop.f32.mrf.mxu1  ;;  %13568 = vmatprep.subr.bf16.mxu0 %v13992_v52  ;;  %13584 = vmatprep.subr.bf16.mxu1 %v13993_v50 }
 0x53b   :  { %13569 = vmatpush3.bf16.msra.mxu0 %v13992_v52  ;;  %13585 = vmatpush3.bf16.msra.mxu1 %v13993_v50 }
 0x53c   :  { %13570 = vmatprep.subr.bf16.mxu0 %v13994_v45  ;;  %13586 = vmatprep.subr.bf16.mxu1 %v13995_v46 }
 0x53f   :  { %13571 = vmatpush3.bf16.msra.mxu0 %v13994_v45  ;;  %13587 = vmatpush3.bf16.msra.mxu1 %v13995_v46 }
 0x540   :  { %13572 = vmatprep.subr.bf16.mxu0 %v13996_v53  ;;  %13588 = vmatprep.subr.bf16.mxu1 %v13997_v63 }
 0x543   :  { %13573 = vmatpush3.bf16.msra.mxu0 %v13996_v53  ;;  %13589 = vmatpush3.bf16.msra.mxu1 %v13997_v63 }
 0x544   :  { %13574 = vmatprep.subr.bf16.mxu0 %v13998_v0  ;;  %13590 = vmatprep.subr.bf16.mxu1 %v13999_v1 }
 0x546   :  { %v3423_v6 = vpop.f32.mrf.mxu0  ;;  %v3464_v7 = vpop.f32.mrf.mxu1 }
 0x547   :  { %v15625_v10 = vadd.f32 %v3423_v6, %v15519_v12  ;;  %v15628_v11 = vadd.f32 %v3464_v7, %v15522_v13  ;;  %13575 = vmatpush3.bf16.msra.mxu0 %v13998_v0  ;;  %13591 = vmatpush3.bf16.msra.mxu1 %v13999_v1  ;;  %v14627_v0 = vmov 1966171168  }
 0x548   :  { %v3425_v40 = vpop.f32.mrf.mxu0  ;;  %v3466_v14 = vpop.f32.mrf.mxu1  ;;  %13596 = vmatprep.subr.bf16.mxu0 %v14000_v2  ;;  %13612 = vmatprep.subr.bf16.mxu1 %v14001_v4  ;;  %v4408_v1 = vunpack.c.l.s4 %v14627_v0 }
 0x549   :  { %v15637_v55 = vadd.f32 %v3425_v40, %v15531_v17  ;;  %v15640_v12 = vadd.f32 %v3466_v14, %v15534_v18  ;;  %v14004_v17 = vld [vmem:[%s17003_s1 + $0x198] sm:$0xff]   ;;  %v14005_v18 = vld [vmem:[%s17003_s1 + $0x1c8] sm:$0xff]  }
 0x54a   :  { %v3427_v13 = vpop.f32.mrf.mxu0  ;;  %v3468_v16 = vpop.f32.mrf.mxu1  ;;  %13577 = vmatmul.mubr.msk.bf16.vlgmr.msra.gmra.mxu0 %vm197_vm1, %v15562_v60  ;;  %13593 = vmatmul.mubr.msk.bf16.vlgmr.msra.gmra.mxu1 %vm197_vm1, %v15562_v60 }
 0x54b   :  { %13597 = vmatpush3.bf16.msra.mxu0 %v14000_v2  ;;  %13613 = vmatpush3.bf16.msra.mxu1 %v14001_v4  ;;  %v4409_v2 = vunpack.c.0.s8 %v4408_v1 }
 0x54c   :  { %v3428_v21 = vpop.f32.mrf.mxu0  ;;  %v3469_v23 = vpop.f32.mrf.mxu1  ;;  %13598 = vmatprep.subr.bf16.mxu0 %v14002_v15  ;;  %13614 = vmatprep.subr.bf16.mxu1 %v14003_v49 }
 0x54d   :  { %13608 = vmatprep.mubr.msk.bf16.mxu0 %vm197_vm1, %v5322_v19  ;;  %13624 = vmatprep.mubr.msk.bf16.mxu1 %vm197_vm1, %v5322_v19 }
 0x54f   :  { %13599 = vmatpush3.bf16.msra.mxu0 %v14002_v15  ;;  %13615 = vmatpush3.bf16.msra.mxu1 %v14003_v49  ;;  %v15697_v15 = vsub.s32 %v4409_v2, %v14953_v57 }
 0x550   :  { %13600 = vmatprep.subr.bf16.mxu0 %v14004_v17  ;;  %13616 = vmatprep.subr.bf16.mxu1 %v14005_v18 }
 0x553   :  { %13601 = vmatpush3.bf16.msra.mxu0 %v14004_v17  ;;  %13617 = vmatpush3.bf16.msra.mxu1 %v14005_v18 }
 0x554   :  { %13602 = vmatprep.subr.bf16.mxu0 %v14006_v27  ;;  %13618 = vmatprep.subr.bf16.mxu1 %v14007_v28 }
 0x557   :  { %13603 = vmatpush3.bf16.msra.mxu0 %v14006_v27  ;;  %13619 = vmatpush3.bf16.msra.mxu1 %v14007_v28 }
 0x558   :  { %13604 = vmatprep.subr.bf16.mxu0 %v14008_v24  ;;  %13620 = vmatprep.subr.bf16.mxu1 %v14009_v25 }
 0x55a   :  { %v3505_v32 = vpop.f32.mrf.mxu0  ;;  %v3546_v33 = vpop.f32.mrf.mxu1 }
 0x55b   :  { %v15675_v34 = vadd.f32 %v3505_v32, %v15577_v41  ;;  %v15678_v35 = vadd.f32 %v3546_v33, %v15580_v37  ;;  %13605 = vmatpush3.bf16.msra.mxu0 %v14008_v24  ;;  %13621 = vmatpush3.bf16.msra.mxu1 %v14009_v25 }
 0x55c   :  { %v3507_v3 = vpop.f32.mrf.mxu0  ;;  %v3548_v22 = vpop.f32.mrf.mxu1  ;;  %13606 = vmatprep.subr.bf16.mxu0 %v14010_v29  ;;  %13622 = vmatprep.subr.bf16.mxu1 %v14011_v30 }
 0x55d   :  { %v3558_v60 = vadd.f32 %v3507_v3, %v15589_v43  ;;  %v3560_v5 = vadd.f32 %v3548_v22, %v15592_v44 }
 0x55e   :  { %v3509_v31 = vpop.f32.mrf.mxu0  ;;  %v3550_v38 = vpop.f32.mrf.mxu1 }
 0x55f   :  { %13607 = vmatpush3.bf16.msra.mxu0 %v14010_v29  ;;  %13623 = vmatpush3.bf16.msra.mxu1 %v14011_v30 }
 0x560   :  { %v3510_v36 = vpop.f32.mrf.mxu0  ;;  %v3551_v39 = vpop.f32.mrf.mxu1  ;;  %13628 = vmatprep.subr.bf16.mxu0 %v14624_v20  ;;  %13636 = vmatprep.subr.bf16.mxu1 %v14624_v20 }
 0x562   :  { %13609 = vmatmul.mubr.msk.bf16.vlgmr.msra.gmra.mxu0 %vm197_vm1, %v15622_v9  ;;  %13625 = vmatmul.mubr.msk.bf16.vlgmr.msra.gmra.mxu1 %vm197_vm1, %v15622_v9 }
 0x563   :  { %13632 = vmatprep.mubr.msk.bf16.mxu0 %vm14625_vm5, %v14624_v20  ;;  %13640 = vmatprep.mubr.msk.bf16.mxu1 %vm14625_vm5, %v14624_v20 }
 0x56e   :  { %v3840_v41 = vpop.f32.mrf.mxu0  ;;  %v3881_v37 = vpop.f32.mrf.mxu1 }
 0x56f   :  { %v3970_v7 = vadd.f32 %v3840_v41, %v15625_v10  ;;  %v3972_v8 = vadd.f32 %v3881_v37, %v15628_v11 }
 0x570   :  { %v3842_v42 = vpop.f32.mrf.mxu0  ;;  %v3883_v51 = vpop.f32.mrf.mxu1 }
 0x571   :  { %v3971_v9 = vadd.f32 %v3842_v42, %v15637_v55  ;;  %v3973_v40 = vadd.f32 %v3883_v51, %v15640_v12 }
 0x572   :  { %v3844_v52 = vpop.f32.mrf.mxu0  ;;  %v3885_v50 = vpop.f32.mrf.mxu1 }
 0x574   :  { %v3845_v43 = vpop.f32.mrf.mxu0  ;;  %v3886_v44 = vpop.f32.mrf.mxu1 }
 0x582   :  { %v3922_v54 = vpop.f32.mrf.mxu0  ;;  %v3963_v56 = vpop.f32.mrf.mxu1 }
 0x583   :  { %v3974_v29 = vadd.f32 %v3922_v54, %v15675_v34  ;;  %v3976_v30 = vadd.f32 %v3963_v56, %v15678_v35 }
 0x584   :  { %v3924_v58 = vpop.f32.mrf.mxu0  ;;  %v3965_v59 = vpop.f32.mrf.mxu1 }
 0x585   :  { %v3975_v32 = vadd.f32 %v3924_v58, %v3558_v60  ;;  %v3977_v33 = vadd.f32 %v3965_v59, %v3560_v5 }
 0x586   :  { %v3926_v45 = vpop.f32.mrf.mxu0  ;;  %v3967_v46 = vpop.f32.mrf.mxu1 }
 0x588   :  { %v3927_v53 = vpop.f32.mrf.mxu0  ;;  %v3968_v63 = vpop.f32.mrf.mxu1 }
 0x596   :  { %v4257_v4 = vpop.f32.mrf.mxu0  ;;  %v4298_v6 = vpop.f32.mrf.mxu1 }
 0x597   :  { %v4387_v13 = vadd.f32 %v4257_v4, %v3970_v7  ;;  %v4389_v16 = vadd.f32 %v4298_v6, %v3972_v8 }
 0x598   :  { %v4259_v14 = vpop.f32.mrf.mxu0  ;;  %v4300_v49 = vpop.f32.mrf.mxu1 }
 0x599   :  { %v4388_v19 = vadd.f32 %v4259_v14, %v3971_v9  ;;  %v4390_v21 = vadd.f32 %v4300_v49, %v3973_v40 }
 0x59a   :  { %v4261_v23 = vpop.f32.mrf.mxu0  ;;  %v4302_v17 = vpop.f32.mrf.mxu1 }
 0x59b   :  { %v4403_v18 = vcombine.low %v4387_v13, %v4388_v19  ;;  %v4404_v27 = vcombine.low %v4389_v16, %v4390_v21 }
 0x59c   :  { %v4262_v10 = vpop.f32.mrf.mxu0  ;;  %v4303_v28 = vpop.f32.mrf.mxu1 }
 0x59d   :  { %v4413_v11 = vrot.slane %v4403_v18, %v15697_v15  ;;  %v4420_v55 = vrot.slane %v4404_v27, %v15697_v15 }
 0x59f   :  { %v4435_v12 = vcombine.low %v4413_v11, %v4420_v55 }
 0x5a1   :  { %v4443_v35 = vrot.slane %v4435_v12, %v15697_v15 }
 0x5aa   :  { %v4339_v24 = vpop.f32.mrf.mxu0  ;;  %v4380_v25 = vpop.f32.mrf.mxu1 }
 0x5ab   :  { %v4391_v31 = vadd.f32 %v4339_v24, %v3974_v29  ;;  %v4393_v38 = vadd.f32 %v4380_v25, %v3976_v30 }
 0x5ac   :  { %v4341_v3 = vpop.f32.mrf.mxu0  ;;  %v4382_v22 = vpop.f32.mrf.mxu1 }
 0x5ad   :  { %v4392_v36 = vadd.f32 %v4341_v3, %v3975_v32  ;;  %v4394_v39 = vadd.f32 %v4382_v22, %v3977_v33 }
 0x5ae   :  { %v4343_v41 = vpop.f32.mrf.mxu0  ;;  %v4384_v37 = vpop.f32.mrf.mxu1 }
 0x5af   :  { %v4405_v42 = vcombine.low %v4391_v31, %v4392_v36  ;;  %v4406_v51 = vcombine.low %v4393_v38, %v4394_v39 }
 0x5b0   :  { %v4344_v52 = vpop.f32.mrf.mxu0  ;;  %v4385_v50 = vpop.f32.mrf.mxu1 }
 0x5b1   :  { %v4427_v43 = vrot.slane %v4405_v42, %v15697_v15  ;;  %v4434_v34 = vrot.slane %v4406_v51, %v15697_v15 }
 0x5b3   :  { %v4436_v44 = vcombine.low %v4427_v43, %v4434_v34 }
 0x5b5   :  { %v4450_v60 = vrot.slane %v4436_v44, %v15697_v15 }
 0x5b7   :  { %v4451_v5 = vcombine.low %v4443_v35, %v4450_v60 }
 0x5b9   :  { %4453 = vst [vmem:[#allocation2] ss:$2 sm:$0xff] %v4451_v5 }
 0x5c2   :  { %v13482_v54 = vpop.f32.mrf.mxu0  ;;  %v13498_v56 = vpop.f32.mrf.mxu1 }
 0x5c4   :  { %v4596_v58 = vpop.f32.mrf.mxu0  ;;  %v4693_v59 = vpop.f32.mrf.mxu1 }
 0x5c6   :  { %v13483_v45 = vpop.f32.mrf.mxu0  ;;  %v13499_v46 = vpop.f32.mrf.mxu1 }
 0x5c8   :  { %v4599_v53 = vpop.f32.mrf.mxu0  ;;  %v4696_v63 = vpop.f32.mrf.mxu1 }
 0x5da   :  { %v13514_v0 = vpop.f32.mrf.mxu0  ;;  %v13530_v1 = vpop.f32.mrf.mxu1 }
 0x5db   :  { %v4791_v55 = vadd.f32 %v13514_v0, %v13482_v54  ;;  %v4876_v12 = vadd.f32 %v13530_v1, %v13498_v56 }
 0x5dc   :  { %v4782_v2 = vpop.f32.mrf.mxu0  ;;  %v4867_v4 = vpop.f32.mrf.mxu1 }
 0x5dd   :  { %v4783_v29 = vadd.f32 %v4782_v2, %v4596_v58  ;;  %v4868_v30 = vadd.f32 %v4867_v4, %v4693_v59 }
 0x5de   :  { %v13515_v6 = vpop.f32.mrf.mxu0  ;;  %v13531_v7 = vpop.f32.mrf.mxu1 }
 0x5df   :  { %v4794_v3 = vadd.f32 %v13515_v6, %v13483_v45  ;;  %v4879_v22 = vadd.f32 %v13531_v7, %v13499_v46  ;;  %v12084_v46 = vld [vmem:[%s17004_s2] ss:$0 sm:$0xff] }
 0x5e0   :  { %v4785_v8 = vpop.f32.mrf.mxu0  ;;  %v4870_v9 = vpop.f32.mrf.mxu1 }
 0x5e1   :  { %v4786_v36 = vadd.f32 %v4785_v8, %v4599_v53  ;;  %v4871_v34 = vadd.f32 %v4870_v9, %v4696_v63 }
 0x5f2   :  { %v13546_v40 = vpop.f32.mrf.mxu0  ;;  %v13562_v14 = vpop.f32.mrf.mxu1 }
 0x5f3   :  { %v5087_v24 = vadd.f32 %v13546_v40, %v4791_v55  ;;  %v5091_v25 = vadd.f32 %v13562_v14, %v4876_v12  ;;  %v14012_v12 = vld [vmem:[%s17005_s3 + $0x80] ss:$0 sps:$4 sm:$0x33]  }
 0x5f4   :  { %v4973_v49 = vpop.f32.mrf.mxu0  ;;  %v5070_v13 = vpop.f32.mrf.mxu1 }
 0x5f5   :  { %v5085_v39 = vadd.f32 %v4973_v49, %v4783_v29  ;;  %v5089_v41 = vadd.f32 %v5070_v13, %v4868_v30  ;;  %v5705_v29 = vsel %vm1367_vm10, %v14012_v12, 0  ;;  %v14045_v12 = vld [vmem:[%s17005_s3 + $0xe4] sm:$0xff]  }
 0x5f6   :  { %v13547_v16 = vpop.f32.mrf.mxu0  ;;  %v13563_v19 = vpop.f32.mrf.mxu1 }
 0x5f7   :  { %v5088_v51 = vadd.f32 %v13547_v16, %v4794_v3  ;;  %v5092_v52 = vadd.f32 %v13563_v19, %v4879_v22  ;;  %v14018_v3 = vld [vmem:[%s17005_s3 + $0x68] sm:$0xff]   ;;  %v14019_v22 = vld [vmem:[%s17005_s3 + $0x94] sm:$0xff]  }
 0x5f8   :  { %v4976_v21 = vpop.f32.mrf.mxu0  ;;  %v5073_v23 = vpop.f32.mrf.mxu1 }
 0x5f9   :  { %v5086_v54 = vadd.f32 %v4976_v21, %v4786_v36  ;;  %v5090_v45 = vadd.f32 %v5073_v23, %v4871_v34  ;;  %v14022_v36 = vld [vmem:[%s17005_s3 + $0x58] sm:$0xff]  }
 0x60a   :  { %v13578_v17 = vpop.f32.mrf.mxu0  ;;  %v13594_v18 = vpop.f32.mrf.mxu1 }
 0x60b   :  { %v5302_v31 = vadd.f32 %v13578_v17, %v5087_v24  ;;  %v5306_v38 = vadd.f32 %v13594_v18, %v5091_v25  ;;  %v14013_v24 = vld [vmem:[%s17005_s3 + $0xac] ss:$0 sps:$4 sm:$0x33]  }
 0x60c   :  { %v5188_v27 = vpop.f32.mrf.mxu0  ;;  %v5285_v10 = vpop.f32.mrf.mxu1  ;;  %v5793_v30 = vsel %vm1367_vm10, %v14013_v24, 0  ;;  %v14046_v24 = vld [vmem:[%s17005_s3 + $0xb0] sm:$0xff]  }
 0x60d   :  { %v5300_v44 = vadd.f32 %v5188_v27, %v5085_v39  ;;  %v5304_v35 = vadd.f32 %v5285_v10, %v5089_v41  ;;  %v14023_v39 = vld [vmem:[%s17005_s3 + $0x84] sm:$0xff]  }
 0x60e   :  { %v13579_v28 = vpop.f32.mrf.mxu0  ;;  %v13595_v11 = vpop.f32.mrf.mxu1 }
 0x60f   :  { %v5303_v56 = vadd.f32 %v13579_v28, %v5088_v51  ;;  %v5307_v58 = vadd.f32 %v13595_v11, %v5092_v52 }
 0x610   :  { %v5191_v32 = vpop.f32.mrf.mxu0  ;;  %v5288_v33 = vpop.f32.mrf.mxu1 }
 0x611   :  { %v5301_v4 = vadd.f32 %v5191_v32, %v5086_v54  ;;  %v5305_v7 = vadd.f32 %v5288_v33, %v5090_v45  ;;  %v14014_v32 = vld [vmem:[%s17005_s3 + $0x78] sm:$0xff]   ;;  %v14015_v33 = vld [vmem:[%s17005_s3 + $0xa4] sm:$0xff]  }
 0x622   :  { %v13610_v37 = vpop.f32.mrf.mxu0  ;;  %v13626_v42 = vpop.f32.mrf.mxu1 }
 0x623   :  { %v5513_v50 = vadd.f32 %v13610_v37, %v5302_v31  ;;  %v5517_v43 = vadd.f32 %v13626_v42, %v5306_v38  ;;  %v14020_v31 = vld [vmem:[%s17005_s3 + $0x60] sm:$0xff]   ;;  %v14021_v38 = vld [vmem:[%s17005_s3 + $0x8c] sm:$0xff]  }
 0x624   :  { %v5399_v60 = vpop.f32.mrf.mxu0  ;;  %v5496_v5 = vpop.f32.mrf.mxu1 }
 0x625   :  { %v5521_v59 = vmax.f32 %v5513_v50, %v5517_v43  ;;  %v5511_v53 = vadd.f32 %v5399_v60, %v5300_v44  ;;  %v5515_v0 = vadd.f32 %v5496_v5, %v5304_v35  ;;  %v14024_v5 = vld [vmem:[%s17005_s3 + $0x28] ss:$0 sps:$4 sm:$0x33]  }
 0x626   :  { %v13611_v1 = vpop.f32.mrf.mxu0  ;;  %v13627_v2 = vpop.f32.mrf.mxu1 }
 0x627   :  { %v5514_v6 = vadd.f32 %v13611_v1, %v5303_v56  ;;  %v5518_v63 = vadd.f32 %v13627_v2, %v5307_v58  ;;  %v5532_v40 = vadd.f32 %v12084_v46, %v5521_v59  ;;  %v5519_v13 = vmax.f32 %v5511_v53, %v5515_v0  ;;  %v14025_v58 = vld [vmem:[%s17005_s3 + $0x54] ss:$0 sps:$4 sm:$0x33]  }
 0x628   :  { %v5402_v8 = vpop.f32.mrf.mxu0  ;;  %v5499_v9 = vpop.f32.mrf.mxu1  ;;  %v5872_v0 = vsel %vm1367_vm10, %v14024_v5, 0  ;;  %v5949_v1 = vsel %vm1367_vm10, %v14025_v58, 0  ;;  %v14065_v5 = vld [vmem:[%s17005_s3 + $0x1a4] sm:$0xff]  }
 0x629   :  { %v5522_v14 = vmax.f32 %v5514_v6, %v5518_v63  ;;  %v5512_v49 = vadd.f32 %v5402_v8, %v5301_v4  ;;  %v5516_v16 = vadd.f32 %v5499_v9, %v5305_v7  ;;  %v5536_v23 = vmax.f32 %v5532_v40, 0.0  ;;  %v14026_v4 = vld [vmem:[%s17005_s3 + $0x20] sm:$0xff]   ;;  %v14027_v6 = vld [vmem:[%s17005_s3 + $0x4c] sm:$0xff]   ;;  %v14028_v63 = vld [vmem:[%s17005_s3 + $0x18] sm:$0xff]  }
 0x62a   :  { %v5530_v18 = vadd.f32 %v12084_v46, %v5519_v13  ;;  %v14029_v7 = vld [vmem:[%s17005_s3 + $0x44] sm:$0xff]   ;;  %v14030_v8 = vld [vmem:[%s17005_s3 + $0x10] sm:$0xff]   ;;  %v14031_v9 = vld [vmem:[%s17005_s3 + $0x3c] sm:$0xff]  }
 0x62b   :  { %v5533_v19 = vadd.f32 %v12084_v46, %v5522_v14  ;;  %v5520_v21 = vmax.f32 %v5512_v49, %v5516_v16  ;;  %v14032_v40 = vld [vmem:[%s17005_s3 + $0x8] sm:$0xff]   ;;  %v14033_v14 = vld [vmem:[%s17005_s3 + $0x34] sm:$0xff]   ;;  %v14034_v49 = vld [vmem:[%s17005_s3] sm:$0xff]  }
 0x62c   :  { %v5534_v55 = vmax.f32 %v5530_v18, 0.0  ;;  %v14035_v13 = vld [vmem:[%s17005_s3 + $0x2c] sm:$0xff]   ;;  %v14036_v16 = vld [vmem:[%s17005_s3 + $0xd8] ss:$0 sps:$4 sm:$0x33]   ;;  %v14039_v18 = vld [vmem:[%s17005_s3 + $0xfc] sm:$0xff]  }
 0x62d   :  { %v5537_v17 = vmax.f32 %v5533_v19, 0.0  ;;  %v5531_v27 = vadd.f32 %v12084_v46, %v5520_v21  ;;  %v14037_v19 = vld [vmem:[%s17005_s3 + $0x104] ss:$0 sps:$4 sm:$0x33]   ;;  %v6042_v21 = vsel %vm1367_vm10, %v14036_v16, 0  ;;  %v14068_v58 = vld [vmem:[%s17005_s3 + $0x168] sm:$0xff]  }
 0x62f   :  { %v5539_v10 = vpack.c.bf16 %v5537_v17, %v5536_v23  ;;  %v5535_v28 = vmax.f32 %v5531_v27, 0.0  ;;  %v6130_v23 = vsel %vm1367_vm10, %v14037_v19, 0  ;;  %v14038_v17 = vld [vmem:[%s17005_s3 + $0xd0] sm:$0xff]   ;;  %v14040_v27 = vld [vmem:[%s17005_s3 + $0xc8] sm:$0xff]  }
 0x631   :  { %v5541_v11 = vsel %vm970_vm2, %v5539_v10, 0  ;;  %v5538_v25 = vpack.c.bf16 %v5535_v28, %v5534_v55  ;;  %v14041_v10 = vld [vmem:[%s17005_s3 + $0xf4] sm:$0xff]   ;;  %v14042_v28 = vld [vmem:[%s17005_s3 + $0xc0] sm:$0xff]  }
 0x632   :  { %13629 = vmatpush3.bf16.msra.mxu0 %v5541_v11  ;;  %13637 = vmatpush3.bf16.msra.mxu1 %v5541_v11  ;;  %v14043_v11 = vld [vmem:[%s17005_s3 + $0xec] sm:$0xff]   ;;  %v14044_v55 = vld [vmem:[%s17005_s3 + $0xb8] sm:$0xff]  }
 0x633   :  { %13630 = vmatprep.subr.bf16.mxu0 %v14624_v20  ;;  %13638 = vmatprep.subr.bf16.mxu1 %v14624_v20 }
 0x636   :  { %13631 = vmatpush3.bf16.msra.mxu0 %v5538_v25  ;;  %13639 = vmatpush3.bf16.msra.mxu1 %v5538_v25  ;;  %v14047_v25 = vld [vmem:[%s17005_s3 + $0xdc] sm:$0xff]  }
 0x637   :  { %13644 = vmatprep.subr.bf16.mxu0 %v14624_v20  ;;  %13660 = vmatprep.subr.bf16.mxu1 %v14624_v20 }
 0x639   :  { %13633 = vmatmul.mubr.msk.bf16.vlgmr.msra.gmra.mxu0 %vm1192_vm11, %v14978_v61  ;;  %13641 = vmatmul.mubr.msk.bf16.vlgmr.msra.gmra.mxu1 %vm1192_vm11, %v14981_v62  ;;  %v14016_v61 = vld [vmem:[%s17005_s3 + $0x70] sm:$0xff]   ;;  %v14017_v62 = vld [vmem:[%s17005_s3 + $0x9c] sm:$0xff]  }
 0x63a   :  { %13645 = vmatpush3.bf16.msra.mxu0 %v5705_v29  ;;  %13661 = vmatpush3.bf16.msra.mxu1 %v5793_v30  ;;  %v14048_v29 = vld [vmem:[%s17005_s3 + $0x130] ss:$0 sps:$4 sm:$0x33]   ;;  %v14049_v30 = vld [vmem:[%s17005_s3 + $0x15c] ss:$0 sps:$4 sm:$0x33]  }
 0x63b   :  { %13646 = vmatprep.subr.bf16.mxu0 %v14624_v20  ;;  %13662 = vmatprep.subr.bf16.mxu1 %v14624_v20 }
 0x63c   :  { %13656 = vmatprep.mubr.msk.bf16.mxu0 %vm14625_vm5, %v14624_v20  ;;  %13672 = vmatprep.mubr.msk.bf16.mxu1 %vm14625_vm5, %v14624_v20 }
 0x63e   :  { %13647 = vmatpush3.bf16.msra.mxu0 %v14014_v32  ;;  %13663 = vmatpush3.bf16.msra.mxu1 %v14015_v33  ;;  %v6228_v33 = vsel %vm1367_vm10, %v14048_v29, 0 }
 0x63f   :  { %13648 = vmatprep.subr.bf16.mxu0 %v14624_v20  ;;  %13664 = vmatprep.subr.bf16.mxu1 %v14624_v20 }
 0x642   :  { %13649 = vmatpush3.bf16.msra.mxu0 %v14016_v61  ;;  %13665 = vmatpush3.bf16.msra.mxu1 %v14017_v62  ;;  %v6316_v61 = vsel %vm1367_vm10, %v14049_v30, 0  ;;  %v14050_v62 = vld [vmem:[%s17005_s3 + $0x128] sm:$0xff]  }
 0x643   :  { %13650 = vmatprep.subr.bf16.mxu0 %v14624_v20  ;;  %13666 = vmatprep.subr.bf16.mxu1 %v14624_v20 }
 0x646   :  { %13651 = vmatpush3.bf16.msra.mxu0 %v14018_v3  ;;  %13667 = vmatpush3.bf16.msra.mxu1 %v14019_v22  ;;  %v14051_v3 = vld [vmem:[%s17005_s3 + $0x154] sm:$0xff]   ;;  %v14052_v22 = vld [vmem:[%s17005_s3 + $0x120] sm:$0xff]  }
 0x647   :  { %13652 = vmatprep.subr.bf16.mxu0 %v14624_v20  ;;  %13668 = vmatprep.subr.bf16.mxu1 %v14624_v20 }
 0x64a   :  { %13653 = vmatpush3.bf16.msra.mxu0 %v14020_v31  ;;  %13669 = vmatpush3.bf16.msra.mxu1 %v14021_v38  ;;  %v14053_v31 = vld [vmem:[%s17005_s3 + $0x14c] sm:$0xff]   ;;  %v14054_v38 = vld [vmem:[%s17005_s3 + $0x118] sm:$0xff]  }
 0x64b   :  { %13654 = vmatprep.subr.bf16.mxu0 %v14624_v20  ;;  %13670 = vmatprep.subr.bf16.mxu1 %v14624_v20 }
 0x64e   :  { %13655 = vmatpush3.bf16.msra.mxu0 %v14022_v36  ;;  %13671 = vmatpush3.bf16.msra.mxu1 %v14023_v39  ;;  %v14055_v36 = vld [vmem:[%s17005_s3 + $0x144] sm:$0xff]   ;;  %v14056_v39 = vld [vmem:[%s17005_s3 + $0x110] sm:$0xff]  }
 0x64f   :  { %13676 = vmatprep.subr.bf16.mxu0 %v14624_v20  ;;  %13692 = vmatprep.subr.bf16.mxu1 %v14624_v20 }
 0x6f9   :  { %v5577_v41 = vpop.f32.mrf.mxu0  ;;  %v5618_v37 = vpop.f32.mrf.mxu1 }
 0x6fa   :  { %v5625_v43 = vmax.f32 %v5577_v41, %v5618_v37  ;;  %v14057_v41 = vld [vmem:[%s17005_s3 + $0x13c] sm:$0xff]   ;;  %v14058_v37 = vld [vmem:[%s17005_s3 + $0x108] sm:$0xff]  }
 0x6fb   :  { %v13634_v42 = vpop.f32.mrf.mxu0  ;;  %v13642_v51 = vpop.f32.mrf.mxu1 }
 0x6fc   :  { %v14059_v42 = vld [vmem:[%s17005_s3 + $0x134] sm:$0xff]   ;;  %v14060_v51 = vld [vmem:[%s17005_s3 + $0x188] ss:$0 sps:$4 sm:$0x33]  }
 0x6fd   :  { %v5580_v52 = vpop.f32.mrf.mxu0  ;;  %v5621_v50 = vpop.f32.mrf.mxu1 }
 0x6fe   :  { %v5626_v34 = vmax.f32 %v5580_v52, %v5621_v50  ;;  %v14061_v52 = vld [vmem:[%s17005_s3 + $0x1b4] ss:$0 sps:$4 sm:$0x33]   ;;  %v6412_v50 = vsel %vm1367_vm10, %v14060_v51, 0 }
 0x6ff   :  { %v13635_v44 = vpop.f32.mrf.mxu0  ;;  %v13643_v35 = vpop.f32.mrf.mxu1 }
 0x700   :  { %v15773_v60 = vpack.c.bf16 %v5626_v34, %v5625_v43  ;;  %v6500_v43 = vsel %vm1367_vm10, %v14061_v52, 0  ;;  %v14062_v34 = vld [vmem:[%s17005_s3 + $0x180] sm:$0xff]   ;;  %v14063_v44 = vld [vmem:[%s17005_s3 + $0x1ac] sm:$0xff]   ;;  %v14064_v35 = vld [vmem:[%s17005_s3 + $0x178] sm:$0xff]  }
 0x702   :  { %v5664_v54 = vshll.u32 %v15773_v60, 16  ;;  %v5662_v56 = vshrl.u32 %v15773_v60, 16  ;;  %v6004_v32 = vrot.slane %v15773_v60, 1 }
 0x704   :  { %v5666_v59 = vrot.slane %v5664_v54, 1  ;;  %v6188_v45 = vrot.slane %v5662_v56, 1  ;;  %v6189_v46 = vrot.slane %v5664_v54, 2  ;;  %v14066_v54 = vld [vmem:[%s17005_s3 + $0x170] sm:$0xff]  }
 0x706   :  { %v5667_v53 = vor.u32 %v5666_v59, %v5662_v56  ;;  %v15785_v2 = vor.u32 %v6189_v46, %v6188_v45  ;;  %v14067_v56 = vld [vmem:[%s17005_s3 + $0x19c] sm:$0xff]   ;;  %v14069_v59 = vld [vmem:[%s17005_s3 + $0x194] sm:$0xff]   ;;  %v14071_v46 = vld [vmem:[%s17005_s3 + $0x18c] sm:$0xff]  }
 0x707   :  { %v14070_v45 = vld [vmem:[%s17005_s3 + $0x160] sm:$0xff]  }
 0x708   :  { %13657 = vmatmul.mubr.msk.bf16.vlgmr.msra.gmra.mxu0 %vm1363_vm12, %v5667_v53  ;;  %13673 = vmatmul.mubr.msk.bf16.vlgmr.msra.gmra.mxu1 %vm1363_vm12, %v5667_v53  ;;  %v6374_v53 = vrot.slane %v15773_v60, 2 }
 0x709   :  { %13677 = vmatpush3.bf16.msra.mxu0 %v5872_v0  ;;  %13693 = vmatpush3.bf16.msra.mxu1 %v5949_v1 }
 0x70a   :  { %13678 = vmatprep.subr.bf16.mxu0 %v14624_v20  ;;  %13694 = vmatprep.subr.bf16.mxu1 %v14624_v20 }
 0x70b   :  { %13688 = vmatprep.mubr.msk.bf16.mxu0 %vm14625_vm5, %v14624_v20  ;;  %13704 = vmatprep.mubr.msk.bf16.mxu1 %vm14625_vm5, %v14624_v20 }
 0x70d   :  { %13679 = vmatpush3.bf16.msra.mxu0 %v14026_v4  ;;  %13695 = vmatpush3.bf16.msra.mxu1 %v14027_v6 }
 0x70e   :  { %13680 = vmatprep.subr.bf16.mxu0 %v14624_v20  ;;  %13696 = vmatprep.subr.bf16.mxu1 %v14624_v20 }
 0x711   :  { %13681 = vmatpush3.bf16.msra.mxu0 %v14028_v63  ;;  %13697 = vmatpush3.bf16.msra.mxu1 %v14029_v7 }
 0x712   :  { %13682 = vmatprep.subr.bf16.mxu0 %v14624_v20  ;;  %13698 = vmatprep.subr.bf16.mxu1 %v14624_v20 }
 0x715   :  { %13683 = vmatpush3.bf16.msra.mxu0 %v14030_v8  ;;  %13699 = vmatpush3.bf16.msra.mxu1 %v14031_v9 }
 0x716   :  { %13684 = vmatprep.subr.bf16.mxu0 %v14624_v20  ;;  %13700 = vmatprep.subr.bf16.mxu1 %v14624_v20 }
 0x719   :  { %13685 = vmatpush3.bf16.msra.mxu0 %v14032_v40  ;;  %13701 = vmatpush3.bf16.msra.mxu1 %v14033_v14 }
 0x71a   :  { %13686 = vmatprep.subr.bf16.mxu0 %v14624_v20  ;;  %13702 = vmatprep.subr.bf16.mxu1 %v14624_v20 }
 0x71d   :  { %13687 = vmatpush3.bf16.msra.mxu0 %v14034_v49  ;;  %13703 = vmatpush3.bf16.msra.mxu1 %v14035_v13 }
 0x71e   :  { %13708 = vmatprep.subr.bf16.mxu0 %v14624_v20  ;;  %13724 = vmatprep.subr.bf16.mxu1 %v14624_v20 }
 0x720   :  { %13689 = vmatmul.mubr.msk.bf16.vlgmr.msra.gmra.mxu0 %vm1363_vm12, %v15773_v60  ;;  %13705 = vmatmul.mubr.msk.bf16.vlgmr.msra.gmra.mxu1 %vm1363_vm12, %v15773_v60 }
 0x721   :  { %13709 = vmatpush3.bf16.msra.mxu0 %v6042_v21  ;;  %13725 = vmatpush3.bf16.msra.mxu1 %v6130_v23 }
 0x722   :  { %13710 = vmatprep.subr.bf16.mxu0 %v14624_v20  ;;  %13726 = vmatprep.subr.bf16.mxu1 %v14624_v20 }
 0x723   :  { %13720 = vmatprep.mubr.msk.bf16.mxu0 %vm14625_vm5, %v14624_v20  ;;  %13736 = vmatprep.mubr.msk.bf16.mxu1 %vm14625_vm5, %v14624_v20 }
 0x725   :  { %13711 = vmatpush3.bf16.msra.mxu0 %v14038_v17  ;;  %13727 = vmatpush3.bf16.msra.mxu1 %v14039_v18 }
 0x726   :  { %13712 = vmatprep.subr.bf16.mxu0 %v14624_v20  ;;  %13728 = vmatprep.subr.bf16.mxu1 %v14624_v20 }
 0x729   :  { %13713 = vmatpush3.bf16.msra.mxu0 %v14040_v27  ;;  %13729 = vmatpush3.bf16.msra.mxu1 %v14041_v10 }
 0x72a   :  { %13714 = vmatprep.subr.bf16.mxu0 %v14624_v20  ;;  %13730 = vmatprep.subr.bf16.mxu1 %v14624_v20 }
 0x72d   :  { %13715 = vmatpush3.bf16.msra.mxu0 %v14042_v28  ;;  %13731 = vmatpush3.bf16.msra.mxu1 %v14043_v11 }
 0x72e   :  { %13716 = vmatprep.subr.bf16.mxu0 %v14624_v20  ;;  %13732 = vmatprep.subr.bf16.mxu1 %v14624_v20 }
 0x731   :  { %13717 = vmatpush3.bf16.msra.mxu0 %v14044_v55  ;;  %13733 = vmatpush3.bf16.msra.mxu1 %v14045_v12 }
 0x732   :  { %13718 = vmatprep.subr.bf16.mxu0 %v14624_v20  ;;  %13734 = vmatprep.subr.bf16.mxu1 %v14624_v20 }
 0x735   :  { %13719 = vmatpush3.bf16.msra.mxu0 %v14046_v24  ;;  %13735 = vmatpush3.bf16.msra.mxu1 %v14047_v25 }
 0x736   :  { %13740 = vmatprep.subr.bf16.mxu0 %v14624_v20  ;;  %13756 = vmatprep.subr.bf16.mxu1 %v14624_v20 }
 0x738   :  { %13721 = vmatmul.mubr.msk.bf16.vlgmr.msra.gmra.mxu0 %vm1363_vm12, %v6004_v32  ;;  %13737 = vmatmul.mubr.msk.bf16.vlgmr.msra.gmra.mxu1 %vm1363_vm12, %v6004_v32 }
 0x739   :  { %13741 = vmatpush3.bf16.msra.mxu0 %v6228_v33  ;;  %13757 = vmatpush3.bf16.msra.mxu1 %v6316_v61 }
 0x73a   :  { %13742 = vmatprep.subr.bf16.mxu0 %v14624_v20  ;;  %13758 = vmatprep.subr.bf16.mxu1 %v14624_v20 }
 0x73b   :  { %13752 = vmatprep.mubr.msk.bf16.mxu0 %vm14625_vm5, %v14624_v20  ;;  %13768 = vmatprep.mubr.msk.bf16.mxu1 %vm14625_vm5, %v14624_v20 }
 0x73d   :  { %13743 = vmatpush3.bf16.msra.mxu0 %v14050_v62  ;;  %13759 = vmatpush3.bf16.msra.mxu1 %v14051_v3 }
 0x73e   :  { %13744 = vmatprep.subr.bf16.mxu0 %v14624_v20  ;;  %13760 = vmatprep.subr.bf16.mxu1 %v14624_v20 }
 0x741   :  { %13745 = vmatpush3.bf16.msra.mxu0 %v14052_v22  ;;  %13761 = vmatpush3.bf16.msra.mxu1 %v14053_v31 }
 0x742   :  { %13746 = vmatprep.subr.bf16.mxu0 %v14624_v20  ;;  %13762 = vmatprep.subr.bf16.mxu1 %v14624_v20 }
 0x745   :  { %13747 = vmatpush3.bf16.msra.mxu0 %v14054_v38  ;;  %13763 = vmatpush3.bf16.msra.mxu1 %v14055_v36 }
 0x746   :  { %13748 = vmatprep.subr.bf16.mxu0 %v14624_v20  ;;  %13764 = vmatprep.subr.bf16.mxu1 %v14624_v20 }
 0x749   :  { %13749 = vmatpush3.bf16.msra.mxu0 %v14056_v39  ;;  %13765 = vmatpush3.bf16.msra.mxu1 %v14057_v41 }
 0x74a   :  { %13750 = vmatprep.subr.bf16.mxu0 %v14624_v20  ;;  %13766 = vmatprep.subr.bf16.mxu1 %v14624_v20 }
 0x74d   :  { %13751 = vmatpush3.bf16.msra.mxu0 %v14058_v37  ;;  %13767 = vmatpush3.bf16.msra.mxu1 %v14059_v42 }
 0x74e   :  { %13772 = vmatprep.subr.bf16.mxu0 %v14624_v20  ;;  %13788 = vmatprep.subr.bf16.mxu1 %v14624_v20 }
 0x750   :  { %13753 = vmatmul.mubr.msk.bf16.vlgmr.msra.gmra.mxu0 %vm1363_vm12, %v15785_v2  ;;  %13769 = vmatmul.mubr.msk.bf16.vlgmr.msra.gmra.mxu1 %vm1363_vm12, %v15785_v2 }
 0x751   :  { %13773 = vmatpush3.bf16.msra.mxu0 %v6412_v50  ;;  %13789 = vmatpush3.bf16.msra.mxu1 %v6500_v43 }
 0x752   :  { %13774 = vmatprep.subr.bf16.mxu0 %v14624_v20  ;;  %13790 = vmatprep.subr.bf16.mxu1 %v14624_v20 }
 0x753   :  { %13784 = vmatprep.mubr.msk.bf16.mxu0 %vm14625_vm5, %v14624_v20  ;;  %13800 = vmatprep.mubr.msk.bf16.mxu1 %vm14625_vm5, %v14624_v20 }
 0x755   :  { %13775 = vmatpush3.bf16.msra.mxu0 %v14062_v34  ;;  %13791 = vmatpush3.bf16.msra.mxu1 %v14063_v44 }
 0x756   :  { %13776 = vmatprep.subr.bf16.mxu0 %v14624_v20  ;;  %13792 = vmatprep.subr.bf16.mxu1 %v14624_v20 }
 0x759   :  { %13777 = vmatpush3.bf16.msra.mxu0 %v14064_v35  ;;  %13793 = vmatpush3.bf16.msra.mxu1 %v14065_v5  ;;  %v12256_v5 = vld [vmem:[%s17006_s4] ss:$0 sm:$0xff] }
 0x75a   :  { %13778 = vmatprep.subr.bf16.mxu0 %v14624_v20  ;;  %13794 = vmatprep.subr.bf16.mxu1 %v14624_v20 }
 0x75d   :  { %13779 = vmatpush3.bf16.msra.mxu0 %v14066_v54  ;;  %13795 = vmatpush3.bf16.msra.mxu1 %v14067_v56 }
 0x75e   :  { %13780 = vmatprep.subr.bf16.mxu0 %v14624_v20  ;;  %13796 = vmatprep.subr.bf16.mxu1 %v14624_v20 }
 0x761   :  { %13781 = vmatpush3.bf16.msra.mxu0 %v14068_v58  ;;  %13797 = vmatpush3.bf16.msra.mxu1 %v14069_v59 }
 0x762   :  { %13782 = vmatprep.subr.bf16.mxu0 %v14624_v20  ;;  %13798 = vmatprep.subr.bf16.mxu1 %v14624_v20 }
 0x765   :  { %13783 = vmatpush3.bf16.msra.mxu0 %v14070_v45  ;;  %13799 = vmatpush3.bf16.msra.mxu1 %v14071_v46 }
 0x766   :  { %13804 = vmatprep.subr.bf16.mxu0 %v14624_v20  ;;  %13810 = vmatprep.subr.bf16.mxu1 %v14624_v20 }
 0x768   :  { %13785 = vmatmul.mubr.msk.bf16.vlgmr.msra.gmra.mxu0 %vm1363_vm12, %v6374_v53  ;;  %13801 = vmatmul.mubr.msk.bf16.vlgmr.msra.gmra.mxu1 %vm1363_vm12, %v6374_v53 }
 0x769   :  { %13806 = vmatprep.mubr.msk.bf16.mxu0 %vm14625_vm5, %v14624_v20  ;;  %13812 = vmatprep.mubr.msk.bf16.mxu1 %vm14625_vm5, %v14624_v20 }
 0x7c8   :  { %v5741_v0 = vpop.f32.mrf.mxu0  ;;  %v5829_v1 = vpop.f32.mrf.mxu1 }
 0x7ca   :  { %v13658_v2 = vpop.f32.mrf.mxu0  ;;  %v13674_v4 = vpop.f32.mrf.mxu1 }
 0x7cb   :  { %v6718_v2 = vld [vmem:[#allocation3 + $0x240] sm:$0xff] }
 0x7cc   :  { %v5744_v6 = vpop.f32.mrf.mxu0  ;;  %v5832_v60 = vpop.f32.mrf.mxu1  ;;  %v6722_v4 = vld [vmem:[#allocation3 + $0x260] sm:$0xff] }
 0x7ce   :  { %v13659_v63 = vpop.f32.mrf.mxu0  ;;  %v13675_v7 = vpop.f32.mrf.mxu1 }
 0x7e0   :  { %v5908_v8 = vpop.f32.mrf.mxu0  ;;  %v5985_v9 = vpop.f32.mrf.mxu1 }
 0x7e1   :  { %v5909_v40 = vadd.f32 %v5908_v8, %v5741_v0  ;;  %v5986_v14 = vadd.f32 %v5985_v9, %v5829_v1  ;;  %v12292_v9 = vcombine.high %v6718_v2, %v6722_v4 }
 0x7e2   :  { %v13690_v49 = vpop.f32.mrf.mxu0  ;;  %v13706_v13 = vpop.f32.mrf.mxu1 }
 0x7e3   :  { %v6714_v49 = vld [vmem:[#allocation3 + $0x220] sm:$0xff]  ;;  %v6711_v13 = vld [vmem:[#allocation3 + $0x208] sm:$0xff] }
 0x7e4   :  { %v5911_v16 = vpop.f32.mrf.mxu0  ;;  %v5988_v19 = vpop.f32.mrf.mxu1 }
 0x7e5   :  { %v5912_v21 = vadd.f32 %v5911_v16, %v5744_v6  ;;  %v5989_v23 = vadd.f32 %v5988_v19, %v5832_v60  ;;  %v6719_v6 = vld [vmem:[#allocation3 + $0x248] sm:$0xff] }
 0x7e6   :  { %v13691_v17 = vpop.f32.mrf.mxu0  ;;  %v13707_v20 = vpop.f32.mrf.mxu1  ;;  %v6723_v60 = vld [vmem:[#allocation3 + $0x268] sm:$0xff] }
 0x7e7   :  { %v6715_v16 = vld [vmem:[#allocation3 + $0x228] sm:$0xff] }
 0x7e8   :  { %v12286_v20 = vcombine.high %v6711_v13, %v6715_v16 }
 0x7f8   :  { %v6078_v18 = vpop.f32.mrf.mxu0  ;;  %v6166_v27 = vpop.f32.mrf.mxu1 }
 0x7f9   :  { %v6173_v22 = vadd.f32 %v6078_v18, %v5909_v40  ;;  %v6175_v31 = vadd.f32 %v6166_v27, %v5986_v14  ;;  %v12294_v40 = vcombine.high %v6719_v6, %v6723_v60  ;;  %v6710_v14 = vld [vmem:[#allocation3 + $0x200] sm:$0xff] }
 0x7fa   :  { %v13722_v10 = vpop.f32.mrf.mxu0  ;;  %v13738_v28 = vpop.f32.mrf.mxu1  ;;  %v12284_v17 = vcombine.high %v6710_v14, %v6714_v49  ;;  %v6702_v18 = vld [vmem:[#allocation3 + $0x1c0] sm:$0xff] }
 0x7fb   :  { %v6706_v27 = vld [vmem:[#allocation3 + $0x1e0] sm:$0xff]  ;;  %v6703_v10 = vld [vmem:[#allocation3 + $0x1c8] sm:$0xff] }
 0x7fc   :  { %v6081_v11 = vpop.f32.mrf.mxu0  ;;  %v6169_v55 = vpop.f32.mrf.mxu1  ;;  %v6707_v28 = vld [vmem:[#allocation3 + $0x1e8] sm:$0xff] }
 0x7fd   :  { %v6174_v37 = vadd.f32 %v6081_v11, %v5912_v21  ;;  %v6176_v42 = vadd.f32 %v6169_v55, %v5989_v23  ;;  %v12291_v21 = vcombine.low %v6718_v2, %v6722_v4  ;;  %v12293_v23 = vcombine.low %v6719_v6, %v6723_v60 }
 0x7fe   :  { %v13723_v12 = vpop.f32.mrf.mxu0  ;;  %v13739_v24 = vpop.f32.mrf.mxu1  ;;  %v12283_v11 = vcombine.low %v6710_v14, %v6714_v49  ;;  %v12285_v55 = vcombine.low %v6711_v13, %v6715_v16  ;;  %v6708_v14 = vld [vmem:[#allocation3 + $0x1f0] sm:$0xff]  ;;  %v6705_v49 = vld [vmem:[#allocation3 + $0x1d8] sm:$0xff] }
 0x7ff   :  { %v12276_v12 = vcombine.high %v6702_v18, %v6706_v27  ;;  %v12278_v24 = vcombine.high %v6703_v10, %v6707_v28  ;;  %v6709_v13 = vld [vmem:[#allocation3 + $0x1f8] sm:$0xff] }
 0x810   :  { %v6264_v25 = vpop.f32.mrf.mxu0  ;;  %v6352_v29 = vpop.f32.mrf.mxu1 }
 0x811   :  { %v6359_v38 = vadd.f32 %v6264_v25, %v6173_v22  ;;  %v6361_v36 = vadd.f32 %v6352_v29, %v6175_v31  ;;  %v6694_v25 = vld [vmem:[#allocation3 + $0x180] sm:$0xff] }
 0x812   :  { %v13754_v30 = vpop.f32.mrf.mxu0  ;;  %v13770_v32 = vpop.f32.mrf.mxu1  ;;  %v6698_v29 = vld [vmem:[#allocation3 + $0x1a0] sm:$0xff] }
 0x813   :  { %v6695_v30 = vld [vmem:[#allocation3 + $0x188] sm:$0xff]  ;;  %v6686_v22 = vld [vmem:[#allocation3 + $0x140] sm:$0xff] }
 0x814   :  { %v6267_v33 = vpop.f32.mrf.mxu0  ;;  %v6355_v61 = vpop.f32.mrf.mxu1  ;;  %v6699_v32 = vld [vmem:[#allocation3 + $0x1a8] sm:$0xff]  ;;  %v6690_v31 = vld [vmem:[#allocation3 + $0x160] sm:$0xff] }
 0x815   :  { %v6360_v34 = vadd.f32 %v6267_v33, %v6174_v37  ;;  %v6362_v44 = vadd.f32 %v6355_v61, %v6176_v42  ;;  %v12268_v33 = vcombine.high %v6694_v25, %v6698_v29  ;;  %v12270_v61 = vcombine.high %v6695_v30, %v6699_v32 }
 0x816   :  { %v13755_v62 = vpop.f32.mrf.mxu0  ;;  %v13771_v3 = vpop.f32.mrf.mxu1 }
 0x817   :  { %v12267_v62 = vcombine.low %v6694_v25, %v6698_v29  ;;  %v12269_v3 = vcombine.low %v6695_v30, %v6699_v32  ;;  %v6689_v25 = vld [vmem:[#allocation3 + $0x158] sm:$0xff] }
 0x818   :  { %v6693_v29 = vld [vmem:[#allocation3 + $0x178] sm:$0xff] }
 0x828   :  { %v6448_v39 = vpop.f32.mrf.mxu0  ;;  %v6536_v41 = vpop.f32.mrf.mxu1 }
 0x829   :  { %v6543_v51 = vadd.f32 %v6448_v39, %v6359_v38  ;;  %v6545_v52 = vadd.f32 %v6536_v41, %v6361_v36  ;;  %v6687_v38 = vld [vmem:[#allocation3 + $0x148] sm:$0xff]  ;;  %v12260_v36 = vcombine.high %v6686_v22, %v6690_v31  ;;  %v12259_v41 = vcombine.low %v6686_v22, %v6690_v31 }
 0x82a   :  { %v13786_v50 = vpop.f32.mrf.mxu0  ;;  %v13802_v43 = vpop.f32.mrf.mxu1  ;;  %v6691_v39 = vld [vmem:[#allocation3 + $0x168] sm:$0xff]  ;;  %v12265_v31 = vcombine.low %v6689_v25, %v6693_v29 }
 0x82b   :  { %v6547_v35 = vmax.f32 %v6543_v51, %v6545_v52  ;;  %v12261_v37 = vcombine.low %v6687_v38, %v6691_v39  ;;  %v12262_v42 = vcombine.high %v6687_v38, %v6691_v39  ;;  %v6720_v51 = vld [vmem:[#allocation3 + $0x250] sm:$0xff]  ;;  %v6721_v50 = vld [vmem:[#allocation3 + $0x258] sm:$0xff]  ;;  %v6670_v39 = vld [vmem:[#allocation3 + $0xc0] sm:$0xff] }
 0x82c   :  { %v6451_v54 = vpop.f32.mrf.mxu0  ;;  %v6539_v56 = vpop.f32.mrf.mxu1  ;;  %v6724_v52 = vld [vmem:[#allocation3 + $0x270] sm:$0xff] }
 0x82d   :  { %v6544_v58 = vadd.f32 %v6451_v54, %v6360_v34  ;;  %v6546_v59 = vadd.f32 %v6539_v56, %v6362_v44  ;;  %v6556_v53 = vadd.f32 %v12256_v5, %v6547_v35  ;;  %v12296_v43 = vcombine.high %v6720_v51, %v6724_v52  ;;  %v6725_v34 = vld [vmem:[#allocation3 + $0x278] sm:$0xff] }
 0x82e   :  { %v13787_v45 = vpop.f32.mrf.mxu0  ;;  %v13803_v46 = vpop.f32.mrf.mxu1  ;;  %v12295_v44 = vcombine.low %v6720_v51, %v6724_v52  ;;  %v12297_v35 = vcombine.low %v6721_v50, %v6725_v34 }
 0x82f   :  { %v6548_v0 = vmax.f32 %v6544_v58, %v6546_v59  ;;  %v6558_v63 = vmax.f32 %v6556_v53, 0.0  ;;  %v6712_v59 = vld [vmem:[#allocation3 + $0x210] sm:$0xff] }
 0x830   :  { %v6716_v53 = vld [vmem:[#allocation3 + $0x230] sm:$0xff] }
 0x831   :  { %v6557_v1 = vadd.f32 %v12256_v5, %v6548_v0  ;;  %v12298_v5 = vcombine.high %v6721_v50, %v6725_v34  ;;  %v6713_v0 = vld [vmem:[#allocation3 + $0x218] sm:$0xff]  ;;  %v12287_v16 = vcombine.low %v6712_v59, %v6716_v53  ;;  %v6662_v34 = vld [vmem:[#allocation3 + $0x80] sm:$0xff] }
 0x833   :  { %v6559_v7 = vmax.f32 %v6557_v1, 0.0  ;;  %v6717_v1 = vld [vmem:[#allocation3 + $0x238] sm:$0xff] }
 0x835   :  { %v6560_v8 = vpack.c.bf16 %v6559_v7, %v6558_v63  ;;  %v12288_v63 = vcombine.high %v6712_v59, %v6716_v53  ;;  %v12290_v7 = vcombine.high %v6713_v0, %v6717_v1  ;;  %v6655_v53 = vld [vmem:[#allocation3 + $0x48] sm:$0xff] }
 0x837   :  { %v6562_v19 = vsel %vm2236_vm13, %v6560_v8, 0  ;;  %v6704_v8 = vld [vmem:[#allocation3 + $0x1d0] sm:$0xff] }
 0x838   :  { %13805 = vmatpush3.bf16.msra.mxu0 %v6562_v19  ;;  %13811 = vmatpush3.bf16.msra.mxu1 %v6562_v19  ;;  %v12289_v19 = vcombine.low %v6713_v0, %v6717_v1  ;;  %v6659_v0 = vld [vmem:[#allocation3 + $0x68] sm:$0xff] }
 0x839   :  { %6938 = vmatprep.subr.bf16.mxu0 %v12292_v9  ;;  %6979 = vmatprep.subr.bf16.mxu1 %v12294_v40 }
 0x83b   :  { %13807 = vmatmul.mubr.msk.bf16.vlgmr.msra.gmra.mxu0 %vm2232_vm14, %v15285_v47  ;;  %13813 = vmatmul.mubr.msk.bf16.vlgmr.msra.gmra.mxu1 %vm2232_vm14, %v15289_v48  ;;  %v12275_v47 = vcombine.low %v6702_v18, %v6706_v27  ;;  %v12277_v48 = vcombine.low %v6703_v10, %v6707_v28  ;;  %v6697_v18 = vld [vmem:[#allocation3 + $0x198] sm:$0xff]  ;;  %v12279_v10 = vcombine.low %v6704_v8, %v6708_v14 }
 0x83c   :  { %6939 = vmatpush1.bf16.msra.mxu0 %v12291_v21  ;;  %6980 = vmatpush1.bf16.msra.mxu1 %v12293_v23  ;;  %v12280_v21 = vcombine.high %v6704_v8, %v6708_v14  ;;  %v12282_v23 = vcombine.high %v6705_v49, %v6709_v13  ;;  %v6701_v27 = vld [vmem:[#allocation3 + $0x1b8] sm:$0xff]  ;;  %v12281_v28 = vcombine.low %v6705_v49, %v6709_v13  ;;  %v6650_v8 = vld [vmem:[#allocation3 + $0x20] sm:$0xff] }
 0x83d   :  { %6940 = vmatprep.subr.bf16.mxu0 %v12284_v17  ;;  %6981 = vmatprep.subr.bf16.mxu1 %v12286_v20  ;;  %v6696_v17 = vld [vmem:[#allocation3 + $0x190] sm:$0xff]  ;;  %v12273_v32 = vcombine.low %v6697_v18, %v6701_v27  ;;  %v12313_v49 = vcombine.low %v6655_v53, %v6659_v0 }
 0x83e   :  { %6964 = vmatprep.mubr.bf16.mxu0 %v14626_v26  ;;  %7005 = vmatprep.mubr.bf16.mxu1 %v14626_v26  ;;  %v6700_v20 = vld [vmem:[#allocation3 + $0x1b0] sm:$0xff] }
 0x83f   :  { %v12271_v30 = vcombine.low %v6696_v17, %v6700_v20 }
 0x840   :  { %6941 = vmatpush1.bf16.msra.mxu0 %v12283_v11  ;;  %6982 = vmatpush1.bf16.msra.mxu1 %v12285_v55  ;;  %v12272_v11 = vcombine.high %v6696_v17, %v6700_v20  ;;  %v12274_v55 = vcombine.high %v6697_v18, %v6701_v27  ;;  %v6685_v17 = vld [vmem:[#allocation3 + $0x138] sm:$0xff] }
 0x841   :  { %6942 = vmatprep.subr.bf16.mxu0 %v12276_v12  ;;  %6983 = vmatprep.subr.bf16.mxu1 %v12278_v24  ;;  %v6688_v12 = vld [vmem:[#allocation3 + $0x150] sm:$0xff] }
 0x842   :  { %v6692_v24 = vld [vmem:[#allocation3 + $0x170] sm:$0xff] }
 0x843   :  { %v12263_v22 = vcombine.low %v6688_v12, %v6692_v24 }
 0x844   :  { %6943 = vmatpush1.bf16.msra.mxu0 %v12275_v47  ;;  %6984 = vmatpush1.bf16.msra.mxu1 %v12277_v48  ;;  %v12264_v47 = vcombine.high %v6688_v12, %v6692_v24  ;;  %v12266_v48 = vcombine.high %v6689_v25, %v6693_v29  ;;  %v6677_v12 = vld [vmem:[#allocation3 + $0xf8] sm:$0xff] }
 0x845   :  { %6944 = vmatprep.subr.bf16.mxu0 %v12268_v33  ;;  %6985 = vmatprep.subr.bf16.mxu1 %v12270_v61  ;;  %v6678_v33 = vld [vmem:[#allocation3 + $0x100] sm:$0xff] }
 0x846   :  { %v6682_v61 = vld [vmem:[#allocation3 + $0x120] sm:$0xff] }
 0x847   :  { %v12336_v38 = vcombine.high %v6678_v33, %v6682_v61  ;;  %v12335_v51 = vcombine.low %v6678_v33, %v6682_v61  ;;  %v6669_v33 = vld [vmem:[#allocation3 + $0xb8] sm:$0xff] }
 0x848   :  { %6945 = vmatpush1.bf16.msra.mxu0 %v12267_v62  ;;  %6986 = vmatpush1.bf16.msra.mxu1 %v12269_v3  ;;  %v6679_v62 = vld [vmem:[#allocation3 + $0x108] sm:$0xff] }
 0x849   :  { %6946 = vmatprep.subr.bf16.mxu0 %v12260_v36  ;;  %6987 = vmatprep.subr.bf16.mxu1 %v12262_v42  ;;  %v6683_v3 = vld [vmem:[#allocation3 + $0x128] sm:$0xff] }
 0x84a   :  { %v12338_v36 = vcombine.high %v6679_v62, %v6683_v3  ;;  %v6675_v42 = vld [vmem:[#allocation3 + $0xe8] sm:$0xff]  ;;  %v12337_v52 = vcombine.low %v6679_v62, %v6683_v3 }
 0x84c   :  { %6947 = vmatpush1.bf16.msra.mxu0 %v12259_v41  ;;  %6988 = vmatpush1.bf16.msra.mxu1 %v12261_v37  ;;  %v6674_v41 = vld [vmem:[#allocation3 + $0xe0] sm:$0xff]  ;;  %v6671_v37 = vld [vmem:[#allocation3 + $0xc8] sm:$0xff] }
 0x84d   :  { %7020 = vmatprep.subr.bf16.mxu0 %v12296_v43  ;;  %7061 = vmatprep.subr.bf16.mxu1 %v12298_v5  ;;  %v12328_v50 = vcombine.high %v6670_v39, %v6674_v41  ;;  %v12330_v43 = vcombine.high %v6671_v37, %v6675_v42  ;;  %v6667_v5 = vld [vmem:[#allocation3 + $0xa8] sm:$0xff] }
 0x8fb   :  { %v6598_v54 = vpop.f32.mrf.mxu0  ;;  %v6638_v56 = vpop.f32.mrf.mxu1 }
 0x8fc   :  { %v6644_v58 = vmax.f32 %v6598_v54, %v6638_v56  ;;  %v12327_v54 = vcombine.low %v6670_v39, %v6674_v41  ;;  %v12329_v56 = vcombine.low %v6671_v37, %v6675_v42  ;;  %v6661_v39 = vld [vmem:[#allocation3 + $0x78] sm:$0xff] }
 0x8fd   :  { %v13808_v45 = vpop.f32.mrf.mxu0  ;;  %v13814_v46 = vpop.f32.mrf.mxu1 }
 0x8fe   :  { %v16025_v2 = vpack.c.bf16 %v6644_v58, %v6644_v58  ;;  %v6654_v45 = vld [vmem:[#allocation3 + $0x40] sm:$0xff] }
 0x8ff   :  { %v6601_v4 = vpop.f32.mrf.mxu0  ;;  %v6641_v6 = vpop.f32.mrf.mxu1  ;;  %v6658_v46 = vld [vmem:[#allocation3 + $0x60] sm:$0xff] }
 0x900   :  { %v16028_v60 = vshrl.u32 %v16025_v2, 16  ;;  %v12312_v6 = vcombine.high %v6654_v45, %v6658_v46  ;;  %v12311_v14 = vcombine.low %v6654_v45, %v6658_v46  ;;  %v7499_v45 = vld [vmem:[#allocation3 + $0x3a8] sm:$0xff] }
 0x901   :  { %v13809_v9 = vpop.f32.mrf.mxu0  ;;  %v13815_v40 = vpop.f32.mrf.mxu1 }
 0x902   :  { %12299 = vmatmul.mubr.msk.bf16.vlgmr.msra.gmra.mxu0 %vm2609_vm15, %v16028_v60  ;;  %12300 = vmatmul.mubr.msk.bf16.vlgmr.msra.gmra.mxu1 %vm2609_vm15, %v16028_v60  ;;  %v6647_v9 = vld [vmem:[#allocation3 + $0x8] sm:$0xff] }
 0x903   :  { %7021 = vmatpush1.bf16.msra.mxu0 %v12295_v44  ;;  %7062 = vmatpush1.bf16.msra.mxu1 %v12297_v35  ;;  %v6666_v44 = vld [vmem:[#allocation3 + $0xa0] sm:$0xff]  ;;  %v6663_v35 = vld [vmem:[#allocation3 + $0x88] sm:$0xff] }
 0x904   :  { %7022 = vmatprep.subr.bf16.mxu0 %v12288_v63  ;;  %7063 = vmatprep.subr.bf16.mxu1 %v12290_v7  ;;  %v12320_v58 = vcombine.high %v6662_v34, %v6666_v44  ;;  %v12322_v59 = vcombine.high %v6663_v35, %v6667_v5  ;;  %v12319_v1 = vcombine.low %v6662_v34, %v6666_v44  ;;  %v6646_v7 = vld [vmem:[#allocation3] sm:$0xff]  ;;  %v6651_v40 = vld [vmem:[#allocation3 + $0x28] sm:$0xff]  ;;  %v6653_v34 = vld [vmem:[#allocation3 + $0x38] sm:$0xff] }
 0x905   :  { %7046 = vmatprep.mubr.bf16.mxu0 %v14626_v26  ;;  %7087 = vmatprep.mubr.bf16.mxu1 %v14626_v26  ;;  %v12321_v4 = vcombine.low %v6663_v35, %v6667_v5  ;;  %v12314_v63 = vcombine.high %v6655_v53, %v6659_v0  ;;  %v12304_v13 = vcombine.high %v6646_v7, %v6650_v8 }
 0x906   :  { %v12303_v20 = vcombine.low %v6646_v7, %v6650_v8  ;;  %v12305_v18 = vcombine.low %v6647_v9, %v6651_v40  ;;  %v7491_v7 = vld [vmem:[#allocation3 + $0x368] sm:$0xff] }
 0x907   :  { %7023 = vmatpush1.bf16.msra.mxu0 %v12287_v16  ;;  %7064 = vmatpush1.bf16.msra.mxu1 %v12289_v19  ;;  %v12306_v16 = vcombine.high %v6647_v9, %v6651_v40  ;;  %v6680_v19 = vld [vmem:[#allocation3 + $0x110] sm:$0xff] }
 0x908   :  { %7024 = vmatprep.subr.bf16.mxu0 %v12280_v21  ;;  %7065 = vmatprep.subr.bf16.mxu1 %v12282_v23  ;;  %v6684_v21 = vld [vmem:[#allocation3 + $0x130] sm:$0xff]  ;;  %v6681_v23 = vld [vmem:[#allocation3 + $0x118] sm:$0xff] }
 0x909   :  { %v12340_v27 = vcombine.high %v6680_v19, %v6684_v21  ;;  %v12339_v24 = vcombine.low %v6680_v19, %v6684_v21  ;;  %v12341_v25 = vcombine.low %v6681_v23, %v6685_v17  ;;  %v7483_v19 = vld [vmem:[#allocation3 + $0x328] sm:$0xff] }
 0x90b   :  { %7025 = vmatpush1.bf16.msra.mxu0 %v12279_v10  ;;  %7066 = vmatpush1.bf16.msra.mxu1 %v12281_v28  ;;  %v12342_v10 = vcombine.high %v6681_v23, %v6685_v17  ;;  %v6672_v28 = vld [vmem:[#allocation3 + $0xd0] sm:$0xff] }
 0x90c   :  { %7026 = vmatprep.subr.bf16.mxu0 %v12272_v11  ;;  %7067 = vmatprep.subr.bf16.mxu1 %v12274_v55  ;;  %v6676_v11 = vld [vmem:[#allocation3 + $0xf0] sm:$0xff]  ;;  %v6673_v55 = vld [vmem:[#allocation3 + $0xd8] sm:$0xff] }
 0x90d   :  { %v12332_v29 = vcombine.high %v6672_v28, %v6676_v11  ;;  %v12331_v61 = vcombine.low %v6672_v28, %v6676_v11  ;;  %v12333_v62 = vcombine.low %v6673_v55, %v6677_v12  ;;  %v7475_v28 = vld [vmem:[#allocation3 + $0x2e8] sm:$0xff] }
 0x90f   :  { %7027 = vmatpush1.bf16.msra.mxu0 %v12271_v30  ;;  %7068 = vmatpush1.bf16.msra.mxu1 %v12273_v32  ;;  %v12334_v30 = vcombine.high %v6673_v55, %v6677_v12  ;;  %v6664_v32 = vld [vmem:[#allocation3 + $0x90] sm:$0xff] }
 0x910   :  { %7028 = vmatprep.subr.bf16.mxu0 %v12264_v47  ;;  %7069 = vmatprep.subr.bf16.mxu1 %v12266_v48  ;;  %v6668_v47 = vld [vmem:[#allocation3 + $0xb0] sm:$0xff]  ;;  %v6665_v48 = vld [vmem:[#allocation3 + $0x98] sm:$0xff] }
 0x911   :  { %v12324_v3 = vcombine.high %v6664_v32, %v6668_v47  ;;  %v12323_v41 = vcombine.low %v6664_v32, %v6668_v47  ;;  %v12325_v37 = vcombine.low %v6665_v48, %v6669_v33  ;;  %v7467_v32 = vld [vmem:[#allocation3 + $0x2a8] sm:$0xff] }
 0x913   :  { %7029 = vmatpush1.bf16.msra.mxu0 %v12263_v22  ;;  %7070 = vmatpush1.bf16.msra.mxu1 %v12265_v31  ;;  %v12326_v22 = vcombine.high %v6665_v48, %v6669_v33  ;;  %v6656_v31 = vld [vmem:[#allocation3 + $0x50] sm:$0xff] }
 0x914   :  { %7304 = vmatprep.subr.bf16.mxu0 %v12336_v38  ;;  %7345 = vmatprep.subr.bf16.mxu1 %v12338_v36  ;;  %v6660_v38 = vld [vmem:[#allocation3 + $0x70] sm:$0xff]  ;;  %v6657_v36 = vld [vmem:[#allocation3 + $0x58] sm:$0xff] }
 0x915   :  { %v12316_v42 = vcombine.high %v6656_v31, %v6660_v38  ;;  %v12315_v44 = vcombine.low %v6656_v31, %v6660_v38  ;;  %v12317_v35 = vcombine.low %v6657_v36, %v6661_v39  ;;  %v7501_v31 = vld [vmem:[#allocation3 + $0x3b8] sm:$0xff] }
 0x916   :  { %12301 = vmatmul.mubr.msk.bf16.vlgmr.msra.gmra.mxu0 %vm2609_vm15, %v16028_v60  ;;  %12302 = vmatmul.mubr.msk.bf16.vlgmr.msra.gmra.mxu1 %vm2609_vm15, %v16028_v60 }
 0x917   :  { %7305 = vmatpush1.bf16.msra.mxu0 %v12335_v51  ;;  %7346 = vmatpush1.bf16.msra.mxu1 %v12337_v52  ;;  %v12318_v51 = vcombine.high %v6657_v36, %v6661_v39  ;;  %v6648_v52 = vld [vmem:[#allocation3 + $0x10] sm:$0xff] }
 0x918   :  { %7306 = vmatprep.subr.bf16.mxu0 %v12328_v50  ;;  %7347 = vmatprep.subr.bf16.mxu1 %v12330_v43  ;;  %v6652_v50 = vld [vmem:[#allocation3 + $0x30] sm:$0xff]  ;;  %v6649_v43 = vld [vmem:[#allocation3 + $0x18] sm:$0xff] }
 0x919   :  { %7330 = vmatprep.mubr.bf16.mxu0 %v14626_v26  ;;  %7371 = vmatprep.mubr.bf16.mxu1 %v14626_v26  ;;  %v12308_v5 = vcombine.high %v6648_v52, %v6652_v50  ;;  %v12307_v46 = vcombine.low %v6648_v52, %v6652_v50  ;;  %v12309_v53 = vcombine.low %v6649_v43, %v6653_v34  ;;  %v7493_v52 = vld [vmem:[#allocation3 + $0x378] sm:$0xff] }
 0x91b   :  { %7307 = vmatpush1.bf16.msra.mxu0 %v12327_v54  ;;  %7348 = vmatpush1.bf16.msra.mxu1 %v12329_v56  ;;  %v12310_v54 = vcombine.high %v6649_v43, %v6653_v34  ;;  %v7494_v56 = vld [vmem:[#allocation3 + $0x380] sm:$0xff]  ;;  %v16055_v34 = vrot.slane %v16025_v2, 1 }
 0x91c   :  { %7308 = vmatprep.subr.bf16.mxu0 %v12320_v58  ;;  %7349 = vmatprep.subr.bf16.mxu1 %v12322_v59  ;;  %v7498_v58 = vld [vmem:[#allocation3 + $0x3a0] sm:$0xff]  ;;  %v7495_v59 = vld [vmem:[#allocation3 + $0x388] sm:$0xff] }
 0x91d   :  { %v12380_v0 = vcombine.high %v7494_v56, %v7498_v58  ;;  %v12379_v8 = vcombine.low %v7494_v56, %v7498_v58  ;;  %v12381_v9 = vcombine.low %v7495_v59, %v7499_v45  ;;  %v7481_v56 = vld [vmem:[#allocation3 + $0x318] sm:$0xff] }
 0x91e   :  { %v7485_v58 = vld [vmem:[#allocation3 + $0x338] sm:$0xff] }
 0x91f   :  { %7309 = vmatpush1.bf16.msra.mxu0 %v12319_v1  ;;  %7350 = vmatpush1.bf16.msra.mxu1 %v12321_v4  ;;  %v12382_v1 = vcombine.high %v7495_v59, %v7499_v45  ;;  %v7486_v4 = vld [vmem:[#allocation3 + $0x340] sm:$0xff] }
 0x920   :  { %7310 = vmatprep.subr.bf16.mxu0 %v12312_v6  ;;  %7351 = vmatprep.subr.bf16.mxu1 %v12314_v63  ;;  %v7490_v6 = vld [vmem:[#allocation3 + $0x360] sm:$0xff]  ;;  %v7487_v63 = vld [vmem:[#allocation3 + $0x348] sm:$0xff] }
 0x921   :  { %v12372_v40 = vcombine.high %v7486_v4, %v7490_v6  ;;  %v12371_v21 = vcombine.low %v7486_v4, %v7490_v6  ;;  %v12373_v23 = vcombine.low %v7487_v63, %v7491_v7  ;;  %v7473_v4 = vld [vmem:[#allocation3 + $0x2d8] sm:$0xff] }
 0x922   :  { %v7477_v6 = vld [vmem:[#allocation3 + $0x2f8] sm:$0xff] }
 0x923   :  { %7311 = vmatpush1.bf16.msra.mxu0 %v12311_v14  ;;  %7352 = vmatpush1.bf16.msra.mxu1 %v12313_v49  ;;  %v12374_v14 = vcombine.high %v7487_v63, %v7491_v7  ;;  %v7478_v49 = vld [vmem:[#allocation3 + $0x300] sm:$0xff]  ;;  %v12369_v7 = vcombine.low %v7481_v56, %v7485_v58 }
 0x924   :  { %7312 = vmatprep.subr.bf16.mxu0 %v12304_v13  ;;  %7353 = vmatprep.subr.bf16.mxu1 %v12306_v16  ;;  %v7482_v13 = vld [vmem:[#allocation3 + $0x320] sm:$0xff]  ;;  %v7479_v16 = vld [vmem:[#allocation3 + $0x308] sm:$0xff] }
 0x925   :  { %v12364_v17 = vcombine.high %v7478_v49, %v7482_v13  ;;  %v12363_v11 = vcombine.low %v7478_v49, %v7482_v13  ;;  %v12365_v55 = vcombine.low %v7479_v16, %v7483_v19  ;;  %v7465_v49 = vld [vmem:[#allocation3 + $0x298] sm:$0xff] }
 0x926   :  { %v7469_v13 = vld [vmem:[#allocation3 + $0x2b8] sm:$0xff] }
 0x927   :  { %7313 = vmatpush1.bf16.msra.mxu0 %v12303_v20  ;;  %7354 = vmatpush1.bf16.msra.mxu1 %v12305_v18  ;;  %v12366_v20 = vcombine.high %v7479_v16, %v7483_v19  ;;  %v7470_v18 = vld [vmem:[#allocation3 + $0x2c0] sm:$0xff]  ;;  %v12361_v19 = vcombine.low %v7473_v4, %v7477_v6 }
 0x928   :  { %7386 = vmatprep.subr.bf16.mxu0 %v12340_v27  ;;  %7427 = vmatprep.subr.bf16.mxu1 %v12342_v10  ;;  %v7474_v27 = vld [vmem:[#allocation3 + $0x2e0] sm:$0xff]  ;;  %v7471_v10 = vld [vmem:[#allocation3 + $0x2c8] sm:$0xff] }
 0x929   :  { %v12356_v12 = vcombine.high %v7470_v18, %v7474_v27  ;;  %v12355_v47 = vcombine.low %v7470_v18, %v7474_v27  ;;  %v12357_v48 = vcombine.low %v7471_v10, %v7475_v28  ;;  %v7912_v18 = vld [vmem:[#allocation3 + $0x4c8] sm:$0xff] }
 0x92a   :  { %12343 = vmatmul.mubr.msk.bf16.vlgmr.msra.gmra.mxu0 %vm2609_vm15, %v16025_v2  ;;  %12344 = vmatmul.mubr.msk.bf16.vlgmr.msra.gmra.mxu1 %vm2609_vm15, %v16025_v2  ;;  %v7916_v27 = vld [vmem:[#allocation3 + $0x4e8] sm:$0xff] }
 0x92b   :  { %7387 = vmatpush1.bf16.msra.mxu0 %v12339_v24  ;;  %7428 = vmatpush1.bf16.msra.mxu1 %v12341_v25  ;;  %v12358_v24 = vcombine.high %v7471_v10, %v7475_v28  ;;  %v7462_v25 = vld [vmem:[#allocation3 + $0x280] sm:$0xff]  ;;  %v12353_v28 = vcombine.low %v7465_v49, %v7469_v13 }
 0x92c   :  { %7388 = vmatprep.subr.bf16.mxu0 %v12332_v29  ;;  %7429 = vmatprep.subr.bf16.mxu1 %v12334_v30  ;;  %v7466_v29 = vld [vmem:[#allocation3 + $0x2a0] sm:$0xff]  ;;  %v7463_v30 = vld [vmem:[#allocation3 + $0x288] sm:$0xff] }
 0x92d   :  { %7412 = vmatprep.mubr.bf16.mxu0 %v14626_v26  ;;  %7453 = vmatprep.mubr.bf16.mxu1 %v14626_v26  ;;  %v12348_v33 = vcombine.high %v7462_v25, %v7466_v29  ;;  %v12347_v38 = vcombine.low %v7462_v25, %v7466_v29  ;;  %v12349_v36 = vcombine.low %v7463_v30, %v7467_v32  ;;  %v7904_v25 = vld [vmem:[#allocation3 + $0x488] sm:$0xff] }
 0x92e   :  { %v7908_v29 = vld [vmem:[#allocation3 + $0x4a8] sm:$0xff] }
 0x92f   :  { %7389 = vmatpush1.bf16.msra.mxu0 %v12331_v61  ;;  %7430 = vmatpush1.bf16.msra.mxu1 %v12333_v62  ;;  %v12350_v61 = vcombine.high %v7463_v30, %v7467_v32  ;;  %v7496_v62 = vld [vmem:[#allocation3 + $0x390] sm:$0xff]  ;;  %v12425_v32 = vcombine.low %v7912_v18, %v7916_v27 }
 0x930   :  { %7390 = vmatprep.subr.bf16.mxu0 %v12324_v3  ;;  %7431 = vmatprep.subr.bf16.mxu1 %v12326_v22  ;;  %v7500_v3 = vld [vmem:[#allocation3 + $0x3b0] sm:$0xff]  ;;  %v7497_v22 = vld [vmem:[#allocation3 + $0x398] sm:$0xff] }
 0x931   :  { %v12384_v39 = vcombine.high %v7496_v62, %v7500_v3  ;;  %v12383_v50 = vcombine.low %v7496_v62, %v7500_v3  ;;  %v12385_v43 = vcombine.low %v7497_v22, %v7501_v31  ;;  %v7896_v62 = vld [vmem:[#allocation3 + $0x448] sm:$0xff] }
 0x932   :  { %v7900_v3 = vld [vmem:[#allocation3 + $0x468] sm:$0xff] }
 0x933   :  { %7391 = vmatpush1.bf16.msra.mxu0 %v12323_v41  ;;  %7432 = vmatpush1.bf16.msra.mxu1 %v12325_v37  ;;  %v12386_v41 = vcombine.high %v7497_v22, %v7501_v31  ;;  %v7488_v37 = vld [vmem:[#allocation3 + $0x350] sm:$0xff]  ;;  %v12417_v31 = vcombine.low %v7904_v25, %v7908_v29 }
 0x934   :  { %7392 = vmatprep.subr.bf16.mxu0 %v12316_v42  ;;  %7433 = vmatprep.subr.bf16.mxu1 %v12318_v51  ;;  %v7492_v42 = vld [vmem:[#allocation3 + $0x370] sm:$0xff]  ;;  %v7489_v51 = vld [vmem:[#allocation3 + $0x358] sm:$0xff] }
 0x935   :  { %v12375_v59 = vcombine.low %v7488_v37, %v7492_v42  ;;  %v12377_v45 = vcombine.low %v7489_v51, %v7493_v52 }
 0x937   :  { %7393 = vmatpush1.bf16.msra.mxu0 %v12315_v44  ;;  %7434 = vmatpush1.bf16.msra.mxu1 %v12317_v35  ;;  %v12376_v44 = vcombine.high %v7488_v37, %v7492_v42  ;;  %v12378_v35 = vcombine.high %v7489_v51, %v7493_v52  ;;  %v7888_v37 = vld [vmem:[#allocation3 + $0x408] sm:$0xff]  ;;  %v12409_v52 = vcombine.low %v7896_v62, %v7900_v3 }
 0x938   :  { %7394 = vmatprep.subr.bf16.mxu0 %v12308_v5  ;;  %7435 = vmatprep.subr.bf16.mxu1 %v12310_v54  ;;  %v7480_v5 = vld [vmem:[#allocation3 + $0x310] sm:$0xff]  ;;  %v7892_v42 = vld [vmem:[#allocation3 + $0x428] sm:$0xff] }
 0x939   :  { %v7484_v54 = vld [vmem:[#allocation3 + $0x330] sm:$0xff] }
 0x93a   :  { %v12367_v63 = vcombine.low %v7480_v5, %v7484_v54 }
 0x93b   :  { %7395 = vmatpush1.bf16.msra.mxu0 %v12307_v46  ;;  %7436 = vmatpush1.bf16.msra.mxu1 %v12309_v53  ;;  %v12368_v46 = vcombine.high %v7480_v5, %v7484_v54  ;;  %v12370_v53 = vcombine.high %v7481_v56, %v7485_v58  ;;  %v7884_v5 = vld [vmem:[#allocation3 + $0x3e8] sm:$0xff]  ;;  %v12401_v56 = vcombine.low %v7888_v37, %v7892_v42 }
 0x93c   :  { %7713 = vmatprep.subr.bf16.mxu0 %v12380_v0  ;;  %7754 = vmatprep.subr.bf16.mxu1 %v12382_v1  ;;  %v7472_v0 = vld [vmem:[#allocation3 + $0x2d0] sm:$0xff] }
 0x93d   :  { %v7476_v1 = vld [vmem:[#allocation3 + $0x2f0] sm:$0xff] }
 0x93e   :  { %12345 = vmatmul.mubr.msk.bf16.vlgmr.msra.gmra.mxu0 %vm2609_vm15, %v16025_v2  ;;  %12346 = vmatmul.mubr.msk.bf16.vlgmr.msra.gmra.mxu1 %vm2609_vm15, %v16025_v2  ;;  %v12359_v16 = vcombine.low %v7472_v0, %v7476_v1 }
 0x93f   :  { %7714 = vmatpush1.bf16.msra.mxu0 %v12379_v8  ;;  %7755 = vmatpush1.bf16.msra.mxu1 %v12381_v9  ;;  %v12360_v8 = vcombine.high %v7472_v0, %v7476_v1  ;;  %v12362_v9 = vcombine.high %v7473_v4, %v7477_v6  ;;  %v7918_v0 = vld [vmem:[#allocation3 + $0x4f8] sm:$0xff] }
 0x940   :  { %7715 = vmatprep.subr.bf16.mxu0 %v12372_v40  ;;  %7756 = vmatprep.subr.bf16.mxu1 %v12374_v14  ;;  %v7464_v40 = vld [vmem:[#allocation3 + $0x290] sm:$0xff] }
 0x941   :  { %7739 = vmatprep.mubr.bf16.mxu0 %v14626_v26  ;;  %7780 = vmatprep.mubr.bf16.mxu1 %v14626_v26  ;;  %v7468_v14 = vld [vmem:[#allocation3 + $0x2b0] sm:$0xff] }
 0x942   :  { %v12351_v10 = vcombine.low %v7464_v40, %v7468_v14 }
 0x943   :  { %7716 = vmatpush1.bf16.msra.mxu0 %v12371_v21  ;;  %7757 = vmatpush1.bf16.msra.mxu1 %v12373_v23  ;;  %v12352_v21 = vcombine.high %v7464_v40, %v7468_v14  ;;  %v12354_v23 = vcombine.high %v7465_v49, %v7469_v13  ;;  %v7910_v40 = vld [vmem:[#allocation3 + $0x4b8] sm:$0xff]  ;;  %v16070_v13 = vrot.slane %v16028_v60, 1 }
 0x944   :  { %7717 = vmatprep.subr.bf16.mxu0 %v12364_v17  ;;  %7758 = vmatprep.subr.bf16.mxu1 %v12366_v20  ;;  %v7911_v17 = vld [vmem:[#allocation3 + $0x4c0] sm:$0xff] }
 0x945   :  { %v7915_v20 = vld [vmem:[#allocation3 + $0x4e0] sm:$0xff] }
 0x946   :  { %v12423_v30 = vcombine.low %v7911_v17, %v7915_v20 }
 0x947   :  { %7718 = vmatpush1.bf16.msra.mxu0 %v12363_v11  ;;  %7759 = vmatpush1.bf16.msra.mxu1 %v12365_v55  ;;  %v12424_v11 = vcombine.high %v7911_v17, %v7915_v20  ;;  %v12426_v55 = vcombine.high %v7912_v18, %v7916_v27  ;;  %v7898_v17 = vld [vmem:[#allocation3 + $0x458] sm:$0xff] }
 0x948   :  { %7719 = vmatprep.subr.bf16.mxu0 %v12356_v12  ;;  %7760 = vmatprep.subr.bf16.mxu1 %v12358_v24  ;;  %v7903_v12 = vld [vmem:[#allocation3 + $0x480] sm:$0xff]  ;;  %v7902_v20 = vld [vmem:[#allocation3 + $0x478] sm:$0xff] }
 0x949   :  { %v7907_v24 = vld [vmem:[#allocation3 + $0x4a0] sm:$0xff] }
 0x94a   :  { %v12415_v22 = vcombine.low %v7903_v12, %v7907_v24 }
 0x94b   :  { %7720 = vmatpush1.bf16.msra.mxu0 %v12355_v47  ;;  %7761 = vmatpush1.bf16.msra.mxu1 %v12357_v48  ;;  %v12416_v47 = vcombine.high %v7903_v12, %v7907_v24  ;;  %v12418_v48 = vcombine.high %v7904_v25, %v7908_v29  ;;  %v7894_v12 = vld [vmem:[#allocation3 + $0x438] sm:$0xff]  ;;  %v12413_v25 = vcombine.low %v7898_v17, %v7902_v20 }
 0x94c   :  { %7721 = vmatprep.subr.bf16.mxu0 %v12348_v33  ;;  %7762 = vmatprep.subr.bf16.mxu1 %v12350_v61  ;;  %v7895_v33 = vld [vmem:[#allocation3 + $0x440] sm:$0xff] }
 0x94d   :  { %v7899_v61 = vld [vmem:[#allocation3 + $0x460] sm:$0xff] }
 0x94e   :  { %v12407_v51 = vcombine.low %v7895_v33, %v7899_v61 }
 0x94f   :  { %7722 = vmatpush1.bf16.msra.mxu0 %v12347_v38  ;;  %7763 = vmatpush1.bf16.msra.mxu1 %v12349_v36  ;;  %v12408_v38 = vcombine.high %v7895_v33, %v7899_v61  ;;  %v12410_v36 = vcombine.high %v7896_v62, %v7900_v3  ;;  %v7886_v33 = vld [vmem:[#allocation3 + $0x3f8] sm:$0xff] }
 0x950   :  { %7795 = vmatprep.subr.bf16.mxu0 %v12384_v39  ;;  %7836 = vmatprep.subr.bf16.mxu1 %v12386_v41  ;;  %v7887_v39 = vld [vmem:[#allocation3 + $0x400] sm:$0xff] }
 0x951   :  { %v7891_v41 = vld [vmem:[#allocation3 + $0x420] sm:$0xff] }
 0x952   :  { %12387 = vmatmul.mubr.msk.bf16.vlgmr.msra.gmra.mxu0 %vm2609_vm15, %v16055_v34  ;;  %12388 = vmatmul.mubr.msk.bf16.vlgmr.msra.gmra.mxu1 %vm2609_vm15, %v16055_v34  ;;  %v12399_v54 = vcombine.low %v7887_v39, %v7891_v41 }
 0x953   :  { %7796 = vmatpush1.bf16.msra.mxu0 %v12383_v50  ;;  %7837 = vmatpush1.bf16.msra.mxu1 %v12385_v43  ;;  %v12400_v50 = vcombine.high %v7887_v39, %v7891_v41  ;;  %v12402_v43 = vcombine.high %v7888_v37, %v7892_v42  ;;  %v8332_v39 = vld [vmem:[#allocation3 + $0x628] sm:$0xff] }
 0x954   :  { %7797 = vmatprep.subr.bf16.mxu0 %v12376_v44  ;;  %7838 = vmatprep.subr.bf16.mxu1 %v12378_v35  ;;  %v7883_v44 = vld [vmem:[#allocation3 + $0x3e0] sm:$0xff]  ;;  %v7880_v35 = vld [vmem:[#allocation3 + $0x3c8] sm:$0xff] }
 0x955   :  { %7821 = vmatprep.mubr.bf16.mxu0 %v14626_v26  ;;  %7862 = vmatprep.mubr.bf16.mxu1 %v14626_v26  ;;  %v12393_v4 = vcombine.low %v7880_v35, %v7884_v5 }
 0x957   :  { %7798 = vmatpush1.bf16.msra.mxu0 %v12375_v59  ;;  %7839 = vmatpush1.bf16.msra.mxu1 %v12377_v45  ;;  %v12394_v59 = vcombine.high %v7880_v35, %v7884_v5  ;;  %v7913_v45 = vld [vmem:[#allocation3 + $0x4d0] sm:$0xff] }
 0x958   :  { %7799 = vmatprep.subr.bf16.mxu0 %v12368_v46  ;;  %7840 = vmatprep.subr.bf16.mxu1 %v12370_v53  ;;  %v7917_v46 = vld [vmem:[#allocation3 + $0x4f0] sm:$0xff]  ;;  %v7914_v53 = vld [vmem:[#allocation3 + $0x4d8] sm:$0xff] }
 0x959   :  { %v12428_v6 = vcombine.high %v7913_v45, %v7917_v46  ;;  %v12427_v14 = vcombine.low %v7913_v45, %v7917_v46  ;;  %v12429_v49 = vcombine.low %v7914_v53, %v7918_v0  ;;  %v8316_v45 = vld [vmem:[#allocation3 + $0x5a8] sm:$0xff] }
 0x95b   :  { %7800 = vmatpush1.bf16.msra.mxu0 %v12367_v63  ;;  %7841 = vmatpush1.bf16.msra.mxu1 %v12369_v7  ;;  %v12430_v63 = vcombine.high %v7914_v53, %v7918_v0  ;;  %v7905_v7 = vld [vmem:[#allocation3 + $0x490] sm:$0xff] }
 0x95c   :  { %7801 = vmatprep.subr.bf16.mxu0 %v12360_v8  ;;  %7842 = vmatprep.subr.bf16.mxu1 %v12362_v9  ;;  %v7909_v8 = vld [vmem:[#allocation3 + $0x4b0] sm:$0xff]  ;;  %v7906_v9 = vld [vmem:[#allocation3 + $0x498] sm:$0xff] }
 0x95d   :  { %v12419_v18 = vcombine.low %v7905_v7, %v7909_v8  ;;  %v12421_v27 = vcombine.low %v7906_v9, %v7910_v40 }
 0x95f   :  { %7802 = vmatpush1.bf16.msra.mxu0 %v12359_v16  ;;  %7843 = vmatpush1.bf16.msra.mxu1 %v12361_v19  ;;  %v12420_v16 = vcombine.high %v7905_v7, %v7909_v8  ;;  %v12422_v19 = vcombine.high %v7906_v9, %v7910_v40  ;;  %v8308_v7 = vld [vmem:[#allocation3 + $0x568] sm:$0xff] }
 0x960   :  { %7803 = vmatprep.subr.bf16.mxu0 %v12352_v21  ;;  %7844 = vmatprep.subr.bf16.mxu1 %v12354_v23  ;;  %v7897_v21 = vld [vmem:[#allocation3 + $0x450] sm:$0xff] }
 0x961   :  { %v7901_v23 = vld [vmem:[#allocation3 + $0x470] sm:$0xff] }
 0x962   :  { %v12412_v60 = vcombine.high %v7897_v21, %v7901_v23  ;;  %v12411_v24 = vcombine.low %v7897_v21, %v7901_v23 }
 0x963   :  { %7804 = vmatpush1.bf16.msra.mxu0 %v12351_v10  ;;  %7845 = vmatpush1.bf16.msra.mxu1 %v12353_v28  ;;  %v12414_v10 = vcombine.high %v7898_v17, %v7902_v20  ;;  %v7889_v28 = vld [vmem:[#allocation3 + $0x410] sm:$0xff] }
 0x964   :  { %8129 = vmatprep.subr.bf16.mxu0 %v12424_v11  ;;  %8170 = vmatprep.subr.bf16.mxu1 %v12426_v55  ;;  %v7893_v11 = vld [vmem:[#allocation3 + $0x430] sm:$0xff]  ;;  %v7890_v55 = vld [vmem:[#allocation3 + $0x418] sm:$0xff] }
 0x965   :  { %v12404_v29 = vcombine.high %v7889_v28, %v7893_v11  ;;  %v12403_v61 = vcombine.low %v7889_v28, %v7893_v11  ;;  %v12405_v62 = vcombine.low %v7890_v55, %v7894_v12 }
 0x966   :  { %12389 = vmatmul.mubr.msk.bf16.vlgmr.msra.gmra.mxu0 %vm2609_vm15, %v16055_v34  ;;  %12390 = vmatmul.mubr.msk.bf16.vlgmr.msra.gmra.mxu1 %vm2609_vm15, %v16055_v34  ;;  %v7879_v34 = vld [vmem:[#allocation3 + $0x3c0] sm:$0xff] }
 0x967   :  { %8130 = vmatpush1.bf16.msra.mxu0 %v12423_v30  ;;  %8171 = vmatpush1.bf16.msra.mxu1 %v12425_v32  ;;  %v12392_v58 = vcombine.high %v7879_v34, %v7883_v44  ;;  %v12391_v1 = vcombine.low %v7879_v34, %v7883_v44  ;;  %v12406_v30 = vcombine.high %v7890_v55, %v7894_v12  ;;  %v7881_v32 = vld [vmem:[#allocation3 + $0x3d0] sm:$0xff]  ;;  %v8324_v34 = vld [vmem:[#allocation3 + $0x5e8] sm:$0xff] }
 0x968   :  { %8131 = vmatprep.subr.bf16.mxu0 %v12416_v47  ;;  %8172 = vmatprep.subr.bf16.mxu1 %v12418_v48  ;;  %v7885_v47 = vld [vmem:[#allocation3 + $0x3f0] sm:$0xff]  ;;  %v7882_v48 = vld [vmem:[#allocation3 + $0x3d8] sm:$0xff] }
 0x969   :  { %8155 = vmatprep.mubr.bf16.mxu0 %v14626_v26  ;;  %8196 = vmatprep.mubr.bf16.mxu1 %v14626_v26  ;;  %v12396_v3 = vcombine.high %v7881_v32, %v7885_v47  ;;  %v12395_v41 = vcombine.low %v7881_v32, %v7885_v47  ;;  %v12397_v37 = vcombine.low %v7882_v48, %v7886_v33 }
 0x96b   :  { %8132 = vmatpush1.bf16.msra.mxu0 %v12415_v22  ;;  %8173 = vmatpush1.bf16.msra.mxu1 %v12417_v31  ;;  %v12398_v22 = vcombine.high %v7882_v48, %v7886_v33  ;;  %v8327_v31 = vld [vmem:[#allocation3 + $0x600] sm:$0xff]  ;;  %v8335_v48 = vrot.slane %v16025_v2, 2 }
 0x96c   :  { %8133 = vmatprep.subr.bf16.mxu0 %v12408_v38  ;;  %8174 = vmatprep.subr.bf16.mxu1 %v12410_v36  ;;  %v8331_v38 = vld [vmem:[#allocation3 + $0x620] sm:$0xff]  ;;  %v8328_v36 = vld [vmem:[#allocation3 + $0x608] sm:$0xff] }
 0x96d   :  { %v12468_v42 = vcombine.high %v8327_v31, %v8331_v38  ;;  %v12467_v44 = vcombine.low %v8327_v31, %v8331_v38  ;;  %v12469_v35 = vcombine.low %v8328_v36, %v8332_v39  ;;  %v8318_v31 = vld [vmem:[#allocation3 + $0x5b8] sm:$0xff] }
 0x96f   :  { %8134 = vmatpush1.bf16.msra.mxu0 %v12407_v51  ;;  %8175 = vmatpush1.bf16.msra.mxu1 %v12409_v52  ;;  %v12470_v51 = vcombine.high %v8328_v36, %v8332_v39  ;;  %v8319_v52 = vld [vmem:[#allocation3 + $0x5c0] sm:$0xff] }
 0x970   :  { %8135 = vmatprep.subr.bf16.mxu0 %v12400_v50  ;;  %8176 = vmatprep.subr.bf16.mxu1 %v12402_v43  ;;  %v8323_v50 = vld [vmem:[#allocation3 + $0x5e0] sm:$0xff]  ;;  %v8320_v43 = vld [vmem:[#allocation3 + $0x5c8] sm:$0xff] }
 0x971   :  { %v12460_v5 = vcombine.high %v8319_v52, %v8323_v50  ;;  %v12459_v46 = vcombine.low %v8319_v52, %v8323_v50  ;;  %v12461_v53 = vcombine.low %v8320_v43, %v8324_v34 }
 0x973   :  { %8136 = vmatpush1.bf16.msra.mxu0 %v12399_v54  ;;  %8177 = vmatpush1.bf16.msra.mxu1 %v12401_v56  ;;  %v12462_v54 = vcombine.high %v8320_v43, %v8324_v34  ;;  %v8311_v56 = vld [vmem:[#allocation3 + $0x580] sm:$0xff] }
 0x974   :  { %8137 = vmatprep.subr.bf16.mxu0 %v12392_v58  ;;  %8178 = vmatprep.subr.bf16.mxu1 %v12394_v59  ;;  %v8315_v58 = vld [vmem:[#allocation3 + $0x5a0] sm:$0xff]  ;;  %v8312_v59 = vld [vmem:[#allocation3 + $0x588] sm:$0xff] }
 0x975   :  { %v12452_v0 = vcombine.high %v8311_v56, %v8315_v58  ;;  %v12451_v8 = vcombine.low %v8311_v56, %v8315_v58  ;;  %v12453_v9 = vcombine.low %v8312_v59, %v8316_v45 }
 0x977   :  { %8138 = vmatpush1.bf16.msra.mxu0 %v12391_v1  ;;  %8179 = vmatpush1.bf16.msra.mxu1 %v12393_v4  ;;  %v12454_v1 = vcombine.high %v8312_v59, %v8316_v45  ;;  %v8303_v4 = vld [vmem:[#allocation3 + $0x540] sm:$0xff] }
 0x978   :  { %8211 = vmatprep.subr.bf16.mxu0 %v12428_v6  ;;  %8252 = vmatprep.subr.bf16.mxu1 %v12430_v63  ;;  %v8307_v6 = vld [vmem:[#allocation3 + $0x560] sm:$0xff]  ;;  %v8304_v63 = vld [vmem:[#allocation3 + $0x548] sm:$0xff] }
 0x979   :  { %v12444_v40 = vcombine.high %v8303_v4, %v8307_v6  ;;  %v12443_v21 = vcombine.low %v8303_v4, %v8307_v6  ;;  %v12445_v23 = vcombine.low %v8304_v63, %v8308_v7 }
 0x97a   :  { %12431 = vmatmul.mubr.msk.bf16.vlgmr.msra.gmra.mxu0 %vm2609_vm15, %v16070_v13  ;;  %12432 = vmatmul.mubr.msk.bf16.vlgmr.msra.gmra.mxu1 %vm2609_vm15, %v16070_v13 }
 0x97b   :  { %8212 = vmatpush1.bf16.msra.mxu0 %v12427_v14  ;;  %8253 = vmatpush1.bf16.msra.mxu1 %v12429_v49  ;;  %v12446_v14 = vcombine.high %v8304_v63, %v8308_v7  ;;  %v8295_v49 = vld [vmem:[#allocation3 + $0x500] sm:$0xff] }
 0x97c   :  { %8213 = vmatprep.subr.bf16.mxu0 %v12420_v16  ;;  %8254 = vmatprep.subr.bf16.mxu1 %v12422_v19  ;;  %v8296_v16 = vld [vmem:[#allocation3 + $0x508] sm:$0xff] }
 0x97d   :  { %8237 = vmatprep.mubr.bf16.mxu0 %v14626_v26  ;;  %8278 = vmatprep.mubr.bf16.mxu1 %v14626_v26  ;;  %v8300_v19 = vld [vmem:[#allocation3 + $0x528] sm:$0xff] }
 0x97e   :  { %v12438_v20 = vcombine.high %v8296_v16, %v8300_v19  ;;  %v12437_v11 = vcombine.low %v8296_v16, %v8300_v19 }
 0x97f   :  { %8214 = vmatpush1.bf16.msra.mxu0 %v12419_v18  ;;  %8255 = vmatpush1.bf16.msra.mxu1 %v12421_v27  ;;  %v8329_v18 = vld [vmem:[#allocation3 + $0x610] sm:$0xff] }
 0x980   :  { %8215 = vmatprep.subr.bf16.mxu0 %v12412_v60  ;;  %8256 = vmatprep.subr.bf16.mxu1 %v12414_v10  ;;  %v8333_v27 = vld [vmem:[#allocation3 + $0x630] sm:$0xff]  ;;  %v8330_v60 = vld [vmem:[#allocation3 + $0x618] sm:$0xff] }
 0x981   :  { %v8334_v10 = vld [vmem:[#allocation3 + $0x638] sm:$0xff]  ;;  %v12472_v55 = vcombine.high %v8329_v18, %v8333_v27  ;;  %v12471_v32 = vcombine.low %v8329_v18, %v8333_v27  ;;  %v14081_v18 = vld [vmem:[%s17009_s7 + $0x2c0] ss:$16 sps:$4 sm:$0xff]   ;;  %v14086_v27 = vld [vmem:[%s17009_s7 + $0xa4] ss:$16 sps:$4 sm:$0xff]  }
 0x982   :  { %v12474_v12 = vcombine.high %v8330_v60, %v8334_v10  ;;  %v12473_v47 = vcombine.low %v8330_v60, %v8334_v10  ;;  %v14089_v60 = vld [vmem:[%s17009_s7 + $0x2a4] ss:$16 sps:$4 sm:$0xff]  }
 0x983   :  { %8216 = vmatpush1.bf16.msra.mxu0 %v12411_v24  ;;  %8257 = vmatpush1.bf16.msra.mxu1 %v12413_v25  ;;  %v8321_v24 = vld [vmem:[#allocation3 + $0x5d0] sm:$0xff] }
 0x984   :  { %8217 = vmatprep.subr.bf16.mxu0 %v12404_v29  ;;  %8258 = vmatprep.subr.bf16.mxu1 %v12406_v30  ;;  %v8325_v25 = vld [vmem:[#allocation3 + $0x5f0] sm:$0xff]  ;;  %v8322_v29 = vld [vmem:[#allocation3 + $0x5d8] sm:$0xff] }
 0x985   :  { %v8326_v30 = vld [vmem:[#allocation3 + $0x5f8] sm:$0xff]  ;;  %v12464_v33 = vcombine.high %v8321_v24, %v8325_v25  ;;  %v12463_v38 = vcombine.low %v8321_v24, %v8325_v25  ;;  %v14087_v24 = vld [vmem:[%s17009_s7 + $0x2a0] ss:$16 sps:$4 sm:$0xff]   ;;  %v14092_v25 = vld [vmem:[%s17009_s7 + $0x84] ss:$16 sps:$4 sm:$0xff]  }
 0x986   :  { %v12465_v36 = vcombine.low %v8322_v29, %v8326_v30 }
 0x987   :  { %8218 = vmatpush1.bf16.msra.mxu0 %v12403_v61  ;;  %8259 = vmatpush1.bf16.msra.mxu1 %v12405_v62  ;;  %v12466_v61 = vcombine.high %v8322_v29, %v8326_v30  ;;  %v8313_v62 = vld [vmem:[#allocation3 + $0x590] sm:$0xff] }
 0x988   :  { %8219 = vmatprep.subr.bf16.mxu0 %v12396_v3  ;;  %8260 = vmatprep.subr.bf16.mxu1 %v12398_v22  ;;  %v8317_v3 = vld [vmem:[#allocation3 + $0x5b0] sm:$0xff]  ;;  %v8314_v22 = vld [vmem:[#allocation3 + $0x598] sm:$0xff] }
 0x989   :  { %v12456_v39 = vcombine.high %v8313_v62, %v8317_v3  ;;  %v12458_v2 = vcombine.high %v8314_v22, %v8318_v31  ;;  %v12455_v52 = vcombine.low %v8313_v62, %v8317_v3  ;;  %v12457_v50 = vcombine.low %v8314_v22, %v8318_v31  ;;  %v14090_v29 = vld [vmem:[%s17009_s7 + $0x80] ss:$16 sps:$4 sm:$0xff]   ;;  %v14095_v30 = vld [vmem:[%s17009_s7 + $0x284] ss:$16 sps:$4 sm:$0xff]  }
 0x98a   :  { %v14104_v62 = vld [vmem:[%s17009_s7 + $0x44] ss:$16 sps:$4 sm:$0xff]   ;;  %v14102_v31 = vld [vmem:[%s17009_s7 + $0x40] ss:$16 sps:$4 sm:$0xff]  }
 0x98b   :  { %8220 = vmatpush1.bf16.msra.mxu0 %v12395_v41  ;;  %8261 = vmatpush1.bf16.msra.mxu1 %v12397_v37  ;;  %v8305_v41 = vld [vmem:[#allocation3 + $0x550] sm:$0xff] }
 0x98c   :  { %8545 = vmatprep.subr.bf16.mxu0 %v12468_v42  ;;  %8586 = vmatprep.subr.bf16.mxu1 %v12470_v51  ;;  %v8309_v37 = vld [vmem:[#allocation3 + $0x570] sm:$0xff]  ;;  %v8306_v42 = vld [vmem:[#allocation3 + $0x558] sm:$0xff] }
 0x98d   :  { %v8310_v51 = vld [vmem:[#allocation3 + $0x578] sm:$0xff]  ;;  %v12448_v43 = vcombine.high %v8305_v41, %v8309_v37  ;;  %v12447_v56 = vcombine.low %v8305_v41, %v8309_v37  ;;  %v14105_v37 = vld [vmem:[%s17009_s7 + $0x240] ss:$16 sps:$4 sm:$0xff]  }
 0x98e   :  { %12433 = vmatmul.mubr.msk.bf16.vlgmr.msra.gmra.mxu0 %vm2609_vm15, %v16070_v13  ;;  %12434 = vmatmul.mubr.msk.bf16.vlgmr.msra.gmra.mxu1 %vm2609_vm15, %v16070_v13  ;;  %v8299_v13 = vld [vmem:[#allocation3 + $0x520] sm:$0xff]  ;;  %v12450_v34 = vcombine.high %v8306_v42, %v8310_v51  ;;  %v12449_v58 = vcombine.low %v8306_v42, %v8310_v51 }
 0x98f   :  { %8546 = vmatpush1.bf16.msra.mxu0 %v12467_v44  ;;  %8587 = vmatpush1.bf16.msra.mxu1 %v12469_v35  ;;  %v12436_v17 = vcombine.high %v8295_v49, %v8299_v13  ;;  %v12435_v28 = vcombine.low %v8295_v49, %v8299_v13  ;;  %v8297_v44 = vld [vmem:[#allocation3 + $0x510] sm:$0xff] }
 0x990   :  { %8547 = vmatprep.subr.bf16.mxu0 %v12460_v5  ;;  %8588 = vmatprep.subr.bf16.mxu1 %v12462_v54  ;;  %v8301_v35 = vld [vmem:[#allocation3 + $0x530] sm:$0xff]  ;;  %v8298_v5 = vld [vmem:[#allocation3 + $0x518] sm:$0xff] }
 0x991   :  { %8571 = vmatprep.mubr.bf16.mxu0 %v14626_v26  ;;  %8612 = vmatprep.mubr.bf16.mxu1 %v14626_v26  ;;  %v8302_v54 = vld [vmem:[#allocation3 + $0x538] sm:$0xff]  ;;  %v12440_v59 = vcombine.high %v8297_v44, %v8301_v35  ;;  %v12439_v45 = vcombine.low %v8297_v44, %v8301_v35  ;;  %v14077_v49 = vld [vmem:[%s17009_s7 + $0x2e4] ss:$16 sps:$4 sm:$0xff]   ;;  %v14111_v44 = vld [vmem:[%s17009_s7 + $0x220] ss:$16 sps:$4 sm:$0xff]  }
 0x992   :  { %v14080_v13 = vld [vmem:[%s17009_s7 + $0xc4] ss:$16 sps:$4 sm:$0xff]  }
 0x993   :  { %8548 = vmatpush1.bf16.msra.mxu0 %v12459_v46  ;;  %8589 = vmatpush1.bf16.msra.mxu1 %v12461_v53  ;;  %v12441_v46 = vcombine.low %v8298_v5, %v8302_v54  ;;  %v14113_v35 = vld [vmem:[%s17009_s7 + $0x224] ss:$16 sps:$4 sm:$0xff]  }
 0x994   :  { %8549 = vmatprep.subr.bf16.mxu0 %v12452_v0  ;;  %8590 = vmatprep.subr.bf16.mxu1 %v12454_v1 }
 0x997   :  { %8550 = vmatpush1.bf16.msra.mxu0 %v12451_v8  ;;  %8591 = vmatpush1.bf16.msra.mxu1 %v12453_v9  ;;  %v14072_v9 = vld [vmem:[%s17009_s7 + $0xe0] ss:$16 sps:$4 sm:$0xff]  }
 0x998   :  { %8551 = vmatprep.subr.bf16.mxu0 %v12444_v40  ;;  %8592 = vmatprep.subr.bf16.mxu1 %v12446_v14  ;;  %v14074_v40 = vld [vmem:[%s17009_s7 + $0xe4] ss:$16 sps:$4 sm:$0xff]   ;;  %v14075_v14 = vld [vmem:[%s17009_s7 + $0x2e0] ss:$16 sps:$4 sm:$0xff]  }
 0x99b   :  { %8552 = vmatpush1.bf16.msra.mxu0 %v12443_v21  ;;  %8593 = vmatpush1.bf16.msra.mxu1 %v12445_v23  ;;  %v14083_v21 = vld [vmem:[%s17009_s7 + $0x2c4] ss:$16 sps:$4 sm:$0xff]   ;;  %v14078_v23 = vld [vmem:[%s17009_s7 + $0xc0] ss:$16 sps:$4 sm:$0xff]  }
 0x99c   :  { %8553 = vmatprep.subr.bf16.mxu0 %v12436_v17  ;;  %8594 = vmatprep.subr.bf16.mxu1 %v12438_v20 }
 0x99f   :  { %8554 = vmatpush1.bf16.msra.mxu0 %v12435_v28  ;;  %8595 = vmatpush1.bf16.msra.mxu1 %v12437_v11  ;;  %v14084_v11 = vld [vmem:[%s17009_s7 + $0xa0] ss:$16 sps:$4 sm:$0xff]  }
 0x9a0   :  { %8627 = vmatprep.subr.bf16.mxu0 %v12472_v55  ;;  %8668 = vmatprep.subr.bf16.mxu1 %v12474_v12 }
 0x9a2   :  { %12475 = vmatmul.mubr.msk.bf16.vlgmr.msra.gmra.mxu0 %vm2609_vm15, %v8335_v48  ;;  %12476 = vmatmul.mubr.msk.bf16.vlgmr.msra.gmra.mxu1 %vm2609_vm15, %v8335_v48 }
 0x9a3   :  { %8628 = vmatpush1.bf16.msra.mxu0 %v12471_v32  ;;  %8669 = vmatpush1.bf16.msra.mxu1 %v12473_v47  ;;  %v14093_v32 = vld [vmem:[%s17009_s7 + $0x280] ss:$16 sps:$4 sm:$0xff]   ;;  %v14098_v47 = vld [vmem:[%s17009_s7 + $0x64] ss:$16 sps:$4 sm:$0xff]  }
 0x9a4   :  { %8629 = vmatprep.subr.bf16.mxu0 %v12464_v33  ;;  %8670 = vmatprep.subr.bf16.mxu1 %v12466_v61  ;;  %v14101_v33 = vld [vmem:[%s17009_s7 + $0x264] ss:$16 sps:$4 sm:$0xff]   ;;  %v14099_v61 = vld [vmem:[%s17009_s7 + $0x260] ss:$16 sps:$4 sm:$0xff]  }
 0x9a5   :  { %8653 = vmatprep.mubr.bf16.mxu0 %v14626_v26  ;;  %8694 = vmatprep.mubr.bf16.mxu1 %v14626_v26  ;;  %v12442_v26 = vcombine.high %v8298_v5, %v8302_v54  ;;  %v14116_v5 = vld [vmem:[%s17009_s7 + $0x4] ss:$16 sps:$4 sm:$0xff]  }
 0x9a6   :  { %v14119_v54 = vld [vmem:[%s17009_s7 + $0x204] ss:$16 sps:$4 sm:$0xff]  }
 0x9a7   :  { %8630 = vmatpush1.bf16.msra.mxu0 %v12463_v38  ;;  %8671 = vmatpush1.bf16.msra.mxu1 %v12465_v36 }
 0x9a8   :  { %8631 = vmatprep.subr.bf16.mxu0 %v12456_v39  ;;  %8672 = vmatprep.subr.bf16.mxu1 %v12458_v2  ;;  %v14107_v39 = vld [vmem:[%s17009_s7 + $0x244] ss:$16 sps:$4 sm:$0xff]  }
 0x9ab   :  { %8632 = vmatpush1.bf16.msra.mxu0 %v12455_v52  ;;  %8673 = vmatpush1.bf16.msra.mxu1 %v12457_v50  ;;  %v14108_v52 = vld [vmem:[%s17009_s7 + $0x20] ss:$16 sps:$4 sm:$0xff]   ;;  %v14110_v50 = vld [vmem:[%s17009_s7 + $0x24] ss:$16 sps:$4 sm:$0xff]  }
 0x9ac   :  { %8633 = vmatprep.subr.bf16.mxu0 %v12448_v43  ;;  %8674 = vmatprep.subr.bf16.mxu1 %v12450_v34 }
 0x9af   :  { %8634 = vmatpush1.bf16.msra.mxu0 %v12447_v56  ;;  %8675 = vmatpush1.bf16.msra.mxu1 %v12449_v58 }
 0x9b0   :  { %8635 = vmatprep.subr.bf16.mxu0 %v12440_v59  ;;  %8676 = vmatprep.subr.bf16.mxu1 %v12442_v26  ;;  %v14114_v59 = vld [vmem:[%s17009_s7] ss:$16 sps:$4 sm:$0xff]  }
 0x9b1   :  { %v14117_v26 = vld [vmem:[%s17009_s7 + $0x200] ss:$16 sps:$4 sm:$0xff]  }
 0x9b3   :  { %8636 = vmatpush1.bf16.msra.mxu0 %v12439_v45  ;;  %8677 = vmatpush1.bf16.msra.mxu1 %v12441_v46  ;;  %v14122_v45 = vld [vmem:[%s17009_s7 + $0x1e4] ss:$16 sps:$4 sm:$0xff]   ;;  %v14120_v46 = vld [vmem:[%s17009_s7 + $0x1e0] ss:$16 sps:$4 sm:$0xff]  }
 0x9b4   :  { %10457 = vmatprep.subr.bf16.mxu0 %v14074_v40  ;;  %10498 = vmatprep.subr.bf16.mxu1 %v14077_v49  ;;  %v14132_v40 = vld [vmem:[%s17009_s7 + $0x1a0] ss:$16 sps:$4 sm:$0xff]  }
 0x9b6   :  { %12477 = vmatmul.mubr.msk.bf16.vlgmr.msra.gmra.mxu0 %vm2609_vm15, %v8335_v48  ;;  %12478 = vmatmul.mubr.msk.bf16.vlgmr.msra.gmra.mxu1 %vm2609_vm15, %v8335_v48  ;;  %v14096_v48 = vld [vmem:[%s17009_s7 + $0x60] ss:$16 sps:$4 sm:$0xff]  }
 0x9b7   :  { %10458 = vmatpush1.bf16.msra.mxu0 %v14072_v9  ;;  %10499 = vmatpush1.bf16.msra.mxu1 %v14075_v14 }
 0x9b8   :  { %10459 = vmatprep.subr.bf16.mxu0 %v14080_v13  ;;  %10500 = vmatprep.subr.bf16.mxu1 %v14083_v21  ;;  %v14137_v13 = vld [vmem:[%s17009_s7 + $0x3a4] ss:$16 sps:$4 sm:$0xff]  }
 0x9bb   :  { %10460 = vmatpush1.bf16.msra.mxu0 %v14078_v23  ;;  %10501 = vmatpush1.bf16.msra.mxu1 %v14081_v18  ;;  %v14135_v18 = vld [vmem:[%s17009_s7 + $0x3a0] ss:$16 sps:$4 sm:$0xff]  }
 0x9bc   :  { %10461 = vmatprep.subr.bf16.mxu0 %v14086_v27  ;;  %10502 = vmatprep.subr.bf16.mxu1 %v14089_v60 }
 0x9bf   :  { %10462 = vmatpush1.bf16.msra.mxu0 %v14084_v11  ;;  %10503 = vmatpush1.bf16.msra.mxu1 %v14087_v24  ;;  %v14146_v24 = vld [vmem:[%s17009_s7 + $0x164] ss:$16 sps:$4 sm:$0xff]  }
 0x9c0   :  { %10463 = vmatprep.subr.bf16.mxu0 %v14092_v25  ;;  %10504 = vmatprep.subr.bf16.mxu1 %v14095_v30  ;;  %v14147_v25 = vld [vmem:[%s17009_s7 + $0x360] ss:$16 sps:$4 sm:$0xff]   ;;  %v14152_v30 = vld [vmem:[%s17009_s7 + $0x144] ss:$16 sps:$4 sm:$0xff]  }
 0x9c2   :  { %v6966_v53 = vpop.f32.mrf.mxu0  ;;  %v7007_v0 = vpop.f32.mrf.mxu1 }
 0x9c3   :  { %10464 = vmatpush1.bf16.msra.mxu0 %v14090_v29  ;;  %10505 = vmatpush1.bf16.msra.mxu1 %v14093_v32  ;;  %v14149_v29 = vld [vmem:[%s17009_s7 + $0x364] ss:$16 sps:$4 sm:$0xff]  }
 0x9c4   :  { %v16091_v1 = vpop.f32.mrf.mxu0  ;;  %v16093_v4 = vpop.f32.mrf.mxu1  ;;  %10465 = vmatprep.subr.bf16.mxu0 %v14098_v47  ;;  %10506 = vmatprep.subr.bf16.mxu1 %v14101_v33  ;;  %v14155_v32 = vld [vmem:[%s17009_s7 + $0x344] ss:$16 sps:$4 sm:$0xff]   ;;  %v14150_v47 = vld [vmem:[%s17009_s7 + $0x140] ss:$16 sps:$4 sm:$0xff]  }
 0x9c5   :  { %v14153_v33 = vld [vmem:[%s17009_s7 + $0x340] ss:$16 sps:$4 sm:$0xff]  }
 0x9c6   :  { %v6970_v6 = vpop.f32.mrf.mxu0  ;;  %v7011_v63 = vpop.f32.mrf.mxu1 }
 0x9c7   :  { %10466 = vmatpush1.bf16.msra.mxu0 %v14096_v48  ;;  %10507 = vmatpush1.bf16.msra.mxu1 %v14099_v61  ;;  %v14131_v6 = vld [vmem:[%s17009_s7 + $0x3c4] ss:$16 sps:$4 sm:$0xff]   ;;  %v14129_v63 = vld [vmem:[%s17009_s7 + $0x3c0] ss:$16 sps:$4 sm:$0xff]  }
 0x9c8   :  { %v6971_v7 = vpop.f32.mrf.mxu0  ;;  %v7012_v8 = vpop.f32.mrf.mxu1  ;;  %10467 = vmatprep.subr.bf16.mxu0 %v14104_v62  ;;  %10508 = vmatprep.subr.bf16.mxu1 %v14107_v39  ;;  %v14158_v48 = vld [vmem:[%s17009_s7 + $0x124] ss:$16 sps:$4 sm:$0xff]   ;;  %v14156_v62 = vld [vmem:[%s17009_s7 + $0x120] ss:$16 sps:$4 sm:$0xff]  }
 0x9c9   :  { %v14134_v7 = vld [vmem:[%s17009_s7 + $0x1a4] ss:$16 sps:$4 sm:$0xff]   ;;  %v14162_v39 = vld [vmem:[%s17009_s7 + $0x100] ss:$16 sps:$4 sm:$0xff]  }
 0x9ca   :  { %v14161_v61 = vld [vmem:[%s17009_s7 + $0x324] ss:$16 sps:$4 sm:$0xff]  }
 0x9cb   :  { %10468 = vmatpush1.bf16.msra.mxu0 %v14102_v31  ;;  %10509 = vmatpush1.bf16.msra.mxu1 %v14105_v37  ;;  %v14167_v31 = vld [vmem:[%s17009_s7 + $0x304] ss:$16 sps:$4 sm:$0xff]   ;;  %v14165_v37 = vld [vmem:[%s17009_s7 + $0x300] ss:$16 sps:$4 sm:$0xff]  }
 0x9cc   :  { %10469 = vmatprep.subr.bf16.mxu0 %v14110_v50  ;;  %10510 = vmatprep.subr.bf16.mxu1 %v14113_v35 }
 0x9cf   :  { %10470 = vmatpush1.bf16.msra.mxu0 %v14108_v52  ;;  %10511 = vmatpush1.bf16.msra.mxu1 %v14111_v44 }
 0x9d0   :  { %10471 = vmatprep.subr.bf16.mxu0 %v14116_v5  ;;  %10512 = vmatprep.subr.bf16.mxu1 %v14119_v54  ;;  %v14170_v5 = vld [vmem:[%s17009_s7 + $0x4e4] ss:$16 sps:$4 sm:$0xff]  }
 0x9d3   :  { %10472 = vmatpush1.bf16.msra.mxu0 %v14114_v59  ;;  %10513 = vmatpush1.bf16.msra.mxu1 %v14117_v26 }
 0x9d4   :  { %10473 = vmatprep.subr.bf16.mxu0 %v14122_v45 }
 0x9d6   :  { %v16110_v16 = vpop.f32.mrf.mxu0  ;;  %v16112_v19 = vpop.f32.mrf.mxu1 }
 0x9d7   :  { %10474 = vmatpush2.bf16.msra.mxu0 %v14120_v46 }
 0x9d8   :  { %v16120_v17 = vpop.f32.mrf.mxu0  ;;  %v16122_v20 = vpop.f32.mrf.mxu1 }
 0x9da   :  { %v7052_v10 = vpop.f32.mrf.mxu0  ;;  %v7093_v28 = vpop.f32.mrf.mxu1 }
 0x9db   :  { %v14138_v28 = vld [vmem:[%s17009_s7 + $0x180] ss:$16 sps:$4 sm:$0xff]  }
 0x9dc   :  { %v7053_v55 = vpop.f32.mrf.mxu0  ;;  %v7094_v12 = vpop.f32.mrf.mxu1 }
 0x9dd   :  { %v14141_v55 = vld [vmem:[%s17009_s7 + $0x380] ss:$16 sps:$4 sm:$0xff]  }
 0x9de   :  { %v14144_v12 = vld [vmem:[%s17009_s7 + $0x160] ss:$16 sps:$4 sm:$0xff]  }
 0x9ea   :  { %v7332_v3 = vpop.f32.mrf.mxu0  ;;  %v7373_v22 = vpop.f32.mrf.mxu1 }
 0x9eb   :  { %v16169_v38 = vadd.f32 %v7332_v3, %v6966_v53  ;;  %v16171_v36 = vadd.f32 %v7373_v22, %v7007_v0  ;;  %v14125_v53 = vld [vmem:[%s17009_s7 + $0x3e4] ss:$16 sps:$4 sm:$0xff]   ;;  %v14123_v0 = vld [vmem:[%s17009_s7 + $0x3e0] ss:$16 sps:$4 sm:$0xff]  }
 0x9ec   :  { %v7334_v2 = vpop.f32.mrf.mxu0  ;;  %v7375_v41 = vpop.f32.mrf.mxu1  ;;  %10514 = vmatprep.subr.bf16.mxu1 %v14125_v53  ;;  %v14164_v3 = vld [vmem:[%s17009_s7 + $0x104] ss:$16 sps:$4 sm:$0xff]   ;;  %v14159_v22 = vld [vmem:[%s17009_s7 + $0x320] ss:$16 sps:$4 sm:$0xff]  }
 0x9ed   :  { %v16180_v42 = vadd.f32 %v7334_v2, %v16091_v1  ;;  %v16183_v51 = vadd.f32 %v7375_v41, %v16093_v4  ;;  %v14128_v1 = vld [vmem:[%s17009_s7 + $0x1c4] ss:$16 sps:$4 sm:$0xff]   ;;  %10515 = vmatpush2.bf16.msra.mxu1 %v14123_v0  ;;  %v14126_v4 = vld [vmem:[%s17009_s7 + $0x1c0] ss:$16 sps:$4 sm:$0xff]  }
 0x9ee   :  { %v7336_v43 = vpop.f32.mrf.mxu0  ;;  %v7377_v34 = vpop.f32.mrf.mxu1  ;;  %10475 = vmatprep.subr.bf16.mxu0 %v14128_v1  ;;  %10516 = vmatprep.subr.bf16.mxu1 %v14131_v6 }
 0x9ef   :  { %10476 = vmatpush2.bf16.msra.mxu0 %v14126_v4 }
 0x9f0   :  { %v7337_v56 = vpop.f32.mrf.mxu0  ;;  %v7378_v58 = vpop.f32.mrf.mxu1  ;;  %10477 = vmatprep.subr.bf16.mxu0 %v14134_v7 }
 0x9f1   :  { %10517 = vmatpush2.bf16.msra.mxu1 %v14129_v63 }
 0x9f2   :  { %10518 = vmatprep.subr.bf16.mxu1 %v14137_v13 }
 0x9f3   :  { %10478 = vmatpush2.bf16.msra.mxu0 %v14132_v40 }
 0x9f5   :  { %10519 = vmatpush2.bf16.msra.mxu1 %v14135_v18 }
 0x9fe   :  { %v7414_v8 = vpop.f32.mrf.mxu0  ;;  %v7455_v9 = vpop.f32.mrf.mxu1 }
 0x9ff   :  { %v16240_v14 = vadd.f32 %v7414_v8, %v16110_v16  ;;  %v16243_v49 = vadd.f32 %v7455_v9, %v16112_v19  ;;  %v14140_v19 = vld [vmem:[%s17009_s7 + $0x184] ss:$16 sps:$4 sm:$0xff]  }
 0xa00   :  { %v7416_v21 = vpop.f32.mrf.mxu0  ;;  %v7457_v23 = vpop.f32.mrf.mxu1  ;;  %10479 = vmatprep.subr.bf16.mxu0 %v14140_v19 }
 0xa01   :  { %v16252_v27 = vadd.f32 %v7416_v21, %v16120_v17  ;;  %v16255_v16 = vadd.f32 %v7457_v23, %v16122_v20  ;;  %v14143_v17 = vld [vmem:[%s17009_s7 + $0x384] ss:$16 sps:$4 sm:$0xff]   ;;  %10480 = vmatpush2.bf16.msra.mxu0 %v14138_v28 }
 0xa02   :  { %v7418_v60 = vpop.f32.mrf.mxu0  ;;  %v7459_v10 = vpop.f32.mrf.mxu1  ;;  %10520 = vmatprep.subr.bf16.mxu1 %v14143_v17  ;;  %10481 = vmatprep.subr.bf16.mxu0 %v14146_v24 }
 0xa03   :  { %10521 = vmatpush2.bf16.msra.mxu1 %v14141_v55 }
 0xa04   :  { %v7419_v11 = vpop.f32.mrf.mxu0  ;;  %v7460_v20 = vpop.f32.mrf.mxu1  ;;  %10522 = vmatprep.subr.bf16.mxu1 %v14149_v29 }
 0xa05   :  { %10482 = vmatpush2.bf16.msra.mxu0 %v14144_v12 }
 0xa06   :  { %10483 = vmatprep.subr.bf16.mxu0 %v14152_v30 }
 0xa07   :  { %10523 = vmatpush2.bf16.msra.mxu1 %v14147_v25 }
 0xa08   :  { %10524 = vmatprep.subr.bf16.mxu1 %v14155_v32 }
 0xa09   :  { %10484 = vmatpush2.bf16.msra.mxu0 %v14150_v47 }
 0xa0a   :  { %10485 = vmatprep.subr.bf16.mxu0 %v14158_v48 }
 0xa0b   :  { %10525 = vmatpush2.bf16.msra.mxu1 %v14153_v33 }
 0xa0c   :  { %10526 = vmatprep.subr.bf16.mxu1 %v14161_v61 }
 0xa0d   :  { %10486 = vmatpush2.bf16.msra.mxu0 %v14156_v62 }
 0xa0e   :  { %10487 = vmatprep.subr.bf16.mxu0 %v14164_v3 }
 0xa0f   :  { %10527 = vmatpush2.bf16.msra.mxu1 %v14159_v22 }
 0xa10   :  { %10528 = vmatprep.subr.bf16.mxu1 %v14167_v31 }
 0xa11   :  { %10488 = vmatpush2.bf16.msra.mxu0 %v14162_v39 }
 0xa12   :  { %v7741_v2 = vpop.f32.mrf.mxu0  ;;  %v7782_v41 = vpop.f32.mrf.mxu1  ;;  %10539 = vmatprep.subr.bf16.mxu0 %v14170_v5 }
 0xa13   :  { %v7871_v52 = vadd.f32 %v7741_v2, %v16169_v38  ;;  %v7873_v50 = vadd.f32 %v7782_v41, %v16171_v36  ;;  %10529 = vmatpush2.bf16.msra.mxu1 %v14165_v37  ;;  %v14173_v36 = vld [vmem:[%s17009_s7 + $0x6e4] ss:$16 sps:$4 sm:$0xff]   ;;  %v16334_v37 = vsub.s32 0, %v14953_v57 }
 0xa14   :  { %v7743_v43 = vpop.f32.mrf.mxu0  ;;  %v7784_v34 = vpop.f32.mrf.mxu1  ;;  %10580 = vmatprep.subr.bf16.mxu1 %v14173_v36  ;;  %v8773_v36 = vld [vmem:[%s17008_s6] sm:$0xff] }
 0xa15   :  { %v7872_v44 = vadd.f32 %v7743_v43, %v16180_v42  ;;  %v7874_v35 = vadd.f32 %v7784_v34, %v16183_v51  ;;  %v16337_v43 = vsub.s32 1, %v14953_v57  ;;  %v8785_v34 = vsub.s32 2, %v14953_v57 }
 0xa16   :  { %v7745_v54 = vpop.f32.mrf.mxu0  ;;  %v7786_v56 = vpop.f32.mrf.mxu1 }
 0xa18   :  { %v7746_v58 = vpop.f32.mrf.mxu0  ;;  %v7787_v38 = vpop.f32.mrf.mxu1 }
 0xa26   :  { %v7823_v59 = vpop.f32.mrf.mxu0  ;;  %v7864_v26 = vpop.f32.mrf.mxu1 }
 0xa27   :  { %v7875_v42 = vadd.f32 %v7823_v59, %v16240_v14  ;;  %v7877_v51 = vadd.f32 %v7864_v26, %v16243_v49 }
 0xa28   :  { %v7825_v45 = vpop.f32.mrf.mxu0  ;;  %v7866_v46 = vpop.f32.mrf.mxu1 }
 0xa29   :  { %v7876_v53 = vadd.f32 %v7825_v45, %v16252_v27  ;;  %v7878_v0 = vadd.f32 %v7866_v46, %v16255_v16  ;;  %v8793_v45 = vsub.s32 4, %v14953_v57  ;;  %v8797_v46 = vsub.s32 5, %v14953_v57 }
 0xa2a   :  { %v7827_v1 = vpop.f32.mrf.mxu0  ;;  %v7868_v4 = vpop.f32.mrf.mxu1 }
 0xa2b   :  { %v8801_v1 = vsub.s32 6, %v14953_v57  ;;  %v8805_v4 = vsub.s32 7, %v14953_v57 }
 0xa2c   :  { %v7828_v6 = vpop.f32.mrf.mxu0  ;;  %v7869_v63 = vpop.f32.mrf.mxu1 }
 0xa3a   :  { %v8157_v7 = vpop.f32.mrf.mxu0  ;;  %v8198_v8 = vpop.f32.mrf.mxu1 }
 0xa3b   :  { %v8287_v20 = vadd.f32 %v8157_v7, %v7871_v52  ;;  %v8289_v55 = vadd.f32 %v8198_v8, %v7873_v50  ;;  %v8778_v7 = vrot.slane %v8773_v36, %v16334_v37 }
 0xa3c   :  { %v8159_v9 = vpop.f32.mrf.mxu0  ;;  %v8200_v40 = vpop.f32.mrf.mxu1 }
 0xa3d   :  { %v8288_v12 = vadd.f32 %v8159_v9, %v7872_v44  ;;  %v8290_v24 = vadd.f32 %v8200_v40, %v7874_v35  ;;  %v8789_v44 = vsub.s32 3, %v14953_v57  ;;  %v14628_v35 = vmov 1983009808  }
 0xa3e   :  { %v8161_v13 = vpop.f32.mrf.mxu0  ;;  %v8202_v21 = vpop.f32.mrf.mxu1  ;;  %v8810_v5 = vunpack.c.l.s4 %v14628_v35  ;;  %v8782_v40 = vrot.slane %v8773_v36, %v16337_v43 }
 0xa3f   :  { %v8786_v13 = vrot.slane %v8773_v36, %v8785_v34 }
 0xa40   :  { %v8162_v23 = vpop.f32.mrf.mxu0  ;;  %v8203_v14 = vpop.f32.mrf.mxu1 }
 0xa41   :  { %v8790_v14 = vrot.slane %v8773_v36, %v8789_v44 }
 0xa4e   :  { %v8239_v18 = vpop.f32.mrf.mxu0  ;;  %v8280_v49 = vpop.f32.mrf.mxu1 }
 0xa4f   :  { %v8291_v54 = vadd.f32 %v8239_v18, %v7875_v42  ;;  %v8293_v56 = vadd.f32 %v8280_v49, %v7877_v51  ;;  %v8811_v18 = vunpack.c.0.s8 %v8810_v5  ;;  %v8794_v49 = vrot.slane %v8773_v36, %v8793_v45 }
 0xa50   :  { %v8241_v19 = vpop.f32.mrf.mxu0  ;;  %v8282_v60 = vpop.f32.mrf.mxu1 }
 0xa51   :  { %v8292_v58 = vadd.f32 %v8241_v19, %v7876_v53  ;;  %v8294_v38 = vadd.f32 %v8282_v60, %v7878_v0  ;;  %v8798_v19 = vrot.slane %v8773_v36, %v8797_v46  ;;  %v14171_v46 = vld [vmem:[%s17009_s7 + $0x6e0] ss:$16 sps:$4 sm:$0xff]  }
 0xa52   :  { %v8243_v10 = vpop.f32.mrf.mxu0  ;;  %v8284_v27 = vpop.f32.mrf.mxu1 }
 0xa53   :  { %v8802_v27 = vrot.slane %v8773_v36, %v8801_v1  ;;  %v14176_v1 = vld [vmem:[%s17009_s7 + $0x4c4] ss:$16 sps:$4 sm:$0xff]  }
 0xa54   :  { %v8244_v28 = vpop.f32.mrf.mxu0  ;;  %v8285_v16 = vpop.f32.mrf.mxu1 }
 0xa55   :  { %v8806_v28 = vrot.slane %v8773_v36, %v8805_v4 }
 0xa62   :  { %v8573_v17 = vpop.f32.mrf.mxu0  ;;  %v8614_v11 = vpop.f32.mrf.mxu1 }
 0xa63   :  { %v8703_v30 = vadd.f32 %v8573_v17, %v8287_v20  ;;  %v8705_v32 = vadd.f32 %v8614_v11, %v8289_v55  ;;  %v8807_v17 = vcombine.low %v8778_v7, %v8782_v40  ;;  %v8808_v11 = vcombine.low %v8786_v13, %v8790_v14  ;;  %v14185_v7 = vld [vmem:[%s17009_s7 + $0x6a4] ss:$16 sps:$4 sm:$0xff]   ;;  %v14183_v40 = vld [vmem:[%s17009_s7 + $0x6a0] ss:$16 sps:$4 sm:$0xff]  }
 0xa64   :  { %v8575_v25 = vpop.f32.mrf.mxu0  ;;  %v8616_v29 = vpop.f32.mrf.mxu1  ;;  %v8814_v20 = vsub.s32 %v8811_v18, %v14953_v57  ;;  %v14191_v13 = vld [vmem:[%s17009_s7 + $0x684] ss:$16 sps:$4 sm:$0xff]   ;;  %v14189_v14 = vld [vmem:[%s17009_s7 + $0x680] ss:$16 sps:$4 sm:$0xff]  }
 0xa65   :  { %v8704_v47 = vadd.f32 %v8575_v25, %v8288_v12  ;;  %v8706_v48 = vadd.f32 %v8616_v29, %v8290_v24  ;;  %v8824_v24 = vcombine.low %v8794_v49, %v8798_v19  ;;  %v8825_v25 = vcombine.low %v8802_v27, %v8806_v28  ;;  %v14197_v18 = vld [vmem:[%s17009_s7 + $0x664] ss:$16 sps:$4 sm:$0xff]   ;;  %v14192_v49 = vld [vmem:[%s17009_s7 + $0x460] ss:$16 sps:$4 sm:$0xff]  }
 0xa66   :  { %v8577_v33 = vpop.f32.mrf.mxu0  ;;  %v8618_v61 = vpop.f32.mrf.mxu1  ;;  %v14200_v19 = vld [vmem:[%s17009_s7 + $0x444] ss:$16 sps:$4 sm:$0xff]   ;;  %v14198_v27 = vld [vmem:[%s17009_s7 + $0x440] ss:$16 sps:$4 sm:$0xff]  }
 0xa67   :  { %v8719_v62 = vcombine.low %v8703_v30, %v8704_v47  ;;  %v8720_v3 = vcombine.low %v8705_v32, %v8706_v48  ;;  %v8815_v30 = vrot.slane %v8807_v17, %v8814_v20  ;;  %v8822_v32 = vrot.slane %v8808_v11, %v8814_v20  ;;  %v14206_v28 = vld [vmem:[%s17009_s7 + $0x424] ss:$16 sps:$4 sm:$0xff]   ;;  %v14204_v11 = vld [vmem:[%s17009_s7 + $0x420] ss:$16 sps:$4 sm:$0xff]  }
 0xa68   :  { %v8578_v22 = vpop.f32.mrf.mxu0  ;;  %v8619_v31 = vpop.f32.mrf.mxu1  ;;  %v8832_v47 = vrot.slane %v8824_v24, %v8814_v20  ;;  %v8839_v48 = vrot.slane %v8825_v25, %v8814_v20  ;;  %v14209_v17 = vld [vmem:[%s17009_s7 + $0x624] ss:$16 sps:$4 sm:$0xff]   ;;  %v14210_v24 = vld [vmem:[%s17009_s7 + $0x400] ss:$16 sps:$4 sm:$0xff]  }
 0xa69   :  { %v8729_v39 = vrot.slane %v8719_v62, %v15697_v15  ;;  %v8736_v2 = vrot.slane %v8720_v3, %v15697_v15  ;;  %v8823_v33 = vcombine.low %v8815_v30, %v8822_v32  ;;  %v14218_v25 = vld [vmem:[%s17009_s7 + $0x5e4] ss:$16 sps:$4 sm:$0xff]   ;;  %v14216_v32 = vld [vmem:[%s17009_s7 + $0x5e0] ss:$16 sps:$4 sm:$0xff]  }
 0xa6a   :  { %v8840_v61 = vcombine.low %v8832_v47, %v8839_v48  ;;  %v14221_v30 = vld [vmem:[%s17009_s7 + $0x7e4] ss:$16 sps:$4 sm:$0xff]   ;;  %v14219_v48 = vld [vmem:[%s17009_s7 + $0x7e0] ss:$16 sps:$4 sm:$0xff]  }
 0xa6b   :  { %v8751_v41 = vcombine.low %v8729_v39, %v8736_v2  ;;  %v14224_v47 = vld [vmem:[%s17009_s7 + $0x5c4] ss:$16 sps:$4 sm:$0xff]  }
 0xa6d   :  { %v8759_v55 = vrot.slane %v8751_v41, %v15697_v15 }
 0xa76   :  { %v8655_v52 = vpop.f32.mrf.mxu0  ;;  %v8696_v50 = vpop.f32.mrf.mxu1 }
 0xa77   :  { %v8707_v6 = vadd.f32 %v8655_v52, %v8291_v54  ;;  %v8709_v63 = vadd.f32 %v8696_v50, %v8293_v56 }
 0xa78   :  { %v8657_v59 = vpop.f32.mrf.mxu0  ;;  %v8698_v26 = vpop.f32.mrf.mxu1 }
 0xa79   :  { %v8708_v42 = vadd.f32 %v8657_v59, %v8292_v58  ;;  %v8710_v51 = vadd.f32 %v8698_v26, %v8294_v38  ;;  %v14168_v38 = vld [vmem:[%s17009_s7 + $0x4e0] ss:$16 sps:$4 sm:$0xff]  }
 0xa7a   :  { %v8659_v53 = vpop.f32.mrf.mxu0  ;;  %v8700_v0 = vpop.f32.mrf.mxu1 }
 0xa7b   :  { %v8721_v8 = vcombine.low %v8707_v6, %v8708_v42  ;;  %v8722_v9 = vcombine.low %v8709_v63, %v8710_v51  ;;  %v14179_v63 = vld [vmem:[%s17009_s7 + $0x6c4] ss:$16 sps:$4 sm:$0xff]   ;;  %v14174_v42 = vld [vmem:[%s17009_s7 + $0x4c0] ss:$16 sps:$4 sm:$0xff]  }
 0xa7c   :  { %v8660_v21 = vpop.f32.mrf.mxu0  ;;  %v8701_v23 = vpop.f32.mrf.mxu1  ;;  %v14182_v53 = vld [vmem:[%s17009_s7 + $0x4a4] ss:$16 sps:$4 sm:$0xff]   ;;  %v14177_v0 = vld [vmem:[%s17009_s7 + $0x6c0] ss:$16 sps:$4 sm:$0xff]  }
 0xa7d   :  { %v8743_v60 = vrot.slane %v8721_v8, %v15697_v15  ;;  %v8750_v10 = vrot.slane %v8722_v9, %v15697_v15  ;;  %v14180_v8 = vld [vmem:[%s17009_s7 + $0x4a0] ss:$16 sps:$4 sm:$0xff]   ;;  %v14188_v9 = vld [vmem:[%s17009_s7 + $0x484] ss:$16 sps:$4 sm:$0xff]  }
 0xa7e   :  { %v14186_v21 = vld [vmem:[%s17009_s7 + $0x480] ss:$16 sps:$4 sm:$0xff]   ;;  %v14194_v23 = vld [vmem:[%s17009_s7 + $0x464] ss:$16 sps:$4 sm:$0xff]  }
 0xa7f   :  { %v8752_v16 = vcombine.low %v8743_v60, %v8750_v10  ;;  %v14195_v60 = vld [vmem:[%s17009_s7 + $0x660] ss:$16 sps:$4 sm:$0xff]   ;;  %v14203_v10 = vld [vmem:[%s17009_s7 + $0x644] ss:$16 sps:$4 sm:$0xff]  }
 0xa81   :  { %v8766_v12 = vrot.slane %v8752_v16, %v15697_v15  ;;  %v14201_v16 = vld [vmem:[%s17009_s7 + $0x640] ss:$16 sps:$4 sm:$0xff]  }
 0xa83   :  { %v8767_v29 = vcombine.low %v8759_v55, %v8766_v12  ;;  %v14207_v55 = vld [vmem:[%s17009_s7 + $0x620] ss:$16 sps:$4 sm:$0xff]   ;;  %v14215_v12 = vld [vmem:[%s17009_s7 + $0x604] ss:$16 sps:$4 sm:$0xff]  }
 0xa85   :  { %8770 = vst [vmem:[#allocation2 + $0x1] ss:$2 sm:$0xff] %v8767_v29  ;;  %v14213_v29 = vld [vmem:[%s17009_s7 + $0x600] ss:$16 sps:$4 sm:$0xff]  }
 0xa8c   :  { %v8771_v62 = vld [vmem:[#allocation2] sm:$0xff]  ;;  %v8772_v3 = vld [vmem:[#allocation2 + $0x8] sm:$0xff] }
 0xa8d   :  { %v8843_v22 = vadd.f32 %v8823_v33, %v8771_v62  ;;  %v8844_v31 = vadd.f32 %v8840_v61, %v8772_v3  ;;  %v14227_v33 = vld [vmem:[%s17009_s7 + $0x7c4] ss:$16 sps:$4 sm:$0xff]   ;;  %v14222_v61 = vld [vmem:[%s17009_s7 + $0x5c0] ss:$16 sps:$4 sm:$0xff]  }
 0xa8e   :  { %v14230_v62 = vld [vmem:[%s17009_s7 + $0x5a4] ss:$16 sps:$4 sm:$0xff]   ;;  %v14225_v3 = vld [vmem:[%s17009_s7 + $0x7c0] ss:$16 sps:$4 sm:$0xff]  }
 0xa8f   :  { %v8845_v39 = vmax.f32 %v8843_v22, 0.0  ;;  %v8846_v2 = vmax.f32 %v8844_v31, 0.0  ;;  %v14233_v22 = vld [vmem:[%s17009_s7 + $0x7a4] ss:$16 sps:$4 sm:$0xff]   ;;  %v14228_v31 = vld [vmem:[%s17009_s7 + $0x5a0] ss:$16 sps:$4 sm:$0xff]  }
 0xa91   :  { %v8856_v52 = vrot.slane %v8845_v39, %v8814_v20  ;;  %v8849_v41 = vcombine.high %v8845_v39, %v8845_v39  ;;  %v16359_v50 = vrot.slane %v8846_v2, %v8814_v20  ;;  %v8866_v15 = vcombine.high %v8846_v2, %v8846_v2  ;;  %v14236_v39 = vld [vmem:[%s17009_s7 + $0x584] ss:$16 sps:$4 sm:$0xff]   ;;  %v14231_v2 = vld [vmem:[%s17009_s7 + $0x7a0] ss:$16 sps:$4 sm:$0xff]  }
 0xa93   :  { %v8864_v35 = vcombine.high %v8856_v52, %v8856_v52  ;;  %v8863_v5 = vrot.slane %v8849_v41, %v8814_v20  ;;  %v8881_v54 = vcombine.high %v16359_v50, %v16359_v50  ;;  %v16363_v56 = vrot.slane %v8866_v15, %v8814_v20  ;;  %v14212_v20 = vld [vmem:[%s17009_s7 + $0x404] ss:$16 sps:$4 sm:$0xff]   ;;  %v14234_v41 = vld [vmem:[%s17009_s7 + $0x580] ss:$16 sps:$4 sm:$0xff]  }
 0xa94   :  { %v16370_v59 = vpack.c.bf16 %v8856_v52, %v8856_v52  ;;  %v14239_v52 = vld [vmem:[%s17009_s7 + $0x784] ss:$16 sps:$4 sm:$0xff]  }
 0xa95   :  { %v16365_v58 = vpack.c.bf16 %v8864_v35, %v8864_v35  ;;  %v8865_v36 = vcombine.high %v8863_v5, %v8863_v5  ;;  %v8882_v26 = vcombine.high %v16363_v56, %v16363_v56  ;;  %v16384_v4 = vpack.c.bf16 %v8863_v5, %v8863_v5  ;;  %v14242_v15 = vld [vmem:[%s17009_s7 + $0x564] ss:$16 sps:$4 sm:$0xff]   ;;  %v14237_v35 = vld [vmem:[%s17009_s7 + $0x780] ss:$16 sps:$4 sm:$0xff]  }
 0xa96   :  { %v16386_v6 = vpack.c.bf16 %v8881_v54, %v8881_v54  ;;  %v14245_v5 = vld [vmem:[%s17009_s7 + $0x764] ss:$16 sps:$4 sm:$0xff]   ;;  %v14240_v54 = vld [vmem:[%s17009_s7 + $0x560] ss:$16 sps:$4 sm:$0xff]  }
 0xa97   :  { %10489 = vmatprep.mubr.bf16.mxu0 %v16365_v58  ;;  %v16375_v45 = vpack.c.bf16 %v8865_v36, %v8865_v36  ;;  %v16397_v51 = vpack.c.bf16 %v8882_v26, %v8882_v26  ;;  %v14243_v36 = vld [vmem:[%s17009_s7 + $0x760] ss:$16 sps:$4 sm:$0xff]   ;;  %v14251_v26 = vld [vmem:[%s17009_s7 + $0x744] ss:$16 sps:$4 sm:$0xff]  }
 0xa98   :  { %10490 = vmatmul.mubr.bf16.vlgmr.msra.gmra.mxu0 %v16370_v59 }
 0xa99   :  { %10540 = vmatpush1.bf16.msra.mxu0 %v14168_v38  ;;  %10530 = vmatprep.mubr.bf16.mxu1 %v16375_v45  ;;  %v14248_v38 = vld [vmem:[%s17009_s7 + $0x544] ss:$16 sps:$4 sm:$0xff]  }
 0xa9a   :  { %10571 = vmatprep.mubr.bf16.mxu0 %v16386_v6  ;;  %10531 = vmatmul.mubr.bf16.vlgmr.msra.gmra.mxu1 %v16384_v4 }
 0xa9b   :  { %10581 = vmatpush1.bf16.msra.mxu1 %v14171_v46  ;;  %10541 = vmatprep.subr.bf16.mxu0 %v14176_v1  ;;  %v14246_v46 = vld [vmem:[%s17009_s7 + $0x540] ss:$16 sps:$4 sm:$0xff]   ;;  %v14254_v1 = vld [vmem:[%s17009_s7 + $0x524] ss:$16 sps:$4 sm:$0xff]  }
 0xa9c   :  { %10612 = vmatprep.mubr.bf16.mxu1 %v16397_v51  ;;  %10582 = vmatprep.subr.bf16.mxu1 %v14179_v63  ;;  %v14249_v63 = vld [vmem:[%s17009_s7 + $0x740] ss:$16 sps:$4 sm:$0xff]  }
 0xa9d   :  { %10542 = vmatpush1.bf16.msra.mxu0 %v14174_v42  ;;  %v14257_v42 = vld [vmem:[%s17009_s7 + $0x724] ss:$16 sps:$4 sm:$0xff]  }
 0xa9e   :  { %10543 = vmatprep.subr.bf16.mxu0 %v14182_v53  ;;  %v14252_v53 = vld [vmem:[%s17009_s7 + $0x520] ss:$16 sps:$4 sm:$0xff]  }
 0xa9f   :  { %10583 = vmatpush1.bf16.msra.mxu1 %v14177_v0  ;;  %v14260_v0 = vld [vmem:[%s17009_s7 + $0x504] ss:$16 sps:$4 sm:$0xff]  }
 0xaa0   :  { %10584 = vmatprep.subr.bf16.mxu1 %v14185_v7  ;;  %v14255_v7 = vld [vmem:[%s17009_s7 + $0x720] ss:$16 sps:$4 sm:$0xff]  }
 0xaa1   :  { %10544 = vmatpush1.bf16.msra.mxu0 %v14180_v8  ;;  %v14263_v8 = vld [vmem:[%s17009_s7 + $0x704] ss:$16 sps:$4 sm:$0xff]  }
 0xaa2   :  { %10545 = vmatprep.subr.bf16.mxu0 %v14188_v9  ;;  %v14258_v9 = vld [vmem:[%s17009_s7 + $0x500] ss:$16 sps:$4 sm:$0xff]  }
 0xaa3   :  { %10585 = vmatpush1.bf16.msra.mxu1 %v14183_v40  ;;  %v14266_v40 = vld [vmem:[%s17009_s7 + $0xec] ss:$16 sps:$4 sm:$0xff]  }
 0xaa4   :  { %10586 = vmatprep.subr.bf16.mxu1 %v14191_v13  ;;  %v14261_v13 = vld [vmem:[%s17009_s7 + $0x700] ss:$16 sps:$4 sm:$0xff]  }
 0xaa5   :  { %10546 = vmatpush1.bf16.msra.mxu0 %v14186_v21  ;;  %v14269_v21 = vld [vmem:[%s17009_s7 + $0x2ec] ss:$16 sps:$4 sm:$0xff]  }
 0xaa6   :  { %10547 = vmatprep.subr.bf16.mxu0 %v14194_v23  ;;  %v14264_v23 = vld [vmem:[%s17009_s7 + $0xe8] ss:$16 sps:$4 sm:$0xff]  }
 0xaa7   :  { %10587 = vmatpush1.bf16.msra.mxu1 %v14189_v14  ;;  %v16582_v14 = vpack.c.bf16 %v16359_v50, %v16359_v50  ;;  %v14275_v50 = vld [vmem:[%s17009_s7 + $0x2cc] ss:$16 sps:$4 sm:$0xff]  }
 0xaa8   :  { %10588 = vmatprep.subr.bf16.mxu1 %v14197_v18  ;;  %v14272_v18 = vld [vmem:[%s17009_s7 + $0xcc] ss:$16 sps:$4 sm:$0xff]  }
 0xaa9   :  { %10548 = vmatpush1.bf16.msra.mxu0 %v14192_v49  ;;  %v14267_v49 = vld [vmem:[%s17009_s7 + $0x2e8] ss:$16 sps:$4 sm:$0xff]  }
 0xaaa   :  { %10549 = vmatprep.subr.bf16.mxu0 %v14200_v19  ;;  %v16592_v19 = vpack.c.bf16 %v16363_v56, %v16363_v56  ;;  %v14278_v56 = vld [vmem:[%s17009_s7 + $0xac] ss:$16 sps:$4 sm:$0xff]  }
 0xaab   :  { %10589 = vmatpush1.bf16.msra.mxu1 %v14195_v60  ;;  %v14270_v60 = vld [vmem:[%s17009_s7 + $0xc8] ss:$16 sps:$4 sm:$0xff]  }
 0xaac   :  { %10590 = vmatprep.subr.bf16.mxu1 %v14203_v10  ;;  %v14273_v10 = vld [vmem:[%s17009_s7 + $0x2c8] ss:$16 sps:$4 sm:$0xff]  }
 0xaad   :  { %10550 = vmatpush1.bf16.msra.mxu0 %v14198_v27  ;;  %v14276_v27 = vld [vmem:[%s17009_s7 + $0xa8] ss:$16 sps:$4 sm:$0xff]  }
 0xaae   :  { %10551 = vmatprep.subr.bf16.mxu0 %v14206_v28  ;;  %v14284_v28 = vld [vmem:[%s17009_s7 + $0x8c] ss:$16 sps:$4 sm:$0xff]  }
 0xaaf   :  { %10591 = vmatpush1.bf16.msra.mxu1 %v14201_v16  ;;  %v14287_v16 = vld [vmem:[%s17009_s7 + $0x28c] ss:$16 sps:$4 sm:$0xff]  }
 0xab0   :  { %10592 = vmatprep.subr.bf16.mxu1 %v14209_v17  ;;  %v14282_v17 = vld [vmem:[%s17009_s7 + $0x88] ss:$16 sps:$4 sm:$0xff]  }
 0xab1   :  { %10552 = vmatpush1.bf16.msra.mxu0 %v14204_v11  ;;  %v14290_v11 = vld [vmem:[%s17009_s7 + $0x6c] ss:$16 sps:$4 sm:$0xff]  }
 0xab2   :  { %10553 = vmatprep.subr.bf16.mxu0 %v14212_v20  ;;  %v14285_v20 = vld [vmem:[%s17009_s7 + $0x288] ss:$16 sps:$4 sm:$0xff]  }
 0xab3   :  { %10593 = vmatpush1.bf16.msra.mxu1 %v14207_v55  ;;  %v14293_v55 = vld [vmem:[%s17009_s7 + $0x26c] ss:$16 sps:$4 sm:$0xff]  }
 0xab4   :  { %10594 = vmatprep.subr.bf16.mxu1 %v14215_v12  ;;  %v14288_v12 = vld [vmem:[%s17009_s7 + $0x68] ss:$16 sps:$4 sm:$0xff]  }
 0xab5   :  { %10554 = vmatpush1.bf16.msra.mxu0 %v14210_v24  ;;  %v14296_v24 = vld [vmem:[%s17009_s7 + $0x4c] ss:$16 sps:$4 sm:$0xff]  }
 0xab6   :  { %10555 = vmatprep.subr.bf16.mxu0 %v14218_v25  ;;  %v14291_v25 = vld [vmem:[%s17009_s7 + $0x268] ss:$16 sps:$4 sm:$0xff]  }
 0xab7   :  { %10595 = vmatpush1.bf16.msra.mxu1 %v14213_v29  ;;  %v14299_v29 = vld [vmem:[%s17009_s7 + $0x24c] ss:$16 sps:$4 sm:$0xff]  }
 0xab8   :  { %10596 = vmatprep.subr.bf16.mxu1 %v14221_v30  ;;  %v14294_v30 = vld [vmem:[%s17009_s7 + $0x48] ss:$16 sps:$4 sm:$0xff]  }
 0xab9   :  { %10556 = vmatpush2.bf16.msra.mxu0 %v14216_v32  ;;  %v14302_v32 = vld [vmem:[%s17009_s7 + $0x2c] ss:$16 sps:$4 sm:$0xff]  }
 0xaba   :  { %10557 = vmatprep.subr.bf16.mxu0 %v14224_v47  ;;  %v14297_v47 = vld [vmem:[%s17009_s7 + $0x248] ss:$16 sps:$4 sm:$0xff]  }
 0xabb   :  { %10597 = vmatpush2.bf16.msra.mxu1 %v14219_v48  ;;  %v14305_v48 = vld [vmem:[%s17009_s7 + $0x22c] ss:$16 sps:$4 sm:$0xff]  }
 0xabc   :  { %10598 = vmatprep.subr.bf16.mxu1 %v14227_v33  ;;  %v14300_v33 = vld [vmem:[%s17009_s7 + $0x28] ss:$16 sps:$4 sm:$0xff]  }
 0xabd   :  { %10558 = vmatpush2.bf16.msra.mxu0 %v14222_v61  ;;  %v14308_v61 = vld [vmem:[%s17009_s7 + $0xc] ss:$16 sps:$4 sm:$0xff]  }
 0xabe   :  { %10559 = vmatprep.subr.bf16.mxu0 %v14230_v62  ;;  %v14303_v62 = vld [vmem:[%s17009_s7 + $0x228] ss:$16 sps:$4 sm:$0xff]  }
 0xabf   :  { %10599 = vmatpush2.bf16.msra.mxu1 %v14225_v3  ;;  %v14311_v3 = vld [vmem:[%s17009_s7 + $0x20c] ss:$16 sps:$4 sm:$0xff]  }
 0xac0   :  { %10600 = vmatprep.subr.bf16.mxu1 %v14233_v22  ;;  %v14306_v22 = vld [vmem:[%s17009_s7 + $0x8] ss:$16 sps:$4 sm:$0xff]  }
 0xac1   :  { %10560 = vmatpush2.bf16.msra.mxu0 %v14228_v31  ;;  %v14314_v31 = vld [vmem:[%s17009_s7 + $0x1ec] ss:$16 sps:$4 sm:$0xff]  }
 0xac2   :  { %10561 = vmatprep.subr.bf16.mxu0 %v14236_v39  ;;  %v14309_v39 = vld [vmem:[%s17009_s7 + $0x208] ss:$16 sps:$4 sm:$0xff]  }
 0xac3   :  { %10601 = vmatpush2.bf16.msra.mxu1 %v14231_v2  ;;  %v14317_v2 = vld [vmem:[%s17009_s7 + $0x3ec] ss:$16 sps:$4 sm:$0xff]  }
 0xac4   :  { %10602 = vmatprep.subr.bf16.mxu1 %v14239_v52  ;;  %v14312_v52 = vld [vmem:[%s17009_s7 + $0x1e8] ss:$16 sps:$4 sm:$0xff]  }
 0xac5   :  { %10562 = vmatpush2.bf16.msra.mxu0 %v14234_v41  ;;  %v14320_v41 = vld [vmem:[%s17009_s7 + $0x1cc] ss:$16 sps:$4 sm:$0xff]  }
 0xac6   :  { %10563 = vmatprep.subr.bf16.mxu0 %v14242_v15  ;;  %v14315_v15 = vld [vmem:[%s17009_s7 + $0x3e8] ss:$16 sps:$4 sm:$0xff]  }
 0xac7   :  { %10603 = vmatpush2.bf16.msra.mxu1 %v14237_v35  ;;  %v14323_v35 = vld [vmem:[%s17009_s7 + $0x3cc] ss:$16 sps:$4 sm:$0xff]  }
 0xac8   :  { %10604 = vmatprep.subr.bf16.mxu1 %v14245_v5  ;;  %v14318_v5 = vld [vmem:[%s17009_s7 + $0x1c8] ss:$16 sps:$4 sm:$0xff]  }
 0xac9   :  { %10564 = vmatpush2.bf16.msra.mxu0 %v14240_v54  ;;  %v14326_v54 = vld [vmem:[%s17009_s7 + $0x1ac] ss:$16 sps:$4 sm:$0xff]  }
 0xaca   :  { %10565 = vmatprep.subr.bf16.mxu0 %v14248_v38  ;;  %v14321_v38 = vld [vmem:[%s17009_s7 + $0x3c8] ss:$16 sps:$4 sm:$0xff]  }
 0xacb   :  { %10605 = vmatpush2.bf16.msra.mxu1 %v14243_v36  ;;  %v14329_v36 = vld [vmem:[%s17009_s7 + $0x3ac] ss:$16 sps:$4 sm:$0xff]  }
 0xacc   :  { %10606 = vmatprep.subr.bf16.mxu1 %v14251_v26  ;;  %v14324_v26 = vld [vmem:[%s17009_s7 + $0x1a8] ss:$16 sps:$4 sm:$0xff]  }
 0xacd   :  { %10566 = vmatpush2.bf16.msra.mxu0 %v14246_v46  ;;  %v14332_v46 = vld [vmem:[%s17009_s7 + $0x18c] ss:$16 sps:$4 sm:$0xff]  }
 0xace   :  { %10567 = vmatprep.subr.bf16.mxu0 %v14254_v1  ;;  %v14327_v1 = vld [vmem:[%s17009_s7 + $0x3a8] ss:$16 sps:$4 sm:$0xff]  }
 0xacf   :  { %10607 = vmatpush2.bf16.msra.mxu1 %v14249_v63  ;;  %v14335_v63 = vld [vmem:[%s17009_s7 + $0x38c] ss:$16 sps:$4 sm:$0xff]  }
 0xad0   :  { %10608 = vmatprep.subr.bf16.mxu1 %v14257_v42  ;;  %v14330_v42 = vld [vmem:[%s17009_s7 + $0x188] ss:$16 sps:$4 sm:$0xff]  }
 0xad1   :  { %10568 = vmatpush2.bf16.msra.mxu0 %v14252_v53  ;;  %v14338_v53 = vld [vmem:[%s17009_s7 + $0x16c] ss:$16 sps:$4 sm:$0xff]  }
 0xad2   :  { %10569 = vmatprep.subr.bf16.mxu0 %v14260_v0  ;;  %v14333_v0 = vld [vmem:[%s17009_s7 + $0x388] ss:$16 sps:$4 sm:$0xff]  }
 0xad3   :  { %10609 = vmatpush2.bf16.msra.mxu1 %v14255_v7  ;;  %v14341_v7 = vld [vmem:[%s17009_s7 + $0x36c] ss:$16 sps:$4 sm:$0xff]  }
 0xad4   :  { %10610 = vmatprep.subr.bf16.mxu1 %v14263_v8  ;;  %v14336_v8 = vld [vmem:[%s17009_s7 + $0x168] ss:$16 sps:$4 sm:$0xff]  }
 0xad5   :  { %10570 = vmatpush2.bf16.msra.mxu0 %v14258_v9  ;;  %v14344_v9 = vld [vmem:[%s17009_s7 + $0x14c] ss:$16 sps:$4 sm:$0xff]  }
 0xad6   :  { %10621 = vmatprep.subr.bf16.mxu0 %v14266_v40  ;;  %v14339_v40 = vld [vmem:[%s17009_s7 + $0x368] ss:$16 sps:$4 sm:$0xff]  }
 0xad7   :  { %10611 = vmatpush2.bf16.msra.mxu1 %v14261_v13  ;;  %v14347_v13 = vld [vmem:[%s17009_s7 + $0x34c] ss:$16 sps:$4 sm:$0xff]  }
 0xad8   :  { %10572 = vmatmul.mubr.bf16.vlgmr.msra.gmra.mxu0 %v16582_v14  ;;  %10662 = vmatprep.subr.bf16.mxu1 %v14269_v21  ;;  %v14342_v21 = vld [vmem:[%s17009_s7 + $0x148] ss:$16 sps:$4 sm:$0xff]  }
 0xad9   :  { %10622 = vmatpush1.bf16.msra.mxu0 %v14264_v23  ;;  %10653 = vmatprep.mubr.bf16.mxu0 %v16365_v58  ;;  %v14281_v58 = vld [vmem:[%s17009_s7 + $0x2ac] ss:$16 sps:$4 sm:$0xff]  }
 0xada   :  { %10613 = vmatmul.mubr.bf16.vlgmr.msra.gmra.mxu1 %v16592_v19  ;;  %10623 = vmatprep.subr.bf16.mxu0 %v14272_v18  ;;  %v14350_v23 = vld [vmem:[%s17009_s7 + $0x12c] ss:$16 sps:$4 sm:$0xff]   ;;  %v14345_v18 = vld [vmem:[%s17009_s7 + $0x348] ss:$16 sps:$4 sm:$0xff]  }
 0xadb   :  { %10663 = vmatpush1.bf16.msra.mxu1 %v14267_v49  ;;  %10694 = vmatprep.mubr.bf16.mxu1 %v16375_v45  ;;  %v14279_v45 = vld [vmem:[%s17009_s7 + $0x2a8] ss:$16 sps:$4 sm:$0xff]   ;;  %v14353_v49 = vld [vmem:[%s17009_s7 + $0x32c] ss:$16 sps:$4 sm:$0xff]  }
 0xadc   :  { %10664 = vmatprep.subr.bf16.mxu1 %v14275_v50  ;;  %v14348_v50 = vld [vmem:[%s17009_s7 + $0x128] ss:$16 sps:$4 sm:$0xff]  }
 0xadd   :  { %10624 = vmatpush1.bf16.msra.mxu0 %v14270_v60  ;;  %v14356_v60 = vld [vmem:[%s17009_s7 + $0x10c] ss:$16 sps:$4 sm:$0xff]  }
 0xade   :  { %10625 = vmatprep.subr.bf16.mxu0 %v14278_v56  ;;  %v14351_v56 = vld [vmem:[%s17009_s7 + $0x328] ss:$16 sps:$4 sm:$0xff]  }
 0xadf   :  { %10665 = vmatpush1.bf16.msra.mxu1 %v14273_v10  ;;  %v14359_v10 = vld [vmem:[%s17009_s7 + $0x30c] ss:$16 sps:$4 sm:$0xff]  }
 0xae0   :  { %10666 = vmatprep.subr.bf16.mxu1 %v14281_v58  ;;  %v14354_v58 = vld [vmem:[%s17009_s7 + $0x108] ss:$16 sps:$4 sm:$0xff]  }
 0xae1   :  { %10626 = vmatpush1.bf16.msra.mxu0 %v14276_v27  ;;  %v14362_v27 = vld [vmem:[%s17009_s7 + $0x4ec] ss:$16 sps:$4 sm:$0xff]  }
 0xae2   :  { %10627 = vmatprep.subr.bf16.mxu0 %v14284_v28  ;;  %v14357_v28 = vld [vmem:[%s17009_s7 + $0x308] ss:$16 sps:$4 sm:$0xff]  }
 0xae3   :  { %10667 = vmatpush1.bf16.msra.mxu1 %v14279_v45  ;;  %v14365_v45 = vld [vmem:[%s17009_s7 + $0x6ec] ss:$16 sps:$4 sm:$0xff]  }
 0xae4   :  { %10668 = vmatprep.subr.bf16.mxu1 %v14287_v16  ;;  %v14360_v16 = vld [vmem:[%s17009_s7 + $0x4e8] ss:$16 sps:$4 sm:$0xff]  }
 0xae5   :  { %10628 = vmatpush1.bf16.msra.mxu0 %v14282_v17  ;;  %v14368_v17 = vld [vmem:[%s17009_s7 + $0x4cc] ss:$16 sps:$4 sm:$0xff]  }
 0xae6   :  { %10629 = vmatprep.subr.bf16.mxu0 %v14290_v11  ;;  %v14363_v11 = vld [vmem:[%s17009_s7 + $0x6e8] ss:$16 sps:$4 sm:$0xff]  }
 0xae7   :  { %10669 = vmatpush1.bf16.msra.mxu1 %v14285_v20  ;;  %v14371_v20 = vld [vmem:[%s17009_s7 + $0x6cc] ss:$16 sps:$4 sm:$0xff]  }
 0xae8   :  { %10670 = vmatprep.subr.bf16.mxu1 %v14293_v55  ;;  %v14366_v55 = vld [vmem:[%s17009_s7 + $0x4c8] ss:$16 sps:$4 sm:$0xff]  }
 0xae9   :  { %10630 = vmatpush1.bf16.msra.mxu0 %v14288_v12  ;;  %v14374_v12 = vld [vmem:[%s17009_s7 + $0x4ac] ss:$16 sps:$4 sm:$0xff]  }
 0xaea   :  { %10631 = vmatprep.subr.bf16.mxu0 %v14296_v24  ;;  %v14380_v24 = vld [vmem:[%s17009_s7 + $0x48c] ss:$16 sps:$4 sm:$0xff]  }
 0xaeb   :  { %10671 = vmatpush1.bf16.msra.mxu1 %v14291_v25  ;;  %v14383_v25 = vld [vmem:[%s17009_s7 + $0x68c] ss:$16 sps:$4 sm:$0xff]  }
 0xaec   :  { %10672 = vmatprep.subr.bf16.mxu1 %v14299_v29  ;;  %v14378_v29 = vld [vmem:[%s17009_s7 + $0x488] ss:$16 sps:$4 sm:$0xff]  }
 0xaed   :  { %10632 = vmatpush1.bf16.msra.mxu0 %v14294_v30  ;;  %v14386_v30 = vld [vmem:[%s17009_s7 + $0x46c] ss:$16 sps:$4 sm:$0xff]  }
 0xaee   :  { %10633 = vmatprep.subr.bf16.mxu0 %v14302_v32  ;;  %v14381_v32 = vld [vmem:[%s17009_s7 + $0x688] ss:$16 sps:$4 sm:$0xff]  }
 0xaef   :  { %10673 = vmatpush1.bf16.msra.mxu1 %v14297_v47  ;;  %v14389_v47 = vld [vmem:[%s17009_s7 + $0x66c] ss:$16 sps:$4 sm:$0xff]  }
 0xaf0   :  { %10674 = vmatprep.subr.bf16.mxu1 %v14305_v48  ;;  %v14384_v48 = vld [vmem:[%s17009_s7 + $0x468] ss:$16 sps:$4 sm:$0xff]  }
 0xaf1   :  { %10634 = vmatpush1.bf16.msra.mxu0 %v14300_v33  ;;  %v14392_v33 = vld [vmem:[%s17009_s7 + $0x44c] ss:$16 sps:$4 sm:$0xff]  }
 0xaf2   :  { %10635 = vmatprep.subr.bf16.mxu0 %v14308_v61  ;;  %v14387_v61 = vld [vmem:[%s17009_s7 + $0x668] ss:$16 sps:$4 sm:$0xff]  }
 0xaf3   :  { %10675 = vmatpush1.bf16.msra.mxu1 %v14303_v62  ;;  %v14395_v62 = vld [vmem:[%s17009_s7 + $0x64c] ss:$16 sps:$4 sm:$0xff]  }
 0xaf4   :  { %10676 = vmatprep.subr.bf16.mxu1 %v14311_v3  ;;  %v14390_v3 = vld [vmem:[%s17009_s7 + $0x448] ss:$16 sps:$4 sm:$0xff]  }
 0xaf5   :  { %10636 = vmatpush1.bf16.msra.mxu0 %v14306_v22  ;;  %v14398_v22 = vld [vmem:[%s17009_s7 + $0x42c] ss:$16 sps:$4 sm:$0xff]  }
 0xaf6   :  { %10637 = vmatprep.subr.bf16.mxu0 %v14314_v31  ;;  %v14393_v31 = vld [vmem:[%s17009_s7 + $0x648] ss:$16 sps:$4 sm:$0xff]  }
 0xaf7   :  { %10677 = vmatpush1.bf16.msra.mxu1 %v14309_v39  ;;  %v14401_v39 = vld [vmem:[%s17009_s7 + $0x62c] ss:$16 sps:$4 sm:$0xff]  }
 0xaf8   :  { %10678 = vmatprep.subr.bf16.mxu1 %v14317_v2  ;;  %v14396_v2 = vld [vmem:[%s17009_s7 + $0x428] ss:$16 sps:$4 sm:$0xff]  }
 0xaf9   :  { %10638 = vmatpush2.bf16.msra.mxu0 %v14312_v52  ;;  %v14404_v52 = vld [vmem:[%s17009_s7 + $0x40c] ss:$16 sps:$4 sm:$0xff]  }
 0xafa   :  { %10639 = vmatprep.subr.bf16.mxu0 %v14320_v41  ;;  %v14399_v41 = vld [vmem:[%s17009_s7 + $0x628] ss:$16 sps:$4 sm:$0xff]  }
 0xafb   :  { %10679 = vmatpush2.bf16.msra.mxu1 %v14315_v15  ;;  %v14407_v15 = vld [vmem:[%s17009_s7 + $0x60c] ss:$16 sps:$4 sm:$0xff]  }
 0xafc   :  { %10680 = vmatprep.subr.bf16.mxu1 %v14323_v35  ;;  %v14402_v35 = vld [vmem:[%s17009_s7 + $0x408] ss:$16 sps:$4 sm:$0xff]  }
 0xafd   :  { %10640 = vmatpush2.bf16.msra.mxu0 %v14318_v5  ;;  %v14410_v5 = vld [vmem:[%s17009_s7 + $0x5ec] ss:$16 sps:$4 sm:$0xff]  }
 0xafe   :  { %10641 = vmatprep.subr.bf16.mxu0 %v14326_v54  ;;  %v14405_v54 = vld [vmem:[%s17009_s7 + $0x608] ss:$16 sps:$4 sm:$0xff]  }
 0xaff   :  { %10681 = vmatpush2.bf16.msra.mxu1 %v14321_v38  ;;  %v14413_v38 = vld [vmem:[%s17009_s7 + $0x7ec] ss:$16 sps:$4 sm:$0xff]  }
 0xb00   :  { %10682 = vmatprep.subr.bf16.mxu1 %v14329_v36  ;;  %v14408_v36 = vld [vmem:[%s17009_s7 + $0x5e8] ss:$16 sps:$4 sm:$0xff]  }
 0xb01   :  { %10642 = vmatpush2.bf16.msra.mxu0 %v14324_v26  ;;  %v14416_v26 = vld [vmem:[%s17009_s7 + $0x5cc] ss:$16 sps:$4 sm:$0xff]  }
 0xb02   :  { %10643 = vmatprep.subr.bf16.mxu0 %v14332_v46  ;;  %v14411_v46 = vld [vmem:[%s17009_s7 + $0x7e8] ss:$16 sps:$4 sm:$0xff]  }
 0xb03   :  { %10683 = vmatpush2.bf16.msra.mxu1 %v14327_v1  ;;  %v14419_v1 = vld [vmem:[%s17009_s7 + $0x7cc] ss:$16 sps:$4 sm:$0xff]  }
 0xb04   :  { %10684 = vmatprep.subr.bf16.mxu1 %v14335_v63  ;;  %v14414_v63 = vld [vmem:[%s17009_s7 + $0x5c8] ss:$16 sps:$4 sm:$0xff]  }
 0xb05   :  { %10644 = vmatpush2.bf16.msra.mxu0 %v14330_v42  ;;  %v14422_v42 = vld [vmem:[%s17009_s7 + $0x5ac] ss:$16 sps:$4 sm:$0xff]  }
 0xb06   :  { %10645 = vmatprep.subr.bf16.mxu0 %v14338_v53  ;;  %v14417_v53 = vld [vmem:[%s17009_s7 + $0x7c8] ss:$16 sps:$4 sm:$0xff]  }
 0xb07   :  { %10685 = vmatpush2.bf16.msra.mxu1 %v14333_v0  ;;  %v14425_v0 = vld [vmem:[%s17009_s7 + $0x7ac] ss:$16 sps:$4 sm:$0xff]  }
 0xb08   :  { %10686 = vmatprep.subr.bf16.mxu1 %v14341_v7  ;;  %v14420_v7 = vld [vmem:[%s17009_s7 + $0x5a8] ss:$16 sps:$4 sm:$0xff]  }
 0xb09   :  { %10646 = vmatpush2.bf16.msra.mxu0 %v14336_v8  ;;  %v14428_v8 = vld [vmem:[%s17009_s7 + $0x58c] ss:$16 sps:$4 sm:$0xff]  }
 0xb0a   :  { %10647 = vmatprep.subr.bf16.mxu0 %v14344_v9  ;;  %v14423_v9 = vld [vmem:[%s17009_s7 + $0x7a8] ss:$16 sps:$4 sm:$0xff]  }
 0xb0b   :  { %10687 = vmatpush2.bf16.msra.mxu1 %v14339_v40  ;;  %v14431_v40 = vld [vmem:[%s17009_s7 + $0x78c] ss:$16 sps:$4 sm:$0xff]  }
 0xb0c   :  { %10688 = vmatprep.subr.bf16.mxu1 %v14347_v13  ;;  %v14426_v13 = vld [vmem:[%s17009_s7 + $0x588] ss:$16 sps:$4 sm:$0xff]  }
 0xb0d   :  { %10648 = vmatpush2.bf16.msra.mxu0 %v14342_v21  ;;  %v14434_v21 = vld [vmem:[%s17009_s7 + $0x56c] ss:$16 sps:$4 sm:$0xff]  }
 0xb0e   :  { %10649 = vmatprep.subr.bf16.mxu0 %v14350_v23  ;;  %v14429_v23 = vld [vmem:[%s17009_s7 + $0x788] ss:$16 sps:$4 sm:$0xff]  }
 0xb0f   :  { %10689 = vmatpush2.bf16.msra.mxu1 %v14345_v18  ;;  %v14437_v18 = vld [vmem:[%s17009_s7 + $0x76c] ss:$16 sps:$4 sm:$0xff]  }
 0xb10   :  { %10690 = vmatprep.subr.bf16.mxu1 %v14353_v49  ;;  %v14432_v49 = vld [vmem:[%s17009_s7 + $0x568] ss:$16 sps:$4 sm:$0xff]  }
 0xb11   :  { %10650 = vmatpush2.bf16.msra.mxu0 %v14348_v50  ;;  %v14440_v50 = vld [vmem:[%s17009_s7 + $0x54c] ss:$16 sps:$4 sm:$0xff]  }
 0xb12   :  { %10651 = vmatprep.subr.bf16.mxu0 %v14356_v60  ;;  %v14435_v60 = vld [vmem:[%s17009_s7 + $0x768] ss:$16 sps:$4 sm:$0xff]  }
 0xb13   :  { %10691 = vmatpush2.bf16.msra.mxu1 %v14351_v56  ;;  %v14443_v56 = vld [vmem:[%s17009_s7 + $0x74c] ss:$16 sps:$4 sm:$0xff]  }
 0xb14   :  { %10692 = vmatprep.subr.bf16.mxu1 %v14359_v10  ;;  %v14438_v10 = vld [vmem:[%s17009_s7 + $0x548] ss:$16 sps:$4 sm:$0xff]  }
 0xb15   :  { %10652 = vmatpush2.bf16.msra.mxu0 %v14354_v58  ;;  %v14446_v58 = vld [vmem:[%s17009_s7 + $0x52c] ss:$16 sps:$4 sm:$0xff]  }
 0xb16   :  { %10703 = vmatprep.subr.bf16.mxu0 %v14362_v27  ;;  %v14441_v27 = vld [vmem:[%s17009_s7 + $0x748] ss:$16 sps:$4 sm:$0xff]  }
 0xb17   :  { %10693 = vmatpush2.bf16.msra.mxu1 %v14357_v28  ;;  %v14449_v28 = vld [vmem:[%s17009_s7 + $0x72c] ss:$16 sps:$4 sm:$0xff]  }
 0xb18   :  { %10654 = vmatmul.mubr.bf16.vlgmr.msra.gmra.mxu0 %v16370_v59  ;;  %10744 = vmatprep.subr.bf16.mxu1 %v14365_v45  ;;  %v14369_v59 = vld [vmem:[%s17009_s7 + $0x6c8] ss:$16 sps:$4 sm:$0xff]  }
 0xb19   :  { %10704 = vmatpush1.bf16.msra.mxu0 %v14360_v16  ;;  %10735 = vmatprep.mubr.bf16.mxu0 %v16386_v6  ;;  %v14377_v6 = vld [vmem:[%s17009_s7 + $0x6ac] ss:$16 sps:$4 sm:$0xff]   ;;  %v14444_v45 = vld [vmem:[%s17009_s7 + $0x528] ss:$16 sps:$4 sm:$0xff]  }
 0xb1a   :  { %10695 = vmatmul.mubr.bf16.vlgmr.msra.gmra.mxu1 %v16384_v4  ;;  %10705 = vmatprep.subr.bf16.mxu0 %v14368_v17  ;;  %v14372_v4 = vld [vmem:[%s17009_s7 + $0x4a8] ss:$16 sps:$4 sm:$0xff]   ;;  %v14452_v16 = vld [vmem:[%s17009_s7 + $0x50c] ss:$16 sps:$4 sm:$0xff]  }
 0xb1b   :  { %10745 = vmatpush1.bf16.msra.mxu1 %v14363_v11  ;;  %10776 = vmatprep.mubr.bf16.mxu1 %v16397_v51  ;;  %v14375_v51 = vld [vmem:[%s17009_s7 + $0x6a8] ss:$16 sps:$4 sm:$0xff]   ;;  %v14455_v11 = vld [vmem:[%s17009_s7 + $0x70c] ss:$16 sps:$4 sm:$0xff]  }
 0xb1c   :  { %10746 = vmatprep.subr.bf16.mxu1 %v14371_v20  ;;  %v14447_v17 = vld [vmem:[%s17009_s7 + $0x728] ss:$16 sps:$4 sm:$0xff]  }
 0xb1d   :  { %10706 = vmatpush1.bf16.msra.mxu0 %v14366_v55  ;;  %v14450_v20 = vld [vmem:[%s17009_s7 + $0x508] ss:$16 sps:$4 sm:$0xff]   ;;  %v14458_v55 = vld [vmem:[#allocation6 + $0x74] ss:$8 sps:$4 sm:$0xff]  }
 0xb1e   :  { %10707 = vmatprep.subr.bf16.mxu0 %v14374_v12  ;;  %v14453_v12 = vld [vmem:[%s17009_s7 + $0x708] ss:$16 sps:$4 sm:$0xff]  }
 0xb1f   :  { %10747 = vmatpush1.bf16.msra.mxu1 %v14369_v59  ;;  %v14456_v59 = vld [vmem:[#allocation6 + $0x70] ss:$8 sps:$4 sm:$0xff]  }
 0xb20   :  { %10748 = vmatprep.subr.bf16.mxu1 %v14377_v6  ;;  %v14461_v6 = vld [vmem:[#allocation6 + $0x64] ss:$8 sps:$4 sm:$0xff]  }
 0xb21   :  { %10708 = vmatpush1.bf16.msra.mxu0 %v14372_v4 }
 0xb22   :  { %10709 = vmatprep.subr.bf16.mxu0 %v14380_v24  ;;  %v14459_v24 = vld [vmem:[#allocation6 + $0x60] ss:$8 sps:$4 sm:$0xff]  }
 0xb23   :  { %10749 = vmatpush1.bf16.msra.mxu1 %v14375_v51 }
 0xb24   :  { %10750 = vmatprep.subr.bf16.mxu1 %v14383_v25 }
 0xb25   :  { %10710 = vmatpush1.bf16.msra.mxu0 %v14378_v29  ;;  %v14464_v29 = vld [vmem:[#allocation6 + $0x54] ss:$8 sps:$4 sm:$0xff]  }
 0xb26   :  { %10711 = vmatprep.subr.bf16.mxu0 %v14386_v30 }
 0xb27   :  { %10751 = vmatpush1.bf16.msra.mxu1 %v14381_v32 }
 0xb28   :  { %10752 = vmatprep.subr.bf16.mxu1 %v14389_v47  ;;  %v14462_v47 = vld [vmem:[#allocation6 + $0x50] ss:$8 sps:$4 sm:$0xff]  }
 0xb29   :  { %10712 = vmatpush1.bf16.msra.mxu0 %v14384_v48 }
 0xb2a   :  { %10713 = vmatprep.subr.bf16.mxu0 %v14392_v33 }
 0xb2b   :  { %10753 = vmatpush1.bf16.msra.mxu1 %v14387_v61 }
 0xb2c   :  { %10754 = vmatprep.subr.bf16.mxu1 %v14395_v62  ;;  %v14504_v62 = vld [vmem:[#allocation6 + $0x170] ss:$8 sps:$4 sm:$0xff]  }
 0xb2d   :  { %10714 = vmatpush1.bf16.msra.mxu0 %v14390_v3  ;;  %v14506_v3 = vld [vmem:[#allocation6 + $0x174] ss:$8 sps:$4 sm:$0xff]  }
 0xb2e   :  { %10715 = vmatprep.subr.bf16.mxu0 %v14398_v22  ;;  %v14509_v22 = vld [vmem:[#allocation6 + $0x164] ss:$8 sps:$4 sm:$0xff]  }
 0xb2f   :  { %10755 = vmatpush1.bf16.msra.mxu1 %v14393_v31  ;;  %v14470_v31 = vld [vmem:[#allocation6 + $0x34] ss:$8 sps:$4 sm:$0xff]  }
 0xb30   :  { %10756 = vmatprep.subr.bf16.mxu1 %v14401_v39  ;;  %v14507_v39 = vld [vmem:[#allocation6 + $0x160] ss:$8 sps:$4 sm:$0xff]  }
 0xb31   :  { %10716 = vmatpush1.bf16.msra.mxu0 %v14396_v2  ;;  %v14512_v2 = vld [vmem:[#allocation6 + $0x154] ss:$8 sps:$4 sm:$0xff]  }
 0xb32   :  { %10717 = vmatprep.subr.bf16.mxu0 %v14404_v52  ;;  %v14468_v52 = vld [vmem:[#allocation6 + $0x30] ss:$8 sps:$4 sm:$0xff]  }
 0xb33   :  { %10757 = vmatpush1.bf16.msra.mxu1 %v14399_v41  ;;  %v14473_v41 = vld [vmem:[#allocation6 + $0x24] ss:$8 sps:$4 sm:$0xff]  }
 0xb34   :  { %10758 = vmatprep.subr.bf16.mxu1 %v14407_v15  ;;  %v14510_v15 = vld [vmem:[#allocation6 + $0x150] ss:$8 sps:$4 sm:$0xff]  }
 0xb35   :  { %10718 = vmatpush1.bf16.msra.mxu0 %v14402_v35  ;;  %v14515_v35 = vld [vmem:[#allocation6 + $0x144] ss:$8 sps:$4 sm:$0xff]  }
 0xb36   :  { %10719 = vmatprep.subr.bf16.mxu0 %v14410_v5  ;;  %v14471_v5 = vld [vmem:[#allocation6 + $0x20] ss:$8 sps:$4 sm:$0xff]  }
 0xb37   :  { %10759 = vmatpush1.bf16.msra.mxu1 %v14405_v54  ;;  %v14476_v54 = vld [vmem:[#allocation6 + $0x14] ss:$8 sps:$4 sm:$0xff]  }
 0xb38   :  { %10760 = vmatprep.subr.bf16.mxu1 %v14413_v38  ;;  %v14513_v38 = vld [vmem:[#allocation6 + $0x140] ss:$8 sps:$4 sm:$0xff]  }
 0xb39   :  { %10720 = vmatpush2.bf16.msra.mxu0 %v14408_v36  ;;  %v14518_v36 = vld [vmem:[#allocation6 + $0x134] ss:$8 sps:$4 sm:$0xff]  }
 0xb3a   :  { %10721 = vmatprep.subr.bf16.mxu0 %v14416_v26  ;;  %v14474_v26 = vld [vmem:[#allocation6 + $0x10] ss:$8 sps:$4 sm:$0xff]  }
 0xb3b   :  { %10761 = vmatpush2.bf16.msra.mxu1 %v14411_v46  ;;  %v14479_v46 = vld [vmem:[#allocation6 + $0x4] ss:$8 sps:$4 sm:$0xff]  }
 0xb3c   :  { %10762 = vmatprep.subr.bf16.mxu1 %v14419_v1  ;;  %v14516_v1 = vld [vmem:[#allocation6 + $0x130] ss:$8 sps:$4 sm:$0xff]  }
 0xb3d   :  { %10722 = vmatpush2.bf16.msra.mxu0 %v14414_v63  ;;  %v14521_v63 = vld [vmem:[#allocation6 + $0x124] ss:$8 sps:$4 sm:$0xff]  }
 0xb3e   :  { %10723 = vmatprep.subr.bf16.mxu0 %v14422_v42  ;;  %v14477_v42 = vld [vmem:[#allocation6] ss:$8 sps:$4 sm:$0xff]  }
 0xb3f   :  { %10763 = vmatpush2.bf16.msra.mxu1 %v14417_v53  ;;  %v14482_v53 = vld [vmem:[#allocation6 + $0xf4] ss:$8 sps:$4 sm:$0xff]  }
 0xb40   :  { %10764 = vmatprep.subr.bf16.mxu1 %v14425_v0  ;;  %v14519_v0 = vld [vmem:[#allocation6 + $0x120] ss:$8 sps:$4 sm:$0xff]  }
 0xb41   :  { %10724 = vmatpush2.bf16.msra.mxu0 %v14420_v7  ;;  %v14524_v7 = vld [vmem:[#allocation6 + $0x114] ss:$8 sps:$4 sm:$0xff]  }
 0xb42   :  { %10725 = vmatprep.subr.bf16.mxu0 %v14428_v8  ;;  %v14480_v8 = vld [vmem:[#allocation6 + $0xf0] ss:$8 sps:$4 sm:$0xff]  }
 0xb43   :  { %10765 = vmatpush2.bf16.msra.mxu1 %v14423_v9  ;;  %v14485_v9 = vld [vmem:[#allocation6 + $0xe4] ss:$8 sps:$4 sm:$0xff]  }
 0xb44   :  { %10766 = vmatprep.subr.bf16.mxu1 %v14431_v40  ;;  %v14522_v40 = vld [vmem:[#allocation6 + $0x110] ss:$8 sps:$4 sm:$0xff]  }
 0xb45   :  { %10726 = vmatpush2.bf16.msra.mxu0 %v14426_v13  ;;  %v14527_v13 = vld [vmem:[#allocation6 + $0x104] ss:$8 sps:$4 sm:$0xff]  }
 0xb46   :  { %10727 = vmatprep.subr.bf16.mxu0 %v14434_v21  ;;  %v14483_v21 = vld [vmem:[#allocation6 + $0xe0] ss:$8 sps:$4 sm:$0xff]  }
 0xb47   :  { %10767 = vmatpush2.bf16.msra.mxu1 %v14429_v23  ;;  %v14488_v23 = vld [vmem:[#allocation6 + $0xd4] ss:$8 sps:$4 sm:$0xff]  }
 0xb48   :  { %10768 = vmatprep.subr.bf16.mxu1 %v14437_v18  ;;  %v14525_v18 = vld [vmem:[#allocation6 + $0x100] ss:$8 sps:$4 sm:$0xff]  }
 0xb49   :  { %10728 = vmatpush2.bf16.msra.mxu0 %v14432_v49  ;;  %v14530_v49 = vld [vmem:[#allocation6 + $0x1f4] ss:$8 sps:$4 sm:$0xff]  }
 0xb4a   :  { %10729 = vmatprep.subr.bf16.mxu0 %v14440_v50  ;;  %v14486_v50 = vld [vmem:[#allocation6 + $0xd0] ss:$8 sps:$4 sm:$0xff]  }
 0xb4b   :  { %10769 = vmatpush2.bf16.msra.mxu1 %v14435_v60  ;;  %v14491_v60 = vld [vmem:[#allocation6 + $0xc4] ss:$8 sps:$4 sm:$0xff]  }
 0xb4c   :  { %10770 = vmatprep.subr.bf16.mxu1 %v14443_v56  ;;  %v14528_v56 = vld [vmem:[#allocation6 + $0x1f0] ss:$8 sps:$4 sm:$0xff]  }
 0xb4d   :  { %10730 = vmatpush2.bf16.msra.mxu0 %v14438_v10  ;;  %v14533_v10 = vld [vmem:[#allocation6 + $0x1e4] ss:$8 sps:$4 sm:$0xff]  }
 0xb4e   :  { %10731 = vmatprep.subr.bf16.mxu0 %v14446_v58  ;;  %v14489_v58 = vld [vmem:[#allocation6 + $0xc0] ss:$8 sps:$4 sm:$0xff]  }
 0xb4f   :  { %10771 = vmatpush2.bf16.msra.mxu1 %v14441_v27  ;;  %v14494_v27 = vld [vmem:[#allocation6 + $0xb4] ss:$8 sps:$4 sm:$0xff]  }
 0xb50   :  { %10772 = vmatprep.subr.bf16.mxu1 %v14449_v28  ;;  %v14531_v28 = vld [vmem:[#allocation6 + $0x1e0] ss:$8 sps:$4 sm:$0xff]  }
 0xb51   :  { %10732 = vmatpush2.bf16.msra.mxu0 %v14444_v45  ;;  %v14536_v45 = vld [vmem:[#allocation6 + $0x1d4] ss:$8 sps:$4 sm:$0xff]  }
 0xb52   :  { %10733 = vmatprep.subr.bf16.mxu0 %v14452_v16  ;;  %v14492_v16 = vld [vmem:[#allocation6 + $0xb0] ss:$8 sps:$4 sm:$0xff]  }
 0xb53   :  { %10773 = vmatpush2.bf16.msra.mxu1 %v14447_v17  ;;  %v14497_v17 = vld [vmem:[#allocation6 + $0xa4] ss:$8 sps:$4 sm:$0xff]  }
 0xb54   :  { %10774 = vmatprep.subr.bf16.mxu1 %v14455_v11  ;;  %v14534_v11 = vld [vmem:[#allocation6 + $0x1d0] ss:$8 sps:$4 sm:$0xff]  }
 0xb55   :  { %10734 = vmatpush2.bf16.msra.mxu0 %v14450_v20  ;;  %v14539_v20 = vld [vmem:[#allocation6 + $0x1c4] ss:$8 sps:$4 sm:$0xff]  }
 0xb56   :  { %11189 = vmatprep.subr.bf16.mxu0 %v14458_v55  ;;  %v14495_v55 = vld [vmem:[#allocation6 + $0xa0] ss:$8 sps:$4 sm:$0xff]  }
 0xb57   :  { %10775 = vmatpush2.bf16.msra.mxu1 %v14453_v12  ;;  %v14500_v12 = vld [vmem:[#allocation6 + $0x94] ss:$8 sps:$4 sm:$0xff]  }
 0xb58   :  { %10736 = vmatmul.mubr.bf16.vlgmr.msra.gmra.mxu0 %v16582_v14  ;;  %v16972_v4 = vpop.f32.mrf.mxu0  ;;  %v14467_v14 = vld [vmem:[#allocation6 + $0x44] ss:$8 sps:$4 sm:$0xff]   ;;  %11230 = vmatprep.subr.bf16.mxu1 %v14506_v3 }
 0xb59   :  { %11190 = vmatpush1.bf16.msra.mxu0 %v14456_v59  ;;  %v14537_v59 = vld [vmem:[#allocation6 + $0x1c0] ss:$8 sps:$4 sm:$0xff]   ;;  %v14545_v3 = vld [vmem:[#allocation6 + $0x1a4] ss:$8 sps:$4 sm:$0xff]  }
 0xb5a   :  { %10777 = vmatmul.mubr.bf16.vlgmr.msra.gmra.mxu1 %v16592_v19  ;;  %v16975_v51 = vpop.f32.mrf.mxu0  ;;  %v16977_v25 = vpop.f32.mrf.mxu1  ;;  %11191 = vmatprep.subr.bf16.mxu0 %v14461_v6  ;;  %v14465_v19 = vld [vmem:[#allocation6 + $0x40] ss:$8 sps:$4 sm:$0xff]   ;;  %v9155_v6 = vld [vmem:[%s17010_s8] sm:$0xf] }
 0xb5b   :  { %11231 = vmatpush1.bf16.msra.mxu1 %v14504_v62 }
 0xb5c   :  { %v10495_v30 = vpop.f32.mrf.mxu0  ;;  %v16979_v32 = vpop.f32.mrf.mxu1  ;;  %11232 = vmatprep.subr.bf16.mxu1 %v14509_v22  ;;  %v14543_v22 = vld [vmem:[#allocation6 + $0x1a0] ss:$8 sps:$4 sm:$0xff]  }
 0xb5d   :  { %11192 = vmatpush1.bf16.msra.mxu0 %v14459_v24  ;;  %v14542_v24 = vld [vmem:[#allocation6 + $0x1b4] ss:$8 sps:$4 sm:$0xff]   ;;  %v14503_v30 = vld [vmem:[#allocation6 + $0x84] ss:$8 sps:$4 sm:$0xff]  }
 0xb5e   :  { %v10496_v48 = vpop.f32.mrf.mxu0  ;;  %v10536_v33 = vpop.f32.mrf.mxu1  ;;  %11193 = vmatprep.subr.bf16.mxu0 %v14464_v29  ;;  %v14498_v29 = vld [vmem:[#allocation6 + $0x90] ss:$8 sps:$4 sm:$0xff]  }
 0xb5f   :  { %11233 = vmatpush1.bf16.msra.mxu1 %v14507_v39  ;;  %v14540_v48 = vld [vmem:[#allocation6 + $0x1b0] ss:$8 sps:$4 sm:$0xff]   ;;  %v9164_v33 = vrot.slane %v9155_v6, %v16337_v43 }
 0xb60   :  { %v10537_v61 = vpop.f32.mrf.mxu1  ;;  %11234 = vmatprep.subr.bf16.mxu1 %v14512_v2 }
 0xb61   :  { %11194 = vmatpush1.bf16.msra.mxu0 %v14462_v47  ;;  %v9160_v47 = vrot.slane %v9155_v6, %v16334_v37  ;;  %v10494_v62 = vadd.f32 %v16975_v51, %v9164_v33  ;;  %v10857_v33 = vld [vmem:[%s17012_s10] sm:$0x3]  ;;  %s14592_s10 = scalar_lea.vmem %s11292_s27, 64 }
 0xb62   :  { %11195 = vmatprep.subr.bf16.mxu0 %v14467_v14  ;;  %v14501_v14 = vld [vmem:[#allocation6 + $0x80] ss:$8 sps:$4 sm:$0xff]   ;;  %p14593_p10 = scmp.ne.s32.totalorder %s11292_s27, %s14592_s10  ;;  %p14598_p12 = scmp.lt.s32.totalorder %s14592_s10, %s14592_s10 }
 0xb63   :  { %11235 = vmatpush1.bf16.msra.mxu1 %v14510_v15  ;;  %v10492_v61 = vadd.f32 %v16972_v4, %v9160_v47  ;;  %v10535_v39 = vadd.f32 %v16979_v32, %v10494_v62  ;;  %v14548_v15 = vld [vmem:[#allocation6 + $0x194] ss:$8 sps:$4 sm:$0xff]   ;;  %v14546_v4 = vld [vmem:[#allocation6 + $0x190] ss:$8 sps:$4 sm:$0xff]  }
 0xb64   :  { %11236 = vmatprep.subr.bf16.mxu1 %v14515_v35  ;;  %p14599_p13 = por %p14598_p12, %p14597_p11 }
 0xb65   :  { %11196 = vmatpush1.bf16.msra.mxu0 %v14465_v19  ;;  %v10533_v19 = vadd.f32 %v16977_v25, %v10492_v61  ;;  %v10866_v61 = vrot.slane %v10857_v33, %v16337_v43 }
 0xb66   :  { %11197 = vmatprep.subr.bf16.mxu0 %v14470_v31  ;;  %p14600_p0 = pnand %p14599_p13, %p14593_p10 }
 0xb67   :  { %11237 = vmatpush1.bf16.msra.mxu1 %v14513_v38 }
 0xb68   :  { %11238 = vmatprep.subr.bf16.mxu1 %v14518_v36 }
 0xb69   :  { %11198 = vmatpush1.bf16.msra.mxu0 %v14468_v52 }
 0xb6a   :  { %11199 = vmatprep.subr.bf16.mxu0 %v14473_v41 }
 0xb6b   :  { %11239 = vmatpush1.bf16.msra.mxu1 %v14516_v1 }
 0xb6c   :  { %11240 = vmatprep.subr.bf16.mxu1 %v14521_v63  ;;  %v14549_v63 = vld [vmem:[#allocation6 + $0x180] ss:$8 sps:$4 sm:$0xff]  }
 0xb6d   :  { %11200 = vmatpush1.bf16.msra.mxu0 %v14471_v5 }
 0xb6e   :  { %11201 = vmatprep.subr.bf16.mxu0 %v14476_v54 }
 0xb6f   :  { %11241 = vmatpush1.bf16.msra.mxu1 %v14519_v0 }
 0xb70   :  { %11242 = vmatprep.subr.bf16.mxu1 %v14524_v7 }
 0xb71   :  { %11202 = vmatpush1.bf16.msra.mxu0 %v14474_v26 }
 0xb72   :  { %11203 = vmatprep.subr.bf16.mxu0 %v14479_v46  ;;  %v14551_v46 = vld [vmem:[#allocation6 + $0x184] ss:$8 sps:$4 sm:$0xff]  }
 0xb73   :  { %11243 = vmatpush1.bf16.msra.mxu1 %v14522_v40 }
 0xb74   :  { %11244 = vmatprep.subr.bf16.mxu1 %v14527_v13 }
 0xb75   :  { %11204 = vmatpush1.bf16.msra.mxu0 %v14477_v42 }
 0xb76   :  { %11205 = vmatprep.subr.bf16.mxu0 %v14482_v53 }
 0xb77   :  { %11245 = vmatpush1.bf16.msra.mxu1 %v14525_v18  ;;  %v9168_v18 = vrot.slane %v9155_v6, %v8785_v34 }
 0xb78   :  { %11246 = vmatprep.subr.bf16.mxu1 %v14530_v49  ;;  %v9172_v49 = vrot.slane %v9155_v6, %v8789_v44 }
 0xb79   :  { %11206 = vmatpush2.bf16.msra.mxu0 %v14480_v8 }
 0xb7a   :  { %11207 = vmatprep.subr.bf16.mxu0 %v14485_v9 }
 0xb7b   :  { %11247 = vmatpush2.bf16.msra.mxu1 %v14528_v56 }
 0xb7c   :  { %11248 = vmatprep.subr.bf16.mxu1 %v14533_v10 }
 0xb7d   :  { %11208 = vmatpush2.bf16.msra.mxu0 %v14483_v21 }
 0xb7e   :  { %11209 = vmatprep.subr.bf16.mxu0 %v14488_v23 }
 0xb7f   :  { %11249 = vmatpush2.bf16.msra.mxu1 %v14531_v28 }
 0xb80   :  { %11250 = vmatprep.subr.bf16.mxu1 %v14536_v45 }
 0xb81   :  { %11210 = vmatpush2.bf16.msra.mxu0 %v14486_v50 }
 0xb82   :  { %11211 = vmatprep.subr.bf16.mxu0 %v14491_v60 }
 0xb83   :  { %11251 = vmatpush2.bf16.msra.mxu1 %v14534_v11 }
 0xb84   :  { %11252 = vmatprep.subr.bf16.mxu1 %v14539_v20 }
 0xb85   :  { %11212 = vmatpush2.bf16.msra.mxu0 %v14489_v58 }
 0xb86   :  { %11213 = vmatprep.subr.bf16.mxu0 %v14494_v27 }
 0xb87   :  { %11253 = vmatpush2.bf16.msra.mxu1 %v14537_v59 }
 0xb88   :  { %11254 = vmatprep.subr.bf16.mxu1 %v14542_v24 }
 0xb89   :  { %11214 = vmatpush2.bf16.msra.mxu0 %v14492_v16 }
 0xb8a   :  { %11215 = vmatprep.subr.bf16.mxu0 %v14497_v17 }
 0xb8b   :  { %11255 = vmatpush2.bf16.msra.mxu1 %v14540_v48 }
 0xb8c   :  { %11256 = vmatprep.subr.bf16.mxu1 %v14545_v3 }
 0xb8d   :  { %11216 = vmatpush2.bf16.msra.mxu0 %v14495_v55 }
 0xb8e   :  { %11217 = vmatprep.subr.bf16.mxu0 %v14500_v12 }
 0xb8f   :  { %11257 = vmatpush2.bf16.msra.mxu1 %v14543_v22 }
 0xb90   :  { %11258 = vmatprep.subr.bf16.mxu1 %v14548_v15 }
 0xb91   :  { %11218 = vmatpush2.bf16.msra.mxu0 %v14498_v29 }
 0xb92   :  { %11219 = vmatprep.subr.bf16.mxu0 %v14503_v30 }
 0xb93   :  { %11259 = vmatpush2.bf16.msra.mxu1 %v14546_v4 }
 0xb94   :  { %11260 = vmatprep.subr.bf16.mxu1 %v14551_v46 }
 0xb95   :  { %11220 = vmatpush2.bf16.msra.mxu0 %v14501_v14  ;;  %v10862_v14 = vrot.slane %v10857_v33, %v16334_v37 }
 0xb97   :  { %11261 = vmatpush2.bf16.msra.mxu1 %v14549_v63 }
 0xb98   :  { %v10573_v31 = vpop.f32.mrf.mxu0 }
 0xb99   :  { %v10574_v2 = vadd.f32 %v10573_v31, %v10533_v19 }
 0xb9a   :  { %v10575_v52 = vpop.f32.mrf.mxu0  ;;  %v10614_v41 = vpop.f32.mrf.mxu1 }
 0xb9b   :  { %v10576_v35 = vadd.f32 %v10575_v52, %v10535_v39  ;;  %v10615_v5 = vadd.f32 %v10614_v41, %v10574_v2 }
 0xb9c   :  { %v10577_v54 = vpop.f32.mrf.mxu0  ;;  %v10616_v38 = vpop.f32.mrf.mxu1 }
 0xb9d   :  { %v10617_v51 = vadd.f32 %v10616_v38, %v10576_v35  ;;  %v10785_v36 = vmax.f32 %v10615_v5, 0.0 }
 0xb9e   :  { %v10578_v25 = vpop.f32.mrf.mxu0  ;;  %v10618_v26 = vpop.f32.mrf.mxu1 }
 0xb9f   :  { %v10786_v1 = vmax.f32 %v10617_v51, 0.0  ;;  %v10789_v53 = vpack.c.bf16 %v10785_v36, %v10785_v36 }
 0xba0   :  { %v10619_v32 = vpop.f32.mrf.mxu1 }
 0xba1   :  { %v10790_v42 = vpack.c.bf16 %v10786_v1, %v10786_v1 }
 0xba3   :  { %11221 = vmatprep.mubr.bf16.mxu0 %v10790_v42 }
 0xba4   :  { %11222 = vmatmul.mubr.bf16.vlgmr.msra.gmra.mxu0 %v10789_v53 }
 0xbd8   :  { %v10655_v0 = vpop.f32.mrf.mxu0 }
 0xbd9   :  { %v10656_v50 = vadd.f32 %v10655_v0, %v9168_v18 }
 0xbda   :  { %v10657_v7 = vpop.f32.mrf.mxu0  ;;  %v10696_v8 = vpop.f32.mrf.mxu1 }
 0xbdb   :  { %v10658_v60 = vadd.f32 %v10657_v7, %v9172_v49  ;;  %v10697_v56 = vadd.f32 %v10696_v8, %v10656_v50 }
 0xbdc   :  { %v10659_v9 = vpop.f32.mrf.mxu0  ;;  %v10698_v40 = vpop.f32.mrf.mxu1 }
 0xbdd   :  { %v10699_v58 = vadd.f32 %v10698_v40, %v10658_v60 }
 0xbde   :  { %v10660_v13 = vpop.f32.mrf.mxu0  ;;  %v10700_v21 = vpop.f32.mrf.mxu1 }
 0xbe0   :  { %v10701_v23 = vpop.f32.mrf.mxu1 }
 0xc18   :  { %v10737_v10 = vpop.f32.mrf.mxu0 }
 0xc19   :  { %v10738_v27 = vadd.f32 %v10737_v10, %v10697_v56 }
 0xc1a   :  { %v10739_v28 = vpop.f32.mrf.mxu0  ;;  %v10778_v45 = vpop.f32.mrf.mxu1 }
 0xc1b   :  { %v10740_v16 = vadd.f32 %v10739_v28, %v10699_v58  ;;  %v10779_v17 = vadd.f32 %v10778_v45, %v10738_v27 }
 0xc1c   :  { %v10741_v11 = vpop.f32.mrf.mxu0  ;;  %v10780_v20 = vpop.f32.mrf.mxu1 }
 0xc1d   :  { %v10781_v55 = vadd.f32 %v10780_v20, %v10740_v16  ;;  %v10787_v12 = vmax.f32 %v10779_v17, 0.0 }
 0xc1e   :  { %v10742_v59 = vpop.f32.mrf.mxu0  ;;  %v10782_v24 = vpop.f32.mrf.mxu1 }
 0xc1f   :  { %v10788_v34 = vmax.f32 %v10781_v55, 0.0  ;;  %v10791_v44 = vpack.c.bf16 %v10787_v12, %v10787_v12 }
 0xc20   :  { %v10783_v29 = vpop.f32.mrf.mxu1 }
 0xc21   :  { %v10792_v57 = vpack.c.bf16 %v10788_v34, %v10788_v34 }
 0xc23   :  { %11262 = vmatprep.mubr.bf16.mxu1 %v10792_v57 }
 0xc24   :  { %11263 = vmatmul.mubr.bf16.vlgmr.msra.gmra.mxu1 %v10791_v44 }
 0xc64   :  { %v11223_v6 = vpop.f32.mrf.mxu0 }
 0xc65   :  { %v11224_v62 = vadd.f32 %v11223_v6, %v10862_v14 }
 0xc66   :  { %v11225_v30 = vpop.f32.mrf.mxu0 }
 0xc67   :  { %v11226_v19 = vadd.f32 %v11225_v30, %v10866_v61 }
 0xc68   :  { %v11227_v47 = vpop.f32.mrf.mxu0 }
 0xc6a   :  { %v11228_v48 = vpop.f32.mrf.mxu0 }
 0xce4   :  { %v11264_v3 = vpop.f32.mrf.mxu1 }
 0xce5   :  { %v11265_v22 = vadd.f32 %v11264_v3, %v11224_v62 }
 0xce6   :  { %v11266_v31 = vpop.f32.mrf.mxu1 }
 0xce7   :  { %v11267_v39 = vadd.f32 %v11266_v31, %v11226_v19  ;;  %v11271_v52 = vmax.f32 %v11265_v22, 0.0 }
 0xce8   :  { %v11268_v2 = vpop.f32.mrf.mxu1 }
 0xce9   :  { %v11272_v41 = vmax.f32 %v11267_v39, 0.0 }
 0xcea   :  { %v11269_v15 = vpop.f32.mrf.mxu1 }
 0xceb   :  { %v11275_v35 = vcombine.low %v11271_v52, %v11272_v41 }
 0xced   :  { %12799 = vst.sshfl [vmem:[#allocation8] sm:$0x33 pattern:$0x76325410] %v11275_v35 }
 0xcee   :  { %14603 = shalt.err (!%p14600_p0)
}
 0xcef   :  { %11294 = dma.vmem_to_hbm [thread:$0]  %s11292_s27, 64, %s17013_s11, [#allocation5]  }
 0xcf0   :  { %14616 = dma.done.wait [#allocation5], 64  }
 0xcf1   :  { %14617 = vsyncadd [#allocation5], 4294967232 }
 0xcf2   :  { %11298 = vsyncpa [#allocation4], 1 }
 0xcf3   :  { %11299 = vsyncpa [#allocation7], 1 }
 0xcf4   :  { %11300 = vsyncpa [#allocation5], 1 }

</bundles_post_ra>
